<compile_context>
chip_gen: v7x
topology: tpu7x:2x2x1
jax: 0.10.0
libtpu: 0.0.40
codegen_flags: <defaults>
</compile_context>

<pallas_src>
import jax
import jax.numpy as jnp
from jax import lax
from jax.experimental import pallas as pl
from jax.experimental.pallas import tpu as pltpu


# ----------------------------------------------------------------------------
# JAX glue: bilinear x2 upsample with align_corners=True (separable matmuls),
# producing NHWC directly.
# ----------------------------------------------------------------------------
def _interp_matrix(n_in, n_out):
    if n_in == 1:
        return jnp.ones((n_out, 1), jnp.float32)
    coords = jnp.arange(n_out, dtype=jnp.float32) * (n_in - 1) / (n_out - 1)
    lo = jnp.clip(jnp.floor(coords).astype(jnp.int32), 0, n_in - 1)
    hi = jnp.clip(lo + 1, 0, n_in - 1)
    frac = coords - lo.astype(jnp.float32)
    rows = jnp.arange(n_out)
    m = jnp.zeros((n_out, n_in), jnp.float32)
    m = m.at[rows, lo].add(1.0 - frac)
    m = m.at[rows, hi].add(frac)
    return m


def _bilinear_up_x2_nhwc(x_nchw):
    _, _, h, w = x_nchw.shape
    mh = _interp_matrix(h, 2 * h)
    mw = _interp_matrix(w, 2 * w)
    # output is NHWC directly (no separate transpose pass)
    return jnp.einsum("ah,nchw,bw->nabc", mh, x_nchw, mw)


# ----------------------------------------------------------------------------
# Kernel A: conv1 with the channel-concat fused via split weights,
#           plus per-image BN statistics (sum, sum of squares).
#   x2_ref : (H+2, W+2, C2)  bf16   (skip connection, halo-padded)
#   x1_ref : (H+2, W+2, C1)  bf16   (upsampled x1, halo-padded)
#   wa_ref : (3, 3, C2, Cmid) bf16  (conv1 weight rows for the x2 channels)
#   wb_ref : (3, 3, C1, Cmid) bf16  (conv1 weight rows for the x1 channels)
#   y_ref  : (H, W, Cmid) f32       raw conv1 output
#   st_ref : (2, Cmid)    f32       [sum, sumsq] over this image's H*W
# ----------------------------------------------------------------------------
def _conv1_fused_concat_kernel(x2_ref, x1_ref, wa_ref, wb_ref, y_ref, st_ref):
    hp, wp, c2 = x2_ref.shape
    c1 = x1_ref.shape[-1]
    h, w = hp - 2, wp - 2
    cmid = wa_ref.shape[-1]

    acc = jnp.zeros((h * w, cmid), jnp.float32)
    for dy in range(3):
        for dx in range(3):
            xa = x2_ref[dy:dy + h, dx:dx + w, :].reshape(h * w, c2)
            xb = x1_ref[dy:dy + h, dx:dx + w, :].reshape(h * w, c1)
            acc = acc + jnp.dot(xa, wa_ref[dy, dx],
                                preferred_element_type=jnp.float32)
            acc = acc + jnp.dot(xb, wb_ref[dy, dx],
                                preferred_element_type=jnp.float32)

    y_ref[...] = acc.reshape(h, w, cmid)
    # BN stats fused into the conv epilogue (single pass over the hot result)
    st_ref[...] = jnp.concatenate(
        [jnp.sum(acc, axis=0, keepdims=True),
         jnp.sum(acc * acc, axis=0, keepdims=True)], axis=0)


# ----------------------------------------------------------------------------
# Kernel B: BN1 (precomputed scale/shift) + ReLU -> conv2, plus BN2 statistics.
#   y1_ref : (H, W, Cmid) f32   raw conv1 output
#   sc_ref : (1, Cmid) f32      gamma1 / sqrt(var1+eps)
#   sh_ref : (1, Cmid) f32      beta1 - mean1 * scale1
#   w_ref  : (3, 3, Cmid, Cout) bf16
#   y2_ref : (H, W, Cout) f32   raw conv2 output
#   st_ref : (2, Cout)    f32   [sum, sumsq] over this image's H*W
# ----------------------------------------------------------------------------
def _bn_relu_conv2_kernel(y1_ref, sc_ref, sh_ref, w_ref, y2_ref, st_ref):
    h, w, cmid = y1_ref.shape
    cout = w_ref.shape[-1]

    # BN1 affine (f32) + ReLU, cast to bf16 for the MXU
    a = jnp.maximum(y1_ref[...] * sc_ref[...] + sh_ref[...], 0.0)
    a = a.astype(jnp.bfloat16)

    # zero-pad as an in-register value (no scratch zero-fill / masked interior
    # store). Zero padding is applied AFTER BN+ReLU, matching Conv2d(padding=1).
    zr = jnp.zeros((1, w, cmid), jnp.bfloat16)
    ap = jnp.concatenate([zr, a, zr], axis=0)            # (h+2, w, cmid)
    zc = jnp.zeros((h + 2, 1, cmid), jnp.bfloat16)
    ap = jnp.concatenate([zc, ap, zc], axis=1)           # (h+2, w+2, cmid)

    acc = jnp.zeros((h * w, cout), jnp.float32)
    for dy in range(3):
        for dx in range(3):
            win = ap[dy:dy + h, dx:dx + w, :].reshape(h * w, cmid)
            acc = acc + jnp.dot(win, w_ref[dy, dx],
                                preferred_element_type=jnp.float32)

    y2_ref[...] = acc.reshape(h, w, cout)
    st_ref[...] = jnp.concatenate(
        [jnp.sum(acc, axis=0, keepdims=True),
         jnp.sum(acc * acc, axis=0, keepdims=True)], axis=0)


# ----------------------------------------------------------------------------
# Wrapper: Up.forward(x1, x2)
#   x1: (N, C1, H1, W1) NCHW  (decoder feature, gets upsampled x2)
#   x2: (N, C2, H2, W2) NCHW  (skip connection), C1 + C2 == in_channels
#   params = (w1, g1, b1, w2, g2, b2)
#     w1: (3, 3, C2+C1, Cmid) HWIO (no bias), input channels ordered [x2, x1]
#     w2: (3, 3, Cmid, Cout)  HWIO (no bias)
#     g*/b*: (C,) BatchNorm weight/bias
# ----------------------------------------------------------------------------
def up_forward(x1, x2, params):
    w1, g1, b1, w2, g2, b2 = params
    n, c1, h1, _ = x1.shape
    _, c2, H, W = x2.shape
    cmid = w1.shape[-1]
    cout = w2.shape[-1]
    eps = 1e-5

    # --- upsample x1 (bilinear, align_corners=True) straight into NHWC ---
    x1u = _bilinear_up_x2_nhwc(x1)                       # (N, 2H1, 2W1, C1)
    diff_y = H - x1u.shape[1]
    diff_x = W - x1u.shape[2]
    # F.pad-to-skip-size and the 1-px conv halo folded into ONE pad
    x1p = jnp.pad(x1u, ((0, 0),
                        (1 + diff_y // 2, 1 + diff_y - diff_y // 2),
                        (1 + diff_x // 2, 1 + diff_x - diff_x // 2),
                        (0, 0))).astype(jnp.bfloat16)    # (N, H+2, W+2, C1)
    x2p = jnp.pad(jnp.transpose(x2, (0, 2, 3, 1)),
                  ((0, 0), (1, 1), (1, 1), (0, 0))).astype(jnp.bfloat16)

    # split conv1 weight along input channels: torch.cat([x2, x1], dim=1)
    w1a = w1[:, :, :c2, :].astype(jnp.bfloat16)          # multiplies x2 channels
    w1b = w1[:, :, c2:, :].astype(jnp.bfloat16)          # multiplies up(x1) channels
    w2b = w2.astype(jnp.bfloat16)

    cparams = pltpu.CompilerParams(
        dimension_semantics=("parallel",),               # megacore on v7x
        vmem_limit_bytes=48 * 1024 * 1024)               # safe on v5e/v6e/v7x

    # --- kernel A: conv1 (concat fused) + per-image BN1 stats ---
    y1, st1 = pl.pallas_call(
        _conv1_fused_concat_kernel,
        grid=(n,),
        out_shape=(jax.ShapeDtypeStruct((n, H, W, cmid), jnp.float32),
                   jax.ShapeDtypeStruct((n, 2, cmid), jnp.float32)),
        in_specs=[
            pl.BlockSpec((None, H + 2, W + 2, c2), lambda i: (i, 0, 0, 0)),
            pl.BlockSpec((None, H + 2, W + 2, c1), lambda i: (i, 0, 0, 0)),
            pl.BlockSpec((3, 3, c2, cmid), lambda i: (0, 0, 0, 0)),   # resident
            pl.BlockSpec((3, 3, c1, cmid), lambda i: (0, 0, 0, 0)),   # resident
        ],
        out_specs=(
            pl.BlockSpec((None, H, W, cmid), lambda i: (i, 0, 0, 0)),
            pl.BlockSpec((None, 2, cmid), lambda i: (i, 0, 0)),
        ),
        compiler_params=cparams,
    )(x2p, x1p, w1a, w1b)

    # --- tiny f32 reduction -> BN1 scale/shift (training-mode batch stats) ---
    cnt = float(n * H * W)
    s1 = jnp.sum(st1[:, 0, :], axis=0)
    ss1 = jnp.sum(st1[:, 1, :], axis=0)
    mean1 = s1 / cnt
    var1 = jnp.maximum(ss1 / cnt - mean1 * mean1, 0.0)   # biased variance
    inv1 = lax.rsqrt(var1 + eps)
    scale1 = (g1 * inv1).reshape(1, cmid).astype(jnp.float32)
    shift1 = (b1 - g1 * mean1 * inv1).reshape(1, cmid).astype(jnp.float32)

    # --- kernel B: BN1+ReLU -> conv2 + per-image BN2 stats ---
    y2, st2 = pl.pallas_call(
        _bn_relu_conv2_kernel,
        grid=(n,),
        out_shape=(jax.ShapeDtypeStruct((n, H, W, cout), jnp.float32),
                   jax.ShapeDtypeStruct((n, 2, cout), jnp.float32)),
        in_specs=[
            pl.BlockSpec((None, H, W, cmid), lambda i: (i, 0, 0, 0)),
            pl.BlockSpec((1, cmid), lambda i: (0, 0)),                 # resident
            pl.BlockSpec((1, cmid), lambda i: (0, 0)),                 # resident
            pl.BlockSpec((3, 3, cmid, cout), lambda i: (0, 0, 0, 0)),  # resident
        ],
        out_specs=(
            pl.BlockSpec((None, H, W, cout), lambda i: (i, 0, 0, 0)),
            pl.BlockSpec((None, 2, cout), lambda i: (i, 0, 0)),
        ),
        compiler_params=cparams,
    )(y1, scale1, shift1, w2b)

    # --- BN2 + ReLU (elementwise) fused by XLA with the NHWC->NCHW transpose ---
    s2 = jnp.sum(st2[:, 0, :], axis=0)
    ss2 = jnp.sum(st2[:, 1, :], axis=0)
    mean2 = s2 / cnt
    var2 = jnp.maximum(ss2 / cnt - mean2 * mean2, 0.0)
    inv2 = lax.rsqrt(var2 + eps)
    out = jnp.maximum(y2 * (g2 * inv2) + (b2 - g2 * mean2 * inv2), 0.0)
    return jnp.transpose(out, (0, 3, 1, 2))              # NCHW f32


# ----------------------------------------------------------------------------
if __name__ == "__main__":
    key = jax.random.PRNGKey(0)
    ks = jax.random.split(key, 8)

    # Up(in_channels=32, out_channels=16, bilinear=True); x1/x2 each carry
    # in_channels // 2 channels (UNet skip-connection convention).
    n, in_ch, out_ch = 2, 32, 16
    c_half = in_ch // 2
    c_mid = in_ch // 2
    h1 = w1_sp = 8
    h2 = w2_sp = 16

    x1 = jax.random.normal(ks[0], (n, c_half, h1, w1_sp), jnp.float32)
    x2 = jax.random.normal(ks[1], (n, c_half, h2, w2_sp), jnp.float32)

    # Deterministic synthetic parameters (conv weights HWIO, no bias; BN gamma/beta)
    w1 = jax.random.normal(ks[2], (3, 3, in_ch, c_mid), jnp.float32) * (2.0 / (9 * in_ch)) ** 0.5
    g1 = 1.0 + 0.1 * jax.random.normal(ks[3], (c_mid,), jnp.float32)
    b1 = 0.1 * jax.random.normal(ks[4], (c_mid,), jnp.float32)
    w2 = jax.random.normal(ks[5], (3, 3, c_mid, out_ch), jnp.float32) * (2.0 / (9 * c_mid)) ** 0.5
    g2 = 1.0 + 0.1 * jax.random.normal(ks[6], (out_ch,), jnp.float32)
    b2 = 0.1 * jax.random.normal(ks[7], (out_ch,), jnp.float32)

    params = (w1, g1, b1, w2, g2, b2)

    out = jax.jit(up_forward)(x1, x2, params)
    out = jax.block_until_ready(out)
    assert out.shape == (n, out_ch, h2, w2_sp), out.shape
    assert bool(jnp.all(jnp.isfinite(out)))
    print("KERNEL_OK")
</pallas_src>

<mosaic_0001>
module attributes {stable_mosaic.version = 11 : i64} {
  func.func private @main(%arg0: i32) attributes {dimension_semantics = [#tpu.dimension_semantics<core_parallel>], iteration_bounds = array<i64: 2>, tpu.core_type = #tpu.core_type<sc_scalar_subcore>, window_params = []} {
    return
  }
}

module attributes {stable_mosaic.version = 11 : i64} {
  func.func private @main(%arg0: i32) attributes {dimension_semantics = [#tpu.dimension_semantics<core_parallel>], iteration_bounds = array<i64: 2>, tpu.core_type = #tpu.core_type<sc_scalar_subcore>, window_params = []} {
    return
  }
}

module attributes {stable_mosaic.version = 11 : i64} {
  func.func @_bn_relu_conv2_kernel(%arg0: i32, %arg1: memref<1x16x16x16xf32, #tpu.memory_space<vmem>>, %arg2: memref<1x16xf32, #tpu.memory_space<vmem>>, %arg3: memref<1x16xf32, #tpu.memory_space<vmem>>, %arg4: memref<3x3x16x16xbf16, #tpu.memory_space<vmem>>, %arg5: memref<1x16x16x16xf32, #tpu.memory_space<vmem>>, %arg6: memref<1x2x16xf32, #tpu.memory_space<vmem>>) attributes {dimension_semantics = [#tpu.dimension_semantics<parallel>], iteration_bounds = array<i64: 2>, scalar_prefetch = 0 : i64, scratch_operands = 0 : i64, tpu.core_type = #tpu.core_type<tc>, window_params = [{transform_indices = @transform_0, window_bounds = array<i64: 1, 16, 16, 16>}, {pipeline_mode = #tpu.pipeline_mode<synchronous>, transform_indices = @transform_1, window_bounds = array<i64: 1, 16>}, {pipeline_mode = #tpu.pipeline_mode<synchronous>, transform_indices = @transform_2, window_bounds = array<i64: 1, 16>}, {pipeline_mode = #tpu.pipeline_mode<synchronous>, transform_indices = @transform_3, window_bounds = array<i64: 3, 3, 16, 16>}, {transform_indices = @transform_4, window_bounds = array<i64: 1, 16, 16, 16>}, {transform_indices = @transform_5, window_bounds = array<i64: 1, 2, 16>}]} {
    %c0 = arith.constant 0 : index
    %c0_0 = arith.constant 0 : index
    %c0_1 = arith.constant 0 : index
    %c0_2 = arith.constant 0 : index
    %0 = vector.load %arg1[%c0, %c0_0, %c0_1, %c0_2] : memref<1x16x16x16xf32, #tpu.memory_space<vmem>>, vector<1x16x16x16xf32>
    %1 = vector.shape_cast %0 : vector<1x16x16x16xf32> to vector<16x16x16xf32>
    %c0_3 = arith.constant 0 : index
    %c0_4 = arith.constant 0 : index
    %2 = vector.load %arg2[%c0_3, %c0_4] : memref<1x16xf32, #tpu.memory_space<vmem>>, vector<1x16xf32>
    %3 = vector.shape_cast %2 : vector<1x16xf32> to vector<1x1x16xf32>
    %4 = vector.broadcast %3 : vector<1x1x16xf32> to vector<16x16x16xf32>
    %5 = arith.mulf %1, %4 : vector<16x16x16xf32>
    %c0_5 = arith.constant 0 : index
    %c0_6 = arith.constant 0 : index
    %6 = vector.load %arg3[%c0_5, %c0_6] : memref<1x16xf32, #tpu.memory_space<vmem>>, vector<1x16xf32>
    %7 = vector.shape_cast %6 : vector<1x16xf32> to vector<1x1x16xf32>
    %8 = vector.broadcast %7 : vector<1x1x16xf32> to vector<16x16x16xf32>
    %9 = arith.addf %5, %8 : vector<16x16x16xf32>
    %cst = arith.constant 0.000000e+00 : f32
    %10 = vector.broadcast %cst : f32 to vector<16x16x16xf32>
    %11 = arith.maximumf %9, %10 : vector<16x16x16xf32>
    %12 = arith.truncf %11 : vector<16x16x16xf32> to vector<16x16x16xbf16>
    %cst_7 = arith.constant 0.000000e+00 : bf16
    %13 = vector.broadcast %cst_7 : bf16 to vector<1x16x16xbf16>
    %14 = tpu.concatenate %13, %12, %13 in 0 : vector<1x16x16xbf16>, vector<16x16x16xbf16>, vector<1x16x16xbf16> -> vector<18x16x16xbf16>
    %cst_8 = arith.constant 0.000000e+00 : bf16
    %15 = vector.broadcast %cst_8 : bf16 to vector<18x1x16xbf16>
    %16 = tpu.concatenate %15, %14, %15 in 1 : vector<18x1x16xbf16>, vector<18x16x16xbf16>, vector<18x1x16xbf16> -> vector<18x18x16xbf16>
    %cst_9 = arith.constant 0.000000e+00 : f32
    %17 = vector.broadcast %cst_9 : f32 to vector<256x16xf32>
    %18 = vector.extract_strided_slice %16 {offsets = [0, 0, 0], sizes = [16, 16, 16], strides = [1, 1, 1]} : vector<18x18x16xbf16> to vector<16x16x16xbf16>
    %19 = vector.shape_cast %18 : vector<16x16x16xbf16> to vector<256x16xbf16>
    %c0_10 = arith.constant 0 : index
    %c0_11 = arith.constant 0 : index
    %c0_12 = arith.constant 0 : index
    %c0_13 = arith.constant 0 : index
    %20 = vector.load %arg4[%c0_10, %c0_11, %c0_12, %c0_13] : memref<3x3x16x16xbf16, #tpu.memory_space<vmem>>, vector<1x1x16x16xbf16>
    %21 = vector.shape_cast %20 : vector<1x1x16x16xbf16> to vector<16x16xbf16>
    %cst_14 = arith.constant dense<0.000000e+00> : vector<256x16xf32>
    %22 = tpu.matmul %19, %21, %cst_14 {dimension_numbers = #tpu.dot_dimension_numbers<[1], [0], [0], [1], [0, 0, 1, 1], [], []>} : vector<256x16xbf16>, vector<16x16xbf16>, vector<256x16xf32> -> vector<256x16xf32>
    %23 = arith.addf %17, %22 : vector<256x16xf32>
    %24 = vector.extract_strided_slice %16 {offsets = [0, 1, 0], sizes = [16, 16, 16], strides = [1, 1, 1]} : vector<18x18x16xbf16> to vector<16x16x16xbf16>
    %25 = vector.shape_cast %24 : vector<16x16x16xbf16> to vector<256x16xbf16>
    %c0_15 = arith.constant 0 : index
    %c1 = arith.constant 1 : index
    %c0_16 = arith.constant 0 : index
    %c0_17 = arith.constant 0 : index
    %26 = vector.load %arg4[%c0_15, %c1, %c0_16, %c0_17] : memref<3x3x16x16xbf16, #tpu.memory_space<vmem>>, vector<1x1x16x16xbf16>
    %27 = vector.shape_cast %26 : vector<1x1x16x16xbf16> to vector<16x16xbf16>
    %cst_18 = arith.constant dense<0.000000e+00> : vector<256x16xf32>
    %28 = tpu.matmul %25, %27, %cst_18 {dimension_numbers = #tpu.dot_dimension_numbers<[1], [0], [0], [1], [0, 0, 1, 1], [], []>} : vector<256x16xbf16>, vector<16x16xbf16>, vector<256x16xf32> -> vector<256x16xf32>
    %29 = arith.addf %23, %28 : vector<256x16xf32>
    %30 = vector.extract_strided_slice %16 {offsets = [0, 2, 0], sizes = [16, 16, 16], strides = [1, 1, 1]} : vector<18x18x16xbf16> to vector<16x16x16xbf16>
    %31 = vector.shape_cast %30 : vector<16x16x16xbf16> to vector<256x16xbf16>
    %c0_19 = arith.constant 0 : index
    %c2 = arith.constant 2 : index
    %c0_20 = arith.constant 0 : index
    %c0_21 = arith.constant 0 : index
    %32 = vector.load %arg4[%c0_19, %c2, %c0_20, %c0_21] : memref<3x3x16x16xbf16, #tpu.memory_space<vmem>>, vector<1x1x16x16xbf16>
    %33 = vector.shape_cast %32 : vector<1x1x16x16xbf16> to vector<16x16xbf16>
    %cst_22 = arith.constant dense<0.000000e+00> : vector<256x16xf32>
    %34 = tpu.matmul %31, %33, %cst_22 {dimension_numbers = #tpu.dot_dimension_numbers<[1], [0], [0], [1], [0, 0, 1, 1], [], []>} : vector<256x16xbf16>, vector<16x16xbf16>, vector<256x16xf32> -> vector<256x16xf32>
    %35 = arith.addf %29, %34 : vector<256x16xf32>
    %36 = vector.extract_strided_slice %16 {offsets = [1, 0, 0], sizes = [16, 16, 16], strides = [1, 1, 1]} : vector<18x18x16xbf16> to vector<16x16x16xbf16>
    %37 = vector.shape_cast %36 : vector<16x16x16xbf16> to vector<256x16xbf16>
    %c1_23 = arith.constant 1 : index
    %c0_24 = arith.constant 0 : index
    %c0_25 = arith.constant 0 : index
    %c0_26 = arith.constant 0 : index
    %38 = vector.load %arg4[%c1_23, %c0_24, %c0_25, %c0_26] : memref<3x3x16x16xbf16, #tpu.memory_space<vmem>>, vector<1x1x16x16xbf16>
    %39 = vector.shape_cast %38 : vector<1x1x16x16xbf16> to vector<16x16xbf16>
    %cst_27 = arith.constant dense<0.000000e+00> : vector<256x16xf32>
    %40 = tpu.matmul %37, %39, %cst_27 {dimension_numbers = #tpu.dot_dimension_numbers<[1], [0], [0], [1], [0, 0, 1, 1], [], []>} : vector<256x16xbf16>, vector<16x16xbf16>, vector<256x16xf32> -> vector<256x16xf32>
    %41 = arith.addf %35, %40 : vector<256x16xf32>
    %42 = vector.extract_strided_slice %16 {offsets = [1, 1, 0], sizes = [16, 16, 16], strides = [1, 1, 1]} : vector<18x18x16xbf16> to vector<16x16x16xbf16>
    %43 = vector.shape_cast %42 : vector<16x16x16xbf16> to vector<256x16xbf16>
    %c1_28 = arith.constant 1 : index
    %c1_29 = arith.constant 1 : index
    %c0_30 = arith.constant 0 : index
    %c0_31 = arith.constant 0 : index
    %44 = vector.load %arg4[%c1_28, %c1_29, %c0_30, %c0_31] : memref<3x3x16x16xbf16, #tpu.memory_space<vmem>>, vector<1x1x16x16xbf16>
    %45 = vector.shape_cast %44 : vector<1x1x16x16xbf16> to vector<16x16xbf16>
    %cst_32 = arith.constant dense<0.000000e+00> : vector<256x16xf32>
    %46 = tpu.matmul %43, %45, %cst_32 {dimension_numbers = #tpu.dot_dimension_numbers<[1], [0], [0], [1], [0, 0, 1, 1], [], []>} : vector<256x16xbf16>, vector<16x16xbf16>, vector<256x16xf32> -> vector<256x16xf32>
    %47 = arith.addf %41, %46 : vector<256x16xf32>
    %48 = vector.extract_strided_slice %16 {offsets = [1, 2, 0], sizes = [16, 16, 16], strides = [1, 1, 1]} : vector<18x18x16xbf16> to vector<16x16x16xbf16>
    %49 = vector.shape_cast %48 : vector<16x16x16xbf16> to vector<256x16xbf16>
    %c1_33 = arith.constant 1 : index
    %c2_34 = arith.constant 2 : index
    %c0_35 = arith.constant 0 : index
    %c0_36 = arith.constant 0 : index
    %50 = vector.load %arg4[%c1_33, %c2_34, %c0_35, %c0_36] : memref<3x3x16x16xbf16, #tpu.memory_space<vmem>>, vector<1x1x16x16xbf16>
    %51 = vector.shape_cast %50 : vector<1x1x16x16xbf16> to vector<16x16xbf16>
    %cst_37 = arith.constant dense<0.000000e+00> : vector<256x16xf32>
    %52 = tpu.matmul %49, %51, %cst_37 {dimension_numbers = #tpu.dot_dimension_numbers<[1], [0], [0], [1], [0, 0, 1, 1], [], []>} : vector<256x16xbf16>, vector<16x16xbf16>, vector<256x16xf32> -> vector<256x16xf32>
    %53 = arith.addf %47, %52 : vector<256x16xf32>
    %54 = vector.extract_strided_slice %16 {offsets = [2, 0, 0], sizes = [16, 16, 16], strides = [1, 1, 1]} : vector<18x18x16xbf16> to vector<16x16x16xbf16>
    %55 = vector.shape_cast %54 : vector<16x16x16xbf16> to vector<256x16xbf16>
    %c2_38 = arith.constant 2 : index
    %c0_39 = arith.constant 0 : index
    %c0_40 = arith.constant 0 : index
    %c0_41 = arith.constant 0 : index
    %56 = vector.load %arg4[%c2_38, %c0_39, %c0_40, %c0_41] : memref<3x3x16x16xbf16, #tpu.memory_space<vmem>>, vector<1x1x16x16xbf16>
    %57 = vector.shape_cast %56 : vector<1x1x16x16xbf16> to vector<16x16xbf16>
    %cst_42 = arith.constant dense<0.000000e+00> : vector<256x16xf32>
    %58 = tpu.matmul %55, %57, %cst_42 {dimension_numbers = #tpu.dot_dimension_numbers<[1], [0], [0], [1], [0, 0, 1, 1], [], []>} : vector<256x16xbf16>, vector<16x16xbf16>, vector<256x16xf32> -> vector<256x16xf32>
    %59 = arith.addf %53, %58 : vector<256x16xf32>
    %60 = vector.extract_strided_slice %16 {offsets = [2, 1, 0], sizes = [16, 16, 16], strides = [1, 1, 1]} : vector<18x18x16xbf16> to vector<16x16x16xbf16>
    %61 = vector.shape_cast %60 : vector<16x16x16xbf16> to vector<256x16xbf16>
    %c2_43 = arith.constant 2 : index
    %c1_44 = arith.constant 1 : index
    %c0_45 = arith.constant 0 : index
    %c0_46 = arith.constant 0 : index
    %62 = vector.load %arg4[%c2_43, %c1_44, %c0_45, %c0_46] : memref<3x3x16x16xbf16, #tpu.memory_space<vmem>>, vector<1x1x16x16xbf16>
    %63 = vector.shape_cast %62 : vector<1x1x16x16xbf16> to vector<16x16xbf16>
    %cst_47 = arith.constant dense<0.000000e+00> : vector<256x16xf32>
    %64 = tpu.matmul %61, %63, %cst_47 {dimension_numbers = #tpu.dot_dimension_numbers<[1], [0], [0], [1], [0, 0, 1, 1], [], []>} : vector<256x16xbf16>, vector<16x16xbf16>, vector<256x16xf32> -> vector<256x16xf32>
    %65 = arith.addf %59, %64 : vector<256x16xf32>
    %66 = vector.extract_strided_slice %16 {offsets = [2, 2, 0], sizes = [16, 16, 16], strides = [1, 1, 1]} : vector<18x18x16xbf16> to vector<16x16x16xbf16>
    %67 = vector.shape_cast %66 : vector<16x16x16xbf16> to vector<256x16xbf16>
    %c2_48 = arith.constant 2 : index
    %c2_49 = arith.constant 2 : index
    %c0_50 = arith.constant 0 : index
    %c0_51 = arith.constant 0 : index
    %68 = vector.load %arg4[%c2_48, %c2_49, %c0_50, %c0_51] : memref<3x3x16x16xbf16, #tpu.memory_space<vmem>>, vector<1x1x16x16xbf16>
    %69 = vector.shape_cast %68 : vector<1x1x16x16xbf16> to vector<16x16xbf16>
    %cst_52 = arith.constant dense<0.000000e+00> : vector<256x16xf32>
    %70 = tpu.matmul %67, %69, %cst_52 {dimension_numbers = #tpu.dot_dimension_numbers<[1], [0], [0], [1], [0, 0, 1, 1], [], []>} : vector<256x16xbf16>, vector<16x16xbf16>, vector<256x16xf32> -> vector<256x16xf32>
    %71 = arith.addf %65, %70 : vector<256x16xf32>
    %72 = vector.shape_cast %71 : vector<256x16xf32> to vector<16x16x16xf32>
    %c0_53 = arith.constant 0 : index
    %c0_54 = arith.constant 0 : index
    %c0_55 = arith.constant 0 : index
    %c0_56 = arith.constant 0 : index
    %73 = vector.load %arg5[%c0_53, %c0_54, %c0_55, %c0_56] : memref<1x16x16x16xf32, #tpu.memory_space<vmem>>, vector<1x16x16x16xf32>
    %74 = vector.shape_cast %73 : vector<1x16x16x16xf32> to vector<16x16x16xf32>
    %75 = vector.shape_cast %72 : vector<16x16x16xf32> to vector<1x16x16x16xf32>
    tpu.vector_store %arg5[%c0_53, %c0_54, %c0_55, %c0_56], %75 {strides = array<i32>} : memref<1x16x16x16xf32, #tpu.memory_space<vmem>>, vector<1x16x16x16xf32>,
    %cst_57 = arith.constant dense<0.000000e+00> : vector<16xf32>
    %76 = vector.multi_reduction <add>, %71, %cst_57 [0] : vector<256x16xf32> to vector<16xf32>
    %77 = vector.shape_cast %76 : vector<16xf32> to vector<1x16xf32>
    %78 = arith.mulf %71, %71 : vector<256x16xf32>
    %cst_58 = arith.constant dense<0.000000e+00> : vector<16xf32>
    %79 = vector.multi_reduction <add>, %78, %cst_58 [0] : vector<256x16xf32> to vector<16xf32>
    %80 = vector.shape_cast %79 : vector<16xf32> to vector<1x16xf32>
    %81 = tpu.concatenate %77, %80 in 0 : vector<1x16xf32>, vector<1x16xf32> -> vector<2x16xf32>
    %c0_59 = arith.constant 0 : index
    %c0_60 = arith.constant 0 : index
    %c0_61 = arith.constant 0 : index
    %82 = vector.load %arg6[%c0_59, %c0_60, %c0_61] : memref<1x2x16xf32, #tpu.memory_space<vmem>>, vector<1x2x16xf32>
    %83 = vector.shape_cast %82 : vector<1x2x16xf32> to vector<2x16xf32>
    %84 = vector.shape_cast %81 : vector<2x16xf32> to vector<1x2x16xf32>
    tpu.vector_store %arg6[%c0_59, %c0_60, %c0_61], %84 {strides = array<i32>} : memref<1x2x16xf32, #tpu.memory_space<vmem>>, vector<1x2x16xf32>,
    return
  }
  func.func @transform_0(%arg0: i32) -> (i32, i32, i32, i32) {
    %c0_i32 = arith.constant 0 : i32
    %c0_i32_0 = arith.constant 0 : i32
    %c0_i32_1 = arith.constant 0 : i32
    %c0_i32_2 = arith.constant 0 : i32
    return %arg0, %c0_i32, %c0_i32_0, %c0_i32_1 : i32, i32, i32, i32
  }
  func.func @transform_1(%arg0: i32) -> (i32, i32) {
    %c0_i32 = arith.constant 0 : i32
    %c0_i32_0 = arith.constant 0 : i32
    %c0_i32_1 = arith.constant 0 : i32
    return %c0_i32, %c0_i32_0 : i32, i32
  }
  func.func @transform_2(%arg0: i32) -> (i32, i32) {
    %c0_i32 = arith.constant 0 : i32
    %c0_i32_0 = arith.constant 0 : i32
    %c0_i32_1 = arith.constant 0 : i32
    return %c0_i32, %c0_i32_0 : i32, i32
  }
  func.func @transform_3(%arg0: i32) -> (i32, i32, i32, i32) {
    %c0_i32 = arith.constant 0 : i32
    %c0_i32_0 = arith.constant 0 : i32
    %c0_i32_1 = arith.constant 0 : i32
    %c0_i32_2 = arith.constant 0 : i32
    %c0_i32_3 = arith.constant 0 : i32
    return %c0_i32, %c0_i32_0, %c0_i32_1, %c0_i32_2 : i32, i32, i32, i32
  }
  func.func @transform_4(%arg0: i32) -> (i32, i32, i32, i32) {
    %c0_i32 = arith.constant 0 : i32
    %c0_i32_0 = arith.constant 0 : i32
    %c0_i32_1 = arith.constant 0 : i32
    %c0_i32_2 = arith.constant 0 : i32
    return %arg0, %c0_i32, %c0_i32_0, %c0_i32_1 : i32, i32, i32, i32
  }
  func.func @transform_5(%arg0: i32) -> (i32, i32, i32) {
    %c0_i32 = arith.constant 0 : i32
    %c0_i32_0 = arith.constant 0 : i32
    %c0_i32_1 = arith.constant 0 : i32
    return %arg0, %c0_i32, %c0_i32_0 : i32, i32, i32
  }
}

module attributes {stable_mosaic.version = 11 : i64} {
  func.func @_conv1_fused_concat_kernel(%arg0: i32, %arg1: memref<1x18x18x16xbf16, #tpu.memory_space<vmem>>, %arg2: memref<1x18x18x16xbf16, #tpu.memory_space<vmem>>, %arg3: memref<3x3x16x16xbf16, #tpu.memory_space<vmem>>, %arg4: memref<3x3x16x16xbf16, #tpu.memory_space<vmem>>, %arg5: memref<1x16x16x16xf32, #tpu.memory_space<vmem>>, %arg6: memref<1x2x16xf32, #tpu.memory_space<vmem>>) attributes {dimension_semantics = [#tpu.dimension_semantics<parallel>], iteration_bounds = array<i64: 2>, scalar_prefetch = 0 : i64, scratch_operands = 0 : i64, tpu.core_type = #tpu.core_type<tc>, window_params = [{transform_indices = @transform_0, window_bounds = array<i64: 1, 18, 18, 16>}, {transform_indices = @transform_1, window_bounds = array<i64: 1, 18, 18, 16>}, {pipeline_mode = #tpu.pipeline_mode<synchronous>, transform_indices = @transform_2, window_bounds = array<i64: 3, 3, 16, 16>}, {pipeline_mode = #tpu.pipeline_mode<synchronous>, transform_indices = @transform_3, window_bounds = array<i64: 3, 3, 16, 16>}, {transform_indices = @transform_4, window_bounds = array<i64: 1, 16, 16, 16>}, {transform_indices = @transform_5, window_bounds = array<i64: 1, 2, 16>}]} {
    %cst = arith.constant 0.000000e+00 : f32
    %0 = vector.broadcast %cst : f32 to vector<256x16xf32>
    %c0 = arith.constant 0 : index
    %c0_0 = arith.constant 0 : index
    %c0_1 = arith.constant 0 : index
    %c0_2 = arith.constant 0 : index
    %1 = vector.load %arg1[%c0, %c0_0, %c0_1, %c0_2] : memref<1x18x18x16xbf16, #tpu.memory_space<vmem>>, vector<1x16x16x16xbf16>
    %2 = vector.shape_cast %1 : vector<1x16x16x16xbf16> to vector<16x16x16xbf16>
    %3 = vector.shape_cast %2 : vector<16x16x16xbf16> to vector<256x16xbf16>
    %c0_3 = arith.constant 0 : index
    %c0_4 = arith.constant 0 : index
    %c0_5 = arith.constant 0 : index
    %c0_6 = arith.constant 0 : index
    %4 = vector.load %arg2[%c0_3, %c0_4, %c0_5, %c0_6] : memref<1x18x18x16xbf16, #tpu.memory_space<vmem>>, vector<1x16x16x16xbf16>
    %5 = vector.shape_cast %4 : vector<1x16x16x16xbf16> to vector<16x16x16xbf16>
    %6 = vector.shape_cast %5 : vector<16x16x16xbf16> to vector<256x16xbf16>
    %c0_7 = arith.constant 0 : index
    %c0_8 = arith.constant 0 : index
    %c0_9 = arith.constant 0 : index
    %c0_10 = arith.constant 0 : index
    %7 = vector.load %arg3[%c0_7, %c0_8, %c0_9, %c0_10] : memref<3x3x16x16xbf16, #tpu.memory_space<vmem>>, vector<1x1x16x16xbf16>
    %8 = vector.shape_cast %7 : vector<1x1x16x16xbf16> to vector<16x16xbf16>
    %cst_11 = arith.constant dense<0.000000e+00> : vector<256x16xf32>
    %9 = tpu.matmul %3, %8, %cst_11 {dimension_numbers = #tpu.dot_dimension_numbers<[1], [0], [0], [1], [0, 0, 1, 1], [], []>} : vector<256x16xbf16>, vector<16x16xbf16>, vector<256x16xf32> -> vector<256x16xf32>
    %10 = arith.addf %0, %9 : vector<256x16xf32>
    %c0_12 = arith.constant 0 : index
    %c0_13 = arith.constant 0 : index
    %c0_14 = arith.constant 0 : index
    %c0_15 = arith.constant 0 : index
    %11 = vector.load %arg4[%c0_12, %c0_13, %c0_14, %c0_15] : memref<3x3x16x16xbf16, #tpu.memory_space<vmem>>, vector<1x1x16x16xbf16>
    %12 = vector.shape_cast %11 : vector<1x1x16x16xbf16> to vector<16x16xbf16>
    %cst_16 = arith.constant dense<0.000000e+00> : vector<256x16xf32>
    %13 = tpu.matmul %6, %12, %cst_16 {dimension_numbers = #tpu.dot_dimension_numbers<[1], [0], [0], [1], [0, 0, 1, 1], [], []>} : vector<256x16xbf16>, vector<16x16xbf16>, vector<256x16xf32> -> vector<256x16xf32>
    %14 = arith.addf %10, %13 : vector<256x16xf32>
    %c0_17 = arith.constant 0 : index
    %c0_18 = arith.constant 0 : index
    %c1 = arith.constant 1 : index
    %c0_19 = arith.constant 0 : index
    %15 = vector.load %arg1[%c0_17, %c0_18, %c1, %c0_19] : memref<1x18x18x16xbf16, #tpu.memory_space<vmem>>, vector<1x16x16x16xbf16>
    %16 = vector.shape_cast %15 : vector<1x16x16x16xbf16> to vector<16x16x16xbf16>
    %17 = vector.shape_cast %16 : vector<16x16x16xbf16> to vector<256x16xbf16>
    %c0_20 = arith.constant 0 : index
    %c0_21 = arith.constant 0 : index
    %c1_22 = arith.constant 1 : index
    %c0_23 = arith.constant 0 : index
    %18 = vector.load %arg2[%c0_20, %c0_21, %c1_22, %c0_23] : memref<1x18x18x16xbf16, #tpu.memory_space<vmem>>, vector<1x16x16x16xbf16>
    %19 = vector.shape_cast %18 : vector<1x16x16x16xbf16> to vector<16x16x16xbf16>
    %20 = vector.shape_cast %19 : vector<16x16x16xbf16> to vector<256x16xbf16>
    %c0_24 = arith.constant 0 : index
    %c1_25 = arith.constant 1 : index
    %c0_26 = arith.constant 0 : index
    %c0_27 = arith.constant 0 : index
    %21 = vector.load %arg3[%c0_24, %c1_25, %c0_26, %c0_27] : memref<3x3x16x16xbf16, #tpu.memory_space<vmem>>, vector<1x1x16x16xbf16>
    %22 = vector.shape_cast %21 : vector<1x1x16x16xbf16> to vector<16x16xbf16>
    %cst_28 = arith.constant dense<0.000000e+00> : vector<256x16xf32>
    %23 = tpu.matmul %17, %22, %cst_28 {dimension_numbers = #tpu.dot_dimension_numbers<[1], [0], [0], [1], [0, 0, 1, 1], [], []>} : vector<256x16xbf16>, vector<16x16xbf16>, vector<256x16xf32> -> vector<256x16xf32>
    %24 = arith.addf %14, %23 : vector<256x16xf32>
    %c0_29 = arith.constant 0 : index
    %c1_30 = arith.constant 1 : index
    %c0_31 = arith.constant 0 : index
    %c0_32 = arith.constant 0 : index
    %25 = vector.load %arg4[%c0_29, %c1_30, %c0_31, %c0_32] : memref<3x3x16x16xbf16, #tpu.memory_space<vmem>>, vector<1x1x16x16xbf16>
    %26 = vector.shape_cast %25 : vector<1x1x16x16xbf16> to vector<16x16xbf16>
    %cst_33 = arith.constant dense<0.000000e+00> : vector<256x16xf32>
    %27 = tpu.matmul %20, %26, %cst_33 {dimension_numbers = #tpu.dot_dimension_numbers<[1], [0], [0], [1], [0, 0, 1, 1], [], []>} : vector<256x16xbf16>, vector<16x16xbf16>, vector<256x16xf32> -> vector<256x16xf32>
    %28 = arith.addf %24, %27 : vector<256x16xf32>
    %c0_34 = arith.constant 0 : index
    %c0_35 = arith.constant 0 : index
    %c2 = arith.constant 2 : index
    %c0_36 = arith.constant 0 : index
    %29 = vector.load %arg1[%c0_34, %c0_35, %c2, %c0_36] : memref<1x18x18x16xbf16, #tpu.memory_space<vmem>>, vector<1x16x16x16xbf16>
    %30 = vector.shape_cast %29 : vector<1x16x16x16xbf16> to vector<16x16x16xbf16>
    %31 = vector.shape_cast %30 : vector<16x16x16xbf16> to vector<256x16xbf16>
    %c0_37 = arith.constant 0 : index
    %c0_38 = arith.constant 0 : index
    %c2_39 = arith.constant 2 : index
    %c0_40 = arith.constant 0 : index
    %32 = vector.load %arg2[%c0_37, %c0_38, %c2_39, %c0_40] : memref<1x18x18x16xbf16, #tpu.memory_space<vmem>>, vector<1x16x16x16xbf16>
    %33 = vector.shape_cast %32 : vector<1x16x16x16xbf16> to vector<16x16x16xbf16>
    %34 = vector.shape_cast %33 : vector<16x16x16xbf16> to vector<256x16xbf16>
    %c0_41 = arith.constant 0 : index
    %c2_42 = arith.constant 2 : index
    %c0_43 = arith.constant 0 : index
    %c0_44 = arith.constant 0 : index
    %35 = vector.load %arg3[%c0_41, %c2_42, %c0_43, %c0_44] : memref<3x3x16x16xbf16, #tpu.memory_space<vmem>>, vector<1x1x16x16xbf16>
    %36 = vector.shape_cast %35 : vector<1x1x16x16xbf16> to vector<16x16xbf16>
    %cst_45 = arith.constant dense<0.000000e+00> : vector<256x16xf32>
    %37 = tpu.matmul %31, %36, %cst_45 {dimension_numbers = #tpu.dot_dimension_numbers<[1], [0], [0], [1], [0, 0, 1, 1], [], []>} : vector<256x16xbf16>, vector<16x16xbf16>, vector<256x16xf32> -> vector<256x16xf32>
    %38 = arith.addf %28, %37 : vector<256x16xf32>
    %c0_46 = arith.constant 0 : index
    %c2_47 = arith.constant 2 : index
    %c0_48 = arith.constant 0 : index
    %c0_49 = arith.constant 0 : index
    %39 = vector.load %arg4[%c0_46, %c2_47, %c0_48, %c0_49] : memref<3x3x16x16xbf16, #tpu.memory_space<vmem>>, vector<1x1x16x16xbf16>
    %40 = vector.shape_cast %39 : vector<1x1x16x16xbf16> to vector<16x16xbf16>
    %cst_50 = arith.constant dense<0.000000e+00> : vector<256x16xf32>
    %41 = tpu.matmul %34, %40, %cst_50 {dimension_numbers = #tpu.dot_dimension_numbers<[1], [0], [0], [1], [0, 0, 1, 1], [], []>} : vector<256x16xbf16>, vector<16x16xbf16>, vector<256x16xf32> -> vector<256x16xf32>
    %42 = arith.addf %38, %41 : vector<256x16xf32>
    %c0_51 = arith.constant 0 : index
    %c1_52 = arith.constant 1 : index
    %c0_53 = arith.constant 0 : index
    %c0_54 = arith.constant 0 : index
    %43 = vector.load %arg1[%c0_51, %c1_52, %c0_53, %c0_54] : memref<1x18x18x16xbf16, #tpu.memory_space<vmem>>, vector<1x16x16x16xbf16>
    %44 = vector.shape_cast %43 : vector<1x16x16x16xbf16> to vector<16x16x16xbf16>
    %45 = vector.shape_cast %44 : vector<16x16x16xbf16> to vector<256x16xbf16>
    %c0_55 = arith.constant 0 : index
    %c1_56 = arith.constant 1 : index
    %c0_57 = arith.constant 0 : index
    %c0_58 = arith.constant 0 : index
    %46 = vector.load %arg2[%c0_55, %c1_56, %c0_57, %c0_58] : memref<1x18x18x16xbf16, #tpu.memory_space<vmem>>, vector<1x16x16x16xbf16>
    %47 = vector.shape_cast %46 : vector<1x16x16x16xbf16> to vector<16x16x16xbf16>
    %48 = vector.shape_cast %47 : vector<16x16x16xbf16> to vector<256x16xbf16>
    %c1_59 = arith.constant 1 : index
    %c0_60 = arith.constant 0 : index
    %c0_61 = arith.constant 0 : index
    %c0_62 = arith.constant 0 : index
    %49 = vector.load %arg3[%c1_59, %c0_60, %c0_61, %c0_62] : memref<3x3x16x16xbf16, #tpu.memory_space<vmem>>, vector<1x1x16x16xbf16>
    %50 = vector.shape_cast %49 : vector<1x1x16x16xbf16> to vector<16x16xbf16>
    %cst_63 = arith.constant dense<0.000000e+00> : vector<256x16xf32>
    %51 = tpu.matmul %45, %50, %cst_63 {dimension_numbers = #tpu.dot_dimension_numbers<[1], [0], [0], [1], [0, 0, 1, 1], [], []>} : vector<256x16xbf16>, vector<16x16xbf16>, vector<256x16xf32> -> vector<256x16xf32>
    %52 = arith.addf %42, %51 : vector<256x16xf32>
    %c1_64 = arith.constant 1 : index
    %c0_65 = arith.constant 0 : index
    %c0_66 = arith.constant 0 : index
    %c0_67 = arith.constant 0 : index
    %53 = vector.load %arg4[%c1_64, %c0_65, %c0_66, %c0_67] : memref<3x3x16x16xbf16, #tpu.memory_space<vmem>>, vector<1x1x16x16xbf16>
    %54 = vector.shape_cast %53 : vector<1x1x16x16xbf16> to vector<16x16xbf16>
    %cst_68 = arith.constant dense<0.000000e+00> : vector<256x16xf32>
    %55 = tpu.matmul %48, %54, %cst_68 {dimension_numbers = #tpu.dot_dimension_numbers<[1], [0], [0], [1], [0, 0, 1, 1], [], []>} : vector<256x16xbf16>, vector<16x16xbf16>, vector<256x16xf32> -> vector<256x16xf32>
    %56 = arith.addf %52, %55 : vector<256x16xf32>
    %c0_69 = arith.constant 0 : index
    %c1_70 = arith.constant 1 : index
    %c1_71 = arith.constant 1 : index
    %c0_72 = arith.constant 0 : index
    %57 = vector.load %arg1[%c0_69, %c1_70, %c1_71, %c0_72] : memref<1x18x18x16xbf16, #tpu.memory_space<vmem>>, vector<1x16x16x16xbf16>
    %58 = vector.shape_cast %57 : vector<1x16x16x16xbf16> to vector<16x16x16xbf16>
    %59 = vector.shape_cast %58 : vector<16x16x16xbf16> to vector<256x16xbf16>
    %c0_73 = arith.constant 0 : index
    %c1_74 = arith.constant 1 : index
    %c1_75 = arith.constant 1 : index
    %c0_76 = arith.constant 0 : index
    %60 = vector.load %arg2[%c0_73, %c1_74, %c1_75, %c0_76] : memref<1x18x18x16xbf16, #tpu.memory_space<vmem>>, vector<1x16x16x16xbf16>
    %61 = vector.shape_cast %60 : vector<1x16x16x16xbf16> to vector<16x16x16xbf16>
    %62 = vector.shape_cast %61 : vector<16x16x16xbf16> to vector<256x16xbf16>
    %c1_77 = arith.constant 1 : index
    %c1_78 = arith.constant 1 : index
    %c0_79 = arith.constant 0 : index
    %c0_80 = arith.constant 0 : index
    %63 = vector.load %arg3[%c1_77, %c1_78, %c0_79, %c0_80] : memref<3x3x16x16xbf16, #tpu.memory_space<vmem>>, vector<1x1x16x16xbf16>
    %64 = vector.shape_cast %63 : vector<1x1x16x16xbf16> to vector<16x16xbf16>
    %cst_81 = arith.constant dense<0.000000e+00> : vector<256x16xf32>
    %65 = tpu.matmul %59, %64, %cst_81 {dimension_numbers = #tpu.dot_dimension_numbers<[1], [0], [0], [1], [0, 0, 1, 1], [], []>} : vector<256x16xbf16>, vector<16x16xbf16>, vector<256x16xf32> -> vector<256x16xf32>
    %66 = arith.addf %56, %65 : vector<256x16xf32>
    %c1_82 = arith.constant 1 : index
    %c1_83 = arith.constant 1 : index
    %c0_84 = arith.constant 0 : index
    %c0_85 = arith.constant 0 : index
    %67 = vector.load %arg4[%c1_82, %c1_83, %c0_84, %c0_85] : memref<3x3x16x16xbf16, #tpu.memory_space<vmem>>, vector<1x1x16x16xbf16>
    %68 = vector.shape_cast %67 : vector<1x1x16x16xbf16> to vector<16x16xbf16>
    %cst_86 = arith.constant dense<0.000000e+00> : vector<256x16xf32>
    %69 = tpu.matmul %62, %68, %cst_86 {dimension_numbers = #tpu.dot_dimension_numbers<[1], [0], [0], [1], [0, 0, 1, 1], [], []>} : vector<256x16xbf16>, vector<16x16xbf16>, vector<256x16xf32> -> vector<256x16xf32>
    %70 = arith.addf %66, %69 : vector<256x16xf32>
    %c0_87 = arith.constant 0 : index
    %c1_88 = arith.constant 1 : index
    %c2_89 = arith.constant 2 : index
    %c0_90 = arith.constant 0 : index
    %71 = vector.load %arg1[%c0_87, %c1_88, %c2_89, %c0_90] : memref<1x18x18x16xbf16, #tpu.memory_space<vmem>>, vector<1x16x16x16xbf16>
    %72 = vector.shape_cast %71 : vector<1x16x16x16xbf16> to vector<16x16x16xbf16>
    %73 = vector.shape_cast %72 : vector<16x16x16xbf16> to vector<256x16xbf16>
    %c0_91 = arith.constant 0 : index
    %c1_92 = arith.constant 1 : index
    %c2_93 = arith.constant 2 : index
    %c0_94 = arith.constant 0 : index
    %74 = vector.load %arg2[%c0_91, %c1_92, %c2_93, %c0_94] : memref<1x18x18x16xbf16, #tpu.memory_space<vmem>>, vector<1x16x16x16xbf16>
    %75 = vector.shape_cast %74 : vector<1x16x16x16xbf16> to vector<16x16x16xbf16>
    %76 = vector.shape_cast %75 : vector<16x16x16xbf16> to vector<256x16xbf16>
    %c1_95 = arith.constant 1 : index
    %c2_96 = arith.constant 2 : index
    %c0_97 = arith.constant 0 : index
    %c0_98 = arith.constant 0 : index
    %77 = vector.load %arg3[%c1_95, %c2_96, %c0_97, %c0_98] : memref<3x3x16x16xbf16, #tpu.memory_space<vmem>>, vector<1x1x16x16xbf16>
    %78 = vector.shape_cast %77 : vector<1x1x16x16xbf16> to vector<16x16xbf16>
    %cst_99 = arith.constant dense<0.000000e+00> : vector<256x16xf32>
    %79 = tpu.matmul %73, %78, %cst_99 {dimension_numbers = #tpu.dot_dimension_numbers<[1], [0], [0], [1], [0, 0, 1, 1], [], []>} : vector<256x16xbf16>, vector<16x16xbf16>, vector<256x16xf32> -> vector<256x16xf32>
    %80 = arith.addf %70, %79 : vector<256x16xf32>
    %c1_100 = arith.constant 1 : index
    %c2_101 = arith.constant 2 : index
    %c0_102 = arith.constant 0 : index
    %c0_103 = arith.constant 0 : index
    %81 = vector.load %arg4[%c1_100, %c2_101, %c0_102, %c0_103] : memref<3x3x16x16xbf16, #tpu.memory_space<vmem>>, vector<1x1x16x16xbf16>
    %82 = vector.shape_cast %81 : vector<1x1x16x16xbf16> to vector<16x16xbf16>
    %cst_104 = arith.constant dense<0.000000e+00> : vector<256x16xf32>
    %83 = tpu.matmul %76, %82, %cst_104 {dimension_numbers = #tpu.dot_dimension_numbers<[1], [0], [0], [1], [0, 0, 1, 1], [], []>} : vector<256x16xbf16>, vector<16x16xbf16>, vector<256x16xf32> -> vector<256x16xf32>
    %84 = arith.addf %80, %83 : vector<256x16xf32>
    %c0_105 = arith.constant 0 : index
    %c2_106 = arith.constant 2 : index
    %c0_107 = arith.constant 0 : index
    %c0_108 = arith.constant 0 : index
    %85 = vector.load %arg1[%c0_105, %c2_106, %c0_107, %c0_108] : memref<1x18x18x16xbf16, #tpu.memory_space<vmem>>, vector<1x16x16x16xbf16>
    %86 = vector.shape_cast %85 : vector<1x16x16x16xbf16> to vector<16x16x16xbf16>
    %87 = vector.shape_cast %86 : vector<16x16x16xbf16> to vector<256x16xbf16>
    %c0_109 = arith.constant 0 : index
    %c2_110 = arith.constant 2 : index
    %c0_111 = arith.constant 0 : index
    %c0_112 = arith.constant 0 : index
    %88 = vector.load %arg2[%c0_109, %c2_110, %c0_111, %c0_112] : memref<1x18x18x16xbf16, #tpu.memory_space<vmem>>, vector<1x16x16x16xbf16>
    %89 = vector.shape_cast %88 : vector<1x16x16x16xbf16> to vector<16x16x16xbf16>
    %90 = vector.shape_cast %89 : vector<16x16x16xbf16> to vector<256x16xbf16>
    %c2_113 = arith.constant 2 : index
    %c0_114 = arith.constant 0 : index
    %c0_115 = arith.constant 0 : index
    %c0_116 = arith.constant 0 : index
    %91 = vector.load %arg3[%c2_113, %c0_114, %c0_115, %c0_116] : memref<3x3x16x16xbf16, #tpu.memory_space<vmem>>, vector<1x1x16x16xbf16>
    %92 = vector.shape_cast %91 : vector<1x1x16x16xbf16> to vector<16x16xbf16>
    %cst_117 = arith.constant dense<0.000000e+00> : vector<256x16xf32>
    %93 = tpu.matmul %87, %92, %cst_117 {dimension_numbers = #tpu.dot_dimension_numbers<[1], [0], [0], [1], [0, 0, 1, 1], [], []>} : vector<256x16xbf16>, vector<16x16xbf16>, vector<256x16xf32> -> vector<256x16xf32>
    %94 = arith.addf %84, %93 : vector<256x16xf32>
    %c2_118 = arith.constant 2 : index
    %c0_119 = arith.constant 0 : index
    %c0_120 = arith.constant 0 : index
    %c0_121 = arith.constant 0 : index
    %95 = vector.load %arg4[%c2_118, %c0_119, %c0_120, %c0_121] : memref<3x3x16x16xbf16, #tpu.memory_space<vmem>>, vector<1x1x16x16xbf16>
    %96 = vector.shape_cast %95 : vector<1x1x16x16xbf16> to vector<16x16xbf16>
    %cst_122 = arith.constant dense<0.000000e+00> : vector<256x16xf32>
    %97 = tpu.matmul %90, %96, %cst_122 {dimension_numbers = #tpu.dot_dimension_numbers<[1], [0], [0], [1], [0, 0, 1, 1], [], []>} : vector<256x16xbf16>, vector<16x16xbf16>, vector<256x16xf32> -> vector<256x16xf32>
    %98 = arith.addf %94, %97 : vector<256x16xf32>
    %c0_123 = arith.constant 0 : index
    %c2_124 = arith.constant 2 : index
    %c1_125 = arith.constant 1 : index
    %c0_126 = arith.constant 0 : index
    %99 = vector.load %arg1[%c0_123, %c2_124, %c1_125, %c0_126] : memref<1x18x18x16xbf16, #tpu.memory_space<vmem>>, vector<1x16x16x16xbf16>
    %100 = vector.shape_cast %99 : vector<1x16x16x16xbf16> to vector<16x16x16xbf16>
    %101 = vector.shape_cast %100 : vector<16x16x16xbf16> to vector<256x16xbf16>
    %c0_127 = arith.constant 0 : index
    %c2_128 = arith.constant 2 : index
    %c1_129 = arith.constant 1 : index
    %c0_130 = arith.constant 0 : index
    %102 = vector.load %arg2[%c0_127, %c2_128, %c1_129, %c0_130] : memref<1x18x18x16xbf16, #tpu.memory_space<vmem>>, vector<1x16x16x16xbf16>
    %103 = vector.shape_cast %102 : vector<1x16x16x16xbf16> to vector<16x16x16xbf16>
    %104 = vector.shape_cast %103 : vector<16x16x16xbf16> to vector<256x16xbf16>
    %c2_131 = arith.constant 2 : index
    %c1_132 = arith.constant 1 : index
    %c0_133 = arith.constant 0 : index
    %c0_134 = arith.constant 0 : index
    %105 = vector.load %arg3[%c2_131, %c1_132, %c0_133, %c0_134] : memref<3x3x16x16xbf16, #tpu.memory_space<vmem>>, vector<1x1x16x16xbf16>
    %106 = vector.shape_cast %105 : vector<1x1x16x16xbf16> to vector<16x16xbf16>
    %cst_135 = arith.constant dense<0.000000e+00> : vector<256x16xf32>
    %107 = tpu.matmul %101, %106, %cst_135 {dimension_numbers = #tpu.dot_dimension_numbers<[1], [0], [0], [1], [0, 0, 1, 1], [], []>} : vector<256x16xbf16>, vector<16x16xbf16>, vector<256x16xf32> -> vector<256x16xf32>
    %108 = arith.addf %98, %107 : vector<256x16xf32>
    %c2_136 = arith.constant 2 : index
    %c1_137 = arith.constant 1 : index
    %c0_138 = arith.constant 0 : index
    %c0_139 = arith.constant 0 : index
    %109 = vector.load %arg4[%c2_136, %c1_137, %c0_138, %c0_139] : memref<3x3x16x16xbf16, #tpu.memory_space<vmem>>, vector<1x1x16x16xbf16>
    %110 = vector.shape_cast %109 : vector<1x1x16x16xbf16> to vector<16x16xbf16>
    %cst_140 = arith.constant dense<0.000000e+00> : vector<256x16xf32>
    %111 = tpu.matmul %104, %110, %cst_140 {dimension_numbers = #tpu.dot_dimension_numbers<[1], [0], [0], [1], [0, 0, 1, 1], [], []>} : vector<256x16xbf16>, vector<16x16xbf16>, vector<256x16xf32> -> vector<256x16xf32>
    %112 = arith.addf %108, %111 : vector<256x16xf32>
    %c0_141 = arith.constant 0 : index
    %c2_142 = arith.constant 2 : index
    %c2_143 = arith.constant 2 : index
    %c0_144 = arith.constant 0 : index
    %113 = vector.load %arg1[%c0_141, %c2_142, %c2_143, %c0_144] : memref<1x18x18x16xbf16, #tpu.memory_space<vmem>>, vector<1x16x16x16xbf16>
    %114 = vector.shape_cast %113 : vector<1x16x16x16xbf16> to vector<16x16x16xbf16>
    %115 = vector.shape_cast %114 : vector<16x16x16xbf16> to vector<256x16xbf16>
    %c0_145 = arith.constant 0 : index
    %c2_146 = arith.constant 2 : index
    %c2_147 = arith.constant 2 : index
    %c0_148 = arith.constant 0 : index
    %116 = vector.load %arg2[%c0_145, %c2_146, %c2_147, %c0_148] : memref<1x18x18x16xbf16, #tpu.memory_space<vmem>>, vector<1x16x16x16xbf16>
    %117 = vector.shape_cast %116 : vector<1x16x16x16xbf16> to vector<16x16x16xbf16>
    %118 = vector.shape_cast %117 : vector<16x16x16xbf16> to vector<256x16xbf16>
    %c2_149 = arith.constant 2 : index
    %c2_150 = arith.constant 2 : index
    %c0_151 = arith.constant 0 : index
    %c0_152 = arith.constant 0 : index
    %119 = vector.load %arg3[%c2_149, %c2_150, %c0_151, %c0_152] : memref<3x3x16x16xbf16, #tpu.memory_space<vmem>>, vector<1x1x16x16xbf16>
    %120 = vector.shape_cast %119 : vector<1x1x16x16xbf16> to vector<16x16xbf16>
    %cst_153 = arith.constant dense<0.000000e+00> : vector<256x16xf32>
    %121 = tpu.matmul %115, %120, %cst_153 {dimension_numbers = #tpu.dot_dimension_numbers<[1], [0], [0], [1], [0, 0, 1, 1], [], []>} : vector<256x16xbf16>, vector<16x16xbf16>, vector<256x16xf32> -> vector<256x16xf32>
    %122 = arith.addf %112, %121 : vector<256x16xf32>
    %c2_154 = arith.constant 2 : index
    %c2_155 = arith.constant 2 : index
    %c0_156 = arith.constant 0 : index
    %c0_157 = arith.constant 0 : index
    %123 = vector.load %arg4[%c2_154, %c2_155, %c0_156, %c0_157] : memref<3x3x16x16xbf16, #tpu.memory_space<vmem>>, vector<1x1x16x16xbf16>
    %124 = vector.shape_cast %123 : vector<1x1x16x16xbf16> to vector<16x16xbf16>
    %cst_158 = arith.constant dense<0.000000e+00> : vector<256x16xf32>
    %125 = tpu.matmul %118, %124, %cst_158 {dimension_numbers = #tpu.dot_dimension_numbers<[1], [0], [0], [1], [0, 0, 1, 1], [], []>} : vector<256x16xbf16>, vector<16x16xbf16>, vector<256x16xf32> -> vector<256x16xf32>
    %126 = arith.addf %122, %125 : vector<256x16xf32>
    %127 = vector.shape_cast %126 : vector<256x16xf32> to vector<16x16x16xf32>
    %c0_159 = arith.constant 0 : index
    %c0_160 = arith.constant 0 : index
    %c0_161 = arith.constant 0 : index
    %c0_162 = arith.constant 0 : index
    %128 = vector.load %arg5[%c0_159, %c0_160, %c0_161, %c0_162] : memref<1x16x16x16xf32, #tpu.memory_space<vmem>>, vector<1x16x16x16xf32>
    %129 = vector.shape_cast %128 : vector<1x16x16x16xf32> to vector<16x16x16xf32>
    %130 = vector.shape_cast %127 : vector<16x16x16xf32> to vector<1x16x16x16xf32>
    tpu.vector_store %arg5[%c0_159, %c0_160, %c0_161, %c0_162], %130 {strides = array<i32>} : memref<1x16x16x16xf32, #tpu.memory_space<vmem>>, vector<1x16x16x16xf32>,
    %cst_163 = arith.constant dense<0.000000e+00> : vector<16xf32>
    %131 = vector.multi_reduction <add>, %126, %cst_163 [0] : vector<256x16xf32> to vector<16xf32>
    %132 = vector.shape_cast %131 : vector<16xf32> to vector<1x16xf32>
    %133 = arith.mulf %126, %126 : vector<256x16xf32>
    %cst_164 = arith.constant dense<0.000000e+00> : vector<16xf32>
    %134 = vector.multi_reduction <add>, %133, %cst_164 [0] : vector<256x16xf32> to vector<16xf32>
    %135 = vector.shape_cast %134 : vector<16xf32> to vector<1x16xf32>
    %136 = tpu.concatenate %132, %135 in 0 : vector<1x16xf32>, vector<1x16xf32> -> vector<2x16xf32>
    %c0_165 = arith.constant 0 : index
    %c0_166 = arith.constant 0 : index
    %c0_167 = arith.constant 0 : index
    %137 = vector.load %arg6[%c0_165, %c0_166, %c0_167] : memref<1x2x16xf32, #tpu.memory_space<vmem>>, vector<1x2x16xf32>
    %138 = vector.shape_cast %137 : vector<1x2x16xf32> to vector<2x16xf32>
    %139 = vector.shape_cast %136 : vector<2x16xf32> to vector<1x2x16xf32>
    tpu.vector_store %arg6[%c0_165, %c0_166, %c0_167], %139 {strides = array<i32>} : memref<1x2x16xf32, #tpu.memory_space<vmem>>, vector<1x2x16xf32>,
    return
  }
  func.func @transform_0(%arg0: i32) -> (i32, i32, i32, i32) {
    %c0_i32 = arith.constant 0 : i32
    %c0_i32_0 = arith.constant 0 : i32
    %c0_i32_1 = arith.constant 0 : i32
    %c0_i32_2 = arith.constant 0 : i32
    return %arg0, %c0_i32, %c0_i32_0, %c0_i32_1 : i32, i32, i32, i32
  }
  func.func @transform_1(%arg0: i32) -> (i32, i32, i32, i32) {
    %c0_i32 = arith.constant 0 : i32
    %c0_i32_0 = arith.constant 0 : i32
    %c0_i32_1 = arith.constant 0 : i32
    %c0_i32_2 = arith.constant 0 : i32
    return %arg0, %c0_i32, %c0_i32_0, %c0_i32_1 : i32, i32, i32, i32
  }
  func.func @transform_2(%arg0: i32) -> (i32, i32, i32, i32) {
    %c0_i32 = arith.constant 0 : i32
    %c0_i32_0 = arith.constant 0 : i32
    %c0_i32_1 = arith.constant 0 : i32
    %c0_i32_2 = arith.constant 0 : i32
    %c0_i32_3 = arith.constant 0 : i32
    return %c0_i32, %c0_i32_0, %c0_i32_1, %c0_i32_2 : i32, i32, i32, i32
  }
  func.func @transform_3(%arg0: i32) -> (i32, i32, i32, i32) {
    %c0_i32 = arith.constant 0 : i32
    %c0_i32_0 = arith.constant 0 : i32
    %c0_i32_1 = arith.constant 0 : i32
    %c0_i32_2 = arith.constant 0 : i32
    %c0_i32_3 = arith.constant 0 : i32
    return %c0_i32, %c0_i32_0, %c0_i32_1, %c0_i32_2 : i32, i32, i32, i32
  }
  func.func @transform_4(%arg0: i32) -> (i32, i32, i32, i32) {
    %c0_i32 = arith.constant 0 : i32
    %c0_i32_0 = arith.constant 0 : i32
    %c0_i32_1 = arith.constant 0 : i32
    %c0_i32_2 = arith.constant 0 : i32
    return %arg0, %c0_i32, %c0_i32_0, %c0_i32_1 : i32, i32, i32, i32
  }
  func.func @transform_5(%arg0: i32) -> (i32, i32, i32) {
    %c0_i32 = arith.constant 0 : i32
    %c0_i32_0 = arith.constant 0 : i32
    %c0_i32_1 = arith.constant 0 : i32
    return %arg0, %c0_i32, %c0_i32_0 : i32, i32, i32
  }
}

</mosaic_0001>

<bundles_post_ra>
// kernel: up_forward.3
= control target key start
LH: loop header
LB: loop body
LE: loop exit
PB: predicated region body
PF: predicated region fallthrough
CT: control target
= control target key end

     0   :  { %s4018_s18 = smov 0   ;;  %s4968_s0 = inlined_call_operand.vmem [shape: f32[2,16,16,16], index: 0, kind: input, shape index: {}]   ;;  %s4969_s1 = inlined_call_operand.vmem [shape: f32[1,16], index: 1, kind: input, shape index: {}]   ;;  %s4970_s2 = inlined_call_operand.vmem [shape: f32[1,16], index: 2, kind: input, shape index: {}]   ;;  %s4971_s3 = inlined_call_operand.vmem [shape: bf16[3,3,16,16], index: 3, kind: input, shape index: {}]   ;;  %s4972_s4 = inlined_call_operand.vmem [shape: f32[2,16,16,16], index: 4, kind: output, shape index: {0}]   ;;  %s4973_s5 = inlined_call_operand.vmem [shape: f32[2,2,16], index: 5, kind: output, shape index: {1}]  }
   0x1 LB: > { %s3058_s19 = sadd.s32 4294967295, %s3985_s18   ;;  %p3062_p0 = scmp.ge.s32.totalorder %s3985_s18, 1  ;;  %s3985_s18 = sphi %s4018_s18, %s16_s18  }
   0x2   : > { %p190_p1 = scmp.lt.s32.totalorder %s3985_s18, 3 }
   0x4   : > { %p191_p2 = pnand %p3062_p0, %p190_p1 }
   0x6   : > { %194 = sbr.rel (%p191_p2) target bundleno = 575 (0x23f), region = 36 }
   0xd   : > { %v3969_v0 = vld [vmem:[%s4971_s3 + $0x8] sm:$0xff]   ;;  %v3970_v1 = vld [vmem:[%s4971_s3 + $0x20] sm:$0xff]   ;;  %v3987_v2 = vmov 0   ;;  %vm548_vm0 = vcmask 1040384   ;;  %vm549_vm1 = vsmask.f32 256 }
   0xe   : > { %v398_v3 = vrot.slane %v3987_v2, 7  ;;  %3396 = vmatprep.subr.bf16.mxu1 %v3969_v0  ;;  %3532 = vmatprep.subr.bf16.mxu0 %v3970_v1  ;;  %vm4033_vm2 = vmand %vm548_vm0, %vm549_vm1  ;;  %vm587_vm3 = vsmask.f32 7424  ;;  %p222_p3 = scmp.lt.s32.totalorder %s3058_s19, 1  ;;  %v4053_v10 = vld [vmem:[%s4969_s1] ss:$0 sm:$0xff] }
   0xf   : > { %3397 = vmatpush3.bf16.msra.mxu1 %v3969_v0  ;;  %3533 = vmatpush3.bf16.msra.mxu0 %v3970_v1  ;;  %v4058_v11 = vld [vmem:[%s4971_s3] sm:$0xff]   ;;  %v4063_v12 = vld [vmem:[%s4971_s3 + $0x28] sm:$0xff]   ;;  %vm789_vm4 = vcmask 130048   ;;  %vm1230_vm5 = vcmask 1046528   ;;  %vm2970_vm6 = vcmask 123904  }
  0x10   : > { %v4039_v5 = vsel %vm4033_vm2, 0, %v398_v3  ;;  %v4043_v6 = vsel %vm4033_vm2, %v398_v3, 0  ;;  %s5000_s19 = smov (!%p222_p3, %s3058_s19), 1  ;;  %v4069_v15 = vld [vmem:[%s4970_s2] ss:$0 sm:$0xff]  ;;  %3430 = vmatprep.subr.bf16.mxu1 %v4058_v11  ;;  %3566 = vmatprep.subr.bf16.mxu0 %v4063_v12 }
  0x11   : > { %v589_v7 = vshrl.u32 %v4039_v5, 16  ;;  %v591_v8 = vshll.u32 %v4039_v5, 16  ;;  %v596_v9 = vshll.u32 %v4043_v6, 16  ;;  %s3241_s30 = sshll.u32 %s5000_s19, 8  ;;  %s3067_s28 = sshll.u32 %s5000_s19, 1 }
  0x12   : > { %s4077_s10 = scalar_lea.vmem %s4968_s0, %s3241_s30  ;;  %s4814_s27 = scalar_lea.vmem %s4972_s4, %s3241_s30 }
  0x13   : > { %v593_v13 = vrot.slane %v591_v8, 1  ;;  %v598_v14 = vrot.slane %v596_v9, 1  ;;  %v237_v17 = vld [vmem:[%s4077_s10] sm:$0xff]  ;;  %v238_v18 = vld [vmem:[%s4077_s10 + $0x8] sm:$0xff]  ;;  %v239_v19 = vld [vmem:[%s4077_s10 + $0x10] sm:$0xff]  ;;  %s235_s6 = scalar_lea.vmem %s4973_s5, %s3067_s28 }
  0x14   : > { %v276_v20 = vmul.f32 %v4053_v10, %v237_v17  ;;  %v277_v21 = vmul.f32 %v4053_v10, %v238_v18  ;;  %v240_v22 = vld [vmem:[%s4077_s10 + $0x18] sm:$0xff]  ;;  %v278_v23 = vmul.f32 %v4053_v10, %v239_v19  ;;  %v241_v24 = vld [vmem:[%s4077_s10 + $0x20] sm:$0xff]  ;;  %v242_v25 = vld [vmem:[%s4077_s10 + $0x28] sm:$0xff] }
  0x15   : > { %v594_v16 = vor.u32 %v593_v13, %v589_v7  ;;  %v279_v27 = vmul.f32 %v4053_v10, %v240_v22  ;;  %v280_v28 = vmul.f32 %v4053_v10, %v241_v24  ;;  %v281_v29 = vmul.f32 %v4053_v10, %v242_v25  ;;  %v243_v30 = vld [vmem:[%s4077_s10 + $0x30] sm:$0xff]  ;;  %v244_v31 = vld [vmem:[%s4077_s10 + $0x38] sm:$0xff]  ;;  %v245_v40 = vld [vmem:[%s4077_s10 + $0x40] sm:$0xff] }
  0x16   : > { %v315_v32 = vadd.f32 %v4069_v15, %v276_v20  ;;  %v316_v33 = vadd.f32 %v4069_v15, %v277_v21  ;;  %v317_v34 = vadd.f32 %v4069_v15, %v278_v23  ;;  %v282_v35 = vmul.f32 %v4053_v10, %v243_v30  ;;  %v246_v41 = vld [vmem:[%s4077_s10 + $0x48] sm:$0xff]  ;;  %v247_v46 = vld [vmem:[%s4077_s10 + $0x50] sm:$0xff]  ;;  %v248_v63 = vld [vmem:[%s4077_s10 + $0x58] sm:$0xff] }
  0x17   : > { %v4090_v26 = vsel %vm587_vm3, %v594_v16, %v598_v14  ;;  %v318_v36 = vadd.f32 %v4069_v15, %v279_v27  ;;  %v319_v37 = vadd.f32 %v4069_v15, %v280_v28  ;;  %v320_v38 = vadd.f32 %v4069_v15, %v281_v29 }
  0x18   : > { %4987 = vst [vmem:[#allocation2_spill] sm:$0xff] %v4090_v26  ;;  %3398 = vmatprep.mubr.msk.bf16.mxu1 %vm789_vm4, %v4090_v26  ;;  %v283_v39 = vmul.f32 %v4053_v10, %v244_v31  ;;  %v347_v42 = vmax.f32 %v315_v32, 0.0  ;;  %v348_v43 = vmax.f32 %v316_v33, 0.0  ;;  %v349_v44 = vmax.f32 %v317_v34, 0.0 }
  0x19   : > { %v321_v45 = vadd.f32 %v4069_v15, %v282_v35  ;;  %v350_v47 = vmax.f32 %v318_v36, 0.0  ;;  %v351_v48 = vmax.f32 %v319_v37, 0.0  ;;  %v352_v49 = vmax.f32 %v320_v38, 0.0 }
  0x1a   : > { %v322_v50 = vadd.f32 %v4069_v15, %v283_v39  ;;  %v379_v51 = vpack.c.bf16 %v348_v43, %v347_v42  ;;  %v284_v53 = vmul.f32 %v4053_v10, %v245_v40  ;;  %v285_v54 = vmul.f32 %v4053_v10, %v246_v41 }
  0x1b   : > { %v353_v52 = vmax.f32 %v321_v45, 0.0  ;;  %v380_v55 = vpack.c.bf16 %v350_v47, %v349_v44  ;;  %v381_v56 = vpack.c.bf16 %v352_v49, %v351_v48  ;;  %v286_v58 = vmul.f32 %v4053_v10, %v247_v46 }
  0x1c   : > { %v354_v57 = vmax.f32 %v322_v50, 0.0  ;;  %v403_v59 = vshrl.u32 %v379_v51, 16  ;;  %v406_v60 = vshll.u32 %v379_v51, 16  ;;  %v323_v61 = vadd.f32 %v4069_v15, %v284_v53 }
  0x1d   : > { %v324_v62 = vadd.f32 %v4069_v15, %v285_v54  ;;  %v410_v0 = vshrl.u32 %v380_v55, 16  ;;  %v413_v1 = vshll.u32 %v380_v55, 16  ;;  %v417_v2 = vshrl.u32 %v381_v56, 16 }
  0x1e   : > { %v420_v3 = vshll.u32 %v381_v56, 16  ;;  %v405_v7 = vrot.slane %v403_v59, 7  ;;  %v382_v8 = vpack.c.bf16 %v354_v57, %v353_v52  ;;  %v355_v9 = vmax.f32 %v323_v61, 0.0  ;;  %v4168_v61 = vld [vmem:[%s4971_s3 + $0x30] sm:$0xff]  }
  0x1f   : > { %v356_v13 = vmax.f32 %v324_v62, 0.0  ;;  %v412_v14 = vrot.slane %v410_v0, 7  ;;  %v419_v16 = vrot.slane %v417_v2, 7  ;;  %v287_v17 = vmul.f32 %v4053_v10, %v248_v63  ;;  %v250_v2 = vld [vmem:[%s4077_s10 + $0x68] sm:$0xff] }
  0x20   : > { %v4120_v18 = vadd.f32 %v4069_v15, %v286_v58  ;;  %v408_v19 = vor.u32 %v406_v60, %v405_v7  ;;  %v4124_v20 = vsel %vm4033_vm2, %v405_v7, 0  ;;  %v424_v21 = vshrl.u32 %v382_v8, 16  ;;  %v249_v60 = vld [vmem:[%s4077_s10 + $0x60] sm:$0xff]  ;;  %v4184_v7 = vld [vmem:[%s4971_s3 + $0x10] sm:$0xff]  }
  0x21   : > { %v427_v22 = vshll.u32 %v382_v8, 16  ;;  %v608_v23 = vshll.u32 %v4124_v20, 16  ;;  %v415_v24 = vor.u32 %v413_v1, %v412_v14  ;;  %v4129_v25 = vsel %vm4033_vm2, %v412_v14, 0 }
  0x22   : > { %v422_v27 = vor.u32 %v420_v3, %v419_v16  ;;  %v4133_v28 = vsel %vm4033_vm2, 0, %v408_v19  ;;  %v620_v29 = vshll.u32 %v4129_v25, 16  ;;  %v1238_v30 = vrot.slane %v4129_v25, 1  ;;  %v251_v3 = vld [vmem:[%s4077_s10 + $0x70] sm:$0xff] }
  0x23   : > { %v4139_v31 = vsel %vm4033_vm2, %v419_v16, 0  ;;  %v601_v32 = vshrl.u32 %v4133_v28, 16  ;;  %v603_v33 = vshll.u32 %v4133_v28, 16  ;;  %v610_v34 = vrot.slane %v608_v23, 1 }
  0x24   : > { %v4145_v35 = vsel %vm4033_vm2, 0, %v415_v24  ;;  %v622_v38 = vrot.slane %v620_v29, 1  ;;  %v4151_v39 = vsel %vm4033_vm2, 0, %v422_v27  ;;  %v632_v43 = vshll.u32 %v4139_v31, 16 }
  0x25   : > { %v613_v36 = vshrl.u32 %v4145_v35, 16  ;;  %v615_v37 = vshll.u32 %v4145_v35, 16  ;;  %v605_v40 = vrot.slane %v603_v33, 1  ;;  %v625_v41 = vshrl.u32 %v4151_v39, 16  ;;  %v253_v33 = vld [vmem:[%s4077_s10 + $0x80] sm:$0xff] }
  0x26   : > { %v627_v42 = vshll.u32 %v4151_v39, 16  ;;  %v426_v45 = vrot.slane %v424_v21, 7  ;;  %v383_v46 = vpack.c.bf16 %v356_v13, %v355_v9  ;;  %v326_v47 = vadd.f32 %v4069_v15, %v287_v17 }
  0x27   : > { %v617_v44 = vrot.slane %v615_v37, 1  ;;  %v606_v48 = vor.u32 %v605_v40, %v601_v32  ;;  %v634_v50 = vrot.slane %v632_v43, 1  ;;  %v357_v51 = vmax.f32 %v4120_v18, 0.0 }
  0x28   : > { %v629_v49 = vrot.slane %v627_v42, 1  ;;  %v429_v53 = vor.u32 %v427_v22, %v426_v45  ;;  %v4160_v54 = vsel %vm4033_vm2, %v426_v45, 0  ;;  %v431_v55 = vshrl.u32 %v383_v46, 16  ;;  %v252_v22 = vld [vmem:[%s4077_s10 + $0x78] sm:$0xff] }
  0x29   : > { %v618_v52 = vor.u32 %v617_v44, %v613_v36  ;;  %v611_v56 = vsel %vm587_vm3, %v606_v48, %v610_v34  ;;  %v644_v58 = vshll.u32 %v4160_v54, 16  ;;  %v434_v59 = vshll.u32 %v383_v46, 16  ;;  %v254_v44 = vld [vmem:[%s4077_s10 + $0x88] sm:$0xff] }
  0x2a   : > { %v630_v57 = vor.u32 %v629_v49, %v625_v41  ;;  %3399 = vmatmul.mubr.msk.bf16.vlgmr.msra.gmra.mrb[0].mxu1 %vm789_vm4, %v611_v56  ;;  %3534 = vmatprep.mubr.msk.bf16.mxu0 %vm789_vm4, %v611_v56  ;;  %v4177_v63 = vsel %vm4033_vm2, 0, %v429_v53  ;;  %v433_v0 = vrot.slane %v431_v55, 7  ;;  %v358_v1 = vmax.f32 %v326_v47, 0.0 }
  0x2b   : > { %v4173_v62 = vsel %vm587_vm3, %v618_v52, %v622_v38  ;;  %3431 = vmatpush3.bf16.msra.mxu1 %v4058_v11  ;;  %v637_v9 = vshrl.u32 %v4177_v63, 16  ;;  %v639_v13 = vshll.u32 %v4177_v63, 16  ;;  %v646_v14 = vrot.slane %v644_v58, 1 }
  0x2c   : > { %3535 = vmatmul.mubr.msk.bf16.vlgmr.msra.gmra.mrb[0].mxu0 %vm789_vm4, %v4173_v62  ;;  %v4190_v8 = vsel %vm587_vm3, %v630_v57, %v634_v50  ;;  %3402 = vmatprep.mubr.msk.bf16.mxu1 %vm789_vm4, %v4173_v62  ;;  %v436_v16 = vor.u32 %v434_v59, %v433_v0  ;;  %v4199_v11 = vsel %vm4033_vm2, %v433_v0, 0  ;;  %v384_v17 = vpack.c.bf16 %v358_v1, %v357_v51 }
  0x2d   : > { %3567 = vmatpush3.bf16.msra.mxu0 %v4063_v12  ;;  %v288_v18 = vmul.f32 %v4053_v10, %v249_v60  ;;  %3538 = vmatprep.mubr.msk.bf16.mxu0 %vm789_vm4, %v4190_v8  ;;  %v641_v19 = vrot.slane %v639_v13, 1  ;;  %v656_v21 = vshll.u32 %v4199_v11, 16  ;;  %v289_v12 = vmul.f32 %v4053_v10, %v250_v2 }
  0x2e   : > { %v290_v23 = vmul.f32 %v4053_v10, %v251_v3  ;;  %3600 = vmatprep.subr.bf16.mxu0 %v4168_v61  ;;  %v4211_v24 = vsel %vm4033_vm2, 0, %v436_v16  ;;  %v438_v27 = vshrl.u32 %v384_v17, 16  ;;  %v441_v29 = vshll.u32 %v384_v17, 16  ;;  %3464 = vmatprep.subr.bf16.mxu1 %v4184_v7 }
  0x2f   : > { %v327_v32 = vadd.f32 %v4069_v15, %v288_v18  ;;  %v642_v34 = vor.u32 %v641_v19, %v637_v9  ;;  %v649_v36 = vshrl.u32 %v4211_v24, 16  ;;  %v651_v37 = vshll.u32 %v4211_v24, 16  ;;  %v255_v18 = vld [vmem:[%s4077_s10 + $0x90] sm:$0xff] }
  0x30   : > { %v658_v38 = vrot.slane %v656_v21, 1  ;;  %v440_v40 = vrot.slane %v438_v27, 7  ;;  %v328_v41 = vadd.f32 %v4069_v15, %v289_v12  ;;  %v291_v43 = vmul.f32 %v4053_v10, %v252_v22 }
  0x31   : > { %v359_v42 = vmax.f32 %v327_v32, 0.0  ;;  %v4222_v45 = vsel %vm587_vm3, %v642_v34, %v646_v14  ;;  %v653_v46 = vrot.slane %v651_v37, 1  ;;  %v329_v47 = vadd.f32 %v4069_v15, %v290_v23 }
  0x32   : > { %v292_v48 = vmul.f32 %v4053_v10, %v253_v33  ;;  %3403 = vmatmul.mubr.msk.bf16.gmra.mrb[4].mxu1 %vm789_vm4, %v4190_v8  ;;  %v443_v49 = vor.u32 %v441_v29, %v440_v40  ;;  %v4230_v50 = vsel %vm4033_vm2, %v440_v40, 0  ;;  %v360_v51 = vmax.f32 %v328_v41, 0.0  ;;  %v256_v33 = vld [vmem:[%s4077_s10 + $0x98] sm:$0xff] }
  0x33   : > { %v330_v52 = vadd.f32 %v4069_v15, %v291_v43  ;;  %3406 = vmatprep.mubr.msk.bf16.mxu1 %vm789_vm4, %v4222_v45  ;;  %v654_v53 = vor.u32 %v653_v46, %v649_v36  ;;  %v668_v55 = vshll.u32 %v4230_v50, 16  ;;  %v361_v56 = vmax.f32 %v329_v47, 0.0 }
  0x34   : > { %3539 = vmatmul.mubr.msk.bf16.gmra.mrb[4].mxu0 %vm789_vm4, %v4222_v45  ;;  %v293_v57 = vmul.f32 %v4053_v10, %v254_v44  ;;  %v4241_v58 = vsel %vm4033_vm2, 0, %v443_v49  ;;  %v385_v59 = vpack.c.bf16 %v360_v51, %v359_v42  ;;  %v331_v0 = vadd.f32 %v4069_v15, %v292_v48 }
  0x35   : > { %v362_v60 = vmax.f32 %v330_v52, 0.0  ;;  %v4245_v1 = vsel %vm587_vm3, %v654_v53, %v658_v38  ;;  %v661_v2 = vshrl.u32 %v4241_v58, 16  ;;  %v663_v3 = vshll.u32 %v4241_v58, 16 }
  0x36   : > { %v670_v9 = vrot.slane %v668_v55, 1  ;;  %3542 = vmatprep.mubr.msk.bf16.mxu0 %vm789_vm4, %v4245_v1  ;;  %v445_v13 = vshrl.u32 %v385_v59, 16  ;;  %v448_v14 = vshll.u32 %v385_v59, 16  ;;  %v332_v17 = vadd.f32 %v4069_v15, %v293_v57 }
  0x37   : > { %v386_v16 = vpack.c.bf16 %v362_v60, %v361_v56  ;;  %v665_v19 = vrot.slane %v663_v3, 1  ;;  %v363_v21 = vmax.f32 %v331_v0, 0.0  ;;  %v1234_v12 = vrot.slane %v4133_v28, 1  ;;  %v257_v0 = vld [vmem:[%s4077_s10 + $0xa0] sm:$0xff] }
  0x38   : > { %v1235_v22 = vrot.slane %v4124_v20, 1  ;;  %v447_v23 = vrot.slane %v445_v13, 7  ;;  %v364_v32 = vmax.f32 %v332_v17, 0.0  ;;  %v1237_v37 = vrot.slane %v4145_v35, 1 }
  0x39   : > { %v452_v27 = vshrl.u32 %v386_v16, 16  ;;  %v455_v29 = vshll.u32 %v386_v16, 16  ;;  %v666_v34 = vor.u32 %v665_v19, %v661_v2  ;;  %v294_v38 = vmul.f32 %v4053_v10, %v255_v18 }
  0x3a   : > { %v4257_v36 = vsel %vm1230_vm5, %v1234_v12, %v1235_v22  ;;  %3407 = vmatmul.mubr.msk.bf16.gmra.mrb[8].mxu1 %vm789_vm4, %v4245_v1  ;;  %v450_v40 = vor.u32 %v448_v14, %v447_v23  ;;  %v4265_v20 = vsel %vm4033_vm2, %v447_v23, 0  ;;  %v387_v42 = vpack.c.bf16 %v364_v32, %v363_v21  ;;  %v258_v14 = vld [vmem:[%s4077_s10 + $0xa8] sm:$0xff] }
  0x3b   : > { %v454_v41 = vrot.slane %v452_v27, 7  ;;  %v4268_v43 = vsel %vm587_vm3, %v666_v34, %v670_v9  ;;  %v680_v44 = vshll.u32 %v4265_v20, 16  ;;  %v4274_v46 = vsel %vm1230_vm5, %v1237_v37, %v1238_v30 }
  0x3c   : > { %v295_v47 = vmul.f32 %v4053_v10, %v256_v33  ;;  %3543 = vmatmul.mubr.msk.bf16.gmra.mrb[8].mxu0 %vm789_vm4, %v4268_v43  ;;  %3410 = vmatprep.mubr.msk.bf16.mxu1 %vm789_vm4, %v4268_v43  ;;  %v4283_v48 = vsel %vm4033_vm2, 0, %v450_v40  ;;  %v459_v30 = vshrl.u32 %v387_v42, 16  ;;  %v462_v59 = vshll.u32 %v387_v42, 16 }
  0x3d   : > { %v457_v49 = vor.u32 %v455_v29, %v454_v41  ;;  %v4287_v25 = vsel %vm4033_vm2, %v454_v41, 0  ;;  %v673_v51 = vshrl.u32 %v4283_v48, 16  ;;  %v675_v52 = vshll.u32 %v4283_v48, 16 }
  0x3e   : > { %v682_v53 = vrot.slane %v680_v44, 1  ;;  %v692_v55 = vshll.u32 %v4287_v25, 16  ;;  %v461_v57 = vrot.slane %v459_v30, 7  ;;  %v333_v60 = vadd.f32 %v4069_v15, %v294_v38 }
  0x3f   : > { %v4294_v56 = vsel %vm4033_vm2, 0, %v457_v49  ;;  %v677_v2 = vrot.slane %v675_v52, 1  ;;  %v334_v18 = vadd.f32 %v4069_v15, %v295_v47  ;;  %v296_v23 = vmul.f32 %v4053_v10, %v257_v0  ;;  %v259_v47 = vld [vmem:[%s4077_s10 + $0xb0] sm:$0xff] }
  0x40   : > { %v685_v3 = vshrl.u32 %v4294_v56, 16  ;;  %v687_v9 = vshll.u32 %v4294_v56, 16  ;;  %v694_v13 = vrot.slane %v692_v55, 1  ;;  %v464_v16 = vor.u32 %v462_v59, %v461_v57  ;;  %v261_v55 = vld [vmem:[%s4077_s10 + $0xc0] sm:$0xff] }
  0x41   : > { %v4303_v17 = vsel %vm4033_vm2, %v461_v57, 0  ;;  %v365_v19 = vmax.f32 %v333_v60, 0.0  ;;  %v678_v21 = vor.u32 %v677_v2, %v673_v51  ;;  %v366_v29 = vmax.f32 %v334_v18, 0.0  ;;  %v262_v2 = vld [vmem:[%s4077_s10 + $0xc8] sm:$0xff] }
  0x42   : > { %v689_v12 = vrot.slane %v687_v9, 1  ;;  %v704_v22 = vshll.u32 %v4303_v17, 16  ;;  %v4310_v27 = vsel %vm4033_vm2, 0, %v464_v16  ;;  %v297_v32 = vmul.f32 %v4053_v10, %v258_v14 }
  0x43   : > { %v1240_v33 = vrot.slane %v4151_v39, 1  ;;  %v4315_v34 = vsel %vm587_vm3, %v678_v21, %v682_v53  ;;  %v697_v38 = vshrl.u32 %v4310_v27, 16  ;;  %v699_v40 = vshll.u32 %v4310_v27, 16  ;;  %v260_v53 = vld [vmem:[%s4077_s10 + $0xb8] sm:$0xff] }
  0x44   : > { %v690_v37 = vor.u32 %v689_v12, %v685_v3  ;;  %3411 = vmatmul.mubr.msk.bf16.gmra.mrb[12].mxu1 %vm789_vm4, %v4315_v34  ;;  %3546 = vmatprep.mubr.msk.bf16.mxu0 %vm789_vm4, %v4315_v34  ;;  %v388_v41 = vpack.c.bf16 %v366_v29, %v365_v19  ;;  %v335_v42 = vadd.f32 %v4069_v15, %v296_v23  ;;  %v706_v51 = vrot.slane %v704_v22, 1 }
  0x45   : > { %v336_v44 = vadd.f32 %v4069_v15, %v297_v32  ;;  %v701_v30 = vrot.slane %v699_v40, 1  ;;  %v1241_v52 = vrot.slane %v4139_v31, 1  ;;  %v1243_v31 = vrot.slane %v4177_v63, 1 }
  0x46   : > { %v4327_v49 = vsel %vm587_vm3, %v690_v37, %v694_v13  ;;  %v466_v57 = vshrl.u32 %v388_v41, 16  ;;  %v469_v59 = vshll.u32 %v388_v41, 16  ;;  %v367_v60 = vmax.f32 %v335_v42, 0.0 }
  0x47   : > { %3547 = vmatmul.mubr.msk.bf16.gmra.mrb[12].mxu0 %vm789_vm4, %v4327_v49  ;;  %3414 = vmatprep.mubr.msk.bf16.mxu1 %vm789_vm4, %v4327_v49  ;;  %v368_v0 = vmax.f32 %v336_v44, 0.0  ;;  %v702_v3 = vor.u32 %v701_v30, %v697_v38  ;;  %v4340_v9 = vsel %vm1230_vm5, %v1240_v33, %v1241_v52  ;;  %v298_v13 = vmul.f32 %v4053_v10, %v259_v47 }
  0x48   : > { %3568 = vmatprep.mubr.msk.bf16.mxu0 %vm789_vm4, %v4257_v36  ;;  %v468_v14 = vrot.slane %v466_v57, 7  ;;  %v299_v18 = vmul.f32 %v4053_v10, %v260_v53  ;;  %v300_v19 = vmul.f32 %v4053_v10, %v261_v55  ;;  %v1244_v12 = vrot.slane %v4160_v54, 1 }
  0x49   : > { %v389_v16 = vpack.c.bf16 %v368_v0, %v367_v60  ;;  %v4347_v21 = vsel %vm587_vm3, %v702_v3, %v706_v51  ;;  %v337_v22 = vadd.f32 %v4069_v15, %v298_v13  ;;  %v301_v23 = vmul.f32 %v4053_v10, %v262_v2  ;;  %v4370_v51 = vld [vmem:[%s4971_s3 + $0x38] sm:$0xff]  }
  0x4a   : > { %4988 = vst [vmem:[#allocation3_spill] sm:$0xff] %v4347_v21  ;;  %v471_v29 = vor.u32 %v469_v59, %v468_v14  ;;  %v4354_v32 = vsel %vm4033_vm2, %v468_v14, 0  ;;  %v338_v40 = vadd.f32 %v4069_v15, %v299_v18  ;;  %v339_v42 = vadd.f32 %v4069_v15, %v300_v19 }
  0x4b   : > { %v473_v33 = vshrl.u32 %v389_v16, 16  ;;  %v476_v37 = vshll.u32 %v389_v16, 16  ;;  %v716_v38 = vshll.u32 %v4354_v32, 16  ;;  %v369_v41 = vmax.f32 %v337_v22, 0.0 }
  0x4c   : > { %3415 = vmatmul.mubr.msk.bf16.gmra.mrb[16].mxu1 %vm789_vm4, %v4347_v21  ;;  %v4363_v54 = vsel %vm4033_vm2, 0, %v471_v29  ;;  %v340_v47 = vadd.f32 %v4069_v15, %v301_v23  ;;  %v1246_v30 = vrot.slane %v4211_v24, 1  ;;  %v370_v57 = vmax.f32 %v338_v40, 0.0 }
  0x4d   : > { %v475_v44 = vrot.slane %v473_v33, 7  ;;  %v709_v52 = vshrl.u32 %v4363_v54, 16  ;;  %v711_v53 = vshll.u32 %v4363_v54, 16  ;;  %v718_v55 = vrot.slane %v716_v38, 1  ;;  %v264_v38 = vld [vmem:[%s4077_s10 + $0xd8] sm:$0xff] }
  0x4e   : > { %v371_v0 = vmax.f32 %v339_v42, 0.0  ;;  %v372_v2 = vmax.f32 %v340_v47, 0.0  ;;  %v390_v14 = vpack.c.bf16 %v370_v57, %v369_v41  ;;  %v1247_v16 = vrot.slane %v4199_v11, 1 }
  0x4f   : > { %3569 = vmatmul.mubr.msk.bf16.vlgmr.msra.gmra.mrb[0].mxu0 %vm789_vm4, %v4274_v46  ;;  %v478_v59 = vor.u32 %v476_v37, %v475_v44  ;;  %v4378_v60 = vsel %vm4033_vm2, %v475_v44, 0  ;;  %v713_v3 = vrot.slane %v711_v53, 1  ;;  %v4390_v19 = vsel %vm1230_vm5, %v1243_v31, %v1244_v12  ;;  %v263_v37 = vld [vmem:[%s4077_s10 + $0xd0] sm:$0xff]  ;;  %v265_v31 = vld [vmem:[%s4077_s10 + $0xe0] sm:$0xff]  ;;  %v266_v12 = vld [vmem:[%s4077_s10 + $0xe8] sm:$0xff] }
  0x50   : > { %3601 = vmatpush3.bf16.msra.mxu0 %v4168_v61  ;;  %v728_v13 = vshll.u32 %v4378_v60, 16  ;;  %3572 = vmatprep.mubr.msk.bf16.mxu0 %vm789_vm4, %v4340_v9  ;;  %v391_v61 = vpack.c.bf16 %v372_v2, %v371_v0  ;;  %v1249_v22 = vrot.slane %v4241_v58, 1  ;;  %v1250_v11 = vrot.slane %v4230_v50, 1 }
  0x51   : > { %v4387_v18 = vsel %vm4033_vm2, 0, %v478_v59  ;;  %3634 = vmatprep.subr.bf16.mxu0 %v4370_v51  ;;  %v714_v23 = vor.u32 %v713_v3, %v709_v52  ;;  %v480_v40 = vshrl.u32 %v390_v14, 16  ;;  %v483_v41 = vshll.u32 %v390_v14, 16 }
  0x52   : > { %v721_v29 = vshrl.u32 %v4387_v18, 16  ;;  %v723_v33 = vshll.u32 %v4387_v18, 16  ;;  %v487_v42 = vshrl.u32 %v391_v61, 16  ;;  %v490_v44 = vshll.u32 %v391_v61, 16 }
  0x53   : > { %v4402_v47 = vsel %vm587_vm3, %v714_v23, %v718_v55  ;;  %v730_v57 = vrot.slane %v728_v13, 1  ;;  %v4405_v52 = vsel %vm1230_vm5, %v1246_v30, %v1247_v16  ;;  %v482_v50 = vrot.slane %v480_v40, 7 }
  0x54   : > { %4989 = vst [vmem:[#allocation4_spill] sm:$0xff] %v4402_v47  ;;  %v725_v53 = vrot.slane %v723_v33, 1  ;;  %3418 = vmatprep.mubr.msk.bf16.mxu1 %vm789_vm4, %v4402_v47  ;;  %v489_v59 = vrot.slane %v487_v42, 7  ;;  %v302_v0 = vmul.f32 %v4053_v10, %v263_v37  ;;  %v303_v2 = vmul.f32 %v4053_v10, %v264_v38 }
  0x55   : > { %v4412_v14 = vsel %vm1230_vm5, %v1249_v22, %v1250_v11  ;;  %v304_v55 = vmul.f32 %v4053_v10, %v265_v31  ;;  %v305_v13 = vmul.f32 %v4053_v10, %v266_v12  ;;  %v485_v30 = vor.u32 %v483_v41, %v482_v50 }
  0x56   : > { %v726_v3 = vor.u32 %v725_v53, %v721_v29  ;;  %v4420_v16 = vsel %vm4033_vm2, %v482_v50, 0  ;;  %v492_v61 = vor.u32 %v490_v44, %v489_v59  ;;  %v4424_v23 = vsel %vm4033_vm2, %v489_v59, 0 }
  0x57   : > { %3573 = vmatmul.mubr.msk.bf16.gmra.mrb[4].mxu0 %vm789_vm4, %v4390_v19  ;;  %v740_v29 = vshll.u32 %v4420_v16, 16  ;;  %v752_v33 = vshll.u32 %v4424_v23, 16  ;;  %v341_v11 = vadd.f32 %v4069_v15, %v302_v0  ;;  %v4438_v37 = vsel %vm4033_vm2, 0, %v485_v30 }
  0x58   : > { %v4427_v22 = vsel %vm587_vm3, %v726_v3, %v730_v57  ;;  %3576 = vmatprep.mubr.msk.bf16.mxu0 %vm789_vm4, %v4405_v52  ;;  %v4442_v38 = vsel %vm4033_vm2, 0, %v492_v61  ;;  %v342_v40 = vadd.f32 %v4069_v15, %v303_v2  ;;  %v343_v41 = vadd.f32 %v4069_v15, %v304_v55 }
  0x59   : > { %4990 = vst [vmem:[#allocation5_spill] sm:$0xff] %v4427_v22  ;;  %3419 = vmatmul.mubr.msk.bf16.gmra.mrb[20].mxu1 %vm789_vm4, %v4427_v22  ;;  %v733_v42 = vshrl.u32 %v4438_v37, 16  ;;  %v735_v44 = vshll.u32 %v4438_v37, 16  ;;  %v742_v31 = vrot.slane %v740_v29, 1  ;;  %v1252_v12 = vrot.slane %v4283_v48, 1 }
  0x5a   : > { %v745_v53 = vshrl.u32 %v4442_v38, 16  ;;  %v747_v57 = vshll.u32 %v4442_v38, 16  ;;  %v373_v50 = vmax.f32 %v341_v11, 0.0  ;;  %v374_v59 = vmax.f32 %v342_v40, 0.0 }
  0x5b   : > { %v737_v0 = vrot.slane %v735_v44, 1  ;;  %v344_v3 = vadd.f32 %v4069_v15, %v305_v13  ;;  %v375_v30 = vmax.f32 %v343_v41, 0.0  ;;  %v1253_v2 = vrot.slane %v4265_v20, 1 }
  0x5c   : > { %v749_v55 = vrot.slane %v747_v57, 1  ;;  %v754_v61 = vrot.slane %v752_v33, 1  ;;  %v392_v26 = vpack.c.bf16 %v374_v59, %v373_v50  ;;  %v1255_v20 = vrot.slane %v4294_v56, 1 }
  0x5d   : > { %v738_v22 = vor.u32 %v737_v0, %v733_v42  ;;  %v376_v47 = vmax.f32 %v344_v3, 0.0  ;;  %v4454_v29 = vsel %vm1230_vm5, %v1252_v12, %v1253_v2  ;;  %v1256_v33 = vrot.slane %v4287_v25, 1 }
  0x5e   : > { %v750_v21 = vor.u32 %v749_v55, %v745_v53  ;;  %v494_v11 = vshrl.u32 %v392_v26, 16  ;;  %v497_v40 = vshll.u32 %v392_v26, 16  ;;  %v1258_v26 = vrot.slane %v4310_v27, 1 }
  0x5f   : > { %3577 = vmatmul.mubr.msk.bf16.gmra.mrb[8].mxu0 %vm789_vm4, %v4412_v14  ;;  %v4459_v44 = vsel %vm587_vm3, %v738_v22, %v742_v31  ;;  %v393_v13 = vpack.c.bf16 %v376_v47, %v375_v30  ;;  %v1259_v22 = vrot.slane %v4303_v17, 1  ;;  %v4480_v57 = vsel %vm1230_vm5, %v1255_v20, %v1256_v33 }
  0x60   : > { %4991 = vst [vmem:[#allocation6_spill] sm:$0xff] %v4459_v44  ;;  %3580 = vmatprep.mubr.msk.bf16.mxu0 %vm789_vm4, %v4454_v29  ;;  %3422 = vmatprep.mubr.msk.bf16.mxu1 %vm789_vm4, %v4459_v44  ;;  %v4468_v41 = vsel %vm587_vm3, %v750_v21, %v754_v61  ;;  %v496_v42 = vrot.slane %v494_v11, 7  ;;  %v1261_v2 = vrot.slane %v4363_v54, 1  ;;  %v1262_v55 = vrot.slane %v4354_v32, 1  ;;  %v267_v61 = vld [vmem:[%s4077_s10 + $0xf0] sm:$0xff]  ;;  %v268_v11 = vld [vmem:[%s4077_s10 + $0xf8] sm:$0xff] }
  0x61   : > { %4992 = vst [vmem:[#allocation7_spill] sm:$0xff] %v4468_v41  ;;  %3423 = vmatmul.mubr.msk.bf16.gmra.mrb[24].mxu1 %vm789_vm4, %v4468_v41  ;;  %v501_v47 = vshrl.u32 %v393_v13, 16  ;;  %v504_v31 = vshll.u32 %v393_v13, 16  ;;  %v4487_v50 = vsel %vm1230_vm5, %v1258_v26, %v1259_v22  ;;  %v1264_v22 = vrot.slane %v4387_v18, 1 }
  0x62   : > { %v499_v12 = vor.u32 %v497_v40, %v496_v42  ;;  %v4476_v25 = vsel %vm4033_vm2, %v496_v42, 0  ;;  %v1265_v32 = vrot.slane %v4378_v60, 1 }
  0x63   : > { %v764_v21 = vshll.u32 %v4476_v25, 16  ;;  %v503_v53 = vrot.slane %v501_v47, 7 }
  0x64   : > { %v4484_v17 = vsel %vm4033_vm2, 0, %v499_v12  ;;  %v307_v12 = vmul.f32 %v4053_v10, %v268_v11 }
  0x65   : > { %v757_v59 = vshrl.u32 %v4484_v17, 16  ;;  %v759_v0 = vshll.u32 %v4484_v17, 16  ;;  %v506_v3 = vor.u32 %v504_v31, %v503_v53  ;;  %v583_v30 = vsel %vm4033_vm2, %v503_v53, 0 }
  0x66   : > { %v766_v13 = vrot.slane %v764_v21, 1  ;;  %v776_v33 = vshll.u32 %v583_v30, 16  ;;  %v306_v31 = vmul.f32 %v4053_v10, %v267_v61  ;;  %v346_v44 = vadd.f32 %v4069_v15, %v307_v12 }
  0x67   : > { %3581 = vmatmul.mubr.msk.bf16.gmra.mrb[12].mxu0 %vm789_vm4, %v4480_v57  ;;  %v761_v40 = vrot.slane %v759_v0, 1  ;;  %v4501_v20 = vsel %vm4033_vm2, 0, %v506_v3  ;;  %v4515_v3 = vsel %vm1230_vm5, %v1261_v2, %v1262_v55  ;;  %v1268_v2 = vrot.slane %v4420_v16, 1  ;;  %v3976_v16 = vld [vmem:[%s4971_s3 + $0x18] sm:$0xff]  }
  0x68   : > { %3584 = vmatprep.mubr.msk.bf16.mxu0 %vm789_vm4, %v4487_v50  ;;  %v769_v42 = vshrl.u32 %v4501_v20, 16  ;;  %v771_v26 = vshll.u32 %v4501_v20, 16  ;;  %v778_v53 = vrot.slane %v776_v33, 1  ;;  %v345_v41 = vadd.f32 %v4069_v15, %v306_v31 }
  0x69   : > { %v762_v47 = vor.u32 %v761_v40, %v757_v59  ;;  %v4522_v59 = vsel %vm1230_vm5, %v1264_v22, %v1265_v32  ;;  %v378_v61 = vmax.f32 %v346_v44, 0.0  ;;  %v1267_v15 = vrot.slane %v4438_v37, 1 }
  0x6a   : > { %v773_v21 = vrot.slane %v771_v26, 1  ;;  %v377_v10 = vmax.f32 %v345_v41, 0.0  ;;  %v1270_v44 = vrot.slane %v4442_v38, 1  ;;  %v1271_v41 = vrot.slane %v4424_v23, 1 }
  0x6b   : > { %v4512_v0 = vsel %vm587_vm3, %v762_v47, %v766_v13  ;;  %v4540_v13 = vsel %vm1230_vm5, %v1267_v15, %v1268_v2  ;;  %v1273_v23 = vrot.slane %v4484_v17, 1  ;;  %v1274_v22 = vrot.slane %v4476_v25, 1 }
  0x6c   : > { %3426 = vmatprep.mubr.msk.bf16.mxu1 %vm789_vm4, %v4512_v0  ;;  %v774_v60 = vor.u32 %v773_v21, %v769_v42  ;;  %v394_v55 = vpack.c.bf16 %v378_v61, %v377_v10  ;;  %v4543_v33 = vsel %vm1230_vm5, %v1270_v44, %v1271_v41  ;;  %v1276_v32 = vrot.slane %v4501_v20, 1 }
  0x6d   : > { %v1277_v47 = vrot.slane %v583_v30, 1  ;;  %v4561_v12 = vsel %vm1230_vm5, %v1273_v23, %v1274_v22  ;;  %v1231_v10 = vrot.slane %v4039_v5, 1 }
  0x6e   : > { %v4525_v11 = vsel %vm587_vm3, %v774_v60, %v778_v53  ;;  %v508_v40 = vshrl.u32 %v394_v55, 16  ;;  %v511_v26 = vshll.u32 %v394_v55, 16  ;;  %v3977_v60 = vld [vmem:[%s4971_s3 + $0x40] sm:$0xff]  }
  0x6f   : > { %3585 = vmatmul.mubr.msk.bf16.gmra.mrb[16].mxu0 %vm789_vm4, %v4515_v3  ;;  %3427 = vmatmul.mubr.msk.bf16.gmra.mrb[28].mxu1 %vm789_vm4, %v4525_v11  ;;  %v4564_v21 = vsel %vm1230_vm5, %v1276_v32, %v1277_v47 }
  0x70   : > { %3588 = vmatprep.mubr.msk.bf16.mxu0 %vm789_vm4, %v4522_v59  ;;  %3432 = vmatprep.mubr.msk.bf16.mxu1 %vm789_vm4, %v4039_v5  ;;  %v510_v42 = vrot.slane %v508_v40, 7 }
  0x72   : > { %v513_v31 = vor.u32 %v511_v26, %v510_v42 }
  0x74   : > { %v4568_v53 = vsel %vm4033_vm2, 0, %v513_v31 }
  0x75   : > { %v1952_v25 = vrot.slane %v4568_v53, 1 }
  0x77   : > { %3589 = vmatmul.mubr.msk.bf16.gmra.mrb[20].mxu0 %vm789_vm4, %v4540_v13  ;;  %3433 = vmatmul.mubr.msk.bf16.vlgmr.msra.gmra.mrb[0].mxu1 %vm789_vm4, %v4133_v28 }
  0x78   : > { %3592 = vmatprep.mubr.msk.bf16.mxu0 %vm789_vm4, %v4543_v33  ;;  %3465 = vmatpush3.bf16.msra.mxu1 %v4184_v7  ;;  %v4572_v7 = vsel %vm4033_vm2, %v510_v42, 0 }
  0x79   : > { %3436 = vmatprep.mubr.msk.bf16.mxu1 %vm789_vm4, %v4145_v35  ;;  %3498 = vmatprep.subr.bf16.mxu1 %v3976_v16  ;;  %v1953_v30 = vrot.slane %v4572_v7, 1 }
  0x7b   : > { %v4585_v4 = vsel %vm1230_vm5, %v1952_v25, %v1953_v30 }
  0x7f   : > { %3593 = vmatmul.mubr.msk.bf16.gmra.mrb[24].mxu0 %vm789_vm4, %v4561_v12  ;;  %3437 = vmatmul.mubr.msk.bf16.gmra.mrb[4].mxu1 %vm789_vm4, %v4151_v39 }
  0x80   : > { %3596 = vmatprep.mubr.msk.bf16.mxu0 %vm789_vm4, %v4564_v21  ;;  %3440 = vmatprep.mubr.msk.bf16.mxu1 %vm789_vm4, %v4177_v63 }
  0x87   : > { %3597 = vmatmul.mubr.msk.bf16.gmra.mrb[28].mxu0 %vm789_vm4, %v4585_v4  ;;  %3441 = vmatmul.mubr.msk.bf16.gmra.mrb[8].mxu1 %vm789_vm4, %v4211_v24 }
  0x88   : > { %3602 = vmatprep.mubr.msk.bf16.mxu0 %vm789_vm4, %v4145_v35  ;;  %3444 = vmatprep.mubr.msk.bf16.mxu1 %vm789_vm4, %v4241_v58 }
  0x8f   : > { %3603 = vmatmul.mubr.msk.bf16.vlgmr.msra.gmra.mrb[0].mxu0 %vm789_vm4, %v4151_v39  ;;  %3445 = vmatmul.mubr.msk.bf16.gmra.mrb[12].mxu1 %vm789_vm4, %v4283_v48 }
  0x90   : > { %3635 = vmatpush3.bf16.msra.mxu0 %v4370_v51  ;;  %3448 = vmatprep.mubr.msk.bf16.mxu1 %vm789_vm4, %v4294_v56  ;;  %v1232_v51 = vrot.slane %v4043_v6, 1  ;;  %v3978_v6 = vld [vmem:[%s4971_s3 + $0x20] sm:$0xff]  }
  0x91   : > { %3606 = vmatprep.mubr.msk.bf16.mxu0 %vm789_vm4, %v4177_v63  ;;  %3668 = vmatprep.subr.bf16.mxu0 %v3977_v60 }
  0x92   : > { %v4634_v61 = vsel %vm1230_vm5, %v1231_v10, %v1232_v51 }
  0x97   : > { %3607 = vmatmul.mubr.msk.bf16.gmra.mrb[4].mxu0 %vm789_vm4, %v4211_v24  ;;  %3449 = vmatmul.mubr.msk.bf16.gmra.mrb[16].mxu1 %vm789_vm4, %v4310_v27 }
  0x98   : > { %3610 = vmatprep.mubr.msk.bf16.mxu0 %vm789_vm4, %v4241_v58  ;;  %3452 = vmatprep.mubr.msk.bf16.mxu1 %vm789_vm4, %v4363_v54 }
  0x9f   : > { %3611 = vmatmul.mubr.msk.bf16.gmra.mrb[8].mxu0 %vm789_vm4, %v4283_v48  ;;  %3453 = vmatmul.mubr.msk.bf16.gmra.mrb[20].mxu1 %vm789_vm4, %v4387_v18 }
  0xa0   : > { %3614 = vmatprep.mubr.msk.bf16.mxu0 %vm789_vm4, %v4294_v56  ;;  %3456 = vmatprep.mubr.msk.bf16.mxu1 %vm789_vm4, %v4438_v37 }
  0xa7   : > { %3615 = vmatmul.mubr.msk.bf16.gmra.mrb[12].mxu0 %vm789_vm4, %v4310_v27  ;;  %3457 = vmatmul.mubr.msk.bf16.gmra.mrb[24].mxu1 %vm789_vm4, %v4442_v38 }
  0xa8   : > { %3618 = vmatprep.mubr.msk.bf16.mxu0 %vm789_vm4, %v4363_v54  ;;  %3460 = vmatprep.mubr.msk.bf16.mxu1 %vm789_vm4, %v4484_v17 }
  0xaf   : > { %3619 = vmatmul.mubr.msk.bf16.gmra.mrb[16].mxu0 %vm789_vm4, %v4387_v18  ;;  %3461 = vmatmul.mubr.msk.bf16.gmra.mrb[28].mxu1 %vm789_vm4, %v4501_v20 }
  0xb0   : > { %3622 = vmatprep.mubr.msk.bf16.mxu0 %vm789_vm4, %v4438_v37  ;;  %3466 = vmatprep.mubr.msk.bf16.mxu1 %vm789_vm4, %v4634_v61 }
  0xb7   : > { %3623 = vmatmul.mubr.msk.bf16.gmra.mrb[20].mxu0 %vm789_vm4, %v4442_v38  ;;  %3467 = vmatmul.mubr.msk.bf16.vlgmr.msra.gmra.mrb[0].mxu1 %vm789_vm4, %v4257_v36  ;;  %v1734_v36 = vshrl.u32 %v4568_v53, 16 }
  0xb8   : > { %3626 = vmatprep.mubr.msk.bf16.mxu0 %vm789_vm4, %v4484_v17  ;;  %3499 = vmatpush3.bf16.msra.mxu1 %v3976_v16 }
  0xb9   : > { %3470 = vmatprep.mubr.msk.bf16.mxu1 %vm789_vm4, %v4274_v46  ;;  %3702 = vmatprep.subr.bf16.mxu1 %v3978_v6 }
  0xbf   : > { %3627 = vmatmul.mubr.msk.bf16.gmra.mrb[24].mxu0 %vm789_vm4, %v4501_v20  ;;  %3471 = vmatmul.mubr.msk.bf16.gmra.mrb[4].mxu1 %vm789_vm4, %v4340_v9 }
  0xc0   : > { %3630 = vmatprep.mubr.msk.bf16.mxu0 %vm789_vm4, %v4568_v53  ;;  %3474 = vmatprep.mubr.msk.bf16.mxu1 %vm789_vm4, %v4390_v19 }
  0xc7   : > { %3631 = vmatmul.mubr.msk.bf16.gmra.mrb[28].mxu0 %vm789_vm4, %v4039_v5  ;;  %3475 = vmatmul.mubr.msk.bf16.gmra.mrb[8].mxu1 %vm789_vm4, %v4405_v52  ;;  %v4993_v5 = vld [vmem:[#allocation3_spill] sm:$0xff] }
  0xc8   : > { %3636 = vmatprep.mubr.msk.bf16.mxu0 %vm789_vm4, %v4173_v62  ;;  %3478 = vmatprep.mubr.msk.bf16.mxu1 %vm789_vm4, %v4412_v14  ;;  %v4994_v62 = vld [vmem:[#allocation4_spill] sm:$0xff] }
  0xcf   : > { %3637 = vmatmul.mubr.msk.bf16.vlgmr.msra.gmra.mrb[0].mxu0 %vm789_vm4, %v4190_v8  ;;  %3479 = vmatmul.mubr.msk.bf16.gmra.mrb[12].mxu1 %vm789_vm4, %v4454_v29  ;;  %v4995_v8 = vld [vmem:[#allocation5_spill] sm:$0xff] }
  0xd0   : > { %3669 = vmatpush3.bf16.msra.mxu0 %v3977_v60  ;;  %3482 = vmatprep.mubr.msk.bf16.mxu1 %vm789_vm4, %v4480_v57 }
  0xd1   : > { %3640 = vmatprep.mubr.msk.bf16.mxu0 %vm789_vm4, %v4222_v45  ;;  %v4996_v45 = vld [vmem:[#allocation6_spill] sm:$0xff] }
  0xd7   : > { %3641 = vmatmul.mubr.msk.bf16.gmra.mrb[4].mxu0 %vm789_vm4, %v4245_v1  ;;  %3483 = vmatmul.mubr.msk.bf16.gmra.mrb[16].mxu1 %vm789_vm4, %v4487_v50  ;;  %v1736_v1 = vshll.u32 %v4568_v53, 16 }
  0xd8   : > { %3644 = vmatprep.mubr.msk.bf16.mxu0 %vm789_vm4, %v4268_v43  ;;  %3486 = vmatprep.mubr.msk.bf16.mxu1 %vm789_vm4, %v4515_v3 }
  0xd9   : > { %v1738_v43 = vrot.slane %v1736_v1, 1 }
  0xdf   : > { %3645 = vmatmul.mubr.msk.bf16.gmra.mrb[8].mxu0 %vm789_vm4, %v4315_v34  ;;  %3487 = vmatmul.mubr.msk.bf16.gmra.mrb[20].mxu1 %vm789_vm4, %v4522_v59  ;;  %v1741_v34 = vshll.u32 %v4572_v7, 16 }
  0xe0   : > { %3648 = vmatprep.mubr.msk.bf16.mxu0 %vm789_vm4, %v4327_v49  ;;  %3490 = vmatprep.mubr.msk.bf16.mxu1 %vm789_vm4, %v4540_v13  ;;  %v4997_v49 = vld [vmem:[#allocation7_spill] sm:$0xff] }
  0xe1   : > { %v1743_v15 = vrot.slane %v1741_v34, 1 }
  0xe7   : > { %3649 = vmatmul.mubr.msk.bf16.gmra.mrb[12].mxu0 %vm789_vm4, %v4993_v5  ;;  %3491 = vmatmul.mubr.msk.bf16.gmra.mrb[24].mxu1 %vm789_vm4, %v4543_v33 }
  0xe8   : > { %3652 = vmatprep.mubr.msk.bf16.mxu0 %vm789_vm4, %v4994_v62  ;;  %3494 = vmatprep.mubr.msk.bf16.mxu1 %vm789_vm4, %v4561_v12 }
  0xef   : > { %3653 = vmatmul.mubr.msk.bf16.gmra.mrb[16].mxu0 %vm789_vm4, %v4995_v8  ;;  %3495 = vmatmul.mubr.msk.bf16.gmra.mrb[28].mxu1 %vm789_vm4, %v4564_v21 }
  0xf0   : > { %3656 = vmatprep.mubr.msk.bf16.mxu0 %vm789_vm4, %v4996_v45  ;;  %3500 = vmatprep.mubr.msk.bf16.mxu1 %vm789_vm4, %v4133_v28  ;;  %v1739_v28 = vor.u32 %v1738_v43, %v1734_v36 }
  0xf2   : > { %v1744_v2 = vsel %vm587_vm3, %v1739_v28, %v1743_v15 }
  0xf7   : > { %3657 = vmatmul.mubr.msk.bf16.gmra.mrb[20].mxu0 %vm789_vm4, %v4997_v49  ;;  %3501 = vmatmul.mubr.msk.bf16.vlgmr.msra.gmra.mrb[0].mxu1 %vm789_vm4, %v4145_v35  ;;  %v4998_v35 = vld [vmem:[#allocation2_spill] sm:$0xff] }
  0xf8   : > { %3660 = vmatprep.mubr.msk.bf16.mxu0 %vm789_vm4, %v4512_v0  ;;  %3703 = vmatpush3.bf16.msra.mxu1 %v3978_v6 }
  0xf9   : > { %3504 = vmatprep.mubr.msk.bf16.mxu1 %vm789_vm4, %v4151_v39 }
  0xff   : > { %3661 = vmatmul.mubr.msk.bf16.gmra.mrb[24].mxu0 %vm789_vm4, %v4525_v11  ;;  %3505 = vmatmul.mubr.msk.bf16.gmra.mrb[4].mxu1 %vm789_vm4, %v4177_v63 }
 0x100   : > { %3664 = vmatprep.mubr.msk.bf16.mxu0 %vm789_vm4, %v1744_v2  ;;  %3508 = vmatprep.mubr.msk.bf16.mxu1 %vm789_vm4, %v4211_v24 }
 0x107   : > { %3665 = vmatmul.mubr.msk.bf16.gmra.mrb[28].mxu0 %vm789_vm4, %v4998_v35  ;;  %3509 = vmatmul.mubr.msk.bf16.gmra.mrb[8].mxu1 %vm789_vm4, %v4241_v58 }
 0x108   : > { %3670 = vmatprep.mubr.msk.bf16.mxu0 %vm789_vm4, %v4274_v46  ;;  %3512 = vmatprep.mubr.msk.bf16.mxu1 %vm789_vm4, %v4283_v48 }
 0x10f   : > { %3671 = vmatmul.mubr.msk.bf16.vlgmr.msra.gmra.mrb[0].mxu0 %vm789_vm4, %v4340_v9  ;;  %3513 = vmatmul.mubr.msk.bf16.gmra.mrb[12].mxu1 %vm789_vm4, %v4294_v56 }
 0x110   : > { %3674 = vmatprep.mubr.msk.bf16.mxu0 %vm789_vm4, %v4390_v19  ;;  %3516 = vmatprep.mubr.msk.bf16.mxu1 %vm789_vm4, %v4310_v27 }
 0x117   : > { %3675 = vmatmul.mubr.msk.bf16.gmra.mrb[4].mxu0 %vm789_vm4, %v4405_v52  ;;  %3517 = vmatmul.mubr.msk.bf16.gmra.mrb[16].mxu1 %vm789_vm4, %v4363_v54 }
 0x118   : > { %3678 = vmatprep.mubr.msk.bf16.mxu0 %vm789_vm4, %v4412_v14  ;;  %3520 = vmatprep.mubr.msk.bf16.mxu1 %vm789_vm4, %v4387_v18 }
 0x11f   : > { %3679 = vmatmul.mubr.msk.bf16.gmra.mrb[8].mxu0 %vm789_vm4, %v4454_v29  ;;  %3521 = vmatmul.mubr.msk.bf16.gmra.mrb[20].mxu1 %vm789_vm4, %v4438_v37 }
 0x120   : > { %3682 = vmatprep.mubr.msk.bf16.mxu0 %vm789_vm4, %v4480_v57  ;;  %3524 = vmatprep.mubr.msk.bf16.mxu1 %vm789_vm4, %v4442_v38 }
 0x127   : > { %3683 = vmatmul.mubr.msk.bf16.gmra.mrb[12].mxu0 %vm789_vm4, %v4487_v50  ;;  %3525 = vmatmul.mubr.msk.bf16.gmra.mrb[24].mxu1 %vm789_vm4, %v4484_v17 }
 0x128   : > { %3686 = vmatprep.mubr.msk.bf16.mxu0 %vm789_vm4, %v4515_v3  ;;  %3528 = vmatprep.mubr.msk.bf16.mxu1 %vm789_vm4, %v4501_v20 }
 0x12f   : > { %3687 = vmatmul.mubr.msk.bf16.gmra.mrb[16].mxu0 %vm789_vm4, %v4522_v59  ;;  %3529 = vmatmul.mubr.msk.bf16.gmra.mrb[28].mxu1 %vm789_vm4, %v4568_v53 }
 0x130   : > { %3690 = vmatprep.mubr.msk.bf16.mxu0 %vm789_vm4, %v4540_v13  ;;  %3550 = vmatprep.mubr.msk.bf16.mxu1 %vm789_vm4, %v4993_v5 }
 0x137   : > { %3691 = vmatmul.mubr.msk.bf16.gmra.mrb[20].mxu0 %vm789_vm4, %v4543_v33  ;;  %3551 = vmatmul.mubr.msk.bf16.vlgmr.msra.gmra.mrb[16].mxu1 %vm789_vm4, %v4994_v62 }
 0x138   : > { %3694 = vmatprep.mubr.msk.bf16.mxu0 %vm789_vm4, %v4561_v12  ;;  %3554 = vmatprep.mubr.msk.bf16.mxu1 %vm789_vm4, %v4995_v8 }
 0x13f   : > { %3695 = vmatmul.mubr.msk.bf16.gmra.mrb[24].mxu0 %vm789_vm4, %v4564_v21  ;;  %3555 = vmatmul.mubr.msk.bf16.gmra.mrb[20].mxu1 %vm789_vm4, %v4996_v45 }
 0x140   : > { %3698 = vmatprep.mubr.msk.bf16.mxu0 %vm789_vm4, %v4585_v4  ;;  %3558 = vmatprep.mubr.msk.bf16.mxu1 %vm789_vm4, %v4997_v49 }
 0x147   : > { %3699 = vmatmul.mubr.msk.bf16.gmra.mrb[28].mxu0 %vm789_vm4, %v4634_v61  ;;  %3559 = vmatmul.mubr.msk.bf16.gmra.mrb[24].mxu1 %vm789_vm4, %v4512_v0 }
 0x148   : > { %3562 = vmatprep.mubr.msk.bf16.mxu1 %vm789_vm4, %v4525_v11 }
 0x14f   : > { %3563 = vmatmul.mubr.msk.bf16.gmra.mrb[28].mxu1 %vm789_vm4, %v1744_v2 }
 0x1ca   : > { %v3502_v39 = vpop.f32.mrb[0].mxu1 }
 0x1cb   : > { %v1575_v63 = vpop.f32.mrb[1].mxu1 }
 0x1cc   : > { %v3503_v24 = vpop.f32.mrb[2].mxu1 }
 0x1cd   : > { %v1578_v58 = vpop.f32.mrb[3].mxu1 }
 0x1d2   : > { %v3506_v46 = vpop.f32.mrb[4].mxu1 }
 0x1d3   : > { %v1591_v48 = vpop.f32.mrb[5].mxu1 }
 0x1d4   : > { %v3507_v56 = vpop.f32.mrb[6].mxu1 }
 0x1d5   : > { %v1594_v27 = vpop.f32.mrb[7].mxu1 }
 0x1da   : > { %v4801_v9 = vpop.f32.mrb[8].mxu1 }
 0x1db   : > { %v4803_v54 = vpop.f32.mrb[9].mxu1 }
 0x1dc   : > { %v4805_v18 = vpop.f32.mrb[10].mxu1 }
 0x1dd   : > { %v4807_v19 = vpop.f32.mrb[11].mxu1 }
 0x1e2   : > { %v3672_v52 = vpop.f32.mrb[0].mxu0  ;;  %v4816_v14 = vpop.f32.mrb[12].mxu1 }
 0x1e3   : > { %v3704_v37 = vadd.f32 %v3672_v52, %v3502_v39  ;;  %v2607_v38 = vpop.f32.mrb[1].mxu0  ;;  %v4818_v29 = vpop.f32.mrb[13].mxu1 }
 0x1e4   : > { %v3705_v57 = vadd.f32 %v2607_v38, %v1575_v63  ;;  %v3673_v17 = vpop.f32.mrb[2].mxu0  ;;  %v4820_v50 = vpop.f32.mrb[14].mxu1 }
 0x1e5   : > { %2768 = vst.msk [vmem:[%s4814_s27 + $0x10] sm:$0xff] %vm789_vm4, %v3704_v37  ;;  %v3706_v20 = vadd.f32 %v3673_v17, %v3503_v24  ;;  %v2610_v0 = vpop.f32.mrb[3].mxu0  ;;  %v4824_v3 = vpop.f32.mrb[15].mxu1  ;;  %v2869_v55 = vmul.f32 %v3704_v37, %v3704_v37  ;;  %v2801_v42 = vsel %vm789_vm4, %v3704_v37, 0.0 }
 0x1e6   : > { %2766 = vst.msk [vmem:[%s4814_s27] sm:$0xff] %vm789_vm4, %v3705_v57  ;;  %v2867_v59 = vmul.f32 %v3705_v57, %v3705_v57  ;;  %v3707_v11 = vadd.f32 %v2610_v0, %v1578_v58  ;;  %v2798_v44 = vsel %vm789_vm4, %v3705_v57, 0.0 }
 0x1e7   : > { %2769 = vst.msk [vmem:[%s4814_s27 + $0x18] sm:$0xff] %vm789_vm4, %v3706_v20  ;;  %v2870_v13 = vmul.f32 %v3706_v20, %v3706_v20  ;;  %v2902_v12 = vsel %vm789_vm4, %v2869_v55, 0.0  ;;  %v2803_v21 = vsel %vm789_vm4, %v3706_v20, 0.0 }
 0x1e8   : > { %2767 = vst.msk [vmem:[%s4814_s27 + $0x8] sm:$0xff] %vm789_vm4, %v3707_v11  ;;  %v2799_v41 = vsel %vm789_vm4, %v3707_v11, 0.0  ;;  %v2868_v40 = vmul.f32 %v3707_v11, %v3707_v11  ;;  %v2899_v26 = vsel %vm789_vm4, %v2867_v59, 0.0 }
 0x1e9   : > { %v2800_v33 = vadd.f32 %v2799_v41, %v2798_v44  ;;  %v2904_v25 = vsel %vm789_vm4, %v2870_v13, 0.0 }
 0x1ea   : > { %v2900_v16 = vsel %vm789_vm4, %v2868_v40, 0.0  ;;  %v3676_v23 = vpop.f32.mrb[4].mxu0 }
 0x1eb   : > { %v2802_v22 = vadd.f32 %v2801_v42, %v2800_v33  ;;  %v2901_v32 = vadd.f32 %v2900_v16, %v2899_v26  ;;  %v3708_v47 = vadd.f32 %v3676_v23, %v3506_v46  ;;  %v2623_v31 = vpop.f32.mrb[5].mxu0 }
 0x1ec   : > { %v3709_v53 = vadd.f32 %v2623_v31, %v1591_v48  ;;  %v3677_v7 = vpop.f32.mrb[6].mxu0 }
 0x1ed   : > { %v2903_v30 = vadd.f32 %v2902_v12, %v2901_v32  ;;  %2772 = vst.msk [vmem:[%s4814_s27 + $0x30] sm:$0xff] %vm789_vm4, %v3708_v47  ;;  %v2804_v4 = vadd.f32 %v2803_v21, %v2802_v22  ;;  %v2626_v60 = vpop.f32.mrb[7].mxu0  ;;  %v3710_v61 = vadd.f32 %v3677_v7, %v3507_v56  ;;  %v2873_v1 = vmul.f32 %v3708_v47, %v3708_v47 }
 0x1ee   : > { %2770 = vst.msk [vmem:[%s4814_s27 + $0x20] sm:$0xff] %vm789_vm4, %v3709_v53  ;;  %v2805_v51 = vsel %vm789_vm4, %v3709_v53, 0.0  ;;  %v2871_v10 = vmul.f32 %v3709_v53, %v3709_v53  ;;  %v3711_v6 = vadd.f32 %v2626_v60, %v1594_v27  ;;  %v2809_v49 = vsel %vm789_vm4, %v3708_v47, 0.0 }
 0x1ef   : > { %v2806_v5 = vadd.f32 %v2805_v51, %v2804_v4  ;;  %v2905_v62 = vadd.f32 %v2904_v25, %v2903_v30  ;;  %2773 = vst.msk [vmem:[%s4814_s27 + $0x38] sm:$0xff] %vm789_vm4, %v3710_v61  ;;  %v2874_v15 = vmul.f32 %v3710_v61, %v3710_v61  ;;  %v2811_v24 = vsel %vm789_vm4, %v3710_v61, 0.0 }
 0x1f0   : > { %v2906_v8 = vsel %vm789_vm4, %v2871_v10, 0.0  ;;  %2771 = vst.msk [vmem:[%s4814_s27 + $0x28] sm:$0xff] %vm789_vm4, %v3711_v6  ;;  %v2807_v45 = vsel %vm789_vm4, %v3711_v6, 0.0  ;;  %v2872_v34 = vmul.f32 %v3711_v6, %v3711_v6  ;;  %v2910_v56 = vsel %vm789_vm4, %v2873_v1, 0.0 }
 0x1f1   : > { %v2907_v36 = vadd.f32 %v2906_v8, %v2905_v62  ;;  %v2808_v43 = vadd.f32 %v2807_v45, %v2806_v5 }
 0x1f2   : > { %v3680_v28 = vpop.f32.mrb[8].mxu0  ;;  %v2908_v35 = vsel %vm789_vm4, %v2872_v34, 0.0 }
 0x1f3   : > { %v2810_v2 = vadd.f32 %v2809_v49, %v2808_v43  ;;  %v3712_v39 = vadd.f32 %v3680_v28, %v4801_v9  ;;  %v2639_v63 = vpop.f32.mrb[9].mxu0  ;;  %v2909_v58 = vadd.f32 %v2908_v35, %v2907_v36 }
 0x1f4   : > { %v3713_v46 = vadd.f32 %v2639_v63, %v4803_v54  ;;  %v3681_v48 = vpop.f32.mrb[10].mxu0  ;;  %v2912_v54 = vsel %vm789_vm4, %v2874_v15, 0.0 }
 0x1f5   : > { %2776 = vst.msk [vmem:[%s4814_s27 + $0x50] sm:$0xff] %vm789_vm4, %v3712_v39  ;;  %v2812_v27 = vadd.f32 %v2811_v24, %v2810_v2  ;;  %v3714_v52 = vadd.f32 %v3681_v48, %v4805_v18  ;;  %v2642_v37 = vpop.f32.mrb[11].mxu0  ;;  %v2911_v38 = vadd.f32 %v2910_v56, %v2909_v58  ;;  %v2877_v55 = vmul.f32 %v3712_v39, %v3712_v39 }
 0x1f6   : > { %2774 = vst.msk [vmem:[%s4814_s27 + $0x40] sm:$0xff] %vm789_vm4, %v3713_v46  ;;  %v2813_v9 = vsel %vm789_vm4, %v3713_v46, 0.0  ;;  %v2875_v57 = vmul.f32 %v3713_v46, %v3713_v46  ;;  %v3715_v17 = vadd.f32 %v2642_v37, %v4807_v19  ;;  %v2817_v41 = vsel %vm789_vm4, %v3712_v39, 0.0 }
 0x1f7   : > { %v2814_v20 = vadd.f32 %v2813_v9, %v2812_v27  ;;  %2777 = vst.msk [vmem:[%s4814_s27 + $0x58] sm:$0xff] %vm789_vm4, %v3714_v52  ;;  %v2913_v0 = vadd.f32 %v2912_v54, %v2911_v38  ;;  %v2878_v33 = vmul.f32 %v3714_v52, %v3714_v52  ;;  %v2819_v23 = vsel %vm789_vm4, %v3714_v52, 0.0 }
 0x1f8   : > { %v2914_v59 = vsel %vm789_vm4, %v2875_v57, 0.0  ;;  %2775 = vst.msk [vmem:[%s4814_s27 + $0x48] sm:$0xff] %vm789_vm4, %v3715_v17  ;;  %v2815_v18 = vsel %vm789_vm4, %v3715_v17, 0.0  ;;  %v2876_v11 = vmul.f32 %v3715_v17, %v3715_v17  ;;  %v2918_v31 = vsel %vm789_vm4, %v2877_v55, 0.0 }
 0x1f9   : > { %v2816_v44 = vadd.f32 %v2815_v18, %v2814_v20  ;;  %v2915_v40 = vadd.f32 %v2914_v59, %v2913_v0 }
 0x1fa   : > { %v2916_v19 = vsel %vm789_vm4, %v2876_v11, 0.0  ;;  %v3684_v13 = vpop.f32.mrb[12].mxu0 }
 0x1fb   : > { %v2818_v42 = vadd.f32 %v2817_v41, %v2816_v44  ;;  %v3716_v26 = vadd.f32 %v3684_v13, %v4816_v14  ;;  %v2655_v16 = vpop.f32.mrb[13].mxu0  ;;  %v2917_v22 = vadd.f32 %v2916_v19, %v2915_v40 }
 0x1fc   : > { %v3717_v32 = vadd.f32 %v2655_v16, %v4818_v29  ;;  %v3685_v47 = vpop.f32.mrb[14].mxu0  ;;  %v2920_v29 = vsel %vm789_vm4, %v2878_v33, 0.0 }
 0x1fd   : > { %2780 = vst.msk [vmem:[%s4814_s27 + $0x70] sm:$0xff] %vm789_vm4, %v3716_v26  ;;  %v2820_v12 = vadd.f32 %v2819_v23, %v2818_v42  ;;  %v3718_v21 = vadd.f32 %v3685_v47, %v4820_v50  ;;  %v2658_v53 = vpop.f32.mrb[15].mxu0  ;;  %v2919_v7 = vadd.f32 %v2918_v31, %v2917_v22  ;;  %v2881_v61 = vmul.f32 %v3716_v26, %v3716_v26 }
 0x1fe   : > { %2778 = vst.msk [vmem:[%s4814_s27 + $0x60] sm:$0xff] %vm789_vm4, %v3717_v32  ;;  %v2821_v14 = vsel %vm789_vm4, %v3717_v32, 0.0  ;;  %v2879_v25 = vmul.f32 %v3717_v32, %v3717_v32  ;;  %v3719_v30 = vadd.f32 %v2658_v53, %v4824_v3  ;;  %v2825_v5 = vsel %vm789_vm4, %v3716_v26, 0.0 }
 0x1ff   : > { %v2822_v4 = vadd.f32 %v2821_v14, %v2820_v12  ;;  %2781 = vst.msk [vmem:[%s4814_s27 + $0x78] sm:$0xff] %vm789_vm4, %v3718_v21  ;;  %v2921_v60 = vadd.f32 %v2920_v29, %v2919_v7  ;;  %v2882_v45 = vmul.f32 %v3718_v21, %v3718_v21  ;;  %v2827_v43 = vsel %vm789_vm4, %v3718_v21, 0.0 }
 0x200   : > { %v2922_v51 = vsel %vm789_vm4, %v2879_v25, 0.0  ;;  %2779 = vst.msk [vmem:[%s4814_s27 + $0x68] sm:$0xff] %vm789_vm4, %v3719_v30  ;;  %v2823_v50 = vsel %vm789_vm4, %v3719_v30, 0.0  ;;  %v2880_v10 = vmul.f32 %v3719_v30, %v3719_v30  ;;  %v2926_v28 = vsel %vm789_vm4, %v2881_v61, 0.0 }
 0x201   : > { %v2824_v6 = vadd.f32 %v2823_v50, %v2822_v4  ;;  %v2923_v62 = vadd.f32 %v2922_v51, %v2921_v60  ;;  %v2928_v39 = vsel %vm789_vm4, %v2882_v45, 0.0 }
 0x202   : > { %v2924_v3 = vsel %vm789_vm4, %v2880_v10, 0.0  ;;  %v3688_v8 = vpop.f32.mrb[16].mxu0 }
 0x203   : > { %v2826_v1 = vadd.f32 %v2825_v5, %v2824_v6  ;;  %v2671_v36 = vpop.f32.mrb[17].mxu0  ;;  %v2925_v34 = vadd.f32 %v2924_v3, %v2923_v62 }
 0x204   : > { %v3689_v49 = vpop.f32.mrb[18].mxu0 }
 0x205   : > { %v2828_v15 = vadd.f32 %v2827_v43, %v2826_v1  ;;  %v2674_v2 = vpop.f32.mrb[19].mxu0  ;;  %v2927_v35 = vadd.f32 %v2926_v28, %v2925_v34 }
 0x207   : > { %v2929_v63 = vadd.f32 %v2928_v39, %v2927_v35 }
 0x20a   : > { %v3692_v24 = vpop.f32.mrb[20].mxu0  ;;  %v3552_v58 = vpop.f32.mrb[16].mxu1 }
 0x20b   : > { %v2687_v46 = vpop.f32.mrb[21].mxu0  ;;  %v1855_v48 = vpop.f32.mrb[17].mxu1  ;;  %v3720_v56 = vadd.f32 %v3688_v8, %v3552_v58 }
 0x20c   : > { %v3693_v27 = vpop.f32.mrb[22].mxu0  ;;  %v3553_v52 = vpop.f32.mrb[18].mxu1  ;;  %v3721_v37 = vadd.f32 %v2671_v36, %v1855_v48 }
 0x20d   : > { %v2690_v38 = vpop.f32.mrb[23].mxu0  ;;  %2784 = vst.msk [vmem:[%s4814_s27 + $0x90] sm:$0xff] %vm789_vm4, %v3720_v56  ;;  %v1858_v9 = vpop.f32.mrb[19].mxu1  ;;  %v3722_v57 = vadd.f32 %v3689_v49, %v3553_v52  ;;  %v2885_v59 = vmul.f32 %v3720_v56, %v3720_v56  ;;  %v2833_v13 = vsel %vm789_vm4, %v3720_v56, 0.0 }
 0x20e   : > { %2782 = vst.msk [vmem:[%s4814_s27 + $0x80] sm:$0xff] %vm789_vm4, %v3721_v37  ;;  %v2829_v17 = vsel %vm789_vm4, %v3721_v37, 0.0  ;;  %v2883_v54 = vmul.f32 %v3721_v37, %v3721_v37  ;;  %v3723_v20 = vadd.f32 %v2674_v2, %v1858_v9 }
 0x20f   : > { %v2830_v0 = vadd.f32 %v2829_v17, %v2828_v15  ;;  %2785 = vst.msk [vmem:[%s4814_s27 + $0x98] sm:$0xff] %vm789_vm4, %v3722_v57  ;;  %v2886_v41 = vmul.f32 %v3722_v57, %v3722_v57  ;;  %v2934_v31 = vsel %vm789_vm4, %v2885_v59, 0.0  ;;  %v2835_v12 = vsel %vm789_vm4, %v3722_v57, 0.0 }
 0x210   : > { %v2930_v18 = vsel %vm789_vm4, %v2883_v54, 0.0  ;;  %2783 = vst.msk [vmem:[%s4814_s27 + $0x88] sm:$0xff] %vm789_vm4, %v3723_v20  ;;  %v2831_v11 = vsel %vm789_vm4, %v3723_v20, 0.0  ;;  %v2884_v55 = vmul.f32 %v3723_v20, %v3723_v20 }
 0x211   : > { %v2931_v44 = vadd.f32 %v2930_v18, %v2929_v63  ;;  %v2832_v40 = vadd.f32 %v2831_v11, %v2830_v0  ;;  %v2936_v14 = vsel %vm789_vm4, %v2886_v41, 0.0 }
 0x212   : > { %v3696_v19 = vpop.f32.mrb[24].mxu0  ;;  %v2932_v33 = vsel %vm789_vm4, %v2884_v55, 0.0  ;;  %v3556_v42 = vpop.f32.mrb[20].mxu1 }
 0x213   : > { %v2703_v26 = vpop.f32.mrb[25].mxu0  ;;  %v2834_v16 = vadd.f32 %v2833_v13, %v2832_v40  ;;  %v2933_v23 = vadd.f32 %v2932_v33, %v2931_v44  ;;  %v1871_v22 = vpop.f32.mrb[21].mxu1  ;;  %v3724_v32 = vadd.f32 %v3692_v24, %v3556_v42 }
 0x214   : > { %v3697_v47 = vpop.f32.mrb[26].mxu0  ;;  %v3557_v21 = vpop.f32.mrb[22].mxu1  ;;  %v3725_v53 = vadd.f32 %v2687_v46, %v1871_v22 }
 0x215   : > { %v2706_v7 = vpop.f32.mrb[27].mxu0  ;;  %v2935_v25 = vadd.f32 %v2934_v31, %v2933_v23  ;;  %2788 = vst.msk [vmem:[%s4814_s27 + $0xb0] sm:$0xff] %vm789_vm4, %v3724_v32  ;;  %v2836_v30 = vadd.f32 %v2835_v12, %v2834_v16  ;;  %v1874_v29 = vpop.f32.mrb[23].mxu1  ;;  %v3726_v51 = vadd.f32 %v3693_v27, %v3557_v21  ;;  %v2889_v62 = vmul.f32 %v3724_v32, %v3724_v32 }
 0x216   : > { %2786 = vst.msk [vmem:[%s4814_s27 + $0xa0] sm:$0xff] %vm789_vm4, %v3725_v53  ;;  %v2837_v4 = vsel %vm789_vm4, %v3725_v53, 0.0  ;;  %v2887_v60 = vmul.f32 %v3725_v53, %v3725_v53  ;;  %v3727_v50 = vadd.f32 %v2690_v38, %v1874_v29  ;;  %v2841_v36 = vsel %vm789_vm4, %v3724_v32, 0.0 }
 0x217   : > { %v2838_v10 = vadd.f32 %v2837_v4, %v2836_v30  ;;  %v2937_v61 = vadd.f32 %v2936_v14, %v2935_v25  ;;  %2789 = vst.msk [vmem:[%s4814_s27 + $0xb8] sm:$0xff] %vm789_vm4, %v3726_v51  ;;  %v2890_v49 = vmul.f32 %v3726_v51, %v3726_v51  ;;  %v2843_v63 = vsel %vm789_vm4, %v3726_v51, 0.0 }
 0x218   : > { %v2938_v6 = vsel %vm789_vm4, %v2887_v60, 0.0  ;;  %2787 = vst.msk [vmem:[%s4814_s27 + $0xa8] sm:$0xff] %vm789_vm4, %v3727_v50  ;;  %v2839_v5 = vsel %vm789_vm4, %v3727_v50, 0.0  ;;  %v2888_v45 = vmul.f32 %v3727_v50, %v3727_v50  ;;  %v2942_v56 = vsel %vm789_vm4, %v2889_v62, 0.0 }
 0x219   : > { %v2939_v3 = vadd.f32 %v2938_v6, %v2937_v61  ;;  %v2840_v8 = vadd.f32 %v2839_v5, %v2838_v10  ;;  %v2944_v54 = vsel %vm789_vm4, %v2890_v49, 0.0 }
 0x21a   : > { %v3700_v1 = vpop.f32.mrb[28].mxu0  ;;  %v3560_v43 = vpop.f32.mrb[24].mxu1  ;;  %v2940_v15 = vsel %vm789_vm4, %v2888_v45, 0.0 }
 0x21b   : > { %v2719_v34 = vpop.f32.mrb[29].mxu0  ;;  %v2842_v28 = vadd.f32 %v2841_v36, %v2840_v8  ;;  %v1887_v2 = vpop.f32.mrb[25].mxu1  ;;  %v3728_v35 = vadd.f32 %v3696_v19, %v3560_v43  ;;  %v2941_v24 = vadd.f32 %v2940_v15, %v2939_v3 }
 0x21c   : > { %v3701_v39 = vpop.f32.mrb[30].mxu0  ;;  %v3561_v58 = vpop.f32.mrb[26].mxu1  ;;  %v3729_v46 = vadd.f32 %v2703_v26, %v1887_v2 }
 0x21d   : > { %v2722_v48 = vpop.f32.mrb[31].mxu0  ;;  %2792 = vst.msk [vmem:[%s4814_s27 + $0xd0] sm:$0xff] %vm789_vm4, %v3728_v35  ;;  %v2844_v27 = vadd.f32 %v2843_v63, %v2842_v28  ;;  %v1890_v52 = vpop.f32.mrb[27].mxu1  ;;  %v3730_v37 = vadd.f32 %v3697_v47, %v3561_v58  ;;  %v2943_v38 = vadd.f32 %v2942_v56, %v2941_v24  ;;  %v2893_v55 = vmul.f32 %v3728_v35, %v3728_v35 }
 0x21e   : > { %2790 = vst.msk [vmem:[%s4814_s27 + $0xc0] sm:$0xff] %vm789_vm4, %v3729_v46  ;;  %v2845_v9 = vsel %vm789_vm4, %v3729_v46, 0.0  ;;  %v2891_v57 = vmul.f32 %v3729_v46, %v3729_v46  ;;  %v3731_v17 = vadd.f32 %v2706_v7, %v1890_v52  ;;  %v2849_v41 = vsel %vm789_vm4, %v3728_v35, 0.0 }
 0x21f   : > { %v2846_v20 = vadd.f32 %v2845_v9, %v2844_v27  ;;  %2793 = vst.msk [vmem:[%s4814_s27 + $0xd8] sm:$0xff] %vm789_vm4, %v3730_v37  ;;  %v2945_v0 = vadd.f32 %v2944_v54, %v2943_v38  ;;  %v2894_v33 = vmul.f32 %v3730_v37, %v3730_v37  ;;  %v2851_v23 = vsel %vm789_vm4, %v3730_v37, 0.0 }
 0x220   : > { %v2946_v59 = vsel %vm789_vm4, %v2891_v57, 0.0  ;;  %2791 = vst.msk [vmem:[%s4814_s27 + $0xc8] sm:$0xff] %vm789_vm4, %v3731_v17  ;;  %v2847_v18 = vsel %vm789_vm4, %v3731_v17, 0.0  ;;  %v2892_v11 = vmul.f32 %v3731_v17, %v3731_v17  ;;  %v2950_v31 = vsel %vm789_vm4, %v2893_v55, 0.0 }
 0x221   : > { %v2848_v44 = vadd.f32 %v2847_v18, %v2846_v20  ;;  %v2947_v40 = vadd.f32 %v2946_v59, %v2945_v0  ;;  %v2952_v29 = vsel %vm789_vm4, %v2894_v33, 0.0 }
 0x222   : > { %v2948_v19 = vsel %vm789_vm4, %v2892_v11, 0.0  ;;  %v3564_v13 = vpop.f32.mrb[28].mxu1 }
 0x223   : > { %v2850_v42 = vadd.f32 %v2849_v41, %v2848_v44  ;;  %v1903_v26 = vpop.f32.mrb[29].mxu1  ;;  %v3732_v16 = vadd.f32 %v3700_v1, %v3564_v13  ;;  %v2949_v22 = vadd.f32 %v2948_v19, %v2947_v40 }
 0x224   : > { %v3565_v32 = vpop.f32.mrb[30].mxu1  ;;  %v3733_v47 = vadd.f32 %v2719_v34, %v1903_v26 }
 0x225   : > { %2796 = vst.msk [vmem:[%s4814_s27 + $0xf0] sm:$0xff] %vm789_vm4, %v3732_v16  ;;  %v2852_v12 = vadd.f32 %v2851_v23, %v2850_v42  ;;  %v1906_v21 = vpop.f32.mrb[31].mxu1  ;;  %v3734_v53 = vadd.f32 %v3701_v39, %v3565_v32  ;;  %v2951_v7 = vadd.f32 %v2950_v31, %v2949_v22  ;;  %v2897_v61 = vmul.f32 %v3732_v16, %v3732_v16 }
 0x226   : > { %2794 = vst.msk [vmem:[%s4814_s27 + $0xe0] sm:$0xff] %vm789_vm4, %v3733_v47  ;;  %v2853_v14 = vsel %vm789_vm4, %v3733_v47, 0.0  ;;  %v2895_v25 = vmul.f32 %v3733_v47, %v3733_v47  ;;  %v3735_v30 = vadd.f32 %v2722_v48, %v1906_v21  ;;  %v2857_v5 = vsel %vm789_vm4, %v3732_v16, 0.0 }
 0x227   : > { %v2854_v4 = vadd.f32 %v2853_v14, %v2852_v12  ;;  %2797 = vst.msk [vmem:[%s4814_s27 + $0xf8] sm:$0xff] %vm789_vm4, %v3734_v53  ;;  %v2953_v60 = vadd.f32 %v2952_v29, %v2951_v7  ;;  %v2898_v8 = vmul.f32 %v3734_v53, %v3734_v53  ;;  %v2859_v1 = vsel %vm789_vm4, %v3734_v53, 0.0 }
 0x228   : > { %v2954_v51 = vsel %vm789_vm4, %v2895_v25, 0.0  ;;  %2795 = vst.msk [vmem:[%s4814_s27 + $0xe8] sm:$0xff] %vm789_vm4, %v3735_v30  ;;  %v2855_v50 = vsel %vm789_vm4, %v3735_v30, 0.0  ;;  %v2896_v10 = vmul.f32 %v3735_v30, %v3735_v30  ;;  %v2958_v43 = vsel %vm789_vm4, %v2897_v61, 0.0 }
 0x229   : > { %v2856_v6 = vadd.f32 %v2855_v50, %v2854_v4  ;;  %v2955_v62 = vadd.f32 %v2954_v51, %v2953_v60  ;;  %v2960_v28 = vsel %vm789_vm4, %v2898_v8, 0.0 }
 0x22a   : > { %v2956_v3 = vsel %vm789_vm4, %v2896_v10, 0.0 }
 0x22b   : > { %v2858_v45 = vadd.f32 %v2857_v5, %v2856_v6  ;;  %v2957_v36 = vadd.f32 %v2956_v3, %v2955_v62 }
 0x22d   : > { %v2860_v34 = vadd.f32 %v2859_v1, %v2858_v45  ;;  %v2959_v49 = vadd.f32 %v2958_v43, %v2957_v36 }
 0x22f   : > { %v2861_v15 = vrot.slane %v2860_v34, 4  ;;  %v2961_v2 = vadd.f32 %v2960_v28, %v2959_v49 }
 0x231   : > { %v2862_v35 = vadd.f32 %v2861_v15, %v2860_v34  ;;  %v2962_v39 = vrot.slane %v2961_v2, 4 }
 0x233   : > { %v2863_v63 = vrot.slane %v2862_v35, 2  ;;  %v2963_v24 = vadd.f32 %v2962_v39, %v2961_v2 }
 0x235   : > { %v2864_v58 = vadd.f32 %v2863_v63, %v2862_v35  ;;  %v2964_v46 = vrot.slane %v2963_v24, 2 }
 0x237   : > { %v2865_v48 = vrot.slane %v2864_v58, 1  ;;  %v2965_v56 = vadd.f32 %v2964_v46, %v2963_v24 }
 0x239   : > { %v2966_v27 = vrot.slane %v2965_v56, 1  ;;  %v2866_v52 = vadd.f32 %v2865_v48, %v2864_v58 }
 0x23b   : > { %v2967_v37 = vadd.f32 %v2966_v27, %v2965_v56 }
 0x23d   : > { %v2969_v38 = vsel %vm548_vm0, %v2866_v52, %v2967_v37 }
 0x23e   : > { %2971 = vst.msk [vmem:[%s235_s6] sm:$0x3] %vm2970_vm6, %v2969_v38 }
 0x23f PF: > { %s16_s18 = sadd.s32 1, %s3985_s18  }
 0x240   : > { %p13_p4 = scmp.ge.s32.totalorder %s16_s18, 4  }
 0x242   :  { %15 = sbr.rel (!%p13_p4) target bundleno = 1 (0x1), region = 86 }

// kernel: up_forward.2
= control target key start
LH: loop header
LB: loop body
LE: loop exit
PB: predicated region body
PF: predicated region fallthrough
CT: control target
= control target key end

     0   :  { %s12829_s18 = smov 0   ;;  %s15719_s0 = inlined_call_operand.vmem [shape: bf16[2,18,18,16], index: 0, kind: input, shape index: {}]   ;;  %s15720_s1 = inlined_call_operand.vmem [shape: bf16[2,18,18,16], index: 1, kind: input, shape index: {}]   ;;  %s15721_s2 = inlined_call_operand.vmem [shape: bf16[3,3,16,16], index: 2, kind: input, shape index: {}]   ;;  %s15722_s3 = inlined_call_operand.vmem [shape: bf16[3,3,16,16], index: 3, kind: input, shape index: {}]   ;;  %s15723_s4 = inlined_call_operand.vmem [shape: f32[2,16,16,16], index: 4, kind: output, shape index: {0}]   ;;  %s15724_s5 = inlined_call_operand.vmem [shape: f32[2,2,16], index: 5, kind: output, shape index: {1}]  }
   0x1 LB: > { %s9902_s19 = sadd.s32 4294967295, %s12797_s18   ;;  %p9906_p0 = scmp.ge.s32.totalorder %s12797_s18, 1  ;;  %s12797_s18 = sphi %s12829_s18, %s16_s18  }
   0x2   : > { %p200_p1 = scmp.lt.s32.totalorder %s12797_s18, 3 }
   0x4   : > { %p201_p2 = pnand %p9906_p0, %p200_p1 }
   0x5   : > { %v12492_v0 = vld [vmem:[%s15722_s3] sm:$0xff] (!%p201_p2)   ;;  %p237_p3 = scmp.lt.s32.totalorder (!%p201_p2), %s9902_s19, 1  ;;  %v12852_v3 = vld [vmem:[%s15721_s2 + $0x28] sm:$0xff] (!%p201_p2)   ;;  %vm411_vm0 = vcmask (!%p201_p2), 130048   ;;  %vm964_vm1 = vsmask.f32 (!%p201_p2), 3328 }
   0x6   : > { %204 = sbr.rel (%p201_p2) target bundleno = 849 (0x351), region = 36  ;;  %v12495_v1 = vld [vmem:[%s15722_s3 + $0x20] sm:$0xff] (!%p201_p2)   ;;  %11327 = vmatprep.subr.bf16.mxu1 (!%p201_p2), %v12492_v0  ;;  %v12865_v4 = vld [vmem:[%s15721_s2 + $0x8] sm:$0xff] (!%p201_p2)   ;;  %vm965_vm2 = vsmask.f32 (!%p201_p2), 7440  ;;  %vm2443_vm3 = vcmask (!%p201_p2), 1042432  }
   0x7   : > { %v12498_v2 = vld [vmem:[%s15721_s2] sm:$0xff] (!%p201_p2)   ;;  %11328 = vmatpush3.bf16.msra.mxu1 (!%p201_p2), %v12492_v0  ;;  %11633 = vmatprep.subr.bf16.mxu0 (!%p201_p2), %v12495_v1  ;;  %vm12898_vm4 = vmor (!%p201_p2), %vm964_vm1, %vm965_vm2  ;;  %vm2444_vm5 = vcmask (!%p201_p2), 1046532   ;;  %vm9800_vm7 = vcmask (!%p201_p2), 1040384   ;;  %vm9802_vm8 = vcmask (!%p201_p2), 123904  }
   0x8   : > { %11634 = vmatpush3.bf16.msra.mxu0 (!%p201_p2), %v12495_v1  ;;  %11361 = vmatprep.subr.bf16.mxu1 (!%p201_p2), %v12498_v2  ;;  %vm12940_vm6 = vmor (!%p201_p2), %vm2443_vm3, %vm2444_vm5 }
   0x9   : > { %11667 = vmatprep.subr.bf16.mxu0 (!%p201_p2), %v12852_v3 }
   0xd   : > { %s15739_s19 = smov (!%p237_p3, %s9902_s19), 1 }
   0xe   : > { %s12483_s26 = smul.u32 216, %s15739_s19  ;;  %s9911_s21 = sshll.u32 %s15739_s19, 1 }
   0xf   : > { %s255_s24 = scalar_lea.vmem %s15724_s5, %s9911_s21 }
  0x10   : > { %s12859_s6 = scalar_lea.vmem %s15720_s1, %s12483_s26  ;;  %s13037_s13 = scalar_lea.vmem %s15719_s0, %s12483_s26 }
  0x11   : > { %v12493_v5 = vld [vmem:[%s12859_s6] sm:$0xff]   ;;  %v12494_v6 = vld [vmem:[%s12859_s6 + $0xc] sm:$0xff]   ;;  %v12496_v7 = vld [vmem:[%s12859_s6 + $0x18] sm:$0xff]  }
  0x12   : > { %11329 = vmatprep.mubr.msk.bf16.mxu1 %vm411_vm0, %v12493_v5  ;;  %v10332_v8 = vld [vmem:[%s12859_s6 + $0xc] sm:$0xf]  ;;  %v12875_v9 = vld [vmem:[%s12859_s6 + $0x10] sm:$0xf]  ;;  %v12878_v10 = vld [vmem:[%s12859_s6 + $0x14] sm:$0x1] }
  0x13   : > { %11330 = vmatmul.mubr.msk.bf16.vlgmr.msra.gmra.mrb[0].mxu1 %vm411_vm0, %v12494_v6  ;;  %v4537_v11 = vshrl.u32 %v10332_v8, 16  ;;  %v4540_v12 = vshll.u32 %v10332_v8, 16  ;;  %v4546_v13 = vshll.u32 %v12875_v9, 16  ;;  %v4550_v14 = vshrl.u32 %v12875_v9, 16  ;;  %v10335_v15 = vld [vmem:[%s12859_s6 + $0x18] sm:$0xf] }
  0x14   : > { %11333 = vmatprep.mubr.msk.bf16.mxu1 %vm411_vm0, %v12496_v7  ;;  %11362 = vmatpush3.bf16.msra.mxu1 %v12498_v2  ;;  %v12497_v16 = vld [vmem:[%s12859_s6 + $0x24] sm:$0xff]   ;;  %v4556_v17 = vshll.u32 %v12878_v10, 16  ;;  %v12887_v18 = vld [vmem:[%s12859_s6 + $0x1c] sm:$0xf]  ;;  %v4561_v19 = vshrl.u32 %v10335_v15, 16  ;;  %v4564_v27 = vshll.u32 %v10335_v15, 16 }
  0x15   : > { %11395 = vmatprep.subr.bf16.mxu1 %v12865_v4  ;;  %v4539_v20 = vrot.slane %v4537_v11, 4  ;;  %v4542_v21 = vrot.slane %v4540_v12, 5  ;;  %v4548_v22 = vrot.slane %v4546_v13, 5  ;;  %v4552_v23 = vrot.slane %v4550_v14, 4  ;;  %v12890_v24 = vld [vmem:[%s12859_s6 + $0x20] sm:$0x1] }
  0x16   : > { %v4558_v25 = vrot.slane %v4556_v17, 5  ;;  %v4563_v26 = vrot.slane %v4561_v19, 4  ;;  %v4570_v28 = vshll.u32 %v12887_v18, 16  ;;  %v4574_v31 = vshrl.u32 %v12887_v18, 16  ;;  %v12500_v33 = vld [vmem:[%s12859_s6 + $0x30] sm:$0xff]   ;;  %v12501_v55 = vld [vmem:[%s12859_s6 + $0x3c] sm:$0xff]  }
  0x17   : > { %v4543_v29 = vor.u32 %v4542_v21, %v4539_v20  ;;  %v4553_v30 = vor.u32 %v4552_v23, %v4548_v22  ;;  %v4580_v32 = vshll.u32 %v12890_v24, 16  ;;  %v4566_v35 = vrot.slane %v4564_v27, 5  ;;  %v10338_v45 = vld [vmem:[%s12859_s6 + $0x24] sm:$0xf]  ;;  %v12910_v46 = vld [vmem:[%s12859_s6 + $0x28] sm:$0xf] }
  0x18   : > { %v4572_v36 = vrot.slane %v4570_v28, 5  ;;  %v5765_v37 = vrot.slane %v12887_v18, 5  ;;  %v4576_v40 = vrot.slane %v4574_v31, 4  ;;  %v5768_v41 = vrot.slane %v12890_v24, 5  ;;  %v12917_v50 = vld [vmem:[%s12859_s6 + $0x2c] sm:$0x1] }
  0x19   : > { %v4544_v38 = vrot.slane %v4543_v29, 4  ;;  %v4554_v39 = vrot.slane %v4553_v30, 4  ;;  %v4567_v42 = vor.u32 %v4566_v35, %v4563_v26  ;;  %v4582_v43 = vrot.slane %v4580_v32, 5  ;;  %v10341_v52 = vld [vmem:[%s12859_s6 + $0x30] sm:$0xf]  ;;  %v12502_v6 = vld [vmem:[%s12859_s6 + $0x48] sm:$0xff]  }
  0x1a   : > { %v5767_v44 = vrot.slane %v5765_v37, 4  ;;  %v4577_v49 = vor.u32 %v4576_v40, %v4572_v36  ;;  %v4585_v51 = vshrl.u32 %v10338_v45, 16  ;;  %v4588_v56 = vshll.u32 %v10338_v45, 16  ;;  %v12923_v58 = vld [vmem:[%s12859_s6 + $0x34] sm:$0xf] }
  0x1b   : > { %11334 = vmatmul.mubr.msk.bf16.gmra.mrb[4].mxu1 %vm411_vm0, %v12497_v16  ;;  %v4549_v47 = vsel %vm12898_vm4, %v4544_v38, %v4548_v22  ;;  %v4559_v48 = vsel %vm12898_vm4, %v4554_v39, %v4558_v25  ;;  %v4568_v54 = vrot.slane %v4567_v42, 4  ;;  %v4594_v57 = vshll.u32 %v12910_v46, 16  ;;  %v10343_v63 = vld [vmem:[%s12859_s6 + $0x38] sm:$0x1]  ;;  %v10344_v22 = vld [vmem:[%s12859_s6 + $0x3c] sm:$0xf] }
  0x1c   : > { %11337 = vmatprep.mubr.msk.bf16.mxu1 %vm411_vm0, %v12500_v33  ;;  %v10417_v53 = vcombine.low %v4549_v47, %v4559_v48  ;;  %v4578_v59 = vrot.slane %v4577_v49, 4  ;;  %v4587_v60 = vrot.slane %v4585_v51, 4  ;;  %v4598_v61 = vshrl.u32 %v12910_v46, 16  ;;  %v10345_v26 = vld [vmem:[%s12859_s6 + $0x40] sm:$0xf]  ;;  %v12503_v35 = vld [vmem:[%s12859_s6 + $0x54] sm:$0xff]  }
  0x1d   : > { %v4604_v62 = vshll.u32 %v12917_v50, 16  ;;  %v4573_v0 = vsel %vm12898_vm4, %v4568_v54, %v4572_v36  ;;  %v4590_v1 = vrot.slane %v4588_v56, 5  ;;  %v4596_v2 = vrot.slane %v4594_v57, 5  ;;  %v10346_v32 = vld [vmem:[%s12859_s6 + $0x44] sm:$0x1] }
  0x1e   : > { %11635 = vmatprep.mubr.msk.bf16.mxu0 %vm411_vm0, %v10417_v53  ;;  %v4609_v5 = vshrl.u32 %v10341_v52, 16  ;;  %v4583_v7 = vsel %vm12898_vm4, %v4578_v59, %v4582_v43  ;;  %v4600_v8 = vrot.slane %v4598_v61, 4  ;;  %v4612_v12 = vshll.u32 %v10341_v52, 16  ;;  %v10347_v40 = vld [vmem:[%s12859_s6 + $0x48] sm:$0xf]  ;;  %v12504_v52 = vld [vmem:[%s12859_s6 + $0x60] sm:$0xff]  }
  0x1f   : > { %v4606_v11 = vrot.slane %v4604_v62, 5  ;;  %v10418_v13 = vcombine.low %v4573_v0, %v4583_v7  ;;  %v4591_v14 = vor.u32 %v4590_v1, %v4587_v60  ;;  %v4618_v16 = vshll.u32 %v12923_v58, 16  ;;  %v10349_v51 = vld [vmem:[%s12859_s6 + $0x50] sm:$0x1] }
  0x20   : > { %v4611_v15 = vrot.slane %v4609_v5, 4  ;;  %v4601_v17 = vor.u32 %v4600_v8, %v4596_v2  ;;  %v4614_v19 = vrot.slane %v4612_v12, 5  ;;  %v4622_v20 = vshrl.u32 %v12923_v58, 16 }
  0x21   : > { %v4628_v21 = vshll.u32 %v10343_v63, 16  ;;  %11636 = vmatmul.mubr.msk.bf16.vlgmr.msra.gmra.mrb[0].mxu0 %vm411_vm0, %v10418_v13  ;;  %v4592_v24 = vrot.slane %v4591_v14, 4  ;;  %v4620_v25 = vrot.slane %v4618_v16, 5  ;;  %v12949_v27 = vsel %vm12940_vm6, %v5767_v44, %v5768_v41  ;;  %v10348_v44 = vld [vmem:[%s12859_s6 + $0x4c] sm:$0xf] }
  0x22   : > { %11668 = vmatpush3.bf16.msra.mxu0 %v12852_v3  ;;  %v4602_v28 = vrot.slane %v4601_v17, 4  ;;  %v4615_v29 = vor.u32 %v4614_v19, %v4611_v15  ;;  %v4624_v30 = vrot.slane %v4622_v20, 4  ;;  %v4633_v36 = vshrl.u32 %v10344_v22, 16  ;;  %v12505_v16 = vld [vmem:[%s12859_s6 + $0x6c] sm:$0xff]   ;;  %v10352_v17 = vld [vmem:[%s12859_s6 + $0x5c] sm:$0x1] }
  0x23   : > { %11338 = vmatmul.mubr.msk.bf16.gmra.mrb[8].mxu1 %vm411_vm0, %v12501_v55  ;;  %v4630_v31 = vrot.slane %v4628_v21, 5  ;;  %v4597_v33 = vsel %vm12898_vm4, %v4592_v24, %v4596_v2  ;;  %v4636_v38 = vshll.u32 %v10344_v22, 16  ;;  %v4642_v39 = vshll.u32 %v10345_v26, 16  ;;  %v10350_v2 = vld [vmem:[%s12859_s6 + $0x54] sm:$0xf] }
  0x24   : > { %11341 = vmatprep.mubr.msk.bf16.mxu1 %vm411_vm0, %v12502_v6  ;;  %v4607_v41 = vsel %vm12898_vm4, %v4602_v28, %v4606_v11  ;;  %v4616_v3 = vrot.slane %v4615_v29, 4  ;;  %v4625_v42 = vor.u32 %v4624_v30, %v4620_v25  ;;  %v4646_v43 = vshrl.u32 %v10345_v26, 16  ;;  %v10351_v11 = vld [vmem:[%s12859_s6 + $0x58] sm:$0xf]  ;;  %v10353_v24 = vld [vmem:[%s12859_s6 + $0x60] sm:$0xf] }
  0x25   : > { %v10419_v45 = vcombine.low %v4597_v33, %v4607_v41  ;;  %v4635_v47 = vrot.slane %v4633_v36, 4  ;;  %v4638_v48 = vrot.slane %v4636_v38, 5  ;;  %v4644_v49 = vrot.slane %v4642_v39, 5  ;;  %v12506_v36 = vld [vmem:[%s12859_s6 + $0x78] sm:$0xff]  }
  0x26   : > { %v4621_v53 = vsel %vm12898_vm4, %v4616_v3, %v4620_v25  ;;  %v4626_v54 = vrot.slane %v4625_v42, 4  ;;  %v4648_v55 = vrot.slane %v4646_v43, 4  ;;  %v4652_v56 = vshll.u32 %v10346_v32, 16  ;;  %v10354_v25 = vld [vmem:[%s12859_s6 + $0x64] sm:$0xf] }
  0x27   : > { %11639 = vmatprep.mubr.msk.bf16.mxu0 %vm411_vm0, %v10419_v45  ;;  %v4639_v57 = vor.u32 %v4638_v48, %v4635_v47  ;;  %v4657_v59 = vshrl.u32 %v10347_v40, 16  ;;  %v4660_v60 = vshll.u32 %v10347_v40, 16  ;;  %v4666_v61 = vshll.u32 %v10348_v44, 16  ;;  %v10355_v43 = vld [vmem:[%s12859_s6 + $0x68] sm:$0x1] }
  0x28   : > { %v4631_v62 = vsel %vm12898_vm4, %v4626_v54, %v4630_v31  ;;  %v4649_v63 = vor.u32 %v4648_v55, %v4644_v49  ;;  %v4654_v0 = vrot.slane %v4652_v56, 5  ;;  %v4670_v1 = vshrl.u32 %v10348_v44, 16 }
  0x29   : > { %v10420_v5 = vcombine.low %v4621_v53, %v4631_v62  ;;  %v4640_v6 = vrot.slane %v4639_v57, 4  ;;  %v4659_v7 = vrot.slane %v4657_v59, 4  ;;  %v4662_v8 = vrot.slane %v4660_v60, 5  ;;  %v10357_v57 = vld [vmem:[%s12859_s6 + $0x70] sm:$0xf]  ;;  %v12994_v59 = vld [vmem:[%s15722_s3 + $0x28] sm:$0xff]  }
  0x2a   : > { %v4650_v12 = vrot.slane %v4649_v63, 4  ;;  %v4668_v13 = vrot.slane %v4666_v61, 5  ;;  %v4672_v14 = vrot.slane %v4670_v1, 4  ;;  %v4676_v15 = vshll.u32 %v10349_v51, 16  ;;  %v10358_v1 = vld [vmem:[%s12859_s6 + $0x74] sm:$0x1]  ;;  %11701 = vmatprep.subr.bf16.mxu0 %v12994_v59 }
  0x2b   : > { %11342 = vmatmul.mubr.msk.bf16.gmra.mrb[12].mxu1 %vm411_vm0, %v12503_v35  ;;  %11640 = vmatmul.mubr.msk.bf16.gmra.mrb[4].mxu0 %vm411_vm0, %v10420_v5  ;;  %v4645_v19 = vsel %vm12898_vm4, %v4640_v6, %v4644_v49  ;;  %v4663_v20 = vor.u32 %v4662_v8, %v4659_v7  ;;  %v4681_v21 = vshrl.u32 %v10350_v2, 16  ;;  %v4684_v22 = vshll.u32 %v10350_v2, 16  ;;  %v10359_v8 = vld [vmem:[%s12859_s6 + $0x78] sm:$0xf] }
  0x2c   : > { %11345 = vmatprep.mubr.msk.bf16.mxu1 %vm411_vm0, %v12504_v52  ;;  %v4655_v26 = vsel %vm12898_vm4, %v4650_v12, %v4654_v0  ;;  %v4673_v28 = vor.u32 %v4672_v14, %v4668_v13  ;;  %v4678_v29 = vrot.slane %v4676_v15, 5  ;;  %v4690_v30 = vshll.u32 %v10351_v11, 16  ;;  %v10356_v52 = vld [vmem:[%s12859_s6 + $0x6c] sm:$0xf]  ;;  %v12507_v0 = vld [vmem:[%s12859_s6 + $0x84] sm:$0xff]  }
  0x2d   : > { %v10421_v31 = vcombine.low %v4645_v19, %v4655_v26  ;;  %v4664_v32 = vrot.slane %v4663_v20, 4  ;;  %v4683_v33 = vrot.slane %v4681_v21, 4  ;;  %v4686_v35 = vrot.slane %v4684_v22, 5  ;;  %v10360_v26 = vld [vmem:[%s12859_s6 + $0x7c] sm:$0xf] }
  0x2e   : > { %v4674_v38 = vrot.slane %v4673_v28, 4  ;;  %v4692_v39 = vrot.slane %v4690_v30, 5  ;;  %v4694_v40 = vshrl.u32 %v10351_v11, 16  ;;  %v4700_v41 = vshll.u32 %v10352_v17, 16  ;;  %v12508_v11 = vld [vmem:[%s12859_s6 + $0x90] sm:$0xff]  }
  0x2f   : > { %11643 = vmatprep.mubr.msk.bf16.mxu0 %vm411_vm0, %v10421_v31  ;;  %v4669_v3 = vsel %vm12898_vm4, %v4664_v32, %v4668_v13  ;;  %v4687_v42 = vor.u32 %v4686_v35, %v4683_v33  ;;  %v4705_v44 = vshrl.u32 %v10353_v24, 16  ;;  %v4708_v45 = vshll.u32 %v10353_v24, 16  ;;  %v10361_v32 = vld [vmem:[%s12859_s6 + $0x80] sm:$0x1] }
  0x30   : > { %v4679_v47 = vsel %vm12898_vm4, %v4674_v38, %v4678_v29  ;;  %v4696_v48 = vrot.slane %v4694_v40, 4  ;;  %v4702_v49 = vrot.slane %v4700_v41, 5  ;;  %v4714_v51 = vshll.u32 %v10354_v25, 16 }
  0x31   : > { %v10422_v53 = vcombine.low %v4669_v3, %v4679_v47  ;;  %v4688_v54 = vrot.slane %v4687_v42, 4  ;;  %v4707_v55 = vrot.slane %v4705_v44, 4  ;;  %v4710_v56 = vrot.slane %v4708_v45, 5 }
  0x32   : > { %v4697_v60 = vor.u32 %v4696_v48, %v4692_v39  ;;  %v4716_v61 = vrot.slane %v4714_v51, 5  ;;  %v4718_v62 = vshrl.u32 %v10354_v25, 16  ;;  %v4724_v63 = vshll.u32 %v10355_v43, 16  ;;  %v10363_v43 = vld [vmem:[%s12859_s6 + $0x88] sm:$0xf] }
  0x33   : > { %11346 = vmatmul.mubr.msk.bf16.gmra.mrb[16].mxu1 %vm411_vm0, %v12505_v16  ;;  %11644 = vmatmul.mubr.msk.bf16.gmra.mrb[8].mxu0 %vm411_vm0, %v10422_v53  ;;  %v4693_v2 = vsel %vm12898_vm4, %v4688_v54, %v4692_v39  ;;  %v4711_v5 = vor.u32 %v4710_v56, %v4707_v55  ;;  %v4729_v6 = vshrl.u32 %v10356_v52, 16  ;;  %v4732_v7 = vshll.u32 %v10356_v52, 16  ;;  %v10362_v39 = vld [vmem:[%s12859_s6 + $0x84] sm:$0xf]  ;;  %v10365_v55 = vld [vmem:[%s12859_s6 + $0x90] sm:$0xf] }
  0x34   : > { %11349 = vmatprep.mubr.msk.bf16.mxu1 %vm411_vm0, %v12506_v36  ;;  %v4698_v12 = vrot.slane %v4697_v60, 4  ;;  %v4720_v13 = vrot.slane %v4718_v62, 4  ;;  %v4726_v14 = vrot.slane %v4724_v63, 5  ;;  %v4738_v15 = vshll.u32 %v10357_v57, 16 }
  0x35   : > { %v4712_v16 = vrot.slane %v4711_v5, 4  ;;  %v4731_v17 = vrot.slane %v4729_v6, 4  ;;  %v4734_v19 = vrot.slane %v4732_v7, 5  ;;  %v4742_v20 = vshrl.u32 %v10357_v57, 16  ;;  %v12510_v5 = vld [vmem:[%s12859_s6 + $0xa8] sm:$0xff]  }
  0x36   : > { %v4703_v21 = vsel %vm12898_vm4, %v4698_v12, %v4702_v49  ;;  %v4721_v22 = vor.u32 %v4720_v13, %v4716_v61  ;;  %v4740_v24 = vrot.slane %v4738_v15, 5  ;;  %v4748_v25 = vshll.u32 %v10358_v1, 16  ;;  %v10364_v49 = vld [vmem:[%s12859_s6 + $0x8c] sm:$0x1]  ;;  %v10366_v12 = vld [vmem:[%s12859_s6 + $0x94] sm:$0xf] }
  0x37   : > { %v10423_v28 = vcombine.low %v4693_v2, %v4703_v21  ;;  %v4717_v29 = vsel %vm12898_vm4, %v4712_v16, %v4716_v61  ;;  %v4735_v30 = vor.u32 %v4734_v19, %v4731_v17  ;;  %v4744_v31 = vrot.slane %v4742_v20, 4  ;;  %v12509_v61 = vld [vmem:[%s12859_s6 + $0x9c] sm:$0xff]   ;;  %v10367_v20 = vld [vmem:[%s12859_s6 + $0x98] sm:$0x1] }
  0x38   : > { %v4722_v33 = vrot.slane %v4721_v22, 4  ;;  %v4750_v35 = vrot.slane %v4748_v25, 5  ;;  %v4753_v36 = vshrl.u32 %v10359_v8, 16  ;;  %v4756_v38 = vshll.u32 %v10359_v8, 16 }
  0x39   : > { %11647 = vmatprep.mubr.msk.bf16.mxu0 %vm411_vm0, %v10423_v28  ;;  %v4736_v40 = vrot.slane %v4735_v30, 4  ;;  %v4745_v41 = vor.u32 %v4744_v31, %v4740_v24  ;;  %v4762_v3 = vshll.u32 %v10360_v26, 16  ;;  %v4766_v42 = vshrl.u32 %v10360_v26, 16  ;;  %v10369_v30 = vld [vmem:[%s12859_s6 + $0xa0] sm:$0xf] }
  0x3a   : > { %v4727_v44 = vsel %vm12898_vm4, %v4722_v33, %v4726_v14  ;;  %v4755_v45 = vrot.slane %v4753_v36, 4  ;;  %v4758_v47 = vrot.slane %v4756_v38, 5  ;;  %v4772_v48 = vshll.u32 %v10361_v32, 16 }
  0x3b   : > { %11350 = vmatmul.mubr.msk.bf16.gmra.mrb[20].mxu1 %vm411_vm0, %v12507_v0  ;;  %v10424_v51 = vcombine.low %v4717_v29, %v4727_v44  ;;  %v4741_v52 = vsel %vm12898_vm4, %v4736_v40, %v4740_v24  ;;  %v4746_v53 = vrot.slane %v4745_v41, 4  ;;  %v4764_v54 = vrot.slane %v4762_v3, 5  ;;  %v10368_v29 = vld [vmem:[%s12859_s6 + $0x9c] sm:$0xf]  ;;  %v12511_v41 = vld [vmem:[%s12859_s6 + $0xb4] sm:$0xff]  }
  0x3c   : > { %11353 = vmatprep.mubr.msk.bf16.mxu1 %vm411_vm0, %v12508_v11  ;;  %v4759_v56 = vor.u32 %v4758_v47, %v4755_v45  ;;  %v4768_v57 = vrot.slane %v4766_v42, 4  ;;  %v4774_v60 = vrot.slane %v4772_v48, 5  ;;  %v4777_v62 = vshrl.u32 %v10362_v39, 16  ;;  %v10370_v3 = vld [vmem:[%s12859_s6 + $0xa4] sm:$0x1] }
  0x3d   : > { %11648 = vmatmul.mubr.msk.bf16.gmra.mrb[12].mxu0 %vm411_vm0, %v10424_v51  ;;  %v4751_v63 = vsel %vm12898_vm4, %v4746_v53, %v4750_v35  ;;  %v4780_v0 = vshll.u32 %v10362_v39, 16  ;;  %v4786_v1 = vshll.u32 %v10363_v43, 16  ;;  %v4790_v2 = vshrl.u32 %v10363_v43, 16  ;;  %v12512_v47 = vld [vmem:[%s13037_s13] sm:$0xff]   ;;  %v10371_v53 = vld [vmem:[%s12859_s6 + $0xa8] sm:$0xf] }
  0x3e   : > { %v10425_v6 = vcombine.low %v4741_v52, %v4751_v63  ;;  %v4760_v7 = vrot.slane %v4759_v56, 4  ;;  %v4769_v8 = vor.u32 %v4768_v57, %v4764_v54  ;;  %v4779_v11 = vrot.slane %v4777_v62, 4 }
  0x3f   : > { %v4782_v13 = vrot.slane %v4780_v0, 5  ;;  %v4788_v14 = vrot.slane %v4786_v1, 5  ;;  %v4792_v15 = vrot.slane %v4790_v2, 4  ;;  %v4796_v16 = vshll.u32 %v10364_v49, 16  ;;  %v10373_v1 = vld [vmem:[%s12859_s6 + $0xb0] sm:$0x1] }
  0x40   : > { %11651 = vmatprep.mubr.msk.bf16.mxu0 %vm411_vm0, %v10425_v6  ;;  %v4765_v17 = vsel %vm12898_vm4, %v4760_v7, %v4764_v54  ;;  %v4770_v19 = vrot.slane %v4769_v8, 4  ;;  %v4801_v21 = vshrl.u32 %v10365_v55, 16  ;;  %v4804_v22 = vshll.u32 %v10365_v55, 16  ;;  %v10374_v8 = vld [vmem:[%s12859_s6 + $0xb4] sm:$0xf] }
  0x41   : > { %v4783_v24 = vor.u32 %v4782_v13, %v4779_v11  ;;  %v4793_v25 = vor.u32 %v4792_v15, %v4788_v14  ;;  %v4798_v26 = vrot.slane %v4796_v16, 5  ;;  %v4810_v28 = vshll.u32 %v10366_v12, 16  ;;  %v10375_v15 = vld [vmem:[%s12859_s6 + $0xb8] sm:$0xf] }
  0x42   : > { %v4775_v31 = vsel %vm12898_vm4, %v4770_v19, %v4774_v60  ;;  %v4803_v32 = vrot.slane %v4801_v21, 4  ;;  %v4806_v33 = vrot.slane %v4804_v22, 5  ;;  %v4814_v35 = vshrl.u32 %v10366_v12, 16  ;;  %v10372_v60 = vld [vmem:[%s12859_s6 + $0xac] sm:$0xf] }
  0x43   : > { %11354 = vmatmul.mubr.msk.bf16.gmra.mrb[24].mxu1 %vm411_vm0, %v12509_v61  ;;  %v10426_v36 = vcombine.low %v4765_v17, %v4775_v31  ;;  %v4784_v38 = vrot.slane %v4783_v24, 4  ;;  %v4794_v39 = vrot.slane %v4793_v25, 4  ;;  %v4812_v40 = vrot.slane %v4810_v28, 5  ;;  %v12513_v21 = vld [vmem:[%s13037_s13 + $0xc] sm:$0xff]   ;;  %v12514_v28 = vld [vmem:[%s13037_s13 + $0x18] sm:$0xff]  }
  0x44   : > { %11357 = vmatprep.mubr.msk.bf16.mxu1 %vm411_vm0, %v12510_v5  ;;  %v4807_v42 = vor.u32 %v4806_v33, %v4803_v32  ;;  %v4816_v43 = vrot.slane %v4814_v35, 4  ;;  %v4820_v44 = vshll.u32 %v10367_v20, 16  ;;  %v4825_v45 = vshrl.u32 %v10368_v29, 16 }
  0x45   : > { %11652 = vmatmul.mubr.msk.bf16.gmra.mrb[16].mxu0 %vm411_vm0, %v10426_v36  ;;  %v4789_v48 = vsel %vm12898_vm4, %v4784_v38, %v4788_v14  ;;  %v4799_v49 = vsel %vm12898_vm4, %v4794_v39, %v4798_v26  ;;  %v4828_v51 = vshll.u32 %v10368_v29, 16  ;;  %v4834_v52 = vshll.u32 %v10369_v30, 16  ;;  %v10376_v38 = vld [vmem:[%s12859_s6 + $0xbc] sm:$0x1] }
  0x46   : > { %v10427_v54 = vcombine.low %v4789_v48, %v4799_v49  ;;  %v4808_v55 = vrot.slane %v4807_v42, 4  ;;  %v4817_v56 = vor.u32 %v4816_v43, %v4812_v40  ;;  %v4822_v57 = vrot.slane %v4820_v44, 5  ;;  %v10378_v44 = vld [vmem:[%s12859_s6 + $0xc4] sm:$0xf] }
  0x47   : > { %v4827_v61 = vrot.slane %v4825_v45, 4  ;;  %v4830_v62 = vrot.slane %v4828_v51, 5  ;;  %v4836_v63 = vrot.slane %v4834_v52, 5  ;;  %v4838_v0 = vshrl.u32 %v10369_v30, 16  ;;  %v13075_v45 = vld [vmem:[%s15722_s3 + $0x8] sm:$0xff]  }
  0x48   : > { %11655 = vmatprep.mubr.msk.bf16.mxu0 %vm411_vm0, %v10427_v54  ;;  %v4813_v2 = vsel %vm12898_vm4, %v4808_v55, %v4812_v40  ;;  %v4818_v5 = vrot.slane %v4817_v56, 4  ;;  %v4844_v6 = vshll.u32 %v10370_v3, 16  ;;  %v4849_v7 = vshrl.u32 %v10371_v53, 16  ;;  %v10377_v40 = vld [vmem:[%s12859_s6 + $0xc0] sm:$0xf] }
  0x49   : > { %v4831_v11 = vor.u32 %v4830_v62, %v4827_v61  ;;  %v4840_v12 = vrot.slane %v4838_v0, 4  ;;  %v4852_v13 = vshll.u32 %v10371_v53, 16  ;;  %v4858_v14 = vshll.u32 %v10372_v60, 16  ;;  %v10379_v52 = vld [vmem:[%s12859_s6 + $0xc8] sm:$0x1] }
  0x4a   : > { %v4823_v16 = vsel %vm12898_vm4, %v4818_v5, %v4822_v57  ;;  %v4846_v17 = vrot.slane %v4844_v6, 5  ;;  %v4851_v19 = vrot.slane %v4849_v7, 4  ;;  %v4862_v20 = vshrl.u32 %v10372_v60, 16  ;;  %v10285_v57 = vld [vmem:[%s13037_s13 + $0x10] sm:$0xf] }
  0x4b   : > { %11358 = vmatmul.mubr.msk.bf16.gmra.mrb[28].mxu1 %vm411_vm0, %v12511_v41  ;;  %v10428_v22 = vcombine.low %v4813_v2, %v4823_v16  ;;  %v4832_v24 = vrot.slane %v4831_v11, 4  ;;  %v4841_v25 = vor.u32 %v4840_v12, %v4836_v63  ;;  %v4854_v26 = vrot.slane %v4852_v13, 5  ;;  %v10286_v0 = vld [vmem:[%s13037_s13 + $0x14] sm:$0x1] }
  0x4c   : > { %11363 = vmatprep.mubr.msk.bf16.mxu1 %vm411_vm0, %v12512_v47  ;;  %v4860_v29 = vrot.slane %v4858_v14, 5  ;;  %v4864_v30 = vrot.slane %v4862_v20, 4  ;;  %v4868_v31 = vshll.u32 %v10373_v1, 16  ;;  %v4873_v32 = vshrl.u32 %v10374_v8, 16  ;;  %v10450_v1 = vld [vmem:[%s13037_s13 + $0xc] sm:$0xe] }
  0x4d   : > { %11656 = vmatmul.mubr.msk.bf16.gmra.mrb[20].mxu0 %vm411_vm0, %v10428_v22  ;;  %v4837_v33 = vsel %vm12898_vm4, %v4832_v24, %v4836_v63  ;;  %v4842_v35 = vrot.slane %v4841_v25, 4  ;;  %v4855_v36 = vor.u32 %v4854_v26, %v4851_v19  ;;  %v4876_v39 = vshll.u32 %v10374_v8, 16  ;;  %v10288_v24 = vld [vmem:[%s13037_s13 + $0x1c] sm:$0xf]  ;;  %v12518_v25 = vld [vmem:[%s13037_s13 + $0x30] sm:$0xff]  }
  0x4e   : > { %v4865_v41 = vor.u32 %v4864_v30, %v4860_v29  ;;  %v4870_v3 = vrot.slane %v4868_v31, 5  ;;  %v4875_v42 = vrot.slane %v4873_v32, 4  ;;  %v4882_v43 = vshll.u32 %v10375_v15, 16  ;;  %v10289_v30 = vld [vmem:[%s13037_s13 + $0x20] sm:$0x1] }
  0x4f   : > { %v4847_v47 = vsel %vm12898_vm4, %v4842_v35, %v4846_v17  ;;  %v4856_v48 = vrot.slane %v4855_v36, 4  ;;  %v4878_v49 = vrot.slane %v4876_v39, 5  ;;  %v4886_v51 = vshrl.u32 %v10375_v15, 16  ;;  %v12515_v17 = vld [vmem:[%s13037_s13 + $0x24] sm:$0xff]   ;;  %v10451_v31 = vld [vmem:[%s13037_s13 + $0x18] sm:$0xe] }
  0x50   : > { %v10429_v53 = vcombine.low %v4837_v33, %v4847_v47  ;;  %v4866_v54 = vrot.slane %v4865_v41, 4  ;;  %v4884_v55 = vrot.slane %v4882_v43, 5  ;;  %v4892_v56 = vshll.u32 %v10376_v38, 16  ;;  %v10291_v32 = vld [vmem:[%s13037_s13 + $0x28] sm:$0xf] }
  0x51   : > { %v4861_v60 = vsel %vm12898_vm4, %v4856_v48, %v4860_v29  ;;  %v4879_v61 = vor.u32 %v4878_v49, %v4875_v42  ;;  %v4888_v62 = vrot.slane %v4886_v51, 4  ;;  %v4897_v63 = vshrl.u32 %v10377_v40, 16  ;;  %v10292_v39 = vld [vmem:[%s13037_s13 + $0x2c] sm:$0x1]  ;;  %v10295_v51 = vld [vmem:[%s13037_s13 + $0x38] sm:$0x1] }
  0x52   : > { %11659 = vmatprep.mubr.msk.bf16.mxu0 %vm411_vm0, %v10429_v53  ;;  %v4871_v2 = vsel %vm12898_vm4, %v4866_v54, %v4870_v3  ;;  %v4894_v5 = vrot.slane %v4892_v56, 5  ;;  %v4900_v6 = vshll.u32 %v10377_v40, 16  ;;  %v4906_v7 = vshll.u32 %v10378_v44, 16  ;;  %v10452_v40 = vld [vmem:[%s13037_s13 + $0x24] sm:$0xe] }
  0x53   : > { %11364 = vmatmul.mubr.msk.bf16.vlgmr.msra.gmra.mrb[0].mxu1 %vm411_vm0, %v12513_v21  ;;  %v10430_v8 = vcombine.low %v4861_v60, %v4871_v2  ;;  %v4880_v11 = vrot.slane %v4879_v61, 4  ;;  %v4889_v12 = vor.u32 %v4888_v62, %v4884_v55  ;;  %v4899_v13 = vrot.slane %v4897_v63, 4  ;;  %v10297_v62 = vld [vmem:[%s13037_s13 + $0x40] sm:$0xf] }
  0x54   : > { %11367 = vmatprep.mubr.msk.bf16.mxu1 %vm411_vm0, %v12514_v28  ;;  %11396 = vmatpush3.bf16.msra.mxu1 %v12865_v4  ;;  %v4902_v14 = vrot.slane %v4900_v6, 5  ;;  %v4908_v4 = vrot.slane %v4906_v7, 5  ;;  %v4910_v15 = vshrl.u32 %v10378_v44, 16  ;;  %v4916_v16 = vshll.u32 %v10379_v52, 16  ;;  %v13109_v44 = vld [vmem:[%s13037_s13 + $0x34] sm:$0xf] }
  0x55   : > { %11429 = vmatprep.subr.bf16.mxu1 %v13075_v45  ;;  %11660 = vmatmul.mubr.msk.bf16.gmra.mrb[24].mxu0 %vm411_vm0, %v10430_v8  ;;  %v4885_v19 = vsel %vm12898_vm4, %v4880_v11, %v4884_v55  ;;  %v4890_v20 = vrot.slane %v4889_v12, 4  ;;  %v10466_v21 = vrot.slane %v10450_v1, 9  ;;  %v5582_v22 = vrot.slane %v10285_v57, 5  ;;  %v10453_v52 = vld [vmem:[%s13037_s13 + $0x30] sm:$0xe]  ;;  %v12520_v8 = vld [vmem:[%s13037_s13 + $0x48] sm:$0xff]  }
  0x56   : > { %v4903_v26 = vor.u32 %v4902_v14, %v4899_v13  ;;  %v4912_v28 = vrot.slane %v4910_v15, 4  ;;  %v5585_v29 = vrot.slane %v10286_v0, 5  ;;  %v4918_v35 = vrot.slane %v4916_v16, 5  ;;  %v12519_v0 = vld [vmem:[%s13037_s13 + $0x3c] sm:$0xff]   ;;  %v10298_v6 = vld [vmem:[%s13037_s13 + $0x44] sm:$0x1] }
  0x57   : > { %v4895_v33 = vsel %vm12898_vm4, %v4890_v20, %v4894_v5  ;;  %v5583_v36 = vsel %vm12940_vm6, %v10466_v21, %v5582_v22  ;;  %v5584_v38 = vrot.slane %v5582_v22, 4  ;;  %v5589_v43 = vrot.slane %v10288_v24, 5  ;;  %v10454_v11 = vld [vmem:[%s13037_s13 + $0x3c] sm:$0xe]  ;;  %v10300_v13 = vld [vmem:[%s13037_s13 + $0x4c] sm:$0xf] }
  0x58   : > { %v10431_v41 = vcombine.low %v4885_v19, %v4895_v33  ;;  %v4904_v3 = vrot.slane %v4903_v26, 4  ;;  %v4913_v42 = vor.u32 %v4912_v28, %v4908_v4  ;;  %v5758_v47 = vrot.slane %v12875_v9, 5  ;;  %v10455_v24 = vld [vmem:[%s13037_s13 + $0x48] sm:$0xe] }
  0x59   : > { %v5586_v48 = vsel %vm12940_vm6, %v5584_v38, %v5585_v29  ;;  %v5596_v49 = vrot.slane %v10291_v32, 5  ;;  %v10467_v55 = vrot.slane %v10451_v31, 9  ;;  %v5591_v57 = vrot.slane %v5589_v43, 4  ;;  %v10303_v29 = vld [vmem:[%s13037_s13 + $0x58] sm:$0xf] }
  0x5a   : > { %11663 = vmatprep.mubr.msk.bf16.mxu0 %vm411_vm0, %v10431_v41  ;;  %v4909_v53 = vsel %vm12898_vm4, %v4904_v3, %v4908_v4  ;;  %v4914_v54 = vrot.slane %v4913_v42, 4  ;;  %v10516_v56 = vcombine.low %v5583_v36, %v5586_v48  ;;  %v5592_v60 = vrot.slane %v10289_v30, 5  ;;  %v10304_v30 = vld [vmem:[%s13037_s13 + $0x5c] sm:$0x1]  ;;  %v10456_v32 = vld [vmem:[%s13037_s13 + $0x54] sm:$0xe] }
  0x5b   : > { %11368 = vmatmul.mubr.msk.bf16.gmra.mrb[4].mxu1 %vm411_vm0, %v12515_v17  ;;  %v10468_v61 = vrot.slane %v10452_v40, 9  ;;  %v5598_v1 = vrot.slane %v5596_v49, 4  ;;  %v5599_v2 = vrot.slane %v10292_v39, 5  ;;  %v5603_v5 = vrot.slane %v13109_v44, 5  ;;  %v10301_v17 = vld [vmem:[%s13037_s13 + $0x50] sm:$0x1] }
  0x5c   : > { %11371 = vmatprep.mubr.msk.bf16.mxu1 %vm411_vm0, %v12518_v25  ;;  %v4919_v63 = vsel %vm12898_vm4, %v4914_v54, %v4918_v35  ;;  %v5610_v12 = vrot.slane %v10297_v62, 5  ;;  %v5761_v14 = vrot.slane %v12878_v10, 5  ;;  %v10469_v4 = vrot.slane %v10453_v52, 9  ;;  %v10306_v35 = vld [vmem:[%s13037_s13 + $0x64] sm:$0xf]  ;;  %v12521_v39 = vld [vmem:[%s13037_s13 + $0x54] sm:$0xff]  }
  0x5d   : > { %v10432_v7 = vcombine.low %v4909_v53, %v4919_v63  ;;  %v5605_v15 = vrot.slane %v5603_v5, 4  ;;  %v5606_v16 = vrot.slane %v10295_v51, 5  ;;  %v5590_v19 = vsel %vm12940_vm6, %v10467_v55, %v5589_v43  ;;  %v10307_v3 = vld [vmem:[%s13037_s13 + $0x68] sm:$0x1]  ;;  %v10457_v42 = vld [vmem:[%s13037_s13 + $0x60] sm:$0xe] }
  0x5e   : > { %v5597_v20 = vsel %vm12940_vm6, %v10468_v61, %v5596_v49  ;;  %v10470_v21 = vrot.slane %v10454_v11, 9  ;;  %v5612_v22 = vrot.slane %v5610_v12, 4  ;;  %v5593_v10 = vsel %vm12940_vm6, %v5591_v57, %v5592_v60  ;;  %v12522_v43 = vld [vmem:[%s13037_s13 + $0x60] sm:$0xff]   ;;  %v10309_v63 = vld [vmem:[%s13037_s13 + $0x70] sm:$0xf] }
  0x5f   : > { %11664 = vmatmul.mubr.msk.bf16.gmra.mrb[28].mxu0 %vm411_vm0, %v10432_v7  ;;  %v5600_v25 = vsel %vm12940_vm6, %v5598_v1, %v5599_v2  ;;  %v5613_v26 = vrot.slane %v10298_v6, 5  ;;  %v5617_v28 = vrot.slane %v10300_v13, 5  ;;  %v10471_v31 = vrot.slane %v10455_v24, 9  ;;  %v10310_v2 = vld [vmem:[%s13037_s13 + $0x74] sm:$0x1] }
  0x60   : > { %11669 = vmatprep.mubr.msk.bf16.mxu0 %vm411_vm0, %v10516_v56  ;;  %v5624_v33 = vrot.slane %v10303_v29, 5  ;;  %v10517_v36 = vcombine.low %v5590_v19, %v5593_v10  ;;  %v10518_v38 = vcombine.low %v5597_v20, %v5600_v25  ;;  %v5620_v41 = vrot.slane %v10301_v17, 5  ;;  %v13165_v56 = vld [vmem:[%s15721_s2 + $0x30] sm:$0xff]   ;;  %v10312_v13 = vld [vmem:[%s13037_s13 + $0x7c] sm:$0xf] }
  0x61   : > { %v5619_v40 = vrot.slane %v5617_v28, 4  ;;  %v10472_v44 = vrot.slane %v10456_v32, 9  ;;  %v5627_v49 = vrot.slane %v10304_v30, 5  ;;  %v5631_v51 = vrot.slane %v10306_v35, 5  ;;  %v12523_v25 = vld [vmem:[%s13037_s13 + $0x6c] sm:$0xff]  }
  0x62   : > { %v5626_v48 = vrot.slane %v5624_v33, 4  ;;  %v5604_v52 = vsel %vm12940_vm6, %v10469_v4, %v5603_v5  ;;  %v5607_v53 = vsel %vm12940_vm6, %v5605_v15, %v5606_v16  ;;  %v13158_v54 = vsel %vm12940_vm6, %v10470_v21, %v5610_v12  ;;  %v10458_v5 = vld [vmem:[%s13037_s13 + $0x6c] sm:$0xe]  ;;  %v10313_v4 = vld [vmem:[%s13037_s13 + $0x80] sm:$0x1] }
  0x63   : > { %11372 = vmatmul.mubr.msk.bf16.gmra.mrb[8].mxu1 %vm411_vm0, %v12519_v0  ;;  %v5760_v55 = vrot.slane %v5758_v47, 4  ;;  %v5614_v57 = vsel %vm12940_vm6, %v5612_v22, %v5613_v26  ;;  %v13171_v60 = vsel %vm12940_vm6, %v10471_v31, %v5617_v28  ;;  %v10473_v61 = vrot.slane %v10457_v42, 9  ;;  %v10459_v16 = vld [vmem:[%s13037_s13 + $0x78] sm:$0xe]  ;;  %v10315_v32 = vld [vmem:[%s13037_s13 + $0x88] sm:$0xf] }
  0x64   : > { %11375 = vmatprep.mubr.msk.bf16.mxu1 %vm411_vm0, %v12520_v8  ;;  %v5634_v62 = vrot.slane %v10307_v3, 5  ;;  %v13177_v0 = vsel %vm12940_vm6, %v5619_v40, %v5620_v41  ;;  %v5633_v1 = vrot.slane %v5631_v51, 4  ;;  %v5638_v6 = vrot.slane %v10309_v63, 5  ;;  %v10460_v35 = vld [vmem:[%s13037_s13 + $0x84] sm:$0xe]  ;;  %v12524_v3 = vld [vmem:[%s13037_s13 + $0x78] sm:$0xff]  }
  0x65   : > { %v13183_v7 = vsel %vm12940_vm6, %v5760_v55, %v5761_v14  ;;  %v13189_v8 = vsel %vm12940_vm6, %v10472_v44, %v5624_v33  ;;  %v13193_v11 = vsel %vm12940_vm6, %v5626_v48, %v5627_v49  ;;  %v10474_v12 = vrot.slane %v10458_v5, 9  ;;  %v10316_v33 = vld [vmem:[%s13037_s13 + $0x8c] sm:$0x1]  ;;  %v10318_v40 = vld [vmem:[%s13037_s13 + $0x94] sm:$0xf] }
  0x66   : > { %v15726_v15 = vrot.slane %v12910_v46, 5  ;;  %v5640_v14 = vrot.slane %v5638_v6, 4  ;;  %v5645_v17 = vrot.slane %v10312_v13, 5  ;;  %v5775_v19 = vrot.slane %v12917_v50, 5  ;;  %v10319_v48 = vld [vmem:[%s13037_s13 + $0x98] sm:$0x1] }
  0x67   : > { %11670 = vmatmul.mubr.msk.bf16.vlgmr.msra.gmra.mrb[0].mxu0 %vm411_vm0, %v10517_v36  ;;  %v10519_v20 = vcombine.low %v5604_v52, %v5607_v53  ;;  %v10475_v21 = vrot.slane %v10459_v16, 9  ;;  %v5648_v22 = vrot.slane %v10313_v4, 5  ;;  %v10520_v24 = vcombine.low %v13158_v54, %v5614_v57  ;;  %v10461_v49 = vld [vmem:[%s13037_s13 + $0x90] sm:$0xe]  ;;  %v12606_v63 = vld [vmem:[%s12859_s6 + $0x38] sm:$0x1] }
  0x68   : > { %11702 = vmatpush3.bf16.msra.mxu0 %v12994_v59  ;;  %11673 = vmatprep.mubr.msk.bf16.mxu0 %vm411_vm0, %v10518_v38  ;;  %v5641_v59 = vrot.slane %v10310_v2, 5  ;;  %v10521_v10 = vcombine.low %v13171_v60, %v13177_v0  ;;  %v5647_v26 = vrot.slane %v5645_v17, 4  ;;  %v15725_v28 = vrot.slane %v12923_v58, 5  ;;  %v10322_v13 = vld [vmem:[%s13037_s13 + $0xa4] sm:$0x1] }
  0x69   : > { %11735 = vmatprep.subr.bf16.mxu0 %v13165_v56  ;;  %v10522_v50 = vcombine.low %v13189_v8, %v13193_v11  ;;  %v13212_v29 = vsel %vm12940_vm6, %v10473_v61, %v5631_v51  ;;  %v13216_v30 = vsel %vm12940_vm6, %v5633_v1, %v5634_v62  ;;  %v13220_v31 = vsel %vm12940_vm6, %v10474_v12, %v5638_v6  ;;  %v10321_v12 = vld [vmem:[%s13037_s13 + $0xa0] sm:$0xf]  ;;  %v10462_v16 = vld [vmem:[%s13037_s13 + $0x9c] sm:$0xe] }
  0x6a   : > { %v10476_v36 = vrot.slane %v10460_v35, 9  ;;  %v5652_v38 = vrot.slane %v10315_v32, 5  ;;  %v5774_v41 = vrot.slane %v15726_v15, 4  ;;  %v13231_v42 = vsel %vm12940_vm6, %v5640_v14, %v5641_v59  ;;  %v10463_v32 = vld [vmem:[%s13037_s13 + $0xa8] sm:$0xe]  ;;  %v12526_v35 = vld [vmem:[%s13037_s13 + $0x90] sm:$0xff]  }
  0x6b   : > { %11376 = vmatmul.mubr.msk.bf16.gmra.mrb[12].mxu1 %vm411_vm0, %v12521_v39  ;;  %v5655_v39 = vrot.slane %v10316_v33, 5  ;;  %v13239_v44 = vsel %vm12940_vm6, %v5647_v26, %v5648_v22  ;;  %v5659_v51 = vrot.slane %v10318_v40, 5  ;;  %v10477_v53 = vrot.slane %v10461_v49, 9  ;;  %v12525_v22 = vld [vmem:[%s13037_s13 + $0x84] sm:$0xff]   ;;  %v10325_v26 = vld [vmem:[%s13037_s13 + $0xb0] sm:$0x1] }
  0x6c   : > { %11379 = vmatprep.mubr.msk.bf16.mxu1 %vm411_vm0, %v12522_v43  ;;  %v13235_v43 = vsel %vm12940_vm6, %v10475_v21, %v5645_v17  ;;  %v5654_v52 = vrot.slane %v5652_v38, 4  ;;  %v5662_v54 = vrot.slane %v10319_v48, 5  ;;  %v5781_v55 = vrot.slane %v15725_v28, 4  ;;  %v10324_v21 = vld [vmem:[%s13037_s13 + $0xac] sm:$0xf] }
  0x6d   : > { %v10523_v57 = vcombine.low %v13212_v29, %v13216_v30  ;;  %v13251_v61 = vsel %vm12940_vm6, %v10476_v36, %v5652_v38  ;;  %v5661_v62 = vrot.slane %v5659_v51, 4  ;;  %v5782_v1 = vrot.slane %v12606_v63, 5  ;;  %v916_v40 = vld [vmem:[%s13037_s13] sm:$0xf]  ;;  %v12528_v15 = vld [vmem:[%s13037_s13 + $0xa8] sm:$0xff]  }
  0x6e   : > { %v10524_v2 = vcombine.low %v13220_v31, %v13231_v42  ;;  %v13259_v5 = vsel %vm12940_vm6, %v5654_v52, %v5655_v39  ;;  %v13263_v6 = vsel %vm12940_vm6, %v10477_v53, %v5659_v51  ;;  %v13269_v4 = vsel %vm12940_vm6, %v5774_v41, %v5775_v19  ;;  %v13290_v41 = vld [vmem:[%s12859_s6 + $0x40] sm:$0xf]  ;;  %v917_v51 = vld [vmem:[%s13037_s13 + $0x4] sm:$0xf]  ;;  %v918_v52 = vld [vmem:[%s13037_s13 + $0x8] sm:$0x1] }
  0x6f   : > { %11674 = vmatmul.mubr.msk.bf16.gmra.mrb[4].mxu0 %vm411_vm0, %v10519_v20  ;;  %v10525_v14 = vcombine.low %v13235_v43, %v13239_v44  ;;  %v13276_v59 = vsel %vm12940_vm6, %v5661_v62, %v5662_v54  ;;  %v5666_v17 = vrot.slane %v10321_v12, 5  ;;  %v5669_v20 = vrot.slane %v10322_v13, 5  ;;  %v10465_v28 = vld [vmem:[%s13037_s13 + $0xc0] sm:$0xe] }
  0x70   : > { %11677 = vmatprep.mubr.msk.bf16.mxu0 %vm411_vm0, %v10520_v24  ;;  %v10526_v19 = vcombine.low %v13251_v61, %v13259_v5  ;;  %v10527_v24 = vcombine.low %v13263_v6, %v13276_v59  ;;  %v5673_v33 = vrot.slane %v10324_v21, 5  ;;  %v10479_v38 = vrot.slane %v10463_v32, 9  ;;  %v10327_v32 = vld [vmem:[%s13037_s13 + $0xb8] sm:$0xf] }
  0x71   : > { %v5668_v36 = vrot.slane %v5666_v17, 4  ;;  %v5676_v39 = vrot.slane %v10325_v26, 5  ;;  %v968_v53 = vshrl.u32 %v916_v40, 16  ;;  %v13301_v54 = vsel %vm12940_vm6, %v5781_v55, %v5782_v1 }
  0x72   : > { %v5675_v49 = vrot.slane %v5673_v33, 4  ;;  %v13309_v63 = vsel %vm12940_vm6, %v10479_v38, %v5673_v33  ;;  %v971_v12 = vshll.u32 %v916_v40, 16  ;;  %v977_v13 = vshll.u32 %v917_v51, 16  ;;  %v10464_v40 = vld [vmem:[%s13037_s13 + $0xb4] sm:$0xe] }
  0x73   : > { %11380 = vmatmul.mubr.msk.bf16.gmra.mrb[16].mxu1 %vm411_vm0, %v12523_v25  ;;  %v10478_v25 = vrot.slane %v10462_v16, 9  ;;  %v13305_v62 = vsel %vm12940_vm6, %v5668_v36, %v5669_v20  ;;  %v919_v16 = vld [vmem:[%s13037_s13 + $0xc] sm:$0xf]  ;;  %v970_v20 = vrot.slane %v968_v53, 4  ;;  %v981_v21 = vshrl.u32 %v917_v51, 16 }
  0x74   : > { %11383 = vmatprep.mubr.msk.bf16.mxu1 %vm411_vm0, %v12524_v3  ;;  %v13321_v1 = vsel %vm12940_vm6, %v5675_v49, %v5676_v39  ;;  %v973_v0 = vrot.slane %v971_v12, 5  ;;  %v987_v26 = vshll.u32 %v918_v52, 16  ;;  %v992_v36 = vshrl.u32 %v919_v16, 16  ;;  %v10328_v51 = vld [vmem:[%s13037_s13 + $0xbc] sm:$0x1] }
  0x75   : > { %v13295_v48 = vsel %vm12940_vm6, %v10478_v25, %v5666_v17  ;;  %v920_v17 = vld [vmem:[%s13037_s13 + $0x10] sm:$0xf]  ;;  %v921_v25 = vld [vmem:[%s13037_s13 + $0x14] sm:$0x1]  ;;  %v983_v33 = vrot.slane %v981_v21, 4  ;;  %v995_v38 = vshll.u32 %v919_v16, 16 }
  0x76   : > { %v10528_v55 = vcombine.low %v13295_v48, %v13305_v62  ;;  %v1001_v39 = vshll.u32 %v920_v17, 16  ;;  %v974_v8 = vor.u32 %v973_v0, %v970_v20  ;;  %v989_v11 = vrot.slane %v987_v26, 5 }
  0x77   : > { %11678 = vmatmul.mubr.msk.bf16.gmra.mrb[8].mxu0 %vm411_vm0, %v10521_v10  ;;  %v979_v10 = vrot.slane %v977_v13, 5  ;;  %v1011_v49 = vshll.u32 %v921_v25, 16  ;;  %v994_v53 = vrot.slane %v992_v36, 4  ;;  %v997_v12 = vrot.slane %v995_v38, 5  ;;  %v10330_v13 = vld [vmem:[%s13037_s13 + $0xc4] sm:$0xf] }
  0x78   : > { %11681 = vmatprep.mubr.msk.bf16.mxu0 %vm411_vm0, %v10522_v50  ;;  %v1005_v50 = vshrl.u32 %v920_v17, 16  ;;  %v975_v21 = vrot.slane %v974_v8, 4  ;;  %v10480_v60 = vrot.slane %v10464_v40, 9  ;;  %v5680_v25 = vrot.slane %v10327_v32, 5  ;;  %v10331_v36 = vld [vmem:[%s13037_s13 + $0xc8] sm:$0x1] }
  0x79   : > { %v984_v52 = vor.u32 %v983_v33, %v979_v10  ;;  %v1013_v3 = vrot.slane %v1011_v49, 5  ;;  %v998_v17 = vor.u32 %v997_v12, %v994_v53  ;;  %v5683_v0 = vrot.slane %v10328_v51, 5  ;;  %v922_v8 = vld [vmem:[%s13037_s13 + $0x18] sm:$0xf]  ;;  %v923_v49 = vld [vmem:[%s13037_s13 + $0x1c] sm:$0xf] }
  0x7a   : > { %v1007_v16 = vrot.slane %v1005_v50, 4  ;;  %v980_v26 = vsel %vm12898_vm4, %v975_v21, %v979_v10  ;;  %v10481_v38 = vrot.slane %v10465_v28, 9  ;;  %v13351_v32 = vsel %vm12940_vm6, %v10480_v60, %v5680_v25  ;;  %v924_v51 = vld [vmem:[%s13037_s13 + $0x20] sm:$0x1] }
  0x7b   : > { %11384 = vmatmul.mubr.msk.bf16.gmra.mrb[20].mxu1 %vm411_vm0, %v12525_v22  ;;  %v1003_v22 = vrot.slane %v1001_v39, 5  ;;  %v985_v20 = vrot.slane %v984_v52, 4  ;;  %v5687_v39 = vrot.slane %v10330_v13, 5  ;;  %v999_v50 = vrot.slane %v998_v17, 4  ;;  %v926_v52 = vld [vmem:[%s13037_s13 + $0x28] sm:$0xf] }
  0x7c   : > { %11387 = vmatprep.mubr.msk.bf16.mxu1 %vm411_vm0, %v12526_v35  ;;  %v12527_v35 = vld [vmem:[%s13037_s13 + $0x9c] sm:$0xff]   ;;  %v5682_v10 = vrot.slane %v5680_v25, 4  ;;  %v5690_v42 = vrot.slane %v10331_v36, 5  ;;  %v1019_v13 = vshll.u32 %v922_v8, 16  ;;  %v1025_v21 = vshll.u32 %v923_v49, 16 }
  0x7d   : > { %v1008_v33 = vor.u32 %v1007_v16, %v1003_v22  ;;  %v990_v40 = vsel %vm12898_vm4, %v985_v20, %v989_v11  ;;  %v13361_v30 = vsel %vm12940_vm6, %v10481_v38, %v5687_v39  ;;  %v925_v11 = vld [vmem:[%s13037_s13 + $0x24] sm:$0xf]  ;;  %v1004_v60 = vsel %vm12898_vm4, %v999_v50, %v1003_v22  ;;  %v927_v17 = vld [vmem:[%s13037_s13 + $0x2c] sm:$0x1] }
  0x7e   : > { %v9980_v28 = vcombine.low %v980_v26, %v990_v40  ;;  %v13369_v31 = vsel %vm12940_vm6, %v5682_v10, %v5683_v0  ;;  %v1029_v20 = vshrl.u32 %v923_v49, 16  ;;  %v1021_v25 = vrot.slane %v1019_v13, 5  ;;  %v10483_v40 = vld [vmem:[%s12859_s6 + $0x18] sm:$0xe]  ;;  %v928_v49 = vld [vmem:[%s13037_s13 + $0x30] sm:$0xf] }
  0x7f   : > { %11682 = vmatmul.mubr.msk.bf16.gmra.mrb[12].mxu0 %vm411_vm0, %v10523_v57  ;;  %v1009_v29 = vrot.slane %v1008_v33, 4  ;;  %v5689_v57 = vrot.slane %v5687_v39, 4  ;;  %v10530_v12 = vcombine.low %v13351_v32, %v13369_v31  ;;  %v1027_v0 = vrot.slane %v1025_v21, 5  ;;  %v10482_v33 = vld [vmem:[%s12859_s6 + $0xc] sm:$0xe] }
  0x80   : > { %11685 = vmatprep.mubr.msk.bf16.mxu0 %vm411_vm0, %v10524_v2  ;;  %v1016_v2 = vshrl.u32 %v922_v8, 16  ;;  %v1035_v26 = vshll.u32 %v924_v51, 16  ;;  %v1031_v36 = vrot.slane %v1029_v20, 4  ;;  %v1040_v38 = vshrl.u32 %v925_v11, 16 }
  0x81   : > { %v1014_v53 = vsel %vm12898_vm4, %v1009_v29, %v1013_v3  ;;  %v13381_v16 = vsel %vm12940_vm6, %v5689_v57, %v5690_v42  ;;  %v1043_v39 = vshll.u32 %v925_v11, 16  ;;  %v1049_v8 = vshll.u32 %v926_v52, 16 }
  0x82   : > { %v13377_v22 = vcombine.low %v1004_v60, %v1014_v53  ;;  %v10531_v3 = vcombine.low %v13361_v30, %v13381_v16  ;;  %v1037_v10 = vrot.slane %v1035_v26, 5  ;;  %v1053_v29 = vshrl.u32 %v926_v52, 16 }
  0x83   : > { %11388 = vmatmul.mubr.msk.bf16.gmra.mrb[24].mxu1 %vm411_vm0, %v12527_v35  ;;  %v1018_v35 = vrot.slane %v1016_v2, 4  ;;  %v1059_v57 = vshll.u32 %v927_v17, 16  ;;  %v1032_v60 = vor.u32 %v1031_v36, %v1027_v0  ;;  %v1042_v42 = vrot.slane %v1040_v38, 4 }
  0x84   : > { %11391 = vmatprep.mubr.msk.bf16.mxu1 %vm411_vm0, %v12528_v15  ;;  %v12529_v15 = vld [vmem:[%s13037_s13 + $0xb4] sm:$0xff]   ;;  %v1045_v2 = vrot.slane %v1043_v39, 5  ;;  %v1051_v51 = vrot.slane %v1049_v8, 5  ;;  %v1055_v53 = vrot.slane %v1053_v29, 4  ;;  %v10498_v13 = vrot.slane %v10482_v33, 9 }
  0x85   : > { %v1022_v50 = vor.u32 %v1021_v25, %v1018_v35  ;;  %v1061_v52 = vrot.slane %v1059_v57, 5  ;;  %v1033_v43 = vrot.slane %v1032_v60, 4  ;;  %v1064_v21 = vshrl.u32 %v928_v49, 16  ;;  %v930_v25 = vld [vmem:[%s13037_s13 + $0x38] sm:$0x1] }
  0x86   : > { %v1046_v44 = vor.u32 %v1045_v2, %v1042_v42  ;;  %v1056_v61 = vor.u32 %v1055_v53, %v1051_v51  ;;  %v13406_v5 = vsel %vm12940_vm6, %v10498_v13, %v5758_v47  ;;  %v1067_v20 = vshll.u32 %v928_v49, 16  ;;  %v931_v47 = vld [vmem:[%s13037_s13 + $0x3c] sm:$0xf]  ;;  %v13432_v49 = vld [vmem:[%s15721_s2 + $0x10] sm:$0xff]  }
  0x87   : > { %11686 = vmatmul.mubr.msk.bf16.gmra.mrb[16].mxu0 %vm411_vm0, %v10525_v14  ;;  %v1023_v11 = vrot.slane %v1022_v50, 4  ;;  %v10499_v14 = vrot.slane %v10483_v40, 9  ;;  %v1038_v17 = vsel %vm12898_vm4, %v1033_v43, %v1037_v10  ;;  %v1066_v36 = vrot.slane %v1064_v21, 4  ;;  %v932_v40 = vld [vmem:[%s13037_s13 + $0x40] sm:$0xf] }
  0x88   : > { %11689 = vmatprep.mubr.msk.bf16.mxu0 %vm411_vm0, %v10526_v19  ;;  %v929_v19 = vld [vmem:[%s13037_s13 + $0x34] sm:$0xf]  ;;  %v1057_v26 = vrot.slane %v1056_v61, 4  ;;  %v1069_v39 = vrot.slane %v1067_v20, 5  ;;  %v1083_v50 = vshll.u32 %v930_v25, 16  ;;  %v1088_v29 = vshrl.u32 %v931_v47, 16 }
  0x89   : > { %v1028_v35 = vsel %vm12898_vm4, %v1023_v11, %v1027_v0  ;;  %v13417_v9 = vsel %vm12940_vm6, %v10499_v14, %v5765_v37  ;;  %v1073_v8 = vshll.u32 %v929_v19, 16  ;;  %v1077_v18 = vshrl.u32 %v929_v19, 16  ;;  %v933_v10 = vld [vmem:[%s13037_s13 + $0x44] sm:$0x1]  ;;  %v10484_v11 = vld [vmem:[%s12859_s6 + $0x24] sm:$0xe] }
  0x8a   : > { %v9982_v0 = vcombine.low %v1028_v35, %v1038_v17  ;;  %v10552_v33 = vcombine.low %v13417_v9, %v12949_v27  ;;  %v1062_v37 = vsel %vm12898_vm4, %v1057_v26, %v1061_v52  ;;  %v1091_v57 = vshll.u32 %v931_v47, 16  ;;  %v10485_v53 = vld [vmem:[%s12859_s6 + $0x30] sm:$0xe]  ;;  %v934_v21 = vld [vmem:[%s13037_s13 + $0x48] sm:$0xf] }
  0x8b   : > { %11392 = vmatmul.mubr.msk.bf16.gmra.mrb[28].mxu1 %vm411_vm0, %v12529_v15  ;;  %v1047_v15 = vrot.slane %v1046_v44, 4  ;;  %v1070_v42 = vor.u32 %v1069_v39, %v1066_v36  ;;  %v1075_v2 = vrot.slane %v1073_v8, 5  ;;  %v1085_v52 = vrot.slane %v1083_v50, 5  ;;  %v936_v26 = vld [vmem:[%s13037_s13 + $0x50] sm:$0x1] }
  0x8c   : > { %11397 = vmatprep.mubr.msk.bf16.mxu1 %vm411_vm0, %v9980_v28  ;;  %v10551_v28 = vcombine.low %v13406_v5, %v13183_v7  ;;  %v1090_v13 = vrot.slane %v1088_v29, 4  ;;  %v1093_v43 = vrot.slane %v1091_v57, 5  ;;  %v1097_v44 = vshll.u32 %v932_v40, 16 }
  0x8d   : > { %v1052_v38 = vsel %vm12898_vm4, %v1047_v15, %v1051_v51  ;;  %v1079_v51 = vrot.slane %v1077_v18, 4  ;;  %v1071_v6 = vrot.slane %v1070_v42, 4  ;;  %v1107_v14 = vshll.u32 %v933_v10, 16  ;;  %v937_v18 = vld [vmem:[%s13037_s13 + $0x54] sm:$0xf] }
  0x8e   : > { %v9983_v60 = vcombine.low %v1052_v38, %v1062_v37  ;;  %v1094_v48 = vor.u32 %v1093_v43, %v1090_v13  ;;  %v1099_v62 = vrot.slane %v1097_v44, 5  ;;  %v10501_v35 = vrot.slane %v10485_v53, 9  ;;  %v939_v53 = vld [vmem:[%s13037_s13 + $0x5c] sm:$0x1] }
  0x8f   : > { %11690 = vmatmul.mubr.msk.bf16.gmra.mrb[20].mxu0 %vm411_vm0, %v10527_v24  ;;  %v1080_v59 = vor.u32 %v1079_v51, %v1075_v2  ;;  %v1101_v24 = vshrl.u32 %v932_v40, 16  ;;  %v1076_v61 = vsel %vm12898_vm4, %v1071_v6, %v1075_v2  ;;  %v1109_v20 = vrot.slane %v1107_v14, 5 }
  0x90   : > { %11693 = vmatprep.mubr.msk.bf16.mxu0 %vm411_vm0, %v10528_v55  ;;  %v10500_v55 = vrot.slane %v10484_v11, 9  ;;  %v1095_v17 = vrot.slane %v1094_v48, 4  ;;  %v15731_v15 = vrot.slane %v12910_v46, 5  ;;  %v15732_v25 = vrot.slane %v12923_v58, 5  ;;  %v938_v58 = vld [vmem:[%s13037_s13 + $0x58] sm:$0xf] }
  0x91   : > { %v1103_v19 = vrot.slane %v1101_v24, 4  ;;  %v1112_v36 = vshrl.u32 %v934_v21, 16  ;;  %v1115_v10 = vshll.u32 %v934_v21, 16  ;;  %v15733_v29 = vcombine.low %v13309_v63, %v13321_v1 }
  0x92   : > { %v13462_v47 = vsel %vm12940_vm6, %v10501_v35, %v15732_v25  ;;  %v1100_v37 = vsel %vm12898_vm4, %v1095_v17, %v1099_v62  ;;  %v1131_v51 = vshll.u32 %v936_v26, 16  ;;  %v1139_v13 = vshll.u32 %v937_v18, 16  ;;  %v12608_v25 = vld [vmem:[%s12859_s6 + $0x44] sm:$0x1] }
  0x93   : > { %11398 = vmatmul.mubr.msk.bf16.vlgmr.msra.gmra.mrb[0].mxu1 %vm411_vm0, %v13377_v22  ;;  %v1081_v22 = vrot.slane %v1080_v59, 4  ;;  %v1104_v39 = vor.u32 %v1103_v19, %v1099_v62  ;;  %v10554_v8 = vcombine.low %v13462_v47, %v13301_v54  ;;  %v1114_v50 = vrot.slane %v1112_v36, 4  ;;  %v10486_v59 = vld [vmem:[%s12859_s6 + $0x3c] sm:$0xe]  ;;  %v10491_v47 = vld [vmem:[%s12859_s6 + $0x78] sm:$0xe] }
  0x94   : > { %11401 = vmatprep.mubr.msk.bf16.mxu1 %vm411_vm0, %v9982_v0  ;;  %11430 = vmatpush3.bf16.msra.mxu1 %v13075_v45  ;;  %v13456_v45 = vsel %vm12940_vm6, %v10500_v55, %v15731_v15  ;;  %v935_v0 = vld [vmem:[%s13037_s13 + $0x4c] sm:$0xf]  ;;  %v1117_v11 = vrot.slane %v1115_v10, 5  ;;  %v1145_v43 = vshll.u32 %v938_v58, 16  ;;  %v1133_v6 = vrot.slane %v1131_v51, 5 }
  0x95   : > { %11463 = vmatprep.subr.bf16.mxu1 %v13432_v49  ;;  %v1086_v38 = vsel %vm12898_vm4, %v1081_v22, %v1085_v52  ;;  %v10553_v46 = vcombine.low %v13456_v45, %v13269_v4  ;;  %v1105_v57 = vrot.slane %v1104_v39, 4  ;;  %v1121_v42 = vshll.u32 %v935_v0, 16  ;;  %v943_v51 = vld [vmem:[%s13037_s13 + $0x6c] sm:$0xf] }
  0x96   : > { %v9984_v40 = vcombine.low %v1076_v61, %v1086_v38  ;;  %v1125_v2 = vshrl.u32 %v935_v0, 16  ;;  %v1136_v52 = vshrl.u32 %v937_v18, 16  ;;  %v1118_v31 = vor.u32 %v1117_v11, %v1114_v50  ;;  %v12609_v50 = vld [vmem:[%s12859_s6 + $0x4c] sm:$0xf] }
  0x97   : > { %11694 = vmatmul.mubr.msk.bf16.gmra.mrb[24].mxu0 %vm411_vm0, %v15733_v29  ;;  %v1110_v63 = vsel %vm12898_vm4, %v1105_v57, %v1109_v20  ;;  %v1123_v1 = vrot.slane %v1121_v42, 5  ;;  %v1141_v24 = vrot.slane %v1139_v13, 5  ;;  %v1147_v21 = vrot.slane %v1145_v43, 5  ;;  %v941_v29 = vld [vmem:[%s13037_s13 + $0x64] sm:$0xf] }
  0x98   : > { %11697 = vmatprep.mubr.msk.bf16.mxu0 %vm411_vm0, %v10530_v12  ;;  %v1127_v44 = vrot.slane %v1125_v2, 4  ;;  %v9985_v32 = vcombine.low %v1100_v37, %v1110_v63  ;;  %v1138_v12 = vrot.slane %v1136_v52, 4  ;;  %v1149_v48 = vshrl.u32 %v938_v58, 16  ;;  %v940_v58 = vld [vmem:[%s13037_s13 + $0x60] sm:$0xf] }
  0x99   : > { %v1155_v62 = vshll.u32 %v939_v53, 16  ;;  %v1119_v55 = vrot.slane %v1118_v31, 4  ;;  %v10502_v61 = vrot.slane %v10486_v59, 9  ;;  %v15734_v22 = vrot.slane %v13290_v41, 5  ;;  %v942_v57 = vld [vmem:[%s13037_s13 + $0x68] sm:$0x1] }
  0x9a   : > { %v1128_v14 = vor.u32 %v1127_v44, %v1123_v1  ;;  %v1142_v35 = vor.u32 %v1141_v24, %v1138_v12  ;;  %v1151_v17 = vrot.slane %v1149_v48, 4  ;;  %v5789_v0 = vrot.slane %v12608_v25, 5  ;;  %v12610_v42 = vld [vmem:[%s12859_s6 + $0x50] sm:$0x1]  ;;  %v945_v59 = vld [vmem:[%s13037_s13 + $0x74] sm:$0x1] }
  0x9b   : > { %11402 = vmatmul.mubr.msk.bf16.gmra.mrb[4].mxu1 %vm411_vm0, %v9983_v60  ;;  %v10487_v60 = vld [vmem:[%s12859_s6 + $0x48] sm:$0xe]  ;;  %v5788_v19 = vrot.slane %v15734_v22, 4  ;;  %v1157_v15 = vrot.slane %v1155_v62, 5  ;;  %v1124_v26 = vsel %vm12898_vm4, %v1119_v55, %v1123_v1  ;;  %v15735_v38 = vmov %v15734_v22 }
  0x9c   : > { %11405 = vmatprep.mubr.msk.bf16.mxu1 %vm411_vm0, %v9984_v40  ;;  %v1129_v20 = vrot.slane %v1128_v14, 4  ;;  %v1143_v36 = vrot.slane %v1142_v35, 4  ;;  %v13500_v39 = vsel %vm12940_vm6, %v10502_v61, %v15735_v38  ;;  %v10503_v18 = vrot.slane %v10487_v60, 9  ;;  %v13546_v35 = vld [vmem:[%s15722_s3 + $0x30] sm:$0xff]  }
  0x9d   : > { %v1152_v37 = vor.u32 %v1151_v17, %v1147_v21  ;;  %v13511_v41 = vsel %vm12940_vm6, %v5788_v19, %v5789_v0  ;;  %v5793_v10 = vrot.slane %v12609_v50, 5  ;;  %v5796_v2 = vrot.slane %v12610_v42, 5  ;;  %v12611_v0 = vld [vmem:[%s12859_s6 + $0x58] sm:$0xf]  ;;  %v12614_v42 = vld [vmem:[%s12859_s6 + $0x68] sm:$0x1] }
  0x9e   : > { %v1134_v40 = vsel %vm12898_vm4, %v1129_v20, %v1133_v6  ;;  %v1148_v16 = vsel %vm12898_vm4, %v1143_v36, %v1147_v21  ;;  %v1163_v53 = vshll.u32 %v940_v58, 16  ;;  %v1169_v52 = vshll.u32 %v941_v29, 16  ;;  %v944_v6 = vld [vmem:[%s13037_s13 + $0x70] sm:$0xf]  ;;  %v10488_v21 = vld [vmem:[%s12859_s6 + $0x54] sm:$0xe] }
  0x9f   : > { %11698 = vmatmul.mubr.msk.bf16.gmra.mrb[28].mxu0 %vm411_vm0, %v10531_v3  ;;  %v9986_v30 = vcombine.low %v1124_v26, %v1134_v40  ;;  %v10555_v3 = vcombine.low %v13500_v39, %v13511_v41  ;;  %v1153_v11 = vrot.slane %v1152_v37, 4  ;;  %v13529_v7 = vsel %vm12940_vm6, %v10503_v18, %v5793_v10  ;;  %v10489_v36 = vld [vmem:[%s12859_s6 + $0x60] sm:$0xe]  ;;  %v946_v37 = vld [vmem:[%s13037_s13 + $0x78] sm:$0xf] }
  0xa0   : > { %11703 = vmatprep.mubr.msk.bf16.mxu0 %vm411_vm0, %v10551_v28  ;;  %v5795_v5 = vrot.slane %v5793_v10, 4  ;;  %v1160_v28 = vshrl.u32 %v940_v58, 16  ;;  %v1173_v13 = vshrl.u32 %v941_v29, 16  ;;  %v1179_v43 = vshll.u32 %v942_v57, 16 }
  0xa1   : > { %v1158_v63 = vsel %vm12898_vm4, %v1153_v11, %v1157_v15  ;;  %v1165_v24 = vrot.slane %v1163_v53, 5  ;;  %v1171_v14 = vrot.slane %v1169_v52, 5  ;;  %v1187_v55 = vshll.u32 %v943_v51, 16  ;;  %v948_v53 = vld [vmem:[%s13037_s13 + $0x80] sm:$0x1] }
  0xa2   : > { %v13536_v1 = vsel %vm12940_vm6, %v5795_v5, %v5796_v2  ;;  %v1162_v44 = vrot.slane %v1160_v28, 4  ;;  %v9987_v31 = vcombine.low %v1148_v16, %v1158_v63  ;;  %v1175_v48 = vrot.slane %v1173_v13, 4  ;;  %v949_v13 = vld [vmem:[%s13037_s13 + $0x84] sm:$0xf] }
  0xa3   : > { %11406 = vmatmul.mubr.msk.bf16.gmra.mrb[8].mxu1 %vm411_vm0, %v9985_v32  ;;  %v1184_v32 = vshrl.u32 %v943_v51, 16  ;;  %v10556_v12 = vcombine.low %v13529_v7, %v13536_v1  ;;  %v1181_v62 = vrot.slane %v1179_v43, 5  ;;  %v1193_v22 = vshll.u32 %v944_v6, 16  ;;  %v947_v51 = vld [vmem:[%s13037_s13 + $0x7c] sm:$0xf] }
  0xa4   : > { %11409 = vmatprep.mubr.msk.bf16.mxu1 %vm411_vm0, %v9986_v30  ;;  %v1166_v61 = vor.u32 %v1165_v24, %v1162_v44  ;;  %v1197_v19 = vshrl.u32 %v944_v6, 16  ;;  %v1203_v20 = vshll.u32 %v945_v59, 16  ;;  %v1176_v17 = vor.u32 %v1175_v48, %v1171_v14  ;;  %v12613_v30 = vld [vmem:[%s12859_s6 + $0x64] sm:$0xf]  ;;  %v950_v59 = vld [vmem:[%s13037_s13 + $0x88] sm:$0xf] }
  0xa5   : > { %v1186_v60 = vrot.slane %v1184_v32, 4  ;;  %v1189_v15 = vrot.slane %v1187_v55, 5  ;;  %v10504_v25 = vrot.slane %v10488_v21, 9  ;;  %v5800_v26 = vrot.slane %v12611_v0, 5  ;;  %v951_v32 = vld [vmem:[%s13037_s13 + $0x8c] sm:$0x1] }
  0xa6   : > { %v1167_v38 = vrot.slane %v1166_v61, 4  ;;  %v1195_v18 = vrot.slane %v1193_v22, 5  ;;  %v1199_v27 = vrot.slane %v1197_v19, 4  ;;  %v1205_v9 = vrot.slane %v1203_v20, 5  ;;  %v10490_v48 = vld [vmem:[%s12859_s6 + $0x6c] sm:$0xe] }
  0xa7   : > { %11704 = vmatmul.mubr.msk.bf16.vlgmr.msra.gmra.mrb[0].mxu0 %vm411_vm0, %v10552_v33  ;;  %v1177_v33 = vrot.slane %v1176_v17, 4  ;;  %v1190_v58 = vor.u32 %v1189_v15, %v1186_v60  ;;  %v13562_v40 = vsel %vm12940_vm6, %v10504_v25, %v5800_v26  ;;  %v10505_v10 = vrot.slane %v10489_v36, 9  ;;  %v955_v1 = vld [vmem:[%s13037_s13 + $0x9c] sm:$0xf] }
  0xa8   : > { %11736 = vmatpush3.bf16.msra.mxu0 %v13165_v56  ;;  %11707 = vmatprep.mubr.msk.bf16.mxu0 %vm411_vm0, %v10553_v46  ;;  %v5802_v56 = vrot.slane %v5800_v26, 4  ;;  %v1172_v4 = vsel %vm12898_vm4, %v1167_v38, %v1171_v14  ;;  %v1200_v45 = vor.u32 %v1199_v27, %v1195_v18  ;;  %v12612_v46 = vld [vmem:[%s12859_s6 + $0x5c] sm:$0x1]  ;;  %v5807_v16 = vrot.slane %v12613_v30, 5  ;;  %v952_v27 = vld [vmem:[%s13037_s13 + $0x90] sm:$0xf] }
  0xa9   : > { %11769 = vmatprep.subr.bf16.mxu0 %v13546_v35  ;;  %v5803_v50 = vrot.slane %v12612_v46, 5  ;;  %v1182_v29 = vsel %vm12898_vm4, %v1177_v33, %v1181_v62  ;;  %v1191_v57 = vrot.slane %v1190_v58, 4  ;;  %v5810_v2 = vrot.slane %v12614_v42, 5 }
  0xaa   : > { %v9988_v11 = vcombine.low %v1172_v4, %v1182_v29  ;;  %v1201_v5 = vrot.slane %v1200_v45, 4  ;;  %v1208_v52 = vshrl.u32 %v946_v37, 16  ;;  %v13586_v44 = vsel %vm12940_vm6, %v10505_v10, %v5807_v16  ;;  %v12616_v45 = vld [vmem:[%s12859_s6 + $0x74] sm:$0x1] }
  0xab   : > { %11410 = vmatmul.mubr.msk.bf16.gmra.mrb[12].mxu1 %vm411_vm0, %v9987_v31  ;;  %v13576_v28 = vsel %vm12940_vm6, %v5802_v56, %v5803_v50  ;;  %v1196_v43 = vsel %vm12898_vm4, %v1191_v57, %v1195_v18  ;;  %v5809_v6 = vrot.slane %v5807_v16, 4  ;;  %v1211_v14 = vshll.u32 %v946_v37, 16  ;;  %v953_v16 = vld [vmem:[%s13037_s13 + $0x94] sm:$0xf] }
  0xac   : > { %v10557_v63 = vcombine.low %v13562_v40, %v13576_v28  ;;  %11413 = vmatprep.mubr.msk.bf16.mxu1 %vm411_vm0, %v9988_v11  ;;  %v1206_v31 = vsel %vm12898_vm4, %v1201_v5, %v1205_v9  ;;  %v1210_v24 = vrot.slane %v1208_v52, 4  ;;  %v1217_v21 = vshll.u32 %v947_v51, 16  ;;  %v12615_v40 = vld [vmem:[%s12859_s6 + $0x70] sm:$0xf]  ;;  %v12618_v5 = vld [vmem:[%s12859_s6 + $0x80] sm:$0x1] }
  0xad   : > { %v9989_v62 = vcombine.low %v1196_v43, %v1206_v31  ;;  %v13600_v60 = vsel %vm12940_vm6, %v5809_v6, %v5810_v2  ;;  %v1221_v55 = vshrl.u32 %v947_v51, 16  ;;  %v1227_v61 = vshll.u32 %v948_v53, 16  ;;  %v12617_v51 = vld [vmem:[%s12859_s6 + $0x7c] sm:$0xf]  ;;  %v954_v53 = vld [vmem:[%s13037_s13 + $0x98] sm:$0x1] }
  0xae   : > { %v10558_v22 = vcombine.low %v13586_v44, %v13600_v60  ;;  %v1213_v19 = vrot.slane %v1211_v14, 5  ;;  %v1219_v20 = vrot.slane %v1217_v21, 5  ;;  %v1232_v54 = vshrl.u32 %v949_v13, 16  ;;  %v12620_v44 = vld [vmem:[%s12859_s6 + $0x8c] sm:$0x1] }
  0xaf   : > { %11708 = vmatmul.mubr.msk.bf16.gmra.mrb[4].mxu0 %vm411_vm0, %v10554_v8  ;;  %v1223_v8 = vrot.slane %v1221_v55, 4  ;;  %v1229_v17 = vrot.slane %v1227_v61, 5  ;;  %v1235_v15 = vshll.u32 %v949_v13, 16  ;;  %v1241_v25 = vshll.u32 %v950_v59, 16 }
  0xb0   : > { %11711 = vmatprep.mubr.msk.bf16.mxu0 %vm411_vm0, %v10555_v3  ;;  %v1214_v0 = vor.u32 %v1213_v19, %v1210_v24  ;;  %v1234_v39 = vrot.slane %v1232_v54, 4  ;;  %v1245_v41 = vshrl.u32 %v950_v59, 16  ;;  %v1251_v3 = vshll.u32 %v951_v32, 16  ;;  %v957_v24 = vld [vmem:[%s13037_s13 + $0xa4] sm:$0x1] }
  0xb1   : > { %v1224_v26 = vor.u32 %v1223_v8, %v1219_v20  ;;  %v1237_v36 = vrot.slane %v1235_v15, 5  ;;  %v1243_v38 = vrot.slane %v1241_v25, 5  ;;  %v10506_v18 = vrot.slane %v10490_v48, 9 }
  0xb2   : > { %v1215_v9 = vrot.slane %v1214_v0, 4  ;;  %v1247_v33 = vrot.slane %v1245_v41, 4  ;;  %v1253_v58 = vrot.slane %v1251_v3, 5  ;;  %v5814_v56 = vrot.slane %v12615_v40, 5 }
  0xb3   : > { %11414 = vmatmul.mubr.msk.bf16.gmra.mrb[16].mxu1 %vm411_vm0, %v9989_v62  ;;  %v1225_v37 = vrot.slane %v1224_v26, 4  ;;  %v1238_v4 = vor.u32 %v1237_v36, %v1234_v39  ;;  %v5817_v46 = vrot.slane %v12616_v45, 5  ;;  %v10507_v50 = vrot.slane %v10491_v47, 9  ;;  %v958_v45 = vld [vmem:[%s13037_s13 + $0xa8] sm:$0xf] }
  0xb4   : > { %v1220_v10 = vsel %vm12898_vm4, %v1215_v9, %v1219_v20  ;;  %v1248_v29 = vor.u32 %v1247_v33, %v1243_v38  ;;  %v5815_v57 = vsel %vm12940_vm6, %v10506_v18, %v5814_v56  ;;  %v5816_v30 = vrot.slane %v5814_v56, 4 }
  0xb5   : > { %v1230_v42 = vsel %vm12898_vm4, %v1225_v37, %v1229_v17  ;;  %v1239_v2 = vrot.slane %v1238_v4, 4  ;;  %v5821_v11 = vrot.slane %v12617_v51, 5  ;;  %v5824_v28 = vrot.slane %v12618_v5, 5  ;;  %v10492_v17 = vld [vmem:[%s12859_s6 + $0x84] sm:$0xe] }
  0xb6   : > { %v9990_v52 = vcombine.low %v1220_v10, %v1230_v42  ;;  %v1249_v13 = vrot.slane %v1248_v29, 4  ;;  %v5818_v43 = vsel %vm12940_vm6, %v5816_v30, %v5817_v46  ;;  %v1256_v7 = vshrl.u32 %v952_v27, 16  ;;  %v12619_v37 = vld [vmem:[%s12859_s6 + $0x88] sm:$0xf]  ;;  %v959_v10 = vld [vmem:[%s13037_s13 + $0xac] sm:$0xf] }
  0xb7   : > { %11712 = vmatmul.mubr.msk.bf16.gmra.mrb[8].mxu0 %vm411_vm0, %v10556_v12  ;;  %v956_v12 = vld [vmem:[%s13037_s13 + $0xa0] sm:$0xf]  ;;  %v1244_v6 = vsel %vm12898_vm4, %v1239_v2, %v1243_v38  ;;  %v10559_v59 = vcombine.low %v5815_v57, %v5818_v43  ;;  %v13636_v32 = vsel %vm12940_vm6, %v10507_v50, %v5821_v11  ;;  %v5823_v31 = vrot.slane %v5821_v11, 4  ;;  %v10493_v38 = vld [vmem:[%s12859_s6 + $0x90] sm:$0xe] }
  0xb8   : > { %11715 = vmatprep.mubr.msk.bf16.mxu0 %vm411_vm0, %v10557_v63  ;;  %11417 = vmatprep.mubr.msk.bf16.mxu1 %vm411_vm0, %v9990_v52  ;;  %v1254_v63 = vsel %vm12898_vm4, %v1249_v13, %v1253_v58  ;;  %v1258_v14 = vrot.slane %v1256_v7, 4  ;;  %v1259_v21 = vshll.u32 %v952_v27, 16  ;;  %v1265_v48 = vshll.u32 %v953_v16, 16  ;;  %v12621_v51 = vld [vmem:[%s12859_s6 + $0x94] sm:$0xf] }
  0xb9   : > { %v9991_v62 = vcombine.low %v1244_v6, %v1254_v63  ;;  %v13644_v55 = vsel %vm12940_vm6, %v5823_v31, %v5824_v28  ;;  %v1269_v61 = vshrl.u32 %v953_v16, 16  ;;  %v1275_v19 = vshll.u32 %v954_v53, 16  ;;  %v12622_v5 = vld [vmem:[%s12859_s6 + $0x98] sm:$0x1]  ;;  %v960_v43 = vld [vmem:[%s13037_s13 + $0xb0] sm:$0x1] }
  0xba   : > { %v10560_v20 = vcombine.low %v13636_v32, %v13644_v55  ;;  %v1261_v54 = vrot.slane %v1259_v21, 5  ;;  %v1267_v47 = vrot.slane %v1265_v48, 5  ;;  %v1280_v8 = vshrl.u32 %v955_v1, 16  ;;  %v961_v32 = vld [vmem:[%s13037_s13 + $0xb4] sm:$0xf] }
  0xbb   : > { %11418 = vmatmul.mubr.msk.bf16.gmra.mrb[20].mxu1 %vm411_vm0, %v9991_v62  ;;  %v1271_v15 = vrot.slane %v1269_v61, 4  ;;  %v1277_v25 = vrot.slane %v1275_v19, 5  ;;  %v1283_v0 = vshll.u32 %v955_v1, 16  ;;  %v1289_v39 = vshll.u32 %v956_v12, 16  ;;  %v962_v21 = vld [vmem:[%s13037_s13 + $0xb8] sm:$0xf] }
  0xbc   : > { %v1262_v41 = vor.u32 %v1261_v54, %v1258_v14  ;;  %v1282_v3 = vrot.slane %v1280_v8, 4  ;;  %v1293_v26 = vshrl.u32 %v956_v12, 16  ;;  %v1299_v36 = vshll.u32 %v957_v24, 16  ;;  %v963_v19 = vld [vmem:[%s13037_s13 + $0xbc] sm:$0x1] }
  0xbd   : > { %v1272_v18 = vor.u32 %v1271_v15, %v1267_v47  ;;  %v1285_v27 = vrot.slane %v1283_v0, 5  ;;  %v1291_v9 = vrot.slane %v1289_v39, 5  ;;  %v10508_v33 = vrot.slane %v10492_v17, 9  ;;  %v10494_v54 = vld [vmem:[%s12859_s6 + $0x9c] sm:$0xe] }
  0xbe   : > { %v1263_v58 = vrot.slane %v1262_v41, 4  ;;  %v1295_v40 = vrot.slane %v1293_v26, 4  ;;  %v1301_v56 = vrot.slane %v1299_v36, 5  ;;  %v5828_v4 = vrot.slane %v12619_v37, 5  ;;  %v12623_v37 = vld [vmem:[%s12859_s6 + $0xa0] sm:$0xf] }
  0xbf   : > { %11716 = vmatmul.mubr.msk.bf16.gmra.mrb[12].mxu0 %vm411_vm0, %v10558_v22  ;;  %v1273_v46 = vrot.slane %v1272_v18, 4  ;;  %v1286_v50 = vor.u32 %v1285_v27, %v1282_v3  ;;  %v5831_v60 = vrot.slane %v12620_v44, 5  ;;  %v10509_v22 = vrot.slane %v10493_v38, 9 }
  0xc0   : > { %11719 = vmatprep.mubr.msk.bf16.mxu0 %vm411_vm0, %v10559_v59  ;;  %v1268_v29 = vsel %vm12898_vm4, %v1263_v58, %v1267_v47  ;;  %v1296_v57 = vor.u32 %v1295_v40, %v1291_v9  ;;  %v5829_v30 = vsel %vm12940_vm6, %v10508_v33, %v5828_v4  ;;  %v5830_v16 = vrot.slane %v5828_v4, 4 }
  0xc1   : > { %v1278_v42 = vsel %vm12898_vm4, %v1273_v46, %v1277_v25  ;;  %v1287_v2 = vrot.slane %v1286_v50, 4  ;;  %v5835_v11 = vrot.slane %v12621_v51, 5  ;;  %v5838_v28 = vrot.slane %v12622_v5, 5  ;;  %v10495_v25 = vld [vmem:[%s12859_s6 + $0xa8] sm:$0xe] }
  0xc2   : > { %v9992_v53 = vcombine.low %v1268_v29, %v1278_v42  ;;  %v1297_v52 = vrot.slane %v1296_v57, 4  ;;  %v5832_v13 = vsel %vm12940_vm6, %v5830_v16, %v5831_v60  ;;  %v1304_v7 = vshrl.u32 %v958_v45, 16  ;;  %v12624_v50 = vld [vmem:[%s12859_s6 + $0xa4] sm:$0x1]  ;;  %v1353_v42 = vld [vmem:[%s12859_s6 + $0x8] sm:$0x1] }
  0xc3   : > { %v1292_v1 = vsel %vm12898_vm4, %v1287_v2, %v1291_v9  ;;  %v10561_v12 = vcombine.low %v5829_v30, %v5832_v13  ;;  %v5836_v6 = vsel %vm12940_vm6, %v10509_v22, %v5835_v11  ;;  %v5837_v59 = vrot.slane %v5835_v11, 4  ;;  %v1351_v22 = vld [vmem:[%s12859_s6] sm:$0xf]  ;;  %v1352_v16 = vld [vmem:[%s12859_s6 + $0x4] sm:$0xf] }
  0xc4   : > { %11421 = vmatprep.mubr.msk.bf16.mxu1 %vm411_vm0, %v9992_v53  ;;  %v1302_v31 = vsel %vm12898_vm4, %v1297_v52, %v1301_v56  ;;  %v1306_v24 = vrot.slane %v1304_v7, 4  ;;  %v1307_v63 = vshll.u32 %v958_v45, 16  ;;  %v1313_v14 = vshll.u32 %v959_v10, 16  ;;  %v12625_v11 = vld [vmem:[%s12859_s6 + $0xac] sm:$0xf] }
  0xc5   : > { %v9993_v48 = vcombine.low %v1292_v1, %v1302_v31  ;;  %v5839_v62 = vsel %vm12940_vm6, %v5837_v59, %v5838_v28  ;;  %v1317_v55 = vshrl.u32 %v959_v10, 16  ;;  %v1323_v61 = vshll.u32 %v960_v43, 16  ;;  %v12626_v28 = vld [vmem:[%s12859_s6 + $0xb0] sm:$0x1]  ;;  %v1354_v52 = vld [vmem:[%s12859_s6 + $0xc] sm:$0xf] }
  0xc6   : > { %v10562_v47 = vcombine.low %v5836_v6, %v5839_v62  ;;  %v1309_v8 = vrot.slane %v1307_v63, 5  ;;  %v1315_v17 = vrot.slane %v1313_v14, 5  ;;  %v1328_v15 = vshrl.u32 %v961_v32, 16 }
  0xc7   : > { %11720 = vmatmul.mubr.msk.bf16.gmra.mrb[16].mxu0 %vm411_vm0, %v10560_v20  ;;  %11422 = vmatmul.mubr.msk.bf16.gmra.mrb[24].mxu1 %vm411_vm0, %v9993_v48  ;;  %v1319_v0 = vrot.slane %v1317_v55, 4  ;;  %v1325_v20 = vrot.slane %v1323_v61, 5  ;;  %v1331_v39 = vshll.u32 %v961_v32, 16  ;;  %v1337_v41 = vshll.u32 %v962_v21, 16 }
  0xc8   : > { %11723 = vmatprep.mubr.msk.bf16.mxu0 %vm411_vm0, %v10561_v12  ;;  %v1310_v3 = vor.u32 %v1309_v8, %v1306_v24  ;;  %v1330_v26 = vrot.slane %v1328_v15, 4  ;;  %v1341_v36 = vshrl.u32 %v962_v21, 16  ;;  %v1347_v38 = vshll.u32 %v963_v19, 16  ;;  %v1355_v12 = vld [vmem:[%s12859_s6 + $0x10] sm:$0xf] }
  0xc9   : > { %v1320_v18 = vor.u32 %v1319_v0, %v1315_v17  ;;  %v1333_v27 = vrot.slane %v1331_v39, 5  ;;  %v1339_v9 = vrot.slane %v1337_v41, 5  ;;  %v10510_v33 = vrot.slane %v10494_v54, 9  ;;  %v1356_v19 = vld [vmem:[%s12859_s6 + $0x14] sm:$0x1] }
  0xca   : > { %v1311_v58 = vrot.slane %v1310_v3, 4  ;;  %v1343_v40 = vrot.slane %v1341_v36, 4  ;;  %v1349_v56 = vrot.slane %v1347_v38, 5  ;;  %v5842_v4 = vrot.slane %v12623_v37, 5  ;;  %v10496_v15 = vld [vmem:[%s12859_s6 + $0xb4] sm:$0xe] }
  0xcb   : > { %v1321_v45 = vrot.slane %v1320_v18, 4  ;;  %v1334_v46 = vor.u32 %v1333_v27, %v1330_v26  ;;  %v5845_v44 = vrot.slane %v12624_v50, 5  ;;  %v10511_v60 = vrot.slane %v10495_v25, 9  ;;  %v10497_v38 = vld [vmem:[%s12859_s6 + $0xc0] sm:$0xe] }
  0xcc   : > { %v1316_v10 = vsel %vm12898_vm4, %v1311_v58, %v1315_v17  ;;  %v1344_v29 = vor.u32 %v1343_v40, %v1339_v9  ;;  %v5843_v57 = vsel %vm12940_vm6, %v10510_v33, %v5842_v4  ;;  %v5844_v30 = vrot.slane %v5842_v4, 4  ;;  %v1357_v58 = vld [vmem:[%s12859_s6 + $0x18] sm:$0xf] }
  0xcd   : > { %v1326_v2 = vsel %vm12898_vm4, %v1321_v45, %v1325_v20  ;;  %v1335_v51 = vrot.slane %v1334_v46, 4  ;;  %v5849_v5 = vrot.slane %v12625_v11, 5  ;;  %v5852_v53 = vrot.slane %v12626_v28, 5  ;;  %v12627_v4 = vld [vmem:[%s12859_s6 + $0xb8] sm:$0xf] }
  0xce   : > { %v9994_v13 = vcombine.low %v1316_v10, %v1326_v2  ;;  %v1345_v43 = vrot.slane %v1344_v29, 4  ;;  %v5846_v7 = vsel %vm12940_vm6, %v5844_v30, %v5845_v44  ;;  %v1400_v1 = vshrl.u32 %v1351_v22, 16  ;;  %v12628_v44 = vld [vmem:[%s12859_s6 + $0xbc] sm:$0x1]  ;;  %v12629_v2 = vld [vmem:[%s12859_s6 + $0xc4] sm:$0xf] }
  0xcf   : > { %11724 = vmatmul.mubr.msk.bf16.gmra.mrb[20].mxu0 %vm411_vm0, %v10562_v47  ;;  %v1340_v6 = vsel %vm12898_vm4, %v1335_v51, %v1339_v9  ;;  %v10563_v59 = vcombine.low %v5843_v57, %v5846_v7  ;;  %v5850_v32 = vsel %vm12940_vm6, %v10511_v60, %v5849_v5  ;;  %v5851_v31 = vrot.slane %v5849_v5, 4  ;;  %v12630_v11 = vld [vmem:[%s12859_s6 + $0xc8] sm:$0x1]  ;;  %v1358_v28 = vld [vmem:[%s12859_s6 + $0x1c] sm:$0xf] }
  0xd0   : > { %11425 = vmatprep.mubr.msk.bf16.mxu1 %vm411_vm0, %v9994_v13  ;;  %v1350_v24 = vsel %vm12898_vm4, %v1345_v43, %v1349_v56  ;;  %v1402_v63 = vrot.slane %v1400_v1, 4  ;;  %v1403_v14 = vshll.u32 %v1351_v22, 16  ;;  %v1409_v21 = vshll.u32 %v1352_v16, 16  ;;  %v1359_v43 = vld [vmem:[%s12859_s6 + $0x20] sm:$0x1] }
  0xd1   : > { %v9995_v48 = vcombine.low %v1340_v6, %v1350_v24  ;;  %11727 = vmatprep.mubr.msk.bf16.mxu0 %vm411_vm0, %v10563_v59  ;;  %v5853_v62 = vsel %vm12940_vm6, %v5851_v31, %v5852_v53  ;;  %v1413_v55 = vshrl.u32 %v1352_v16, 16  ;;  %v1419_v61 = vshll.u32 %v1353_v42, 16  ;;  %v1360_v1 = vld [vmem:[%s12859_s6 + $0x24] sm:$0xf]  ;;  %v1361_v31 = vld [vmem:[%s12859_s6 + $0x28] sm:$0xf] }
  0xd2   : > { %v10564_v54 = vcombine.low %v5850_v32, %v5853_v62  ;;  %v1405_v47 = vrot.slane %v1403_v14, 5  ;;  %v1411_v8 = vrot.slane %v1409_v21, 5  ;;  %v1424_v17 = vshrl.u32 %v1354_v52, 16  ;;  %v1362_v24 = vld [vmem:[%s12859_s6 + $0x2c] sm:$0x1] }
  0xd3   : > { %11426 = vmatmul.mubr.msk.bf16.gmra.mrb[28].mxu1 %vm411_vm0, %v9995_v48  ;;  %v1415_v25 = vrot.slane %v1413_v55, 4  ;;  %v1421_v0 = vrot.slane %v1419_v61, 5  ;;  %v1427_v20 = vshll.u32 %v1354_v52, 16  ;;  %v1433_v39 = vshll.u32 %v1355_v12, 16  ;;  %v1363_v55 = vld [vmem:[%s12859_s6 + $0x30] sm:$0xf] }
  0xd4   : > { %v1406_v41 = vor.u32 %v1405_v47, %v1402_v63  ;;  %v1426_v3 = vrot.slane %v1424_v17, 4  ;;  %v1437_v26 = vshrl.u32 %v1355_v12, 16  ;;  %v1443_v36 = vshll.u32 %v1356_v19, 16  ;;  %v12533_v63 = vld [vmem:[%s13037_s13 + $0x18] sm:$0xff]   ;;  %v13751_v61 = vld [vmem:[%s15722_s3 + $0x10] sm:$0xff]  }
  0xd5   : > { %v1416_v18 = vor.u32 %v1415_v25, %v1411_v8  ;;  %v1429_v27 = vrot.slane %v1427_v20, 5  ;;  %v1435_v9 = vrot.slane %v1433_v39, 5  ;;  %v10512_v33 = vrot.slane %v10496_v15, 9 }
  0xd6   : > { %v1407_v40 = vrot.slane %v1406_v41, 4  ;;  %v1439_v56 = vrot.slane %v1437_v26, 4  ;;  %v1445_v37 = vrot.slane %v1443_v36, 5  ;;  %v5856_v45 = vrot.slane %v12627_v4, 5 }
  0xd7   : > { %11728 = vmatmul.mubr.msk.bf16.gmra.mrb[24].mxu0 %vm411_vm0, %v10564_v54  ;;  %v1417_v46 = vrot.slane %v1416_v18, 4  ;;  %v1430_v50 = vor.u32 %v1429_v27, %v1426_v3  ;;  %v5859_v60 = vrot.slane %v12628_v44, 5  ;;  %v10513_v22 = vrot.slane %v10497_v38, 9  ;;  %v1364_v27 = vld [vmem:[%s12859_s6 + $0x34] sm:$0xf] }
  0xd8   : > { %v1412_v10 = vsel %vm12898_vm4, %v1407_v40, %v1411_v8  ;;  %v1440_v29 = vor.u32 %v1439_v56, %v1435_v9  ;;  %v5857_v57 = vsel %vm12940_vm6, %v10512_v33, %v5856_v45  ;;  %v5858_v30 = vrot.slane %v5856_v45, 4  ;;  %v1365_v40 = vld [vmem:[%s12859_s6 + $0x38] sm:$0x1]  ;;  %v1366_v44 = vld [vmem:[%s12859_s6 + $0x3c] sm:$0xf] }
  0xd9   : > { %v1422_v16 = vsel %vm12898_vm4, %v1417_v46, %v1421_v0  ;;  %v1431_v42 = vrot.slane %v1430_v50, 4  ;;  %v5863_v51 = vrot.slane %v12629_v2, 5  ;;  %v5866_v5 = vrot.slane %v12630_v11, 5  ;;  %v12535_v46 = vld [vmem:[%s13037_s13 + $0x24] sm:$0xff]  }
  0xda   : > { %v10015_v53 = vcombine.low %v1412_v10, %v1422_v16  ;;  %v1441_v52 = vrot.slane %v1440_v29, 4  ;;  %v5860_v13 = vsel %vm12940_vm6, %v5858_v30, %v5859_v60  ;;  %v1448_v7 = vshrl.u32 %v1357_v58, 16  ;;  %v1367_v29 = vld [vmem:[%s12859_s6 + $0x40] sm:$0xf] }
  0xdb   : > { %v1436_v12 = vsel %vm12898_vm4, %v1431_v42, %v1435_v9  ;;  %v10565_v6 = vcombine.low %v5857_v57, %v5860_v13  ;;  %v5864_v59 = vsel %vm12940_vm6, %v10513_v22, %v5863_v51  ;;  %v5865_v32 = vrot.slane %v5863_v51, 4  ;;  %v12536_v57 = vld [vmem:[%s13037_s13 + $0x30] sm:$0xff]  }
  0xdc   : > { %11431 = vmatprep.mubr.msk.bf16.mxu1 %vm411_vm0, %v10015_v53  ;;  %v1446_v14 = vsel %vm12898_vm4, %v1441_v52, %v1445_v37  ;;  %v1450_v21 = vrot.slane %v1448_v7, 4  ;;  %v1451_v48 = vshll.u32 %v1357_v58, 16  ;;  %v1457_v62 = vshll.u32 %v1358_v28, 16  ;;  %v1368_v53 = vld [vmem:[%s12859_s6 + $0x44] sm:$0x1]  ;;  %v13775_v52 = vld [vmem:[%s15721_s2 + $0x38] sm:$0xff]  }
  0xdd   : > { %v10016_v19 = vcombine.low %v1436_v12, %v1446_v14  ;;  %11731 = vmatprep.mubr.msk.bf16.mxu0 %vm411_vm0, %v10565_v6  ;;  %v5867_v54 = vsel %vm12940_vm6, %v5865_v32, %v5866_v5  ;;  %v1461_v47 = vshrl.u32 %v1358_v28, 16  ;;  %v1467_v8 = vshll.u32 %v1359_v43, 16  ;;  %v1369_v12 = vld [vmem:[%s12859_s6 + $0x48] sm:$0xf] }
  0xde   : > { %v10566_v17 = vcombine.low %v5864_v59, %v5867_v54  ;;  %v1453_v15 = vrot.slane %v1451_v48, 5  ;;  %v1459_v25 = vrot.slane %v1457_v62, 5  ;;  %v1472_v0 = vshrl.u32 %v1360_v1, 16 }
  0xdf   : > { %11432 = vmatmul.mubr.msk.bf16.vlgmr.msra.gmra.mrb[0].mxu1 %vm411_vm0, %v10016_v19  ;;  %v1463_v20 = vrot.slane %v1461_v47, 4  ;;  %v1469_v39 = vrot.slane %v1467_v8, 5  ;;  %v1475_v41 = vshll.u32 %v1360_v1, 16  ;;  %v1481_v3 = vshll.u32 %v1361_v31, 16  ;;  %v1371_v47 = vld [vmem:[%s12859_s6 + $0x50] sm:$0x1] }
  0xe0   : > { %11732 = vmatmul.mubr.msk.bf16.gmra.mrb[28].mxu0 %vm411_vm0, %v10566_v17  ;;  %v1454_v26 = vor.u32 %v1453_v15, %v1450_v21  ;;  %v1474_v36 = vrot.slane %v1472_v0, 4  ;;  %v1485_v38 = vshrl.u32 %v1361_v31, 16  ;;  %v1491_v18 = vshll.u32 %v1362_v24, 16  ;;  %11464 = vmatpush3.bf16.msra.mxu1 %v13432_v49  ;;  %v1370_v24 = vld [vmem:[%s12859_s6 + $0x4c] sm:$0xf] }
  0xe1   : > { %v1464_v9 = vor.u32 %v1463_v20, %v1459_v25  ;;  %v1477_v33 = vrot.slane %v1475_v41, 5  ;;  %v1483_v58 = vrot.slane %v1481_v3, 5  ;;  %11737 = vmatprep.mubr.msk.bf16.mxu0 %vm411_vm0, %v12533_v63  ;;  %v1496_v56 = vshrl.u32 %v1363_v55, 16  ;;  %11497 = vmatprep.subr.bf16.mxu1 %v13751_v61  ;;  %v1372_v0 = vld [vmem:[%s12859_s6 + $0x54] sm:$0xf] }
  0xe2   : > { %v1455_v37 = vrot.slane %v1454_v26, 4  ;;  %v1487_v4 = vrot.slane %v1485_v38, 4  ;;  %v1493_v45 = vrot.slane %v1491_v18, 5  ;;  %v1499_v50 = vshll.u32 %v1363_v55, 16 }
  0xe3   : > { %v1465_v49 = vrot.slane %v1464_v9, 4  ;;  %v1478_v60 = vor.u32 %v1477_v33, %v1474_v36  ;;  %v1498_v22 = vrot.slane %v1496_v56, 4  ;;  %v1505_v10 = vshll.u32 %v1364_v27, 16  ;;  %v12537_v36 = vld [vmem:[%s13037_s13 + $0x3c] sm:$0xff]   ;;  %v12538_v56 = vld [vmem:[%s13037_s13 + $0x48] sm:$0xff]  }
  0xe4   : > { %v1460_v30 = vsel %vm12898_vm4, %v1455_v37, %v1459_v25  ;;  %v1488_v16 = vor.u32 %v1487_v4, %v1483_v58  ;;  %v1501_v42 = vrot.slane %v1499_v50, 5  ;;  %v1509_v2 = vshrl.u32 %v1364_v27, 16  ;;  %v1374_v50 = vld [vmem:[%s12859_s6 + $0x5c] sm:$0x1] }
  0xe5   : > { %v1470_v51 = vsel %vm12898_vm4, %v1465_v49, %v1469_v39  ;;  %v1479_v11 = vrot.slane %v1478_v60, 4  ;;  %v1507_v5 = vrot.slane %v1505_v10, 5  ;;  %v1515_v28 = vshll.u32 %v1365_v40, 16  ;;  %v1373_v40 = vld [vmem:[%s12859_s6 + $0x58] sm:$0xf] }
  0xe6   : > { %v10017_v13 = vcombine.low %v1460_v30, %v1470_v51  ;;  %v1489_v43 = vrot.slane %v1488_v16, 4  ;;  %v1502_v7 = vor.u32 %v1501_v42, %v1498_v22  ;;  %v1511_v1 = vrot.slane %v1509_v2, 4 }
  0xe7   : > { %v1484_v6 = vsel %vm12898_vm4, %v1479_v11, %v1483_v58  ;;  %v1517_v59 = vrot.slane %v1515_v28, 5  ;;  %v1520_v32 = vshrl.u32 %v1366_v44, 16  ;;  %v1523_v31 = vshll.u32 %v1366_v44, 16  ;;  %v1375_v44 = vld [vmem:[%s12859_s6 + $0x60] sm:$0xf] }
  0xe8   : > { %11435 = vmatprep.mubr.msk.bf16.mxu1 %vm411_vm0, %v10017_v13  ;;  %v1494_v63 = vsel %vm12898_vm4, %v1489_v43, %v1493_v45  ;;  %11738 = vmatmul.mubr.msk.bf16.vlgmr.msra.gmra.mrb[0].mxu0 %vm411_vm0, %v12535_v46  ;;  %v1503_v14 = vrot.slane %v1502_v7, 4  ;;  %v1512_v21 = vor.u32 %v1511_v1, %v1507_v5  ;;  %v1529_v48 = vshll.u32 %v1367_v29, 16  ;;  %v12539_v7 = vld [vmem:[%s13037_s13 + $0x54] sm:$0xff]   ;;  %v1377_v1 = vld [vmem:[%s12859_s6 + $0x68] sm:$0x1] }
  0xe9   : > { %v10018_v62 = vcombine.low %v1484_v6, %v1494_v63  ;;  %11770 = vmatpush3.bf16.msra.mxu0 %v13546_v35  ;;  %v1522_v55 = vrot.slane %v1520_v32, 4  ;;  %v1525_v19 = vrot.slane %v1523_v31, 5  ;;  %v1533_v54 = vshrl.u32 %v1367_v29, 16  ;;  %11741 = vmatprep.mubr.msk.bf16.mxu0 %vm411_vm0, %v12536_v57 }
  0xea   : > { %v1508_v8 = vsel %vm12898_vm4, %v1503_v14, %v1507_v5  ;;  %v1513_v17 = vrot.slane %v1512_v21, 4  ;;  %v1531_v15 = vrot.slane %v1529_v48, 5  ;;  %v1539_v25 = vshll.u32 %v1368_v53, 16  ;;  %11803 = vmatprep.subr.bf16.mxu0 %v13775_v52  ;;  %v1376_v5 = vld [vmem:[%s12859_s6 + $0x64] sm:$0xf] }
  0xeb   : > { %11436 = vmatmul.mubr.msk.bf16.gmra.mrb[4].mxu1 %vm411_vm0, %v10018_v62  ;;  %v1526_v35 = vor.u32 %v1525_v19, %v1522_v55  ;;  %v1535_v20 = vrot.slane %v1533_v54, 4  ;;  %v1544_v39 = vshrl.u32 %v1369_v12, 16  ;;  %v1547_v41 = vshll.u32 %v1369_v12, 16  ;;  %v1378_v12 = vld [vmem:[%s12859_s6 + $0x6c] sm:$0xf] }
  0xec   : > { %v1518_v3 = vsel %vm12898_vm4, %v1513_v17, %v1517_v59  ;;  %v1541_v26 = vrot.slane %v1539_v25, 5  ;;  %v1553_v38 = vshll.u32 %v1370_v24, 16  ;;  %v1557_v18 = vshrl.u32 %v1370_v24, 16  ;;  %v12540_v24 = vld [vmem:[%s13037_s13 + $0x60] sm:$0xff]  }
  0xed   : > { %v10019_v27 = vcombine.low %v1508_v8, %v1518_v3  ;;  %v1527_v9 = vrot.slane %v1526_v35, 4  ;;  %v1536_v33 = vor.u32 %v1535_v20, %v1531_v15  ;;  %v1546_v58 = vrot.slane %v1544_v39, 4  ;;  %v1381_v35 = vld [vmem:[%s12859_s6 + $0x78] sm:$0xf] }
  0xee   : > { %v1549_v37 = vrot.slane %v1547_v41, 5  ;;  %v1555_v4 = vrot.slane %v1553_v38, 5  ;;  %v1559_v45 = vrot.slane %v1557_v18, 4  ;;  %v1563_v46 = vshll.u32 %v1371_v47, 16  ;;  %v1379_v47 = vld [vmem:[%s12859_s6 + $0x70] sm:$0xf] }
  0xef   : > { %11439 = vmatprep.mubr.msk.bf16.mxu1 %vm411_vm0, %v10019_v27  ;;  %v1532_v49 = vsel %vm12898_vm4, %v1527_v9, %v1531_v15  ;;  %v1537_v60 = vrot.slane %v1536_v33, 4  ;;  %v1568_v22 = vshrl.u32 %v1372_v0, 16  ;;  %v1571_v10 = vshll.u32 %v1372_v0, 16  ;;  %v1380_v0 = vld [vmem:[%s12859_s6 + $0x74] sm:$0x1] }
  0xf0   : > { %11742 = vmatmul.mubr.msk.bf16.gmra.mrb[4].mxu0 %vm411_vm0, %v12537_v36  ;;  %v1550_v29 = vor.u32 %v1549_v37, %v1546_v58  ;;  %v1560_v57 = vor.u32 %v1559_v45, %v1555_v4  ;;  %v1565_v30 = vrot.slane %v1563_v46, 5  ;;  %v1577_v16 = vshll.u32 %v1373_v40, 16  ;;  %v1382_v27 = vld [vmem:[%s12859_s6 + $0x7c] sm:$0xf]  ;;  %v12541_v46 = vld [vmem:[%s13037_s13 + $0x6c] sm:$0xff]  }
  0xf1   : > { %v1542_v42 = vsel %vm12898_vm4, %v1537_v60, %v1541_v26  ;;  %v1570_v2 = vrot.slane %v1568_v22, 4  ;;  %v1573_v51 = vrot.slane %v1571_v10, 5  ;;  %v1581_v11 = vshrl.u32 %v1373_v40, 16  ;;  %11745 = vmatprep.mubr.msk.bf16.mxu0 %vm411_vm0, %v12538_v56  ;;  %v1384_v10 = vld [vmem:[%s12859_s6 + $0x84] sm:$0xf] }
  0xf2   : > { %v10020_v28 = vcombine.low %v1532_v49, %v1542_v42  ;;  %v1551_v53 = vrot.slane %v1550_v29, 4  ;;  %v1561_v13 = vrot.slane %v1560_v57, 4  ;;  %v1579_v43 = vrot.slane %v1577_v16, 5  ;;  %v1385_v42 = vld [vmem:[%s12859_s6 + $0x88] sm:$0xf] }
  0xf3   : > { %v1574_v6 = vor.u32 %v1573_v51, %v1570_v2  ;;  %v1583_v59 = vrot.slane %v1581_v11, 4  ;;  %v1587_v32 = vshll.u32 %v1374_v50, 16  ;;  %v1592_v31 = vshrl.u32 %v1375_v44, 16  ;;  %v1383_v50 = vld [vmem:[%s12859_s6 + $0x80] sm:$0x1] }
  0xf4   : > { %11440 = vmatmul.mubr.msk.bf16.gmra.mrb[8].mxu1 %vm411_vm0, %v10020_v28  ;;  %v1556_v63 = vsel %vm12898_vm4, %v1551_v53, %v1555_v4  ;;  %v1566_v14 = vsel %vm12898_vm4, %v1561_v13, %v1565_v30  ;;  %v1595_v21 = vshll.u32 %v1375_v44, 16  ;;  %v1601_v48 = vshll.u32 %v1376_v5, 16  ;;  %v12542_v28 = vld [vmem:[%s13037_s13 + $0x78] sm:$0xff]  }
  0xf5   : > { %v10021_v62 = vcombine.low %v1556_v63, %v1566_v14  ;;  %v1575_v55 = vrot.slane %v1574_v6, 4  ;;  %v1584_v19 = vor.u32 %v1583_v59, %v1579_v43  ;;  %v1589_v54 = vrot.slane %v1587_v32, 5 }
  0xf6   : > { %v1594_v8 = vrot.slane %v1592_v31, 4  ;;  %v1597_v17 = vrot.slane %v1595_v21, 5  ;;  %v1603_v15 = vrot.slane %v1601_v48, 5  ;;  %v1605_v25 = vshrl.u32 %v1376_v5, 16  ;;  %v1387_v31 = vld [vmem:[%s12859_s6 + $0x90] sm:$0xf] }
  0xf7   : > { %11443 = vmatprep.mubr.msk.bf16.mxu1 %vm411_vm0, %v10021_v62  ;;  %v1580_v20 = vsel %vm12898_vm4, %v1575_v55, %v1579_v43  ;;  %v1585_v39 = vrot.slane %v1584_v19, 4  ;;  %v1611_v41 = vshll.u32 %v1377_v1, 16  ;;  %v1616_v3 = vshrl.u32 %v1378_v12, 16  ;;  %v1386_v1 = vld [vmem:[%s12859_s6 + $0x8c] sm:$0x1] }
  0xf8   : > { %11746 = vmatmul.mubr.msk.bf16.gmra.mrb[8].mxu0 %vm411_vm0, %v12539_v7  ;;  %v1598_v26 = vor.u32 %v1597_v17, %v1594_v8  ;;  %v1607_v36 = vrot.slane %v1605_v25, 4  ;;  %v1619_v38 = vshll.u32 %v1378_v12, 16  ;;  %v1625_v18 = vshll.u32 %v1379_v47, 16  ;;  %v1388_v48 = vld [vmem:[%s12859_s6 + $0x94] sm:$0xf] }
  0xf9   : > { %v1590_v9 = vsel %vm12898_vm4, %v1585_v39, %v1589_v54  ;;  %v1613_v33 = vrot.slane %v1611_v41, 5  ;;  %v1618_v58 = vrot.slane %v1616_v3, 4  ;;  %v1629_v40 = vshrl.u32 %v1379_v47, 16  ;;  %11749 = vmatprep.mubr.msk.bf16.mxu0 %vm411_vm0, %v12540_v24  ;;  %v1389_v39 = vld [vmem:[%s12859_s6 + $0x98] sm:$0x1] }
  0xfa   : > { %v10022_v56 = vcombine.low %v1580_v20, %v1590_v9  ;;  %v1599_v37 = vrot.slane %v1598_v26, 4  ;;  %v1608_v4 = vor.u32 %v1607_v36, %v1603_v15  ;;  %v1621_v45 = vrot.slane %v1619_v38, 5  ;;  %v1390_v41 = vld [vmem:[%s12859_s6 + $0x9c] sm:$0xf]  ;;  %v12543_v36 = vld [vmem:[%s13037_s13 + $0x84] sm:$0xff]  }
  0xfb   : > { %v1627_v44 = vrot.slane %v1625_v18, 5  ;;  %v1631_v49 = vrot.slane %v1629_v40, 4  ;;  %v1635_v60 = vshll.u32 %v1380_v0, 16  ;;  %v1640_v22 = vshrl.u32 %v1381_v35, 16 }
  0xfc   : > { %11444 = vmatmul.mubr.msk.bf16.gmra.mrb[12].mxu1 %vm411_vm0, %v10022_v56  ;;  %v1604_v29 = vsel %vm12898_vm4, %v1599_v37, %v1603_v15  ;;  %v1609_v57 = vrot.slane %v1608_v4, 4  ;;  %v1622_v30 = vor.u32 %v1621_v45, %v1618_v58  ;;  %v1643_v16 = vshll.u32 %v1381_v35, 16  ;;  %v12544_v56 = vld [vmem:[%s13037_s13 + $0x90] sm:$0xff]  }
  0xfd   : > { %v1632_v2 = vor.u32 %v1631_v49, %v1627_v44  ;;  %v1637_v51 = vrot.slane %v1635_v60, 5  ;;  %v1642_v11 = vrot.slane %v1640_v22, 4  ;;  %v1649_v5 = vshll.u32 %v1382_v27, 16  ;;  %v1392_v22 = vld [vmem:[%s12859_s6 + $0xa4] sm:$0x1] }
  0xfe   : > { %v1614_v53 = vsel %vm12898_vm4, %v1609_v57, %v1613_v33  ;;  %v1623_v13 = vrot.slane %v1622_v30, 4  ;;  %v1645_v43 = vrot.slane %v1643_v16, 5  ;;  %v1653_v7 = vshrl.u32 %v1382_v27, 16  ;;  %v1391_v27 = vld [vmem:[%s12859_s6 + $0xa0] sm:$0xf] }
  0xff   : > { %v10023_v12 = vcombine.low %v1604_v29, %v1614_v53  ;;  %v1633_v6 = vrot.slane %v1632_v2, 4  ;;  %v1651_v59 = vrot.slane %v1649_v5, 5  ;;  %v1659_v32 = vshll.u32 %v1383_v50, 16  ;;  %v1393_v16 = vld [vmem:[%s12859_s6 + $0xa8] sm:$0xf] }
 0x100   : > { %v1628_v24 = vsel %vm12898_vm4, %v1623_v13, %v1627_v44  ;;  %11750 = vmatmul.mubr.msk.bf16.gmra.mrb[12].mxu0 %vm411_vm0, %v12541_v46  ;;  %v1646_v63 = vor.u32 %v1645_v43, %v1642_v11  ;;  %v1655_v14 = vrot.slane %v1653_v7, 4  ;;  %v1664_v21 = vshrl.u32 %v1384_v10, 16  ;;  %v1394_v5 = vld [vmem:[%s12859_s6 + $0xac] sm:$0xf] }
 0x101   : > { %11447 = vmatprep.mubr.msk.bf16.mxu1 %vm411_vm0, %v10023_v12  ;;  %v1638_v62 = vsel %vm12898_vm4, %v1633_v6, %v1637_v51  ;;  %v1661_v55 = vrot.slane %v1659_v32, 5  ;;  %v1667_v19 = vshll.u32 %v1384_v10, 16  ;;  %v1673_v54 = vshll.u32 %v1385_v42, 16  ;;  %11753 = vmatprep.mubr.msk.bf16.mxu0 %vm411_vm0, %v12542_v28  ;;  %v1395_v32 = vld [vmem:[%s12859_s6 + $0xb0] sm:$0x1] }
 0x102   : > { %v10024_v47 = vcombine.low %v1628_v24, %v1638_v62  ;;  %v1647_v8 = vrot.slane %v1646_v63, 4  ;;  %v1656_v17 = vor.u32 %v1655_v14, %v1651_v59  ;;  %v1666_v15 = vrot.slane %v1664_v21, 4 }
 0x103   : > { %v1669_v25 = vrot.slane %v1667_v19, 5  ;;  %v1675_v0 = vrot.slane %v1673_v54, 5  ;;  %v1677_v35 = vshrl.u32 %v1385_v42, 16  ;;  %v1683_v20 = vshll.u32 %v1386_v1, 16  ;;  %v1396_v19 = vld [vmem:[%s12859_s6 + $0xb4] sm:$0xf] }
 0x104   : > { %11448 = vmatmul.mubr.msk.bf16.gmra.mrb[16].mxu1 %vm411_vm0, %v10024_v47  ;;  %v1652_v3 = vsel %vm12898_vm4, %v1647_v8, %v1651_v59  ;;  %v1657_v26 = vrot.slane %v1656_v17, 4  ;;  %v1688_v38 = vshrl.u32 %v1387_v31, 16  ;;  %v1691_v18 = vshll.u32 %v1387_v31, 16  ;;  %v12545_v59 = vld [vmem:[%s13037_s13 + $0x9c] sm:$0xff]   ;;  %v12546_v54 = vld [vmem:[%s13037_s13 + $0xa8] sm:$0xff]  }
 0x105   : > { %v1670_v9 = vor.u32 %v1669_v25, %v1666_v15  ;;  %v1679_v33 = vrot.slane %v1677_v35, 4  ;;  %v1685_v58 = vrot.slane %v1683_v20, 5  ;;  %v1697_v40 = vshll.u32 %v1388_v48, 16  ;;  %v1397_v25 = vld [vmem:[%s12859_s6 + $0xb8] sm:$0xf] }
 0x106   : > { %v1662_v37 = vsel %vm12898_vm4, %v1657_v26, %v1661_v55  ;;  %v1690_v4 = vrot.slane %v1688_v38, 4  ;;  %v1693_v45 = vrot.slane %v1691_v18, 5  ;;  %v1701_v46 = vshrl.u32 %v1388_v48, 16 }
 0x107   : > { %v10025_v50 = vcombine.low %v1652_v3, %v1662_v37  ;;  %v1671_v44 = vrot.slane %v1670_v9, 4  ;;  %v1680_v49 = vor.u32 %v1679_v33, %v1675_v0  ;;  %v1699_v60 = vrot.slane %v1697_v40, 5 }
 0x108   : > { %11754 = vmatmul.mubr.msk.bf16.gmra.mrb[16].mxu0 %vm411_vm0, %v12543_v36  ;;  %v1694_v10 = vor.u32 %v1693_v45, %v1690_v4  ;;  %v1703_v29 = vrot.slane %v1701_v46, 4  ;;  %v1707_v57 = vshll.u32 %v1389_v39, 16  ;;  %v1712_v30 = vshrl.u32 %v1390_v41, 16  ;;  %v2379_v4 = vld [vmem:[%s13037_s13] sm:$0xe] }
 0x109   : > { %11451 = vmatprep.mubr.msk.bf16.mxu1 %vm411_vm0, %v10025_v50  ;;  %v1676_v42 = vsel %vm12898_vm4, %v1671_v44, %v1675_v0  ;;  %v1681_v2 = vrot.slane %v1680_v49, 4  ;;  %v1715_v51 = vshll.u32 %v1390_v41, 16  ;;  %v1721_v11 = vshll.u32 %v1391_v27, 16  ;;  %11757 = vmatprep.mubr.msk.bf16.mxu0 %vm411_vm0, %v12544_v56 }
 0x10a   : > { %v1695_v28 = vrot.slane %v1694_v10, 4  ;;  %v1704_v53 = vor.u32 %v1703_v29, %v1699_v60  ;;  %v1709_v13 = vrot.slane %v1707_v57, 5  ;;  %v1714_v43 = vrot.slane %v1712_v30, 4  ;;  %v12547_v29 = vld [vmem:[%s13037_s13 + $0xb4] sm:$0xff]  }
 0x10b   : > { %v1686_v7 = vsel %vm12898_vm4, %v1681_v2, %v1685_v58  ;;  %v1717_v1 = vrot.slane %v1715_v51, 5  ;;  %v1723_v12 = vrot.slane %v1721_v11, 5  ;;  %v1725_v6 = vshrl.u32 %v1391_v27, 16  ;;  %v1398_v27 = vld [vmem:[%s12859_s6 + $0xbc] sm:$0x1]  ;;  %v12548_v51 = vld [vmem:[%s13037_s13 + $0xc0] sm:$0xff]  }
 0x10c   : > { %v10026_v31 = vcombine.low %v1676_v42, %v1686_v7  ;;  %v1700_v24 = vsel %vm12898_vm4, %v1695_v28, %v1699_v60  ;;  %v1705_v63 = vrot.slane %v1704_v53, 4  ;;  %v1731_v14 = vshll.u32 %v1392_v22, 16  ;;  %v2380_v2 = vld [vmem:[%s13037_s13 + $0xc] sm:$0xe]  ;;  %v12631_v28 = vld [vmem:[%s13037_s13 + $0x4] sm:$0xf] }
 0x10d   : > { %v1718_v21 = vor.u32 %v1717_v1, %v1714_v43  ;;  %v1727_v48 = vrot.slane %v1725_v6, 4  ;;  %v1736_v62 = vshrl.u32 %v1393_v16, 16  ;;  %v1739_v55 = vshll.u32 %v1393_v16, 16  ;;  %v2381_v7 = vld [vmem:[%s13037_s13 + $0x18] sm:$0xe] }
 0x10e   : > { %11452 = vmatmul.mubr.msk.bf16.gmra.mrb[20].mxu1 %vm411_vm0, %v10026_v31  ;;  %v1710_v47 = vsel %vm12898_vm4, %v1705_v63, %v1709_v13  ;;  %v1733_v8 = vrot.slane %v1731_v14, 5  ;;  %v1745_v17 = vshll.u32 %v1394_v5, 16  ;;  %v1749_v15 = vshrl.u32 %v1394_v5, 16  ;;  %v12632_v13 = vld [vmem:[%s13037_s13 + $0x8] sm:$0x1] }
 0x10f   : > { %v10027_v0 = vcombine.low %v1700_v24, %v1710_v47  ;;  %v1719_v35 = vrot.slane %v1718_v21, 4  ;;  %v1728_v20 = vor.u32 %v1727_v48, %v1723_v12  ;;  %v1738_v39 = vrot.slane %v1736_v62, 4  ;;  %v12633_v63 = vld [vmem:[%s13037_s13 + $0x10] sm:$0xf]  ;;  %v2382_v21 = vld [vmem:[%s13037_s13 + $0x24] sm:$0xe] }
 0x110   : > { %11758 = vmatmul.mubr.msk.bf16.gmra.mrb[20].mxu0 %vm411_vm0, %v12545_v59  ;;  %v1741_v41 = vrot.slane %v1739_v55, 5  ;;  %v1747_v3 = vrot.slane %v1745_v17, 5  ;;  %v1751_v26 = vrot.slane %v1749_v15, 4  ;;  %v1755_v36 = vshll.u32 %v1395_v32, 16  ;;  %v12634_v55 = vld [vmem:[%s13037_s13 + $0x14] sm:$0x1] }
 0x111   : > { %11455 = vmatprep.mubr.msk.bf16.mxu1 %vm411_vm0, %v10027_v0  ;;  %v1724_v38 = vsel %vm12898_vm4, %v1719_v35, %v1723_v12  ;;  %v1729_v18 = vrot.slane %v1728_v20, 4  ;;  %v1760_v9 = vshrl.u32 %v1396_v19, 16  ;;  %v1763_v33 = vshll.u32 %v1396_v19, 16  ;;  %11761 = vmatprep.mubr.msk.bf16.mxu0 %vm411_vm0, %v12546_v54  ;;  %v12635_v15 = vld [vmem:[%s13037_s13 + $0x1c] sm:$0xf] }
 0x112   : > { %v1742_v58 = vor.u32 %v1741_v41, %v1738_v39  ;;  %v1752_v40 = vor.u32 %v1751_v26, %v1747_v3  ;;  %v1757_v56 = vrot.slane %v1755_v36, 5  ;;  %v1769_v37 = vshll.u32 %v1397_v25, 16  ;;  %v2383_v0 = vld [vmem:[%s13037_s13 + $0x30] sm:$0xe]  ;;  %v12636_v39 = vld [vmem:[%s13037_s13 + $0x20] sm:$0x1] }
 0x113   : > { %v1734_v45 = vsel %vm12898_vm4, %v1729_v18, %v1733_v8  ;;  %v1762_v46 = vrot.slane %v1760_v9, 4  ;;  %v1765_v50 = vrot.slane %v1763_v33, 5  ;;  %v1773_v44 = vshrl.u32 %v1397_v25, 16  ;;  %v2384_v26 = vld [vmem:[%s13037_s13 + $0x3c] sm:$0xe]  ;;  %v12549_v18 = vld [vmem:[%s13037_s13 + $0xcc] sm:$0xff]  }
 0x114   : > { %v10028_v49 = vcombine.low %v1724_v38, %v1734_v45  ;;  %v1743_v60 = vrot.slane %v1742_v58, 4  ;;  %v1753_v22 = vrot.slane %v1752_v40, 4  ;;  %v1771_v10 = vrot.slane %v1769_v37, 5  ;;  %v12637_v58 = vld [vmem:[%s13037_s13 + $0x28] sm:$0xf] }
 0x115   : > { %v1766_v57 = vor.u32 %v1765_v50, %v1762_v46  ;;  %v1775_v30 = vrot.slane %v1773_v44, 4  ;;  %v1779_v16 = vshll.u32 %v1398_v27, 16  ;;  %v10048_v42 = vrot.slane %v2379_v4, 9  ;;  %v12551_v4 = vld [vmem:[%s12859_s6 + $0x18] sm:$0xff]   ;;  %v2385_v46 = vld [vmem:[%s13037_s13 + $0x48] sm:$0xe] }
 0x116   : > { %11456 = vmatmul.mubr.msk.bf16.gmra.mrb[24].mxu1 %vm411_vm0, %v10028_v49  ;;  %v1748_v11 = vsel %vm12898_vm4, %v1743_v60, %v1747_v3  ;;  %v1758_v5 = vsel %vm12898_vm4, %v1753_v22, %v1757_v56  ;;  %v2448_v53 = vrot.slane %v12631_v28, 5  ;;  %v2451_v43 = vrot.slane %v12632_v13, 5  ;;  %v12638_v56 = vld [vmem:[%s13037_s13 + $0x2c] sm:$0x1]  ;;  %v12639_v44 = vld [vmem:[%s13037_s13 + $0x34] sm:$0xf] }
 0x117   : > { %v10029_v1 = vcombine.low %v1748_v11, %v1758_v5  ;;  %v1767_v12 = vrot.slane %v1766_v57, 4  ;;  %v1776_v6 = vor.u32 %v1775_v30, %v1771_v10  ;;  %v1781_v59 = vrot.slane %v1779_v16, 5  ;;  %v12640_v60 = vld [vmem:[%s13037_s13 + $0x38] sm:$0x1]  ;;  %v12641_v16 = vld [vmem:[%s13037_s13 + $0x40] sm:$0xf] }
 0x118   : > { %11762 = vmatmul.mubr.msk.bf16.gmra.mrb[24].mxu0 %vm411_vm0, %v12547_v29  ;;  %v2449_v32 = vsel %vm12940_vm6, %v10048_v42, %v2448_v53  ;;  %v2450_v31 = vrot.slane %v2448_v53, 4  ;;  %v10049_v24 = vrot.slane %v2380_v2, 9  ;;  %v2455_v14 = vrot.slane %v12633_v63, 5  ;;  %v2386_v2 = vld [vmem:[%s13037_s13 + $0x54] sm:$0xe] }
 0x119   : > { %11459 = vmatprep.mubr.msk.bf16.mxu1 %vm411_vm0, %v10029_v1  ;;  %v1772_v48 = vsel %vm12898_vm4, %v1767_v12, %v1771_v10  ;;  %v1777_v62 = vrot.slane %v1776_v6, 4  ;;  %v2458_v19 = vrot.slane %v12634_v55, 5  ;;  %11765 = vmatprep.mubr.msk.bf16.mxu0 %vm411_vm0, %v12548_v51  ;;  %v10050_v54 = vrot.slane %v2381_v7, 9  ;;  %v12642_v5 = vld [vmem:[%s13037_s13 + $0x44] sm:$0x1] }
 0x11a   : > { %v2452_v47 = vsel %vm12940_vm6, %v2450_v31, %v2451_v43  ;;  %v13912_v8 = vsel %vm12940_vm6, %v10049_v24, %v2455_v14  ;;  %v2457_v17 = vrot.slane %v2455_v14, 4  ;;  %v2462_v25 = vrot.slane %v12635_v15, 5  ;;  %v12643_v1 = vld [vmem:[%s13037_s13 + $0x4c] sm:$0xf]  ;;  %v2387_v6 = vld [vmem:[%s13037_s13 + $0x60] sm:$0xe] }
 0x11b   : > { %v1782_v35 = vsel %vm12898_vm4, %v1777_v62, %v1781_v59  ;;  %v10082_v20 = vcombine.low %v2449_v32, %v2452_v47  ;;  %v2465_v41 = vrot.slane %v12636_v39, 5  ;;  %v10051_v3 = vrot.slane %v2382_v21, 9  ;;  %v12644_v31 = vld [vmem:[%s13037_s13 + $0x50] sm:$0x1]  ;;  %v2388_v14 = vld [vmem:[%s13037_s13 + $0x6c] sm:$0xe] }
 0x11c   : > { %v10030_v36 = vcombine.low %v1772_v48, %v1782_v35  ;;  %v13922_v38 = vsel %vm12940_vm6, %v2457_v17, %v2458_v19  ;;  %v13927_v27 = vsel %vm12940_vm6, %v10050_v54, %v2462_v25  ;;  %v2464_v9 = vrot.slane %v2462_v25, 4  ;;  %v12553_v21 = vld [vmem:[%s12859_s6 + $0x24] sm:$0xff]   ;;  %v12645_v47 = vld [vmem:[%s13037_s13 + $0x58] sm:$0xf]  ;;  %v12646_v17 = vld [vmem:[%s13037_s13 + $0x5c] sm:$0x1] }
 0x11d   : > { %v10083_v33 = vcombine.low %v13912_v8, %v13922_v38  ;;  %v2469_v40 = vrot.slane %v12637_v58, 5  ;;  %v2472_v37 = vrot.slane %v12638_v56, 5  ;;  %v10052_v45 = vrot.slane %v2383_v0, 9  ;;  %v2389_v0 = vld [vmem:[%s13037_s13 + $0x78] sm:$0xe] }
 0x11e   : > { %11460 = vmatmul.mubr.msk.bf16.gmra.mrb[28].mxu1 %vm411_vm0, %v10030_v36  ;;  %v2466_v50 = vsel %vm12940_vm6, %v2464_v9, %v2465_v41  ;;  %v2476_v49 = vrot.slane %v12639_v44, 5  ;;  %v2479_v22 = vrot.slane %v12640_v60, 5  ;;  %v10053_v10 = vrot.slane %v2384_v26, 9  ;;  %v13992_v35 = vld [vmem:[%s15721_s2 + $0x18] sm:$0xff]   ;;  %v12647_v41 = vld [vmem:[%s13037_s13 + $0x64] sm:$0xf] }
 0x11f   : > { %11465 = vmatprep.mubr.msk.bf16.mxu1 %vm411_vm0, %v10082_v20  ;;  %v10084_v29 = vcombine.low %v13927_v27, %v2466_v50  ;;  %v13944_v57 = vsel %vm12940_vm6, %v10051_v3, %v2469_v40  ;;  %v2471_v30 = vrot.slane %v2469_v40, 4  ;;  %v2483_v42 = vrot.slane %v12641_v16, 5  ;;  %v12554_v20 = vld [vmem:[%s12859_s6 + $0x30] sm:$0xff]   ;;  %v12648_v26 = vld [vmem:[%s13037_s13 + $0x68] sm:$0x1] }
 0x120   : > { %11766 = vmatmul.mubr.msk.bf16.gmra.mrb[28].mxu0 %vm411_vm0, %v12549_v18  ;;  %v13951_v51 = vsel %vm12940_vm6, %v10052_v45, %v2476_v49  ;;  %v2478_v11 = vrot.slane %v2476_v49, 4  ;;  %v2486_v28 = vrot.slane %v12642_v5, 5  ;;  %v10054_v53 = vrot.slane %v2385_v46, 9  ;;  %v12649_v58 = vld [vmem:[%s13037_s13 + $0x70] sm:$0xf] }
 0x121   : > { %v13956_v13 = vsel %vm12940_vm6, %v2471_v30, %v2472_v37  ;;  %11771 = vmatprep.mubr.msk.bf16.mxu0 %vm411_vm0, %v12551_v4  ;;  %v13961_v43 = vsel %vm12940_vm6, %v10053_v10, %v2483_v42  ;;  %v2485_v7 = vrot.slane %v2483_v42, 4  ;;  %v2490_v12 = vrot.slane %v12643_v1, 5  ;;  %v2390_v56 = vld [vmem:[%s13037_s13 + $0x84] sm:$0xe]  ;;  %v14013_v37 = vld [vmem:[%s15722_s3 + $0x38] sm:$0xff]  }
 0x122   : > { %v10085_v59 = vcombine.low %v13944_v57, %v13956_v13  ;;  %v13969_v32 = vsel %vm12940_vm6, %v2478_v11, %v2479_v22  ;;  %v2493_v24 = vrot.slane %v12644_v31, 5  ;;  %v10055_v63 = vrot.slane %v2386_v2, 9  ;;  %v12650_v45 = vld [vmem:[%s13037_s13 + $0x74] sm:$0x1]  ;;  %v12651_v60 = vld [vmem:[%s13037_s13 + $0x7c] sm:$0xf] }
 0x123   : > { %v10086_v48 = vcombine.low %v13951_v51, %v13969_v32  ;;  %v13978_v62 = vsel %vm12940_vm6, %v2485_v7, %v2486_v28  ;;  %v13982_v55 = vsel %vm12940_vm6, %v10054_v53, %v2490_v12  ;;  %v2492_v19 = vrot.slane %v2490_v12, 4  ;;  %v2391_v10 = vld [vmem:[%s13037_s13 + $0x90] sm:$0xe]  ;;  %v12652_v16 = vld [vmem:[%s13037_s13 + $0x80] sm:$0x1] }
 0x124   : > { %v10087_v54 = vcombine.low %v13961_v43, %v13978_v62  ;;  %v2497_v8 = vrot.slane %v12645_v47, 5  ;;  %v2500_v15 = vrot.slane %v12646_v17, 5  ;;  %v10056_v25 = vrot.slane %v2387_v6, 9  ;;  %v2392_v11 = vld [vmem:[%s13037_s13 + $0x9c] sm:$0xe] }
 0x125   : > { %v13997_v39 = vsel %vm12940_vm6, %v2492_v19, %v2493_v24  ;;  %v2504_v3 = vrot.slane %v12647_v41, 5  ;;  %v2507_v36 = vrot.slane %v12648_v26, 5  ;;  %v10057_v38 = vrot.slane %v2388_v14, 9  ;;  %v12653_v1 = vld [vmem:[%s13037_s13 + $0x88] sm:$0xf]  ;;  %v12555_v14 = vld [vmem:[%s12859_s6 + $0x3c] sm:$0xff]  }
 0x126   : > { %11466 = vmatmul.mubr.msk.bf16.vlgmr.msra.gmra.mrb[0].mxu1 %vm411_vm0, %v10083_v33  ;;  %v10088_v18 = vcombine.low %v13982_v55, %v13997_v39  ;;  %v14006_v27 = vsel %vm12940_vm6, %v10055_v63, %v2497_v8  ;;  %v2499_v9 = vrot.slane %v2497_v8, 4  ;;  %v2511_v40 = vrot.slane %v12649_v58, 5  ;;  %v12654_v6 = vld [vmem:[%s13037_s13 + $0x8c] sm:$0x1]  ;;  %v2393_v63 = vld [vmem:[%s13037_s13 + $0xa8] sm:$0xe] }
 0x127   : > { %11469 = vmatprep.mubr.msk.bf16.mxu1 %vm411_vm0, %v10084_v29  ;;  %11498 = vmatpush3.bf16.msra.mxu1 %v13751_v61  ;;  %v14019_v33 = vsel %vm12940_vm6, %v10056_v25, %v2504_v3  ;;  %v2506_v4 = vrot.slane %v2504_v3, 4  ;;  %v2514_v46 = vrot.slane %v12650_v45, 5  ;;  %v10058_v50 = vrot.slane %v2389_v0, 9  ;;  %v12655_v19 = vld [vmem:[%s13037_s13 + $0x94] sm:$0xf]  ;;  %v12556_v25 = vld [vmem:[%s12859_s6 + $0x48] sm:$0xff]  }
 0x128   : > { %11772 = vmatmul.mubr.msk.bf16.vlgmr.msra.gmra.mrb[0].mxu0 %vm411_vm0, %v12553_v21  ;;  %v14025_v44 = vsel %vm12940_vm6, %v2499_v9, %v2500_v15  ;;  %v14029_v49 = vsel %vm12940_vm6, %v10057_v38, %v2511_v40  ;;  %v2513_v61 = vrot.slane %v2511_v40, 4  ;;  %v2518_v22 = vrot.slane %v12651_v60, 5  ;;  %11531 = vmatprep.subr.bf16.mxu1 %v13992_v35  ;;  %v12656_v8 = vld [vmem:[%s13037_s13 + $0x98] sm:$0x1]  ;;  %v12657_v3 = vld [vmem:[%s13037_s13 + $0xa0] sm:$0xf] }
 0x129   : > { %11804 = vmatpush3.bf16.msra.mxu0 %v13775_v52  ;;  %11775 = vmatprep.mubr.msk.bf16.mxu0 %vm411_vm0, %v12554_v20  ;;  %v10089_v29 = vcombine.low %v14006_v27, %v14025_v44  ;;  %v14040_v30 = vsel %vm12940_vm6, %v2506_v4, %v2507_v36  ;;  %v2521_v42 = vrot.slane %v12652_v16, 5  ;;  %v10059_v2 = vrot.slane %v2390_v56, 9  ;;  %v2394_v36 = vld [vmem:[%s13037_s13 + $0xb4] sm:$0xe]  ;;  %v12658_v58 = vld [vmem:[%s13037_s13 + $0xa4] sm:$0x1] }
 0x12a   : > { %v10090_v52 = vcombine.low %v14019_v33, %v14040_v30  ;;  %v14048_v5 = vsel %vm12940_vm6, %v2513_v61, %v2514_v46  ;;  %v14052_v28 = vsel %vm12940_vm6, %v10058_v50, %v2518_v22  ;;  %v2520_v53 = vrot.slane %v2518_v22, 4  ;;  %11837 = vmatprep.subr.bf16.mxu0 %v14013_v37  ;;  %v12659_v4 = vld [vmem:[%s13037_s13 + $0xac] sm:$0xf]  ;;  %v2558_v46 = vld [vmem:[%s12859_s6] sm:$0xe] }
 0x12b   : > { %v10091_v7 = vcombine.low %v14029_v49, %v14048_v5  ;;  %v2525_v12 = vrot.slane %v12653_v1, 5  ;;  %v2528_v31 = vrot.slane %v12654_v6, 5  ;;  %v10060_v24 = vrot.slane %v2391_v10, 9  ;;  %v2559_v60 = vld [vmem:[%s12859_s6 + $0xc] sm:$0xe] }
 0x12c   : > { %v14063_v21 = vsel %vm12940_vm6, %v2520_v53, %v2521_v42  ;;  %v2532_v47 = vrot.slane %v12655_v19, 5  ;;  %v2535_v17 = vrot.slane %v12656_v8, 5  ;;  %v10061_v15 = vrot.slane %v2392_v11, 9  ;;  %v12661_v11 = vld [vmem:[%s13037_s13 + $0xb8] sm:$0xf] }
 0x12d   : > { %v10092_v0 = vcombine.low %v14052_v28, %v14063_v21  ;;  %v14072_v20 = vsel %vm12940_vm6, %v10059_v2, %v2525_v12  ;;  %v2527_v41 = vrot.slane %v2525_v12, 4  ;;  %v2539_v26 = vrot.slane %v12657_v3, 5  ;;  %v12662_v1 = vld [vmem:[%s13037_s13 + $0xbc] sm:$0x1]  ;;  %v12665_v3 = vld [vmem:[%s12859_s6 + $0x10] sm:$0xf] }
 0x12e   : > { %11470 = vmatmul.mubr.msk.bf16.gmra.mrb[4].mxu1 %vm411_vm0, %v10085_v59  ;;  %v14082_v38 = vsel %vm12940_vm6, %v10060_v24, %v2532_v47  ;;  %v2534_v9 = vrot.slane %v2532_v47, 4  ;;  %v2542_v40 = vrot.slane %v12658_v58, 5  ;;  %v10062_v56 = vrot.slane %v2393_v63, 9  ;;  %v12557_v24 = vld [vmem:[%s12859_s6 + $0x54] sm:$0xff]   ;;  %v12664_v47 = vld [vmem:[%s12859_s6 + $0x8] sm:$0x1] }
 0x12f   : > { %11473 = vmatprep.mubr.msk.bf16.mxu1 %vm411_vm0, %v10086_v48  ;;  %v14091_v57 = vsel %vm12940_vm6, %v2527_v41, %v2528_v31  ;;  %v14095_v13 = vsel %vm12940_vm6, %v10061_v15, %v2539_v26  ;;  %v2541_v59 = vrot.slane %v2539_v26, 4  ;;  %v2546_v45 = vrot.slane %v12659_v4, 5  ;;  %v12660_v48 = vld [vmem:[%s13037_s13 + $0xb0] sm:$0x1]  ;;  %v2560_v31 = vld [vmem:[%s12859_s6 + $0x18] sm:$0xe] }
 0x130   : > { %11776 = vmatmul.mubr.msk.bf16.gmra.mrb[4].mxu0 %vm411_vm0, %v12555_v14  ;;  %v10093_v51 = vcombine.low %v14072_v20, %v14091_v57  ;;  %v14104_v32 = vsel %vm12940_vm6, %v2534_v9, %v2535_v17  ;;  %v2549_v50 = vrot.slane %v12660_v48, 5  ;;  %v10063_v61 = vrot.slane %v2394_v36, 9  ;;  %v12663_v14 = vld [vmem:[%s12859_s6 + $0x4] sm:$0xf]  ;;  %v10718_v9 = vld [vmem:[%s13037_s13 + $0x18] sm:$0xf] }
 0x131   : > { %11779 = vmatprep.mubr.msk.bf16.mxu0 %vm411_vm0, %v12556_v25  ;;  %v10094_v22 = vcombine.low %v14082_v38, %v14104_v32  ;;  %v14113_v10 = vsel %vm12940_vm6, %v2541_v59, %v2542_v40  ;;  %v14117_v16 = vsel %vm12940_vm6, %v10062_v56, %v2546_v45  ;;  %v2548_v42 = vrot.slane %v2546_v45, 4  ;;  %v2561_v36 = vld [vmem:[%s12859_s6 + $0x24] sm:$0xe]  ;;  %v12666_v59 = vld [vmem:[%s12859_s6 + $0x14] sm:$0x1] }
 0x132   : > { %v10095_v2 = vcombine.low %v14095_v13, %v14113_v10  ;;  %v2553_v53 = vrot.slane %v12661_v11, 5  ;;  %v2556_v12 = vrot.slane %v12662_v1, 5  ;;  %v10064_v6 = vrot.slane %v2558_v46, 9  ;;  %v12558_v58 = vld [vmem:[%s12859_s6 + $0x60] sm:$0xff]   ;;  %v12671_v30 = vld [vmem:[%s12859_s6 + $0x34] sm:$0xf] }
 0x133   : > { %v14127_v63 = vsel %vm12940_vm6, %v2548_v42, %v2549_v50  ;;  %v2624_v19 = vrot.slane %v12663_v14, 5  ;;  %v2627_v8 = vrot.slane %v12664_v47, 5  ;;  %v10065_v17 = vrot.slane %v2559_v60, 9  ;;  %v12670_v14 = vld [vmem:[%s12859_s6 + $0x2c] sm:$0x1] }
 0x134   : > { %v10096_v15 = vcombine.low %v14117_v16, %v14127_v63  ;;  %v14135_v25 = vsel %vm12940_vm6, %v10063_v61, %v2553_v53  ;;  %v2555_v41 = vrot.slane %v2553_v53, 4  ;;  %v2631_v26 = vrot.slane %v12665_v3, 5  ;;  %v12667_v61 = vld [vmem:[%s12859_s6 + $0x1c] sm:$0xf]  ;;  %v12677_v57 = vld [vmem:[%s12859_s6 + $0x58] sm:$0xf] }
 0x135   : > { %v14143_v40 = vsel %vm12940_vm6, %v10064_v6, %v2624_v19  ;;  %v2626_v56 = vrot.slane %v2624_v19, 4  ;;  %v2634_v4 = vrot.slane %v12666_v59, 5  ;;  %v10066_v45 = vrot.slane %v2560_v31, 9  ;;  %v10719_v53 = vld [vmem:[%s13037_s13 + $0x1c] sm:$0xf] }
 0x136   : > { %11474 = vmatmul.mubr.msk.bf16.gmra.mrb[8].mxu1 %vm411_vm0, %v10087_v54  ;;  %v14152_v46 = vsel %vm12940_vm6, %v2555_v41, %v2556_v12  ;;  %v14156_v48 = vsel %vm12940_vm6, %v10065_v17, %v2631_v26  ;;  %v2633_v50 = vrot.slane %v2631_v26, 4  ;;  %v2638_v60 = vrot.slane %v12667_v61, 5  ;;  %v12668_v54 = vld [vmem:[%s12859_s6 + $0x20] sm:$0x1]  ;;  %v12669_v31 = vld [vmem:[%s12859_s6 + $0x28] sm:$0xf] }
 0x137   : > { %11477 = vmatprep.mubr.msk.bf16.mxu1 %vm411_vm0, %v10088_v18  ;;  %v10097_v43 = vcombine.low %v14135_v25, %v14152_v46  ;;  %v14167_v62 = vsel %vm12940_vm6, %v2626_v56, %v2627_v8  ;;  %v2641_v42 = vrot.slane %v12668_v54, 5  ;;  %v10067_v11 = vrot.slane %v2561_v36, 9  ;;  %v10720_v12 = vld [vmem:[%s13037_s13 + $0x20] sm:$0x1]  ;;  %v10721_v8 = vld [vmem:[%s13037_s13 + $0x24] sm:$0xf] }
 0x138   : > { %11780 = vmatmul.mubr.msk.bf16.gmra.mrb[8].mxu0 %vm411_vm0, %v12557_v24  ;;  %v10117_v55 = vcombine.low %v14143_v40, %v14167_v62  ;;  %v14176_v39 = vsel %vm12940_vm6, %v2633_v50, %v2634_v4  ;;  %v14180_v18 = vsel %vm12940_vm6, %v10066_v45, %v2638_v60  ;;  %v2640_v1 = vrot.slane %v2638_v60, 4  ;;  %v12559_v17 = vld [vmem:[%s12859_s6 + $0x6c] sm:$0xff]   ;;  %v2563_v6 = vld [vmem:[%s12859_s6 + $0x3c] sm:$0xe]  ;;  %v12678_v38 = vld [vmem:[%s12859_s6 + $0x5c] sm:$0x1] }
 0x139   : > { %11783 = vmatprep.mubr.msk.bf16.mxu0 %vm411_vm0, %v12558_v58  ;;  %v2645_v24 = vrot.slane %v12669_v31, 5  ;;  %v2648_v19 = vrot.slane %v12670_v14, 5  ;;  %v7239_v47 = vshrl.u32 %v10718_v9, 16  ;;  %v7242_v3 = vshll.u32 %v10718_v9, 16  ;;  %v10722_v58 = vld [vmem:[%s13037_s13 + $0x28] sm:$0xf] }
 0x13a   : > { %v14192_v41 = vsel %vm12940_vm6, %v2640_v1, %v2641_v42  ;;  %v7248_v26 = vshll.u32 %v10719_v53, 16  ;;  %v7252_v36 = vshrl.u32 %v10719_v53, 16  ;;  %v10723_v50 = vld [vmem:[%s13037_s13 + $0x2c] sm:$0x1]  ;;  %v2562_v61 = vld [vmem:[%s12859_s6 + $0x30] sm:$0xe] }
 0x13b   : > { %v14199_v59 = vsel %vm12940_vm6, %v10067_v11, %v2645_v24  ;;  %v2647_v4 = vrot.slane %v2645_v24, 4  ;;  %v7241_v45 = vrot.slane %v7239_v47, 4  ;;  %v7244_v60 = vrot.slane %v7242_v3, 5  ;;  %v12560_v9 = vld [vmem:[%s12859_s6 + $0x78] sm:$0xff]   ;;  %v10741_v62 = vld [vmem:[%s13037_s13 + $0x74] sm:$0x1] }
 0x13c   : > { %v7250_v54 = vrot.slane %v7248_v26, 5  ;;  %v7254_v42 = vrot.slane %v7252_v36, 4  ;;  %v7258_v1 = vshll.u32 %v10720_v12, 16  ;;  %v7263_v31 = vshrl.u32 %v10721_v8, 16 }
 0x13d   : > { %v14206_v53 = vsel %vm12940_vm6, %v2647_v4, %v2648_v19  ;;  %v7266_v14 = vshll.u32 %v10721_v8, 16  ;;  %v7272_v56 = vshll.u32 %v10722_v58, 16  ;;  %v7245_v24 = vor.u32 %v7244_v60, %v7241_v45  ;;  %v12672_v45 = vld [vmem:[%s12859_s6 + $0x38] sm:$0x1] }
 0x13e   : > { %11478 = vmatmul.mubr.msk.bf16.gmra.mrb[12].mxu1 %vm411_vm0, %v10089_v29  ;;  %v10120_v11 = vcombine.low %v14199_v59, %v14206_v53  ;;  %v7255_v12 = vor.u32 %v7254_v42, %v7250_v54  ;;  %v7260_v47 = vrot.slane %v7258_v1, 5  ;;  %v7265_v19 = vrot.slane %v7263_v31, 4  ;;  %v10725_v42 = vld [vmem:[%s13037_s13 + $0x34] sm:$0xf]  ;;  %v12561_v1 = vld [vmem:[%s12859_s6 + $0x84] sm:$0xff]  }
 0x13f   : > { %11481 = vmatprep.mubr.msk.bf16.mxu1 %vm411_vm0, %v10090_v52  ;;  %v7268_v8 = vrot.slane %v7266_v14, 5  ;;  %v7274_v3 = vrot.slane %v7272_v56, 5  ;;  %v7276_v27 = vshrl.u32 %v10722_v58, 16  ;;  %v7246_v44 = vrot.slane %v7245_v24, 4  ;;  %v10724_v58 = vld [vmem:[%s13037_s13 + $0x30] sm:$0xf] }
 0x140   : > { %11784 = vmatmul.mubr.msk.bf16.gmra.mrb[12].mxu0 %vm411_vm0, %v12559_v17  ;;  %v7256_v29 = vrot.slane %v7255_v12, 4  ;;  %v7282_v26 = vshll.u32 %v10723_v50, 16  ;;  %v10068_v36 = vrot.slane %v2562_v61, 9  ;;  %v2652_v52 = vrot.slane %v12671_v30, 5  ;;  %v10726_v12 = vld [vmem:[%s13037_s13 + $0x38] sm:$0x1] }
 0x141   : > { %11787 = vmatprep.mubr.msk.bf16.mxu0 %vm411_vm0, %v12560_v9  ;;  %v7269_v4 = vor.u32 %v7268_v8, %v7265_v19  ;;  %v7278_v33 = vrot.slane %v7276_v27, 4  ;;  %v2655_v60 = vrot.slane %v12672_v45, 5  ;;  %v7251_v17 = vsel %vm12898_vm4, %v7246_v44, %v7250_v54  ;;  %v12673_v19 = vld [vmem:[%s12859_s6 + $0x40] sm:$0xf] }
 0x142   : > { %v7261_v56 = vsel %vm12898_vm4, %v7256_v29, %v7260_v47  ;;  %v7284_v50 = vrot.slane %v7282_v26, 5  ;;  %v10069_v61 = vrot.slane %v2563_v6, 9  ;;  %v14234_v24 = vsel %vm12940_vm6, %v10068_v36, %v2652_v52  ;;  %v12674_v47 = vld [vmem:[%s12859_s6 + $0x44] sm:$0x1]  ;;  %v10727_v29 = vld [vmem:[%s13037_s13 + $0x3c] sm:$0xf] }
 0x143   : > { %v14230_v9 = vcombine.low %v7251_v17, %v7261_v56  ;;  %v7270_v31 = vrot.slane %v7269_v4, 4  ;;  %v7279_v14 = vor.u32 %v7278_v33, %v7274_v3  ;;  %v2654_v54 = vrot.slane %v2652_v52, 4  ;;  %v12562_v6 = vld [vmem:[%s12859_s6 + $0x90] sm:$0xff]   ;;  %v10728_v33 = vld [vmem:[%s13037_s13 + $0x40] sm:$0xf] }
 0x144   : > { %v2659_v8 = vrot.slane %v12673_v19, 5  ;;  %v2662_v27 = vrot.slane %v12674_v47, 5  ;;  %v7287_v44 = vshrl.u32 %v10724_v58, 16  ;;  %v7290_v4 = vshll.u32 %v10724_v58, 16  ;;  %v10729_v56 = vld [vmem:[%s13037_s13 + $0x44] sm:$0x1] }
 0x145   : > { %v7275_v26 = vsel %vm12898_vm4, %v7270_v31, %v7274_v3  ;;  %v7280_v30 = vrot.slane %v7279_v14, 4  ;;  %v7296_v45 = vshll.u32 %v10725_v42, 16  ;;  %v14250_v36 = vsel %vm12940_vm6, %v2654_v54, %v2655_v60  ;;  %v2564_v14 = vld [vmem:[%s12859_s6 + $0x48] sm:$0xe]  ;;  %v12563_v54 = vld [vmem:[%s12859_s6 + $0x9c] sm:$0xff]  }
 0x146   : > { %11482 = vmatmul.mubr.msk.bf16.gmra.mrb[16].mxu1 %vm411_vm0, %v10091_v7  ;;  %v14254_v52 = vsel %vm12940_vm6, %v10069_v61, %v2659_v8  ;;  %v2661_v17 = vrot.slane %v2659_v8, 4  ;;  %v7289_v3 = vrot.slane %v7287_v44, 4  ;;  %v10121_v5 = vcombine.low %v14234_v24, %v14250_v36 }
 0x147   : > { %11485 = vmatprep.mubr.msk.bf16.mxu1 %vm411_vm0, %v10092_v0  ;;  %v7285_v49 = vsel %vm12898_vm4, %v7280_v30, %v7284_v50  ;;  %v7292_v7 = vrot.slane %v7290_v4, 5  ;;  %v7298_v60 = vrot.slane %v7296_v45, 5  ;;  %v7300_v21 = vshrl.u32 %v10725_v42, 16  ;;  %v2565_v42 = vld [vmem:[%s12859_s6 + $0x54] sm:$0xe]  ;;  %v12564_v4 = vld [vmem:[%s12859_s6 + $0xa8] sm:$0xff]  }
 0x148   : > { %11788 = vmatmul.mubr.msk.bf16.gmra.mrb[16].mxu0 %vm411_vm0, %v12561_v1  ;;  %v14265_v58 = vcombine.low %v7275_v26, %v7285_v49  ;;  %v14269_v28 = vsel %vm12940_vm6, %v2661_v17, %v2662_v27  ;;  %v7306_v0 = vshll.u32 %v10726_v12, 16  ;;  %v7311_v31 = vshrl.u32 %v10727_v29, 16  ;;  %v10730_v30 = vld [vmem:[%s13037_s13 + $0x48] sm:$0xf] }
 0x149   : > { %11791 = vmatprep.mubr.msk.bf16.mxu0 %vm411_vm0, %v12562_v6  ;;  %v10122_v50 = vcombine.low %v14254_v52, %v14269_v28  ;;  %v7293_v61 = vor.u32 %v7292_v7, %v7289_v3  ;;  %v7314_v1 = vshll.u32 %v10727_v29, 16  ;;  %v7302_v19 = vrot.slane %v7300_v21, 4 }
 0x14a   : > { %v7308_v8 = vrot.slane %v7306_v0, 5  ;;  %v7320_v47 = vshll.u32 %v10728_v33, 16  ;;  %v7324_v27 = vshrl.u32 %v10728_v33, 16  ;;  %v7313_v44 = vrot.slane %v7311_v31, 4  ;;  %v12675_v0 = vld [vmem:[%s12859_s6 + $0x4c] sm:$0xf] }
 0x14b   : > { %v7294_v12 = vrot.slane %v7293_v61, 4  ;;  %v7316_v26 = vrot.slane %v7314_v1, 5  ;;  %v7330_v6 = vshll.u32 %v10729_v56, 16  ;;  %v7303_v45 = vor.u32 %v7302_v19, %v7298_v60  ;;  %v12676_v31 = vld [vmem:[%s12859_s6 + $0x50] sm:$0x1] }
 0x14c   : > { %v7322_v17 = vrot.slane %v7320_v47, 5  ;;  %v7326_v3 = vrot.slane %v7324_v27, 4  ;;  %v10070_v49 = vrot.slane %v2564_v14, 9  ;;  %v2666_v33 = vrot.slane %v12675_v0, 5 }
 0x14d   : > { %v7299_v29 = vsel %vm12898_vm4, %v7294_v12, %v7298_v60  ;;  %v7317_v7 = vor.u32 %v7316_v26, %v7313_v44  ;;  %v7332_v21 = vrot.slane %v7330_v6, 5  ;;  %v7304_v56 = vrot.slane %v7303_v45, 4  ;;  %v10732_v26 = vld [vmem:[%s13037_s13 + $0x50] sm:$0x1]  ;;  %v10733_v6 = vld [vmem:[%s13037_s13 + $0x54] sm:$0xf] }
 0x14e   : > { %11486 = vmatmul.mubr.msk.bf16.gmra.mrb[20].mxu1 %vm411_vm0, %v10093_v51  ;;  %v7327_v61 = vor.u32 %v7326_v3, %v7322_v17  ;;  %v2669_v1 = vrot.slane %v12676_v31, 5  ;;  %v10071_v14 = vrot.slane %v2565_v42, 9  ;;  %v14294_v19 = vsel %vm12940_vm6, %v10070_v49, %v2666_v33  ;;  %v10734_v45 = vld [vmem:[%s13037_s13 + $0x58] sm:$0xf] }
 0x14f   : > { %11489 = vmatprep.mubr.msk.bf16.mxu1 %vm411_vm0, %v10094_v22  ;;  %v7318_v60 = vrot.slane %v7317_v7, 4  ;;  %v2668_v20 = vrot.slane %v2666_v33, 4  ;;  %v2673_v51 = vrot.slane %v12677_v57, 5  ;;  %v7309_v47 = vsel %vm12898_vm4, %v7304_v56, %v7308_v8  ;;  %v10731_v22 = vld [vmem:[%s13037_s13 + $0x4c] sm:$0xf]  ;;  %v12565_v31 = vld [vmem:[%s12859_s6 + $0xb4] sm:$0xff]  }
 0x150   : > { %11792 = vmatmul.mubr.msk.bf16.gmra.mrb[20].mxu0 %vm411_vm0, %v12563_v54  ;;  %v7328_v27 = vrot.slane %v7327_v61, 4  ;;  %v2676_v32 = vrot.slane %v12678_v38, 5  ;;  %v7335_v42 = vshrl.u32 %v10730_v30, 16  ;;  %v14303_v12 = vcombine.low %v7299_v29, %v7309_v47  ;;  %v10735_v29 = vld [vmem:[%s13037_s13 + $0x5c] sm:$0x1] }
 0x151   : > { %11795 = vmatprep.mubr.msk.bf16.mxu0 %vm411_vm0, %v12564_v4  ;;  %v7323_v44 = vsel %vm12898_vm4, %v7318_v60, %v7322_v17  ;;  %v14309_v54 = vsel %vm12940_vm6, %v2668_v20, %v2669_v1  ;;  %v14313_v8 = vsel %vm12940_vm6, %v10071_v14, %v2673_v51  ;;  %v2675_v17 = vrot.slane %v2673_v51, 4  ;;  %v2566_v61 = vld [vmem:[%s12859_s6 + $0x60] sm:$0xe] }
 0x152   : > { %v7333_v4 = vsel %vm12898_vm4, %v7328_v27, %v7332_v21  ;;  %v10123_v3 = vcombine.low %v14294_v19, %v14309_v54  ;;  %v7337_v49 = vrot.slane %v7335_v42, 4  ;;  %v7338_v0 = vshll.u32 %v10730_v30, 16  ;;  %v12566_v20 = vld [vmem:[%s12859_s6 + $0xc0] sm:$0xff]  }
 0x153   : > { %v14323_v7 = vcombine.low %v7323_v44, %v7333_v4  ;;  %v7344_v33 = vshll.u32 %v10731_v22, 16  ;;  %v7348_v56 = vshrl.u32 %v10731_v22, 16  ;;  %v14329_v1 = vsel %vm12940_vm6, %v2675_v17, %v2676_v32  ;;  %v2567_v4 = vld [vmem:[%s12859_s6 + $0x6c] sm:$0xe]  ;;  %v12679_v17 = vld [vmem:[%s12859_s6 + $0x64] sm:$0xf] }
 0x154   : > { %v7354_v14 = vshll.u32 %v10732_v26, 16  ;;  %v7359_v60 = vshrl.u32 %v10733_v6, 16  ;;  %v7362_v21 = vshll.u32 %v10733_v6, 16  ;;  %v10124_v57 = vcombine.low %v14313_v8, %v14329_v1 }
 0x155   : > { %v7340_v51 = vrot.slane %v7338_v0, 5  ;;  %v7346_v47 = vrot.slane %v7344_v33, 5  ;;  %v7350_v27 = vrot.slane %v7348_v56, 4  ;;  %v7368_v22 = vshll.u32 %v10734_v45, 16  ;;  %v10736_v33 = vld [vmem:[%s13037_s13 + $0x60] sm:$0xf] }
 0x156   : > { %11490 = vmatmul.mubr.msk.bf16.gmra.mrb[24].mxu1 %vm411_vm0, %v10095_v2  ;;  %v7356_v30 = vrot.slane %v7354_v14, 5  ;;  %v7361_v38 = vrot.slane %v7359_v60, 4  ;;  %v7364_v32 = vrot.slane %v7362_v21, 5  ;;  %v7372_v26 = vshrl.u32 %v10734_v45, 16  ;;  %v10737_v45 = vld [vmem:[%s13037_s13 + $0x64] sm:$0xf] }
 0x157   : > { %11493 = vmatprep.mubr.msk.bf16.mxu1 %vm411_vm0, %v10096_v15  ;;  %v7341_v42 = vor.u32 %v7340_v51, %v7337_v49  ;;  %v7351_v44 = vor.u32 %v7350_v27, %v7346_v47  ;;  %v7378_v6 = vshll.u32 %v10735_v29, 16  ;;  %v7370_v10 = vrot.slane %v7368_v22, 5  ;;  %v10738_v60 = vld [vmem:[%s13037_s13 + $0x68] sm:$0x1] }
 0x158   : > { %11796 = vmatmul.mubr.msk.bf16.gmra.mrb[24].mxu0 %vm411_vm0, %v12565_v31  ;;  %v7365_v13 = vor.u32 %v7364_v32, %v7361_v38  ;;  %v10072_v2 = vrot.slane %v2566_v61, 9  ;;  %v2680_v0 = vrot.slane %v12679_v17, 5  ;;  %v7374_v15 = vrot.slane %v7372_v26, 4  ;;  %v12680_v61 = vld [vmem:[%s12859_s6 + $0x68] sm:$0x1]  ;;  %v12567_v38 = vld [vmem:[%s12859_s6 + $0xcc] sm:$0xff]  }
 0x159   : > { %11799 = vmatprep.mubr.msk.bf16.mxu0 %vm411_vm0, %v12566_v20  ;;  %v7342_v16 = vrot.slane %v7341_v42, 4  ;;  %v7352_v63 = vrot.slane %v7351_v44, 4  ;;  %v7380_v49 = vrot.slane %v7378_v6, 5  ;;  %v2683_v14 = vrot.slane %v12680_v61, 5  ;;  %v12681_v44 = vld [vmem:[%s12859_s6 + $0x70] sm:$0xf] }
 0x15a   : > { %v7366_v29 = vrot.slane %v7365_v13, 4  ;;  %v14350_v56 = vsel %vm12940_vm6, %v10072_v2, %v2680_v0  ;;  %v2682_v31 = vrot.slane %v2680_v0, 4  ;;  %v7375_v51 = vor.u32 %v7374_v15, %v7370_v10  ;;  %v10740_v15 = vld [vmem:[%s13037_s13 + $0x70] sm:$0xf] }
 0x15b   : > { %v7347_v21 = vsel %vm12898_vm4, %v7342_v16, %v7346_v47  ;;  %v7357_v20 = vsel %vm12898_vm4, %v7352_v63, %v7356_v30  ;;  %v10073_v27 = vrot.slane %v2567_v4, 9  ;;  %v2687_v26 = vrot.slane %v12681_v44, 5  ;;  %v12682_v30 = vld [vmem:[%s12859_s6 + $0x74] sm:$0x1]  ;;  %v10739_v16 = vld [vmem:[%s13037_s13 + $0x6c] sm:$0xf] }
 0x15c   : > { %v14359_v32 = vcombine.low %v7347_v21, %v7357_v20  ;;  %v7371_v22 = vsel %vm12898_vm4, %v7366_v29, %v7370_v10  ;;  %v14365_v42 = vsel %vm12940_vm6, %v2682_v31, %v2683_v14  ;;  %v7376_v6 = vrot.slane %v7375_v51, 4 }
 0x15d   : > { %v10125_v47 = vcombine.low %v14350_v56, %v14365_v42  ;;  %v2690_v4 = vrot.slane %v12682_v30, 5  ;;  %v7383_v13 = vshrl.u32 %v10736_v33, 16  ;;  %v14377_v10 = vsel %vm12940_vm6, %v10073_v27, %v2687_v26 }
 0x15e   : > { %11494 = vmatmul.mubr.msk.bf16.gmra.mrb[28].mxu1 %vm411_vm0, %v10097_v43  ;;  %v2689_v2 = vrot.slane %v2687_v26, 4  ;;  %v7386_v17 = vshll.u32 %v10736_v33, 16  ;;  %v7392_v0 = vshll.u32 %v10737_v45, 16  ;;  %v7381_v25 = vsel %vm12898_vm4, %v7376_v6, %v7380_v49 }
 0x15f   : > { %11499 = vmatprep.mubr.msk.bf16.mxu1 %vm411_vm0, %v10117_v55  ;;  %v7385_v46 = vrot.slane %v7383_v13, 4  ;;  %v7396_v43 = vshrl.u32 %v10737_v45, 16  ;;  %v7402_v63 = vshll.u32 %v10738_v60, 16  ;;  %v14388_v29 = vcombine.low %v7371_v22, %v7381_v25  ;;  %v2568_v55 = vld [vmem:[%s12859_s6 + $0x78] sm:$0xe] }
 0x160   : > { %11800 = vmatmul.mubr.msk.bf16.gmra.mrb[28].mxu0 %vm411_vm0, %v12567_v38  ;;  %v14392_v33 = vsel %vm12940_vm6, %v2689_v2, %v2690_v4  ;;  %v7388_v31 = vrot.slane %v7386_v17, 5  ;;  %v7394_v40 = vrot.slane %v7392_v0, 5  ;;  %v7407_v14 = vshrl.u32 %v10739_v16, 16  ;;  %v2569_v60 = vld [vmem:[%s12859_s6 + $0x84] sm:$0xe] }
 0x161   : > { %11805 = vmatprep.mubr.msk.bf16.mxu0 %vm411_vm0, %v14230_v9  ;;  %v10126_v49 = vcombine.low %v14377_v10, %v14392_v33  ;;  %v7398_v45 = vrot.slane %v7396_v43, 4  ;;  %v7404_v61 = vrot.slane %v7402_v63, 5  ;;  %v7410_v20 = vshll.u32 %v10739_v16, 16  ;;  %v14404_v9 = vld [vmem:[%s15722_s3 + $0x18] sm:$0xff]   ;;  %v12684_v25 = vld [vmem:[%s12859_s6 + $0x80] sm:$0x1] }
 0x162   : > { %v7389_v21 = vor.u32 %v7388_v31, %v7385_v46  ;;  %v7416_v51 = vshll.u32 %v10740_v15, 16  ;;  %v7420_v27 = vshrl.u32 %v10740_v15, 16  ;;  %v7409_v22 = vrot.slane %v7407_v14, 4  ;;  %v12683_v0 = vld [vmem:[%s12859_s6 + $0x7c] sm:$0xf] }
 0x163   : > { %v7399_v38 = vor.u32 %v7398_v45, %v7394_v40  ;;  %v7426_v44 = vshll.u32 %v10741_v62, 16  ;;  %v10074_v26 = vrot.slane %v2568_v55, 9  ;;  %v7412_v30 = vrot.slane %v7410_v20, 5  ;;  %v10742_v55 = vld [vmem:[%s13037_s13 + $0x78] sm:$0xf]  ;;  %v14418_v45 = vld [vmem:[%s15721_s2 + $0x40] sm:$0xff]  }
 0x164   : > { %v7390_v6 = vrot.slane %v7389_v21, 4  ;;  %v7418_v4 = vrot.slane %v7416_v51, 5  ;;  %v7422_v13 = vrot.slane %v7420_v27, 4  ;;  %v2694_v16 = vrot.slane %v12683_v0, 5  ;;  %v10743_v20 = vld [vmem:[%s13037_s13 + $0x7c] sm:$0xf] }
 0x165   : > { %v7400_v2 = vrot.slane %v7399_v38, 4  ;;  %v7428_v17 = vrot.slane %v7426_v44, 5  ;;  %v2697_v46 = vrot.slane %v12684_v25, 5  ;;  %v15736_v43 = vcombine.low %v14156_v48, %v14176_v39  ;;  %v10744_v51 = vld [vmem:[%s13037_s13 + $0x80] sm:$0x1] }
 0x166   : > { %v7395_v63 = vsel %vm12898_vm4, %v7390_v6, %v7394_v40  ;;  %v7413_v15 = vor.u32 %v7412_v30, %v7409_v22  ;;  %v7423_v31 = vor.u32 %v7422_v13, %v7418_v4  ;;  %v10075_v62 = vrot.slane %v2569_v60, 9  ;;  %v12685_v60 = vld [vmem:[%s12859_s6 + $0x88] sm:$0xf]  ;;  %v12686_v27 = vld [vmem:[%s12859_s6 + $0x8c] sm:$0x1] }
 0x167   : > { %11500 = vmatmul.mubr.msk.bf16.vlgmr.msra.gmra.mrb[0].mxu1 %vm411_vm0, %v15736_v43  ;;  %v15737_v14 = vcombine.low %v14180_v18, %v14192_v41  ;;  %v7405_v48 = vsel %vm12898_vm4, %v7400_v2, %v7404_v61  ;;  %v14429_v39 = vsel %vm12940_vm6, %v10074_v26, %v2694_v16  ;;  %v2696_v40 = vrot.slane %v2694_v16, 4  ;;  %v10745_v61 = vld [vmem:[%s13037_s13 + $0x84] sm:$0xf]  ;;  %v10746_v6 = vld [vmem:[%s13037_s13 + $0x88] sm:$0xf] }
 0x168   : > { %11532 = vmatpush3.bf16.msra.mxu1 %v13992_v35  ;;  %v2701_v21 = vrot.slane %v12685_v60, 5  ;;  %11806 = vmatmul.mubr.msk.bf16.vlgmr.msra.gmra.mrb[0].mxu0 %vm411_vm0, %v14265_v58  ;;  %v14436_v18 = vcombine.low %v7395_v63, %v7405_v48  ;;  %v7414_v41 = vrot.slane %v7413_v15, 4  ;;  %v7424_v35 = vrot.slane %v7423_v31, 4  ;;  %v10747_v63 = vld [vmem:[%s13037_s13 + $0x8c] sm:$0x1] }
 0x169   : > { %11503 = vmatprep.mubr.msk.bf16.mxu1 %vm411_vm0, %v15737_v14  ;;  %v2704_v38 = vrot.slane %v12686_v27, 5  ;;  %11565 = vmatprep.subr.bf16.mxu1 %v14404_v9  ;;  %v14446_v22 = vsel %vm12940_vm6, %v2696_v40, %v2697_v46  ;;  %v7431_v26 = vshrl.u32 %v10742_v55, 16  ;;  %v7434_v13 = vshll.u32 %v10742_v55, 16  ;;  %v2570_v14 = vld [vmem:[%s12859_s6 + $0x90] sm:$0xe] }
 0x16a   : > { %11838 = vmatpush3.bf16.msra.mxu0 %v14013_v37  ;;  %11809 = vmatprep.mubr.msk.bf16.mxu0 %vm411_vm0, %v14303_v12  ;;  %v14450_v58 = vsel %vm12940_vm6, %v10075_v62, %v2701_v21  ;;  %v2703_v44 = vrot.slane %v2701_v21, 4  ;;  %v7419_v30 = vsel %vm12898_vm4, %v7414_v41, %v7418_v4  ;;  %v7429_v37 = vsel %vm12898_vm4, %v7424_v35, %v7428_v17  ;;  %v2571_v27 = vld [vmem:[%s12859_s6 + $0x9c] sm:$0xe] }
 0x16b   : > { %v10127_v12 = vcombine.low %v14429_v39, %v14446_v22  ;;  %11871 = vmatprep.subr.bf16.mxu0 %v14418_v45  ;;  %v14460_v2 = vcombine.low %v7419_v30, %v7429_v37  ;;  %v7433_v16 = vrot.slane %v7431_v26, 4  ;;  %v7440_v25 = vshll.u32 %v10743_v20, 16  ;;  %v12688_v26 = vld [vmem:[%s12859_s6 + $0x98] sm:$0x1] }
 0x16c   : > { %v14464_v0 = vsel %vm12940_vm6, %v2703_v44, %v2704_v38  ;;  %v7436_v46 = vrot.slane %v7434_v13, 5  ;;  %v7444_v17 = vshrl.u32 %v10743_v20, 16  ;;  %v7450_v43 = vshll.u32 %v10744_v51, 16 }
 0x16d   : > { %v10128_v4 = vcombine.low %v14450_v58, %v14464_v0  ;;  %v7442_v15 = vrot.slane %v7440_v25, 5  ;;  %v7455_v31 = vshrl.u32 %v10745_v61, 16  ;;  %v7458_v62 = vshll.u32 %v10745_v61, 16  ;;  %v10748_v61 = vld [vmem:[%s13037_s13 + $0x90] sm:$0xf] }
 0x16e   : > { %v7464_v55 = vshll.u32 %v10746_v6, 16  ;;  %v7437_v48 = vor.u32 %v7436_v46, %v7433_v16  ;;  %v7446_v40 = vrot.slane %v7444_v17, 4  ;;  %v7452_v60 = vrot.slane %v7450_v43, 5  ;;  %v12689_v46 = vld [vmem:[%s12859_s6 + $0xa0] sm:$0xf] }
 0x16f   : > { %11504 = vmatmul.mubr.msk.bf16.gmra.mrb[4].mxu1 %vm411_vm0, %v10120_v11  ;;  %v7468_v21 = vshrl.u32 %v10746_v6, 16  ;;  %v7457_v20 = vrot.slane %v7455_v31, 4  ;;  %v7460_v51 = vrot.slane %v7458_v62, 5  ;;  %v7474_v35 = vshll.u32 %v10747_v63, 16  ;;  %v12690_v31 = vld [vmem:[%s12859_s6 + $0xa4] sm:$0x1] }
 0x170   : > { %11507 = vmatprep.mubr.msk.bf16.mxu1 %vm411_vm0, %v10121_v5  ;;  %v7466_v41 = vrot.slane %v7464_v55, 5  ;;  %11810 = vmatmul.mubr.msk.bf16.gmra.mrb[4].mxu0 %vm411_vm0, %v14323_v7  ;;  %v7438_v59 = vrot.slane %v7437_v48, 4  ;;  %v7447_v53 = vor.u32 %v7446_v40, %v7442_v15  ;;  %v10076_v38 = vrot.slane %v2570_v14, 9  ;;  %v12687_v5 = vld [vmem:[%s12859_s6 + $0x94] sm:$0xf] }
 0x171   : > { %v7470_v11 = vrot.slane %v7468_v21, 4  ;;  %11813 = vmatprep.mubr.msk.bf16.mxu0 %vm411_vm0, %v14359_v32  ;;  %v7461_v24 = vor.u32 %v7460_v51, %v7457_v20  ;;  %v7476_v36 = vrot.slane %v7474_v35, 5  ;;  %v2708_v44 = vrot.slane %v12687_v5, 5  ;;  %v10749_v62 = vld [vmem:[%s13037_s13 + $0x94] sm:$0xf] }
 0x172   : > { %v2711_v6 = vrot.slane %v12688_v26, 5  ;;  %v7443_v7 = vsel %vm12898_vm4, %v7438_v59, %v7442_v15  ;;  %v7448_v30 = vrot.slane %v7447_v53, 4  ;;  %v10077_v13 = vrot.slane %v2571_v27, 9  ;;  %v10750_v21 = vld [vmem:[%s13037_s13 + $0x98] sm:$0x1] }
 0x173   : > { %v7471_v37 = vor.u32 %v7470_v11, %v7466_v41  ;;  %v7462_v16 = vrot.slane %v7461_v24, 4  ;;  %v14490_v32 = vsel %vm12940_vm6, %v10076_v38, %v2708_v44  ;;  %v2710_v25 = vrot.slane %v2708_v44, 4  ;;  %v10751_v20 = vld [vmem:[%s13037_s13 + $0x9c] sm:$0xf]  ;;  %v10752_v59 = vld [vmem:[%s13037_s13 + $0xa0] sm:$0xf] }
 0x174   : > { %v2715_v17 = vrot.slane %v12689_v46, 5  ;;  %v7453_v43 = vsel %vm12898_vm4, %v7448_v30, %v7452_v60  ;;  %v2718_v15 = vrot.slane %v12690_v31, 5  ;;  %v7479_v55 = vshrl.u32 %v10748_v61, 16  ;;  %v10753_v53 = vld [vmem:[%s13037_s13 + $0xa4] sm:$0x1] }
 0x175   : > { %v7472_v63 = vrot.slane %v7471_v37, 4  ;;  %v14497_v14 = vcombine.low %v7443_v7, %v7453_v43  ;;  %v7467_v48 = vsel %vm12898_vm4, %v7462_v16, %v7466_v41  ;;  %v14503_v40 = vsel %vm12940_vm6, %v2710_v25, %v2711_v6  ;;  %v2572_v38 = vld [vmem:[%s12859_s6 + $0xa8] sm:$0xe]  ;;  %v2573_v30 = vld [vmem:[%s12859_s6 + $0xb4] sm:$0xe] }
 0x176   : > { %v14507_v60 = vsel %vm12940_vm6, %v10077_v13, %v2715_v17  ;;  %v10129_v41 = vcombine.low %v14490_v32, %v14503_v40  ;;  %v2717_v35 = vrot.slane %v2715_v17, 4  ;;  %v7481_v27 = vrot.slane %v7479_v55, 4  ;;  %v12691_v43 = vld [vmem:[%s12859_s6 + $0xac] sm:$0xf]  ;;  %v10754_v31 = vld [vmem:[%s13037_s13 + $0xa8] sm:$0xf] }
 0x177   : > { %11508 = vmatmul.mubr.msk.bf16.gmra.mrb[8].mxu1 %vm411_vm0, %v10122_v50  ;;  %v7477_v51 = vsel %vm12898_vm4, %v7472_v63, %v7476_v36  ;;  %v7482_v52 = vshll.u32 %v10748_v61, 16  ;;  %v7488_v28 = vshll.u32 %v10749_v62, 16  ;;  %v7492_v50 = vshrl.u32 %v10749_v62, 16 }
 0x178   : > { %11511 = vmatprep.mubr.msk.bf16.mxu1 %vm411_vm0, %v10123_v3  ;;  %v14525_v11 = vcombine.low %v7467_v48, %v7477_v51  ;;  %11814 = vmatmul.mubr.msk.bf16.gmra.mrb[8].mxu0 %vm411_vm0, %v14388_v29  ;;  %v14532_v24 = vsel %vm12940_vm6, %v2717_v35, %v2718_v15  ;;  %v7498_v36 = vshll.u32 %v10750_v21, 16  ;;  %v7503_v5 = vshrl.u32 %v10751_v20, 16  ;;  %v10755_v21 = vld [vmem:[%s13037_s13 + $0xac] sm:$0xf] }
 0x179   : > { %v7506_v44 = vshll.u32 %v10751_v20, 16  ;;  %11817 = vmatprep.mubr.msk.bf16.mxu0 %vm411_vm0, %v14436_v18  ;;  %v10130_v19 = vcombine.low %v14507_v60, %v14532_v24  ;;  %v7484_v54 = vrot.slane %v7482_v52, 5  ;;  %v7490_v3 = vrot.slane %v7488_v28, 5  ;;  %v10756_v52 = vld [vmem:[%s13037_s13 + $0xb0] sm:$0x1] }
 0x17a   : > { %v7494_v61 = vrot.slane %v7492_v50, 4  ;;  %v7500_v26 = vrot.slane %v7498_v36, 5  ;;  %v7505_v29 = vrot.slane %v7503_v5, 4  ;;  %v7512_v7 = vshll.u32 %v10752_v59, 16  ;;  %v12694_v5 = vld [vmem:[%s12859_s6 + $0xbc] sm:$0x1] }
 0x17b   : > { %v7508_v6 = vrot.slane %v7506_v44, 5  ;;  %v7485_v37 = vor.u32 %v7484_v54, %v7481_v27  ;;  %v7516_v16 = vshrl.u32 %v10752_v59, 16  ;;  %v7522_v25 = vshll.u32 %v10753_v53, 16  ;;  %v12692_v27 = vld [vmem:[%s12859_s6 + $0xb0] sm:$0x1] }
 0x17c   : > { %v7495_v13 = vor.u32 %v7494_v61, %v7490_v3  ;;  %v7514_v46 = vrot.slane %v7512_v7, 5  ;;  %v10078_v17 = vrot.slane %v2572_v38, 9  ;;  %v2722_v63 = vrot.slane %v12691_v43, 5  ;;  %v10757_v38 = vld [vmem:[%s13037_s13 + $0xb4] sm:$0xf] }
 0x17d   : > { %v7509_v18 = vor.u32 %v7508_v6, %v7505_v29  ;;  %v7486_v15 = vrot.slane %v7485_v37, 4  ;;  %v7518_v55 = vrot.slane %v7516_v16, 4  ;;  %v7524_v48 = vrot.slane %v7522_v25, 5  ;;  %v10759_v7 = vld [vmem:[%s13037_s13 + $0xbc] sm:$0x1] }
 0x17e   : > { %v7496_v62 = vrot.slane %v7495_v13, 4  ;;  %v14548_v51 = vsel %vm12940_vm6, %v10078_v17, %v2722_v63  ;;  %v2724_v35 = vrot.slane %v2722_v63, 4  ;;  %v2725_v59 = vrot.slane %v12692_v27, 5  ;;  %v10760_v16 = vld [vmem:[%s13037_s13 + $0xc0] sm:$0xf] }
 0x17f   : > { %11512 = vmatmul.mubr.msk.bf16.gmra.mrb[12].mxu1 %vm411_vm0, %v10124_v57  ;;  %v7510_v20 = vrot.slane %v7509_v18, 4  ;;  %v7491_v8 = vsel %vm12898_vm4, %v7486_v15, %v7490_v3  ;;  %v7519_v57 = vor.u32 %v7518_v55, %v7514_v46  ;;  %v10079_v53 = vrot.slane %v2573_v30, 9  ;;  %v10758_v3 = vld [vmem:[%s13037_s13 + $0xb8] sm:$0xf] }
 0x180   : > { %11515 = vmatprep.mubr.msk.bf16.mxu1 %vm411_vm0, %v10125_v47  ;;  %v7501_v1 = vsel %vm12898_vm4, %v7496_v62, %v7500_v26  ;;  %11818 = vmatmul.mubr.msk.bf16.gmra.mrb[12].mxu0 %vm411_vm0, %v14460_v2  ;;  %v14566_v42 = vsel %vm12940_vm6, %v2724_v35, %v2725_v59  ;;  %v12693_v47 = vld [vmem:[%s12859_s6 + $0xb8] sm:$0xf]  ;;  %v2732_v44 = vrot.slane %v12694_v5, 5  ;;  %v7527_v54 = vshrl.u32 %v10754_v31, 16  ;;  %v10761_v62 = vld [vmem:[%s13037_s13 + $0xc4] sm:$0xf] }
 0x181   : > { %v10826_v28 = vcombine.low %v7491_v8, %v7501_v1  ;;  %v7515_v56 = vsel %vm12898_vm4, %v7510_v20, %v7514_v46  ;;  %v2729_v50 = vrot.slane %v12693_v47, 5  ;;  %11821 = vmatprep.mubr.msk.bf16.mxu0 %vm411_vm0, %v14497_v14  ;;  %v7520_v36 = vrot.slane %v7519_v57, 4  ;;  %v10762_v8 = vld [vmem:[%s13037_s13 + $0xc8] sm:$0x1] }
 0x182   : > { %v10131_v2 = vcombine.low %v14548_v51, %v14566_v42  ;;  %v7530_v29 = vshll.u32 %v10754_v31, 16  ;;  %v7536_v6 = vshll.u32 %v10755_v21, 16  ;;  %v7529_v30 = vrot.slane %v7527_v54, 4 }
 0x183   : > { %v14578_v61 = vsel %vm12940_vm6, %v10079_v53, %v2729_v50  ;;  %v2731_v26 = vrot.slane %v2729_v50, 4  ;;  %v7525_v14 = vsel %vm12898_vm4, %v7520_v36, %v7524_v48  ;;  %v7540_v37 = vshrl.u32 %v10755_v21, 16  ;;  %v10763_v53 = vld [vmem:[%s13037_s13 + $0xcc] sm:$0xf] }
 0x184   : > { %v7546_v13 = vshll.u32 %v10756_v52, 16  ;;  %v10827_v25 = vcombine.low %v7515_v56, %v7525_v14  ;;  %v7532_v46 = vrot.slane %v7530_v29, 5  ;;  %v7538_v17 = vrot.slane %v7536_v6, 5  ;;  %v10764_v56 = vld [vmem:[%s13037_s13 + $0xd0] sm:$0xf] }
 0x185   : > { %v14586_v18 = vsel %vm12940_vm6, %v2731_v26, %v2732_v44  ;;  %v7542_v63 = vrot.slane %v7540_v37, 4  ;;  %v7551_v15 = vshrl.u32 %v10757_v38, 16  ;;  %v7554_v48 = vshll.u32 %v10757_v38, 16 }
 0x186   : > { %v10132_v43 = vcombine.low %v14578_v61, %v14586_v18  ;;  %v7548_v31 = vrot.slane %v7546_v13, 5  ;;  %v7533_v55 = vor.u32 %v7532_v46, %v7529_v30  ;;  %v7560_v21 = vshll.u32 %v10758_v3, 16 }
 0x187   : > { %11516 = vmatmul.mubr.msk.bf16.gmra.mrb[16].mxu1 %vm411_vm0, %v10126_v49  ;;  %v7564_v20 = vshrl.u32 %v10758_v3, 16  ;;  %v7543_v35 = vor.u32 %v7542_v63, %v7538_v17  ;;  %v7553_v27 = vrot.slane %v7551_v15, 4  ;;  %v7570_v59 = vshll.u32 %v10759_v7, 16  ;;  %v10766_v7 = vld [vmem:[%s12859_s6 + $0x18] sm:$0xf] }
 0x188   : > { %11519 = vmatprep.mubr.msk.bf16.mxu1 %vm411_vm0, %v10127_v12  ;;  %v7575_v1 = vshrl.u32 %v10760_v16, 16  ;;  %11822 = vmatmul.mubr.msk.bf16.gmra.mrb[16].mxu0 %vm411_vm0, %v14525_v11  ;;  %v7534_v10 = vrot.slane %v7533_v55, 4  ;;  %v7556_v33 = vrot.slane %v7554_v48, 5  ;;  %v7562_v49 = vrot.slane %v7560_v21, 5 }
 0x189   : > { %v7566_v57 = vrot.slane %v7564_v20, 4  ;;  %11825 = vmatprep.mubr.msk.bf16.mxu0 %vm411_vm0, %v10826_v28  ;;  %v7544_v39 = vrot.slane %v7543_v35, 4  ;;  %v7572_v22 = vrot.slane %v7570_v59, 5  ;;  %v7578_v52 = vshll.u32 %v10760_v16, 16  ;;  %v10765_v28 = vld [vmem:[%s13037_s13 + $0xd4] sm:$0x1] }
 0x18a   : > { %v7577_v12 = vrot.slane %v7575_v1, 4  ;;  %v7539_v47 = vsel %vm12898_vm4, %v7534_v10, %v7538_v17  ;;  %v7557_v50 = vor.u32 %v7556_v33, %v7553_v27  ;;  %v7584_v11 = vshll.u32 %v10761_v62, 16  ;;  %v10767_v16 = vld [vmem:[%s12859_s6 + $0x1c] sm:$0xf]  ;;  %v10768_v20 = vld [vmem:[%s12859_s6 + $0x20] sm:$0x1] }
 0x18b   : > { %v7567_v38 = vor.u32 %v7566_v57, %v7562_v49  ;;  %v7549_v36 = vsel %vm12898_vm4, %v7544_v39, %v7548_v31  ;;  %v7580_v5 = vrot.slane %v7578_v52, 5  ;;  %v7588_v44 = vshrl.u32 %v10761_v62, 16  ;;  %v10769_v35 = vld [vmem:[%s12859_s6 + $0x24] sm:$0xf]  ;;  %v10770_v59 = vld [vmem:[%s12859_s6 + $0x28] sm:$0xf] }
 0x18c   : > { %v7594_v54 = vshll.u32 %v10762_v8, 16  ;;  %v10828_v3 = vcombine.low %v7539_v47, %v7549_v36  ;;  %v7558_v26 = vrot.slane %v7557_v50, 4  ;;  %v7586_v6 = vrot.slane %v7584_v11, 5  ;;  %v10772_v36 = vld [vmem:[%s12859_s6 + $0x30] sm:$0xf] }
 0x18d   : > { %v7568_v29 = vrot.slane %v7567_v38, 4  ;;  %v7581_v14 = vor.u32 %v7580_v5, %v7577_v12  ;;  %v7590_v30 = vrot.slane %v7588_v44, 4  ;;  %v7599_v13 = vshrl.u32 %v10763_v53, 16 }
 0x18e   : > { %v7596_v37 = vrot.slane %v7594_v54, 5  ;;  %v7563_v46 = vsel %vm12898_vm4, %v7558_v26, %v7562_v49  ;;  %v7602_v63 = vshll.u32 %v10763_v53, 16  ;;  %v7608_v31 = vshll.u32 %v10764_v56, 16 }
 0x18f   : > { %11520 = vmatmul.mubr.msk.bf16.gmra.mrb[20].mxu1 %vm411_vm0, %v10128_v4  ;;  %v7573_v17 = vsel %vm12898_vm4, %v7568_v29, %v7572_v22  ;;  %v7582_v58 = vrot.slane %v7581_v14, 4  ;;  %v7591_v0 = vor.u32 %v7590_v30, %v7586_v6  ;;  %v7601_v62 = vrot.slane %v7599_v13, 4 }
 0x190   : > { %11523 = vmatprep.mubr.msk.bf16.mxu1 %vm411_vm0, %v10129_v41  ;;  %v10829_v15 = vcombine.low %v7563_v46, %v7573_v17  ;;  %11826 = vmatmul.mubr.msk.bf16.gmra.mrb[20].mxu0 %vm411_vm0, %v10827_v25  ;;  %v7604_v4 = vrot.slane %v7602_v63, 5  ;;  %v7610_v55 = vrot.slane %v7608_v31, 5  ;;  %v7612_v48 = vshrl.u32 %v10764_v56, 16  ;;  %v10771_v56 = vld [vmem:[%s12859_s6 + $0x2c] sm:$0x1] }
 0x191   : > { %v7618_v21 = vshll.u32 %v10765_v28, 16  ;;  %11829 = vmatprep.mubr.msk.bf16.mxu0 %vm411_vm0, %v10828_v3  ;;  %v7587_v32 = vsel %vm12898_vm4, %v7582_v58, %v7586_v6  ;;  %v7592_v40 = vrot.slane %v7591_v0, 4  ;;  %v7671_v41 = vshrl.u32 %v10766_v7, 16  ;;  %v10773_v3 = vld [vmem:[%s12859_s6 + $0x34] sm:$0xf]  ;;  %v12570_v63 = vld [vmem:[%s13037_s13 + $0xc] sm:$0xff]  }
 0x192   : > { %v7674_v27 = vshll.u32 %v10766_v7, 16  ;;  %v7605_v8 = vor.u32 %v7604_v4, %v7601_v62  ;;  %v7614_v1 = vrot.slane %v7612_v48, 4  ;;  %v7680_v10 = vshll.u32 %v10767_v16, 16  ;;  %v10775_v62 = vld [vmem:[%s12859_s6 + $0x3c] sm:$0xf] }
 0x193   : > { %v7620_v25 = vrot.slane %v7618_v21, 5  ;;  %v7597_v33 = vsel %vm12898_vm4, %v7592_v40, %v7596_v37  ;;  %v7673_v49 = vrot.slane %v7671_v41, 4  ;;  %v7684_v53 = vshrl.u32 %v10767_v16, 16  ;;  %v10774_v16 = vld [vmem:[%s12859_s6 + $0x38] sm:$0x1] }
 0x194   : > { %v7676_v57 = vrot.slane %v7674_v27, 5  ;;  %v10830_v39 = vcombine.low %v7587_v32, %v7597_v33  ;;  %v7606_v22 = vrot.slane %v7605_v8, 4  ;;  %v7615_v12 = vor.u32 %v7614_v1, %v7610_v55 }
 0x195   : > { %v7682_v52 = vrot.slane %v7680_v10, 5  ;;  %v7686_v50 = vrot.slane %v7684_v53, 4  ;;  %v7690_v38 = vshll.u32 %v10768_v20, 16  ;;  %v7695_v11 = vshrl.u32 %v10769_v35, 16  ;;  %v10776_v20 = vld [vmem:[%s12859_s6 + $0x40] sm:$0xf] }
 0x196   : > { %v7677_v47 = vor.u32 %v7676_v57, %v7673_v49  ;;  %v7611_v5 = vsel %vm12898_vm4, %v7606_v22, %v7610_v55  ;;  %v7616_v44 = vrot.slane %v7615_v12, 4  ;;  %v7698_v54 = vshll.u32 %v10769_v35, 16  ;;  %v10777_v49 = vld [vmem:[%s12859_s6 + $0x44] sm:$0x1]  ;;  %v10778_v53 = vld [vmem:[%s12859_s6 + $0x48] sm:$0xf] }
 0x197   : > { %11524 = vmatmul.mubr.msk.bf16.gmra.mrb[24].mxu1 %vm411_vm0, %v10130_v19  ;;  %v7704_v28 = vshll.u32 %v10770_v59, 16  ;;  %v7687_v29 = vor.u32 %v7686_v50, %v7682_v52  ;;  %v7692_v6 = vrot.slane %v7690_v38, 5  ;;  %v7697_v7 = vrot.slane %v7695_v11, 4  ;;  %v10779_v22 = vld [vmem:[%s12859_s6 + $0x4c] sm:$0xf]  ;;  %v12571_v50 = vld [vmem:[%s13037_s13 + $0x18] sm:$0xff]  }
 0x198   : > { %11527 = vmatprep.mubr.msk.bf16.mxu1 %vm411_vm0, %v10131_v2  ;;  %v7678_v26 = vrot.slane %v7677_v47, 4  ;;  %11830 = vmatmul.mubr.msk.bf16.gmra.mrb[24].mxu0 %vm411_vm0, %v10829_v15  ;;  %v7621_v60 = vsel %vm12898_vm4, %v7616_v44, %v7620_v25  ;;  %v7700_v24 = vrot.slane %v7698_v54, 5  ;;  %v7708_v14 = vshrl.u32 %v10770_v59, 16  ;;  %v12572_v38 = vld [vmem:[%s13037_s13 + $0x24] sm:$0xff]  }
 0x199   : > { %v7706_v19 = vrot.slane %v7704_v28, 5  ;;  %11833 = vmatprep.mubr.msk.bf16.mxu0 %vm411_vm0, %v10830_v39  ;;  %v10831_v51 = vcombine.low %v7611_v5, %v7621_v60  ;;  %v7688_v2 = vrot.slane %v7687_v29, 4  ;;  %v7714_v30 = vshll.u32 %v10771_v56, 16 }
 0x19a   : > { %v7683_v42 = vsel %vm12898_vm4, %v7678_v26, %v7682_v52  ;;  %v7701_v37 = vor.u32 %v7700_v24, %v7697_v7  ;;  %v7710_v13 = vrot.slane %v7708_v14, 4  ;;  %v7719_v46 = vshrl.u32 %v10772_v36, 16  ;;  %v10782_v14 = vld [vmem:[%s12859_s6 + $0x58] sm:$0xf] }
 0x19b   : > { %v7722_v17 = vshll.u32 %v10772_v36, 16  ;;  %v7693_v31 = vsel %vm12898_vm4, %v7688_v2, %v7692_v6  ;;  %v7716_v15 = vrot.slane %v7714_v30, 5  ;;  %v7728_v58 = vshll.u32 %v10773_v3, 16  ;;  %v10781_v6 = vld [vmem:[%s12859_s6 + $0x54] sm:$0xf] }
 0x19c   : > { %v7732_v0 = vshrl.u32 %v10773_v3, 16  ;;  %v10851_v4 = vcombine.low %v7683_v42, %v7693_v31  ;;  %v7702_v55 = vrot.slane %v7701_v37, 4  ;;  %v7711_v48 = vor.u32 %v7710_v13, %v7706_v19  ;;  %v10780_v3 = vld [vmem:[%s12859_s6 + $0x50] sm:$0x1]  ;;  %v14693_v31 = vld [vmem:[%s15722_s3 + $0x40] sm:$0xff]  }
 0x19d   : > { %v7721_v21 = vrot.slane %v7719_v46, 4  ;;  %v7724_v35 = vrot.slane %v7722_v17, 5  ;;  %v7730_v32 = vrot.slane %v7728_v58, 5  ;;  %v7738_v41 = vshll.u32 %v10774_v16, 16  ;;  %v10783_v17 = vld [vmem:[%s12859_s6 + $0x5c] sm:$0x1] }
 0x19e   : > { %v7734_v40 = vrot.slane %v7732_v0, 4  ;;  %v7707_v27 = vsel %vm12898_vm4, %v7702_v55, %v7706_v19  ;;  %v7712_v59 = vrot.slane %v7711_v48, 4  ;;  %v7743_v8 = vshrl.u32 %v10775_v62, 16 }
 0x19f   : > { %11528 = vmatmul.mubr.msk.bf16.gmra.mrb[28].mxu1 %vm411_vm0, %v10132_v43  ;;  %v7746_v1 = vshll.u32 %v10775_v62, 16  ;;  %v7725_v25 = vor.u32 %v7724_v35, %v7721_v21  ;;  %v7740_v33 = vrot.slane %v7738_v41, 5  ;;  %v7752_v57 = vshll.u32 %v10776_v20, 16  ;;  %v10785_v41 = vld [vmem:[%s12859_s6 + $0x64] sm:$0xf] }
 0x1a0   : > { %11533 = vmatprep.mubr.msk.bf16.mxu1 %vm411_vm0, %v12570_v63  ;;  %v7735_v10 = vor.u32 %v7734_v40, %v7730_v32  ;;  %11834 = vmatmul.mubr.msk.bf16.gmra.mrb[28].mxu0 %vm411_vm0, %v10831_v51  ;;  %v7717_v61 = vsel %vm12898_vm4, %v7712_v59, %v7716_v15  ;;  %v7745_v18 = vrot.slane %v7743_v8, 4  ;;  %v7756_v39 = vshrl.u32 %v10776_v20, 16  ;;  %v14684_v51 = vld [vmem:[%s15721_s2 + $0x20] sm:$0xff]  }
 0x1a1   : > { %v7748_v43 = vrot.slane %v7746_v1, 5  ;;  %11839 = vmatprep.mubr.msk.bf16.mxu0 %vm411_vm0, %v10851_v4  ;;  %v10852_v12 = vcombine.low %v7707_v27, %v7717_v61  ;;  %v7726_v52 = vrot.slane %v7725_v25, 4  ;;  %v7754_v47 = vrot.slane %v7752_v57, 5  ;;  %v10784_v4 = vld [vmem:[%s12859_s6 + $0x60] sm:$0xf]  ;;  %v12573_v27 = vld [vmem:[%s13037_s13 + $0x30] sm:$0xff]  }
 0x1a2   : > { %v7736_v56 = vrot.slane %v7735_v10, 4  ;;  %v7758_v36 = vrot.slane %v7756_v39, 4  ;;  %v7762_v5 = vshll.u32 %v10777_v49, 16  ;;  %v7767_v44 = vshrl.u32 %v10778_v53, 16  ;;  %v12576_v10 = vld [vmem:[%s13037_s13 + $0x3c] sm:$0xff]  }
 0x1a3   : > { %v7749_v11 = vor.u32 %v7748_v43, %v7745_v18  ;;  %v7731_v54 = vsel %vm12898_vm4, %v7726_v52, %v7730_v32  ;;  %v7770_v26 = vshll.u32 %v10778_v53, 16  ;;  %v7776_v29 = vshll.u32 %v10779_v22, 16  ;;  %v10786_v57 = vld [vmem:[%s12859_s6 + $0x68] sm:$0x1] }
 0x1a4   : > { %v7741_v28 = vsel %vm12898_vm4, %v7736_v56, %v7740_v33  ;;  %v7759_v24 = vor.u32 %v7758_v36, %v7754_v47  ;;  %v7764_v19 = vrot.slane %v7762_v5, 5  ;;  %v7769_v42 = vrot.slane %v7767_v44, 4 }
 0x1a5   : > { %v10853_v7 = vcombine.low %v7731_v54, %v7741_v28  ;;  %v7750_v60 = vrot.slane %v7749_v11, 4  ;;  %v7772_v2 = vrot.slane %v7770_v26, 5  ;;  %v7778_v30 = vrot.slane %v7776_v29, 5 }
 0x1a6   : > { %v7780_v37 = vshrl.u32 %v10779_v22, 16  ;;  %v7760_v16 = vrot.slane %v7759_v24, 4  ;;  %v7786_v46 = vshll.u32 %v10780_v3, 16  ;;  %v7791_v63 = vshrl.u32 %v10781_v6, 16  ;;  %v10787_v22 = vld [vmem:[%s12859_s6 + $0x6c] sm:$0xf] }
 0x1a7   : > { %11534 = vmatmul.mubr.msk.bf16.vlgmr.msra.gmra.mrb[0].mxu1 %vm411_vm0, %v12571_v50  ;;  %v7755_v13 = vsel %vm12898_vm4, %v7750_v60, %v7754_v47  ;;  %v7773_v15 = vor.u32 %v7772_v2, %v7769_v42  ;;  %v7794_v0 = vshll.u32 %v10781_v6, 16  ;;  %v7800_v62 = vshll.u32 %v10782_v14, 16  ;;  %v10788_v50 = vld [vmem:[%s12859_s6 + $0x70] sm:$0xf]  ;;  %v10789_v3 = vld [vmem:[%s12859_s6 + $0x74] sm:$0x1] }
 0x1a8   : > { %11537 = vmatprep.mubr.msk.bf16.mxu1 %vm411_vm0, %v12572_v38  ;;  %11566 = vmatpush3.bf16.msra.mxu1 %v14404_v9  ;;  %v7782_v58 = vrot.slane %v7780_v37, 4  ;;  %v7765_v55 = vsel %vm12898_vm4, %v7760_v16, %v7764_v19  ;;  %v7788_v48 = vrot.slane %v7786_v46, 5  ;;  %v7793_v21 = vrot.slane %v7791_v63, 4  ;;  %v10790_v24 = vld [vmem:[%s12859_s6 + $0x78] sm:$0xf]  ;;  %v12577_v37 = vld [vmem:[%s13037_s13 + $0x48] sm:$0xff]  }
 0x1a9   : > { %11840 = vmatmul.mubr.msk.bf16.vlgmr.msra.gmra.mrb[0].mxu0 %vm411_vm0, %v10852_v12  ;;  %v7804_v20 = vshrl.u32 %v10782_v14, 16  ;;  %11599 = vmatprep.subr.bf16.mxu1 %v14684_v51  ;;  %v10854_v9 = vcombine.low %v7755_v13, %v7765_v55  ;;  %v7774_v35 = vrot.slane %v7773_v15, 4  ;;  %v7796_v40 = vrot.slane %v7794_v0, 5  ;;  %v12578_v63 = vld [vmem:[%s13037_s13 + $0x54] sm:$0xff]   ;;  %v10792_v0 = vld [vmem:[%s12859_s6 + $0x80] sm:$0x1] }
 0x1aa   : > { %11872 = vmatpush3.bf16.msra.mxu0 %v14418_v45  ;;  %11843 = vmatprep.mubr.msk.bf16.mxu0 %vm411_vm0, %v10853_v7  ;;  %v7783_v32 = vor.u32 %v7782_v58, %v7778_v30  ;;  %v7802_v59 = vrot.slane %v7800_v62, 5  ;;  %v7810_v1 = vshll.u32 %v10783_v17, 16  ;;  %v7815_v25 = vshrl.u32 %v10784_v4, 16 }
 0x1ab   : > { %v7806_v8 = vrot.slane %v7804_v20, 4  ;;  %11905 = vmatprep.subr.bf16.mxu0 %v14693_v31  ;;  %v7779_v45 = vsel %vm12898_vm4, %v7774_v35, %v7778_v30  ;;  %v7797_v49 = vor.u32 %v7796_v40, %v7793_v21  ;;  %v7818_v53 = vshll.u32 %v10784_v4, 16  ;;  %v10791_v30 = vld [vmem:[%s12859_s6 + $0x7c] sm:$0xf] }
 0x1ac   : > { %v7784_v33 = vrot.slane %v7783_v32, 4  ;;  %v7812_v18 = vrot.slane %v7810_v1, 5  ;;  %v7817_v43 = vrot.slane %v7815_v25, 4  ;;  %v7824_v39 = vshll.u32 %v10785_v41, 16 }
 0x1ad   : > { %v7807_v61 = vor.u32 %v7806_v8, %v7802_v59  ;;  %v7798_v52 = vrot.slane %v7797_v49, 4  ;;  %v7820_v56 = vrot.slane %v7818_v53, 5  ;;  %v7828_v47 = vshrl.u32 %v10785_v41, 16 }
 0x1ae   : > { %v7789_v12 = vsel %vm12898_vm4, %v7784_v33, %v7788_v48  ;;  %v7826_v36 = vrot.slane %v7824_v39, 5  ;;  %v7834_v5 = vshll.u32 %v10786_v57, 16  ;;  %v7839_v26 = vshrl.u32 %v10787_v22, 16 }
 0x1af   : > { %11538 = vmatmul.mubr.msk.bf16.gmra.mrb[4].mxu1 %vm411_vm0, %v12573_v27  ;;  %v10855_v38 = vcombine.low %v7779_v45, %v7789_v12  ;;  %v7808_v11 = vrot.slane %v7807_v61, 4  ;;  %v7803_v44 = vsel %vm12898_vm4, %v7798_v52, %v7802_v59  ;;  %v7821_v54 = vor.u32 %v7820_v56, %v7817_v43  ;;  %v10794_v27 = vld [vmem:[%s12859_s6 + $0x88] sm:$0xf]  ;;  %v10795_v61 = vld [vmem:[%s12859_s6 + $0x8c] sm:$0x1] }
 0x1b0   : > { %11541 = vmatprep.mubr.msk.bf16.mxu1 %vm411_vm0, %v12576_v10  ;;  %v7830_v28 = vrot.slane %v7828_v47, 4  ;;  %v7836_v6 = vrot.slane %v7834_v5, 5  ;;  %v7842_v7 = vshll.u32 %v10787_v22, 16  ;;  %v7848_v60 = vshll.u32 %v10788_v50, 16  ;;  %v10796_v56 = vld [vmem:[%s12859_s6 + $0x90] sm:$0xf] }
 0x1b1   : > { %11844 = vmatmul.mubr.msk.bf16.gmra.mrb[4].mxu0 %vm411_vm0, %v10854_v9  ;;  %v7813_v29 = vsel %vm12898_vm4, %v7808_v11, %v7812_v18  ;;  %v7822_v14 = vrot.slane %v7821_v54, 4  ;;  %v7841_v2 = vrot.slane %v7839_v26, 4  ;;  %v7852_v46 = vshrl.u32 %v10788_v50, 16  ;;  %v10793_v9 = vld [vmem:[%s12859_s6 + $0x84] sm:$0xf] }
 0x1b2   : > { %11847 = vmatprep.mubr.msk.bf16.mxu0 %vm411_vm0, %v10855_v38  ;;  %v10856_v19 = vcombine.low %v7803_v44, %v7813_v29  ;;  %v7831_v42 = vor.u32 %v7830_v28, %v7826_v36  ;;  %v7844_v13 = vrot.slane %v7842_v7, 5  ;;  %v7850_v16 = vrot.slane %v7848_v60, 5  ;;  %v12579_v47 = vld [vmem:[%s13037_s13 + $0x60] sm:$0xff]   ;;  %v10797_v5 = vld [vmem:[%s12859_s6 + $0x94] sm:$0xf]  ;;  %v12580_v44 = vld [vmem:[%s13037_s13 + $0x6c] sm:$0xff]  }
 0x1b3   : > { %v7858_v17 = vshll.u32 %v10789_v3, 16  ;;  %v7827_v15 = vsel %vm12898_vm4, %v7822_v14, %v7826_v36  ;;  %v7863_v62 = vshrl.u32 %v10790_v24, 16  ;;  %v7866_v4 = vshll.u32 %v10790_v24, 16  ;;  %v10798_v7 = vld [vmem:[%s12859_s6 + $0x98] sm:$0x1] }
 0x1b4   : > { %v7832_v58 = vrot.slane %v7831_v42, 4  ;;  %v7845_v55 = vor.u32 %v7844_v13, %v7841_v2  ;;  %v7854_v48 = vrot.slane %v7852_v46, 4  ;;  %v7872_v20 = vshll.u32 %v10791_v30, 16 }
 0x1b5   : > { %v7860_v21 = vrot.slane %v7858_v17, 5  ;;  %v7865_v32 = vrot.slane %v7863_v62, 4  ;;  %v7868_v40 = vrot.slane %v7866_v4, 5  ;;  %v7876_v41 = vshrl.u32 %v10791_v30, 16  ;;  %v10799_v30 = vld [vmem:[%s12859_s6 + $0x9c] sm:$0xf] }
 0x1b6   : > { %v7837_v35 = vsel %vm12898_vm4, %v7832_v58, %v7836_v6  ;;  %v7846_v8 = vrot.slane %v7845_v55, 4  ;;  %v7855_v1 = vor.u32 %v7854_v48, %v7850_v16  ;;  %v7874_v25 = vrot.slane %v7872_v20, 5  ;;  %v10800_v17 = vld [vmem:[%s12859_s6 + $0xa0] sm:$0xf] }
 0x1b7   : > { %11542 = vmatmul.mubr.msk.bf16.gmra.mrb[8].mxu1 %vm411_vm0, %v12577_v37  ;;  %v10857_v59 = vcombine.low %v7827_v15, %v7837_v35  ;;  %v7869_v10 = vor.u32 %v7868_v40, %v7865_v32  ;;  %v7878_v45 = vrot.slane %v7876_v41, 4  ;;  %v7882_v33 = vshll.u32 %v10792_v0, 16  ;;  %v10801_v35 = vld [vmem:[%s12859_s6 + $0xa4] sm:$0x1]  ;;  %v10802_v40 = vld [vmem:[%s12859_s6 + $0xa8] sm:$0xf] }
 0x1b8   : > { %11545 = vmatprep.mubr.msk.bf16.mxu1 %vm411_vm0, %v12578_v63  ;;  %v7887_v49 = vshrl.u32 %v10793_v9, 16  ;;  %v7851_v57 = vsel %vm12898_vm4, %v7846_v8, %v7850_v16  ;;  %v7856_v53 = vrot.slane %v7855_v1, 4  ;;  %v7890_v18 = vshll.u32 %v10793_v9, 16  ;;  %v12581_v41 = vld [vmem:[%s13037_s13 + $0x78] sm:$0xff]  }
 0x1b9   : > { %11848 = vmatmul.mubr.msk.bf16.gmra.mrb[8].mxu0 %vm411_vm0, %v10856_v19  ;;  %v7896_v43 = vshll.u32 %v10794_v27, 16  ;;  %v7870_v39 = vrot.slane %v7869_v10, 4  ;;  %v7879_v22 = vor.u32 %v7878_v45, %v7874_v25  ;;  %v7884_v12 = vrot.slane %v7882_v33, 5  ;;  %v12582_v10 = vld [vmem:[%s13037_s13 + $0x84] sm:$0xff]  }
 0x1ba   : > { %11851 = vmatprep.mubr.msk.bf16.mxu0 %vm411_vm0, %v10857_v59  ;;  %v7889_v52 = vrot.slane %v7887_v49, 4  ;;  %v7861_v50 = vsel %vm12898_vm4, %v7856_v53, %v7860_v21  ;;  %v7892_v38 = vrot.slane %v7890_v18, 5  ;;  %v7900_v36 = vshrl.u32 %v10794_v27, 16 }
 0x1bb   : > { %v7898_v11 = vrot.slane %v7896_v43, 5  ;;  %v10858_v54 = vcombine.low %v7851_v57, %v7861_v50  ;;  %v7875_v28 = vsel %vm12898_vm4, %v7870_v39, %v7874_v25  ;;  %v7880_v3 = vrot.slane %v7879_v22, 4  ;;  %v10803_v25 = vld [vmem:[%s12859_s6 + $0xac] sm:$0xf] }
 0x1bc   : > { %v7906_v26 = vshll.u32 %v10795_v61, 16  ;;  %v7893_v29 = vor.u32 %v7892_v38, %v7889_v52  ;;  %v7902_v6 = vrot.slane %v7900_v36, 4  ;;  %v7911_v60 = vshrl.u32 %v10796_v56, 16 }
 0x1bd   : > { %v7914_v24 = vshll.u32 %v10796_v56, 16  ;;  %v7885_v19 = vsel %vm12898_vm4, %v7880_v3, %v7884_v12  ;;  %v7920_v42 = vshll.u32 %v10797_v5, 16  ;;  %v7924_v2 = vshrl.u32 %v10797_v5, 16  ;;  %v10804_v12 = vld [vmem:[%s12859_s6 + $0xb0] sm:$0x1] }
 0x1be   : > { %v7908_v14 = vrot.slane %v7906_v26, 5  ;;  %v10859_v37 = vcombine.low %v7875_v28, %v7885_v19  ;;  %v7894_v13 = vrot.slane %v7893_v29, 4  ;;  %v7903_v16 = vor.u32 %v7902_v6, %v7898_v11  ;;  %v10806_v5 = vld [vmem:[%s12859_s6 + $0xb8] sm:$0xf] }
 0x1bf   : > { %11546 = vmatmul.mubr.msk.bf16.gmra.mrb[12].mxu1 %vm411_vm0, %v12579_v47  ;;  %v7913_v46 = vrot.slane %v7911_v60, 4  ;;  %v7916_v63 = vrot.slane %v7914_v24, 5  ;;  %v7922_v15 = vrot.slane %v7920_v42, 5  ;;  %v7926_v58 = vrot.slane %v7924_v2, 4  ;;  %v10805_v47 = vld [vmem:[%s12859_s6 + $0xb4] sm:$0xf] }
 0x1c0   : > { %11549 = vmatprep.mubr.msk.bf16.mxu1 %vm411_vm0, %v12580_v44  ;;  %v7930_v0 = vshll.u32 %v10798_v7, 16  ;;  %v7899_v62 = vsel %vm12898_vm4, %v7894_v13, %v7898_v11  ;;  %v7904_v4 = vrot.slane %v7903_v16, 4  ;;  %v7935_v55 = vshrl.u32 %v10799_v30, 16  ;;  %v10807_v7 = vld [vmem:[%s12859_s6 + $0xbc] sm:$0x1] }
 0x1c1   : > { %11852 = vmatmul.mubr.msk.bf16.gmra.mrb[12].mxu0 %vm411_vm0, %v10858_v54  ;;  %v7938_v48 = vshll.u32 %v10799_v30, 16  ;;  %v7917_v21 = vor.u32 %v7916_v63, %v7913_v46  ;;  %v7927_v20 = vor.u32 %v7926_v58, %v7922_v15  ;;  %v7944_v32 = vshll.u32 %v10800_v17, 16  ;;  %v10808_v2 = vld [vmem:[%s12859_s6 + $0xc0] sm:$0xf]  ;;  %v12583_v30 = vld [vmem:[%s13037_s13 + $0x90] sm:$0xff]  }
 0x1c2   : > { %11855 = vmatprep.mubr.msk.bf16.mxu0 %vm411_vm0, %v10859_v37  ;;  %v7932_v9 = vrot.slane %v7930_v0, 5  ;;  %v7909_v27 = vsel %vm12898_vm4, %v7904_v4, %v7908_v14  ;;  %v7937_v59 = vrot.slane %v7935_v55, 4  ;;  %v7948_v1 = vshrl.u32 %v10800_v17, 16  ;;  %v12584_v17 = vld [vmem:[%s13037_s13 + $0x9c] sm:$0xff]  }
 0x1c3   : > { %v7940_v8 = vrot.slane %v7938_v48, 5  ;;  %v10860_v45 = vcombine.low %v7899_v62, %v7909_v27  ;;  %v7918_v33 = vrot.slane %v7917_v21, 4  ;;  %v7928_v49 = vrot.slane %v7927_v20, 4  ;;  %v10809_v62 = vld [vmem:[%s12859_s6 + $0xc4] sm:$0xf] }
 0x1c4   : > { %v7946_v57 = vrot.slane %v7944_v32, 5  ;;  %v7950_v61 = vrot.slane %v7948_v1, 4  ;;  %v7954_v18 = vshll.u32 %v10801_v35, 16  ;;  %v7959_v43 = vshrl.u32 %v10802_v40, 16  ;;  %v10810_v32 = vld [vmem:[%s12859_s6 + $0xc8] sm:$0x1] }
 0x1c5   : > { %v7941_v53 = vor.u32 %v7940_v8, %v7937_v59  ;;  %v7923_v39 = vsel %vm12898_vm4, %v7918_v33, %v7922_v15  ;;  %v7933_v22 = vsel %vm12898_vm4, %v7928_v49, %v7932_v9  ;;  %v7962_v52 = vshll.u32 %v10802_v40, 16  ;;  %v10811_v1 = vld [vmem:[%s12859_s6 + $0xcc] sm:$0xf]  ;;  %v10812_v49 = vld [vmem:[%s12859_s6 + $0xd0] sm:$0xf] }
 0x1c6   : > { %v7968_v56 = vshll.u32 %v10803_v25, 16  ;;  %v10861_v50 = vcombine.low %v7923_v39, %v7933_v22  ;;  %v7951_v11 = vor.u32 %v7950_v61, %v7946_v57  ;;  %v7956_v36 = vrot.slane %v7954_v18, 5 }
 0x1c7   : > { %11550 = vmatmul.mubr.msk.bf16.gmra.mrb[16].mxu1 %vm411_vm0, %v12581_v41  ;;  %v7942_v38 = vrot.slane %v7941_v53, 4  ;;  %v7961_v44 = vrot.slane %v7959_v43, 4  ;;  %v7964_v54 = vrot.slane %v7962_v52, 5  ;;  %v7972_v3 = vshrl.u32 %v10803_v25, 16 }
 0x1c8   : > { %11553 = vmatprep.mubr.msk.bf16.mxu1 %vm411_vm0, %v12582_v10  ;;  %v7970_v28 = vrot.slane %v7968_v56, 5  ;;  %v7952_v29 = vrot.slane %v7951_v11, 4  ;;  %v7978_v6 = vshll.u32 %v10804_v12, 16  ;;  %v7983_v60 = vshrl.u32 %v10805_v47, 16  ;;  %v10813_v12 = vld [vmem:[%s12859_s6 + $0xd4] sm:$0x1] }
 0x1c9   : > { %11856 = vmatmul.mubr.msk.bf16.gmra.mrb[16].mxu0 %vm411_vm0, %v10860_v45  ;;  %v7947_v26 = vsel %vm12898_vm4, %v7942_v38, %v7946_v57  ;;  %v7965_v24 = vor.u32 %v7964_v54, %v7961_v44  ;;  %v7974_v19 = vrot.slane %v7972_v3, 4  ;;  %v7986_v14 = vshll.u32 %v10805_v47, 16  ;;  %v12585_v56 = vld [vmem:[%s13037_s13 + $0xa8] sm:$0xff]  }
 0x1ca   : > { %11859 = vmatprep.mubr.msk.bf16.mxu0 %vm411_vm0, %v10861_v50  ;;  %v7992_v42 = vshll.u32 %v10806_v5, 16  ;;  %v7957_v37 = vsel %vm12898_vm4, %v7952_v29, %v7956_v36  ;;  %v7980_v13 = vrot.slane %v7978_v6, 5  ;;  %v7985_v16 = vrot.slane %v7983_v60, 4  ;;  %v10884_v36 = vld [vmem:[%s13037_s13 + $0x18] sm:$0xe] }
 0x1cb   : > { %v7996_v46 = vshrl.u32 %v10806_v5, 16  ;;  %v10862_v63 = vcombine.low %v7947_v26, %v7957_v37  ;;  %v7966_v15 = vrot.slane %v7965_v24, 4  ;;  %v7975_v58 = vor.u32 %v7974_v19, %v7970_v28  ;;  %v12586_v5 = vld [vmem:[%s13037_s13 + $0xb4] sm:$0xff]   ;;  %v12696_v37 = vld [vmem:[%s13037_s13 + $0x20] sm:$0x1] }
 0x1cc   : > { %v7988_v0 = vrot.slane %v7986_v14, 5  ;;  %v7994_v4 = vrot.slane %v7992_v42, 5  ;;  %v8002_v48 = vshll.u32 %v10807_v7, 16  ;;  %v8007_v21 = vshrl.u32 %v10808_v2, 16  ;;  %v12695_v14 = vld [vmem:[%s13037_s13 + $0x1c] sm:$0xf] }
 0x1cd   : > { %v7998_v55 = vrot.slane %v7996_v46, 4  ;;  %v7971_v20 = vsel %vm12898_vm4, %v7966_v15, %v7970_v28  ;;  %v7976_v9 = vrot.slane %v7975_v58, 4  ;;  %v8010_v40 = vshll.u32 %v10808_v2, 16 }
 0x1ce   : > { %v7989_v35 = vor.u32 %v7988_v0, %v7985_v16  ;;  %v8004_v27 = vrot.slane %v8002_v48, 5  ;;  %v8009_v59 = vrot.slane %v8007_v21, 4  ;;  %v8016_v8 = vshll.u32 %v10809_v62, 16  ;;  %v10885_v16 = vld [vmem:[%s13037_s13 + $0x24] sm:$0xe] }
 0x1cf   : > { %11554 = vmatmul.mubr.msk.bf16.gmra.mrb[20].mxu1 %vm411_vm0, %v12583_v30  ;;  %v7999_v41 = vor.u32 %v7998_v55, %v7994_v4  ;;  %v7981_v25 = vsel %vm12898_vm4, %v7976_v9, %v7980_v13  ;;  %v8012_v45 = vrot.slane %v8010_v40, 5  ;;  %v8020_v33 = vshrl.u32 %v10809_v62, 16  ;;  %v12697_v62 = vld [vmem:[%s13037_s13 + $0x28] sm:$0xf]  ;;  %v10886_v55 = vld [vmem:[%s13037_s13 + $0x30] sm:$0xe] }
 0x1d0   : > { %11557 = vmatprep.mubr.msk.bf16.mxu1 %vm411_vm0, %v12584_v17  ;;  %v7990_v10 = vrot.slane %v7989_v35, 4  ;;  %v10863_v57 = vcombine.low %v7971_v20, %v7981_v25  ;;  %v8018_v61 = vrot.slane %v8016_v8, 5  ;;  %v8026_v18 = vshll.u32 %v10810_v32, 16  ;;  %v12698_v20 = vld [vmem:[%s13037_s13 + $0x34] sm:$0xf]  ;;  %v12587_v35 = vld [vmem:[%s13037_s13 + $0xc0] sm:$0xff]  }
 0x1d1   : > { %11860 = vmatmul.mubr.msk.bf16.gmra.mrb[20].mxu0 %vm411_vm0, %v10862_v63  ;;  %v8000_v53 = vrot.slane %v7999_v41, 4  ;;  %v8013_v39 = vor.u32 %v8012_v45, %v8009_v59  ;;  %v8022_v22 = vrot.slane %v8020_v33, 4  ;;  %v8031_v52 = vshrl.u32 %v10811_v1, 16  ;;  %v10887_v8 = vld [vmem:[%s13037_s13 + $0x3c] sm:$0xe] }
 0x1d2   : > { %v7995_v43 = vsel %vm12898_vm4, %v7990_v10, %v7994_v4  ;;  %11863 = vmatprep.mubr.msk.bf16.mxu0 %vm411_vm0, %v10863_v57  ;;  %v8028_v50 = vrot.slane %v8026_v18, 5  ;;  %v8034_v38 = vshll.u32 %v10811_v1, 16  ;;  %v8040_v11 = vshll.u32 %v10812_v49, 16  ;;  %v12588_v1 = vld [vmem:[%s12859_s6 + $0xc] sm:$0xff]   ;;  %v12700_v33 = vld [vmem:[%s13037_s13 + $0x38] sm:$0x1] }
 0x1d3   : > { %v8005_v47 = vsel %vm12898_vm4, %v8000_v53, %v8004_v27  ;;  %v8014_v54 = vrot.slane %v8013_v39, 4  ;;  %v8023_v28 = vor.u32 %v8022_v22, %v8018_v61  ;;  %v8033_v3 = vrot.slane %v8031_v52, 4  ;;  %v12699_v27 = vld [vmem:[%s13037_s13 + $0x2c] sm:$0x1]  ;;  %v12701_v53 = vld [vmem:[%s13037_s13 + $0x40] sm:$0xf] }
 0x1d4   : > { %v10864_v44 = vcombine.low %v7995_v43, %v8005_v47  ;;  %v8036_v26 = vrot.slane %v8034_v38, 5  ;;  %v8042_v29 = vrot.slane %v8040_v11, 5  ;;  %v8044_v6 = vshrl.u32 %v10812_v49, 16  ;;  %v12702_v22 = vld [vmem:[%s13037_s13 + $0x44] sm:$0x1] }
 0x1d5   : > { %v8050_v7 = vshll.u32 %v10813_v12, 16  ;;  %v8019_v60 = vsel %vm12898_vm4, %v8014_v54, %v8018_v61  ;;  %v8024_v24 = vrot.slane %v8023_v28, 4  ;;  %v10900_v19 = vrot.slane %v10884_v36, 9  ;;  %v10888_v52 = vld [vmem:[%s13037_s13 + $0x48] sm:$0xe] }
 0x1d6   : > { %v8716_v42 = vrot.slane %v12695_v14, 5  ;;  %v8037_v2 = vor.u32 %v8036_v26, %v8033_v3  ;;  %v8046_v30 = vrot.slane %v8044_v6, 4  ;;  %v8719_v13 = vrot.slane %v12696_v37, 5  ;;  %v12703_v36 = vld [vmem:[%s13037_s13 + $0x4c] sm:$0xf]  ;;  %v12589_v14 = vld [vmem:[%s12859_s6 + $0x18] sm:$0xff]  }
 0x1d7   : > { %11558 = vmatmul.mubr.msk.bf16.gmra.mrb[24].mxu1 %vm411_vm0, %v12585_v56  ;;  %v8029_v46 = vsel %vm12898_vm4, %v8024_v24, %v8028_v50  ;;  %v8052_v17 = vrot.slane %v8050_v7, 5  ;;  %v8723_v4 = vrot.slane %v12697_v62, 5  ;;  %v10901_v21 = vrot.slane %v10885_v16, 9  ;;  %v12704_v54 = vld [vmem:[%s13037_s13 + $0x58] sm:$0xf] }
 0x1d8   : > { %11561 = vmatprep.mubr.msk.bf16.mxu1 %vm411_vm0, %v12586_v5  ;;  %v8718_v63 = vrot.slane %v8716_v42, 4  ;;  %v10865_v15 = vcombine.low %v8019_v60, %v8029_v46  ;;  %v8038_v58 = vrot.slane %v8037_v2, 4  ;;  %v8047_v0 = vor.u32 %v8046_v30, %v8042_v29  ;;  %v10890_v26 = vld [vmem:[%s13037_s13 + $0x60] sm:$0xe]  ;;  %v12706_v2 = vld [vmem:[%s13037_s13 + $0x50] sm:$0x1] }
 0x1d9   : > { %11864 = vmatmul.mubr.msk.bf16.gmra.mrb[24].mxu0 %vm411_vm0, %v10864_v44  ;;  %v8717_v48 = vsel %vm12940_vm6, %v10900_v19, %v8716_v42  ;;  %v8730_v9 = vrot.slane %v12698_v20, 5  ;;  %v8726_v59 = vrot.slane %v12699_v27, 5  ;;  %v8725_v25 = vrot.slane %v8723_v4, 4  ;;  %v10889_v44 = vld [vmem:[%s13037_s13 + $0x54] sm:$0xe] }
 0x1da   : > { %11867 = vmatprep.mubr.msk.bf16.mxu0 %vm411_vm0, %v10865_v15  ;;  %v8043_v32 = vsel %vm12898_vm4, %v8038_v58, %v8042_v29  ;;  %v8048_v40 = vrot.slane %v8047_v0, 4  ;;  %v8720_v41 = vsel %vm12940_vm6, %v8718_v63, %v8719_v13  ;;  %v10902_v10 = vrot.slane %v10886_v55, 9  ;;  %v12705_v29 = vld [vmem:[%s13037_s13 + $0x64] sm:$0xf]  ;;  %v10891_v19 = vld [vmem:[%s13037_s13 + $0x6c] sm:$0xe] }
 0x1db   : > { %v8732_v45 = vrot.slane %v8730_v9, 4  ;;  %v8733_v49 = vrot.slane %v12700_v33, 5  ;;  %v8737_v61 = vrot.slane %v12701_v53, 5  ;;  %v10950_v43 = vcombine.low %v8717_v48, %v8720_v41  ;;  %v12707_v13 = vld [vmem:[%s13037_s13 + $0x5c] sm:$0x1] }
 0x1dc   : > { %v8053_v57 = vsel %vm12898_vm4, %v8048_v40, %v8052_v17  ;;  %v10903_v39 = vrot.slane %v10887_v8, 9  ;;  %v8740_v12 = vrot.slane %v12702_v22, 5  ;;  %v14840_v56 = vsel %vm12940_vm6, %v10901_v21, %v8723_v4  ;;  %v10892_v46 = vld [vmem:[%s13037_s13 + $0x78] sm:$0xe]  ;;  %v12590_v17 = vld [vmem:[%s12859_s6 + $0x24] sm:$0xff]  }
 0x1dd   : > { %v10866_v18 = vcombine.low %v8043_v32, %v8053_v57  ;;  %v8727_v47 = vsel %vm12940_vm6, %v8725_v25, %v8726_v59  ;;  %v8739_v50 = vrot.slane %v8737_v61, 4  ;;  %v14847_v38 = vsel %vm12940_vm6, %v10902_v10, %v8730_v9  ;;  %v12708_v0 = vld [vmem:[%s13037_s13 + $0x70] sm:$0xf]  ;;  %v12709_v21 = vld [vmem:[%s13037_s13 + $0x68] sm:$0x1] }
 0x1de   : > { %v14851_v11 = vsel %vm12940_vm6, %v8732_v45, %v8733_v49  ;;  %v8744_v5 = vrot.slane %v12703_v36, 5  ;;  %v8751_v28 = vrot.slane %v12704_v54, 5  ;;  %v10904_v3 = vrot.slane %v10888_v52, 9  ;;  %v10893_v9 = vld [vmem:[%s13037_s13 + $0x84] sm:$0xe] }
 0x1df   : > { %11562 = vmatmul.mubr.msk.bf16.gmra.mrb[28].mxu1 %vm411_vm0, %v12587_v35  ;;  %v8758_v6 = vrot.slane %v12705_v29, 5  ;;  %v10951_v7 = vcombine.low %v14840_v56, %v8727_v47  ;;  %v14863_v60 = vsel %vm12940_vm6, %v10903_v39, %v8737_v61  ;;  %v14867_v24 = vsel %vm12940_vm6, %v8739_v50, %v8740_v12  ;;  %v12710_v40 = vld [vmem:[%s13037_s13 + $0x74] sm:$0x1]  ;;  %v10894_v59 = vld [vmem:[%s13037_s13 + $0x90] sm:$0xe] }
 0x1e0   : > { %11567 = vmatprep.mubr.msk.bf16.mxu1 %vm411_vm0, %v12588_v1  ;;  %v10952_v42 = vcombine.low %v14847_v38, %v14851_v11  ;;  %v8747_v30 = vrot.slane %v12706_v2, 5  ;;  %v10905_v37 = vrot.slane %v10889_v44, 9  ;;  %v8754_v16 = vrot.slane %v12707_v13, 5  ;;  %v12711_v1 = vld [vmem:[%s13037_s13 + $0x7c] sm:$0xf] }
 0x1e1   : > { %11868 = vmatmul.mubr.msk.bf16.gmra.mrb[28].mxu0 %vm411_vm0, %v10866_v18  ;;  %v8746_v63 = vrot.slane %v8744_v5, 4  ;;  %v8753_v15 = vrot.slane %v8751_v28, 4  ;;  %v10906_v58 = vrot.slane %v10890_v26, 9  ;;  %v8765_v62 = vrot.slane %v12708_v0, 5  ;;  %v12712_v10 = vld [vmem:[%s13037_s13 + $0x80] sm:$0x1] }
 0x1e2   : > { %11873 = vmatprep.mubr.msk.bf16.mxu0 %vm411_vm0, %v10950_v43  ;;  %v10953_v4 = vcombine.low %v14863_v60, %v14867_v24  ;;  %v14882_v55 = vsel %vm12940_vm6, %v10904_v3, %v8744_v5  ;;  %v8760_v48 = vrot.slane %v8758_v6, 4  ;;  %v8761_v20 = vrot.slane %v12709_v21, 5  ;;  %v12713_v33 = vld [vmem:[%s13037_s13 + $0x88] sm:$0xf]  ;;  %v12714_v18 = vld [vmem:[%s13037_s13 + $0x94] sm:$0xf] }
 0x1e3   : > { %v10907_v35 = vrot.slane %v10891_v19, 9  ;;  %v8767_v32 = vrot.slane %v8765_v62, 4  ;;  %v8768_v41 = vrot.slane %v12710_v40, 5  ;;  %v10908_v27 = vrot.slane %v10892_v46, 9  ;;  %v12715_v50 = vld [vmem:[%s13037_s13 + $0x8c] sm:$0x1] }
 0x1e4   : > { %v14891_v8 = vsel %vm12940_vm6, %v10905_v37, %v8751_v28  ;;  %v8772_v25 = vrot.slane %v12711_v1, 5  ;;  %v8775_v45 = vrot.slane %v12712_v10, 5  ;;  %v8779_v49 = vrot.slane %v12713_v33, 5  ;;  %v10895_v11 = vld [vmem:[%s13037_s13 + $0x9c] sm:$0xe] }
 0x1e5   : > { %v14900_v57 = vsel %vm12940_vm6, %v8746_v63, %v8747_v30  ;;  %v14904_v53 = vsel %vm12940_vm6, %v8753_v15, %v8754_v16  ;;  %v14908_v61 = vsel %vm12940_vm6, %v10906_v58, %v8758_v6  ;;  %v8786_v43 = vrot.slane %v12714_v18, 5  ;;  %v12716_v54 = vld [vmem:[%s13037_s13 + $0x98] sm:$0x1]  ;;  %v12594_v3 = vld [vmem:[%s12859_s6 + $0x3c] sm:$0xff]   ;;  %v10896_v13 = vld [vmem:[%s13037_s13 + $0xa8] sm:$0xe] }
 0x1e6   : > { %v8774_v39 = vrot.slane %v8772_v25, 4  ;;  %v10909_v22 = vrot.slane %v10893_v9, 9  ;;  %v10910_v12 = vrot.slane %v10894_v59, 9  ;;  %v14920_v52 = vsel %vm12940_vm6, %v10907_v35, %v8765_v62  ;;  %v10897_v16 = vld [vmem:[%s13037_s13 + $0xb4] sm:$0xe] }
 0x1e7   : > { %11568 = vmatmul.mubr.msk.bf16.vlgmr.msra.gmra.mrb[0].mxu1 %vm411_vm0, %v12589_v14  ;;  %v14924_v56 = vsel %vm12940_vm6, %v8767_v32, %v8768_v41  ;;  %v14928_v47 = vsel %vm12940_vm6, %v10908_v27, %v8772_v25  ;;  %v8782_v38 = vrot.slane %v12715_v50, 5  ;;  %v8781_v5 = vrot.slane %v8779_v49, 4  ;;  %v10284_v14 = vld [vmem:[%s13037_s13 + $0xc] sm:$0xf]  ;;  %v12720_v0 = vld [vmem:[%s13037_s13 + $0xb8] sm:$0xf] }
 0x1e8   : > { %11571 = vmatprep.mubr.msk.bf16.mxu1 %vm411_vm0, %v12590_v17  ;;  %11600 = vmatpush3.bf16.msra.mxu1 %v14684_v51  ;;  %v14914_v51 = vsel %vm12940_vm6, %v8760_v48, %v8761_v20  ;;  %v14935_v36 = vsel %vm12940_vm6, %v8774_v39, %v8775_v45  ;;  %v8788_v44 = vrot.slane %v8786_v43, 4  ;;  %v8789_v28 = vrot.slane %v12716_v54, 5  ;;  %v12718_v17 = vld [vmem:[%s13037_s13 + $0xa4] sm:$0x1]  ;;  %v12719_v15 = vld [vmem:[%s13037_s13 + $0xac] sm:$0xf] }
 0x1e9   : > { %11874 = vmatmul.mubr.msk.bf16.vlgmr.msra.gmra.mrb[0].mxu0 %vm411_vm0, %v10951_v7  ;;  %v10954_v26 = vcombine.low %v14882_v55, %v14900_v57  ;;  %v10955_v29 = vcombine.low %v14891_v8, %v14904_v53  ;;  %v10956_v6 = vcombine.low %v14908_v61, %v14914_v51  ;;  %v12717_v7 = vld [vmem:[%s13037_s13 + $0xa0] sm:$0xf]  ;;  %v14951_v2 = vsel %vm12940_vm6, %v10909_v22, %v8779_v49  ;;  %v10287_v9 = vld [vmem:[%s13037_s13 + $0x18] sm:$0xf]  ;;  %v12721_v40 = vld [vmem:[%s13037_s13 + $0xb0] sm:$0x1] }
 0x1ea   : > { %11906 = vmatpush3.bf16.msra.mxu0 %v14693_v31  ;;  %11877 = vmatprep.mubr.msk.bf16.mxu0 %vm411_vm0, %v10952_v42  ;;  %v12591_v31 = vld [vmem:[%s12859_s6 + $0x30] sm:$0xff]   ;;  %v8793_v19 = vrot.slane %v12717_v7, 5  ;;  %v10957_v42 = vcombine.low %v14920_v52, %v14924_v56  ;;  %v14955_v30 = vsel %vm12940_vm6, %v10910_v12, %v8786_v43  ;;  %v10911_v37 = vrot.slane %v10895_v11, 9  ;;  %v12723_v49 = vld [vmem:[%s13037_s13 + $0xbc] sm:$0x1]  ;;  %v12595_v39 = vld [vmem:[%s12859_s6 + $0x48] sm:$0xff]  }
 0x1eb   : > { %v10958_v46 = vcombine.low %v14928_v47, %v14935_v36  ;;  %v8796_v63 = vrot.slane %v12718_v17, 5  ;;  %v8800_v58 = vrot.slane %v12719_v15, 5  ;;  %v8807_v62 = vrot.slane %v12720_v0, 5  ;;  %v12722_v10 = vld [vmem:[%s13037_s13 + $0x10] sm:$0xf]  ;;  %v12596_v50 = vld [vmem:[%s12859_s6 + $0x54] sm:$0xff]  }
 0x1ec   : > { %v14967_v55 = vsel %vm12940_vm6, %v8781_v5, %v8782_v38  ;;  %v14971_v48 = vsel %vm12940_vm6, %v8788_v44, %v8789_v28  ;;  %v4105_v21 = vshrl.u32 %v10284_v14, 16  ;;  %v4108_v20 = vshll.u32 %v10284_v14, 16  ;;  %v12724_v22 = vld [vmem:[%s13037_s13 + $0x14] sm:$0x1]  ;;  %v12725_v28 = vld [vmem:[%s13037_s13 + $0x1c] sm:$0xf] }
 0x1ed   : > { %v8795_v35 = vrot.slane %v8793_v19, 4  ;;  %v10912_v32 = vrot.slane %v10896_v13, 9  ;;  %v8803_v41 = vrot.slane %v12721_v40, 5  ;;  %v10913_v27 = vrot.slane %v10897_v16, 9  ;;  %v10898_v7 = vld [vmem:[%s13037_s13 + $0xc0] sm:$0xe] }
 0x1ee   : > { %v8802_v59 = vrot.slane %v8800_v58, 4  ;;  %v4107_v1 = vrot.slane %v4105_v21, 4  ;;  %v4110_v25 = vrot.slane %v4108_v20, 5  ;;  %v4114_v45 = vshll.u32 %v12722_v10, 16  ;;  %v12726_v13 = vld [vmem:[%s13037_s13 + $0xc4] sm:$0xf] }
 0x1ef   : > { %11572 = vmatmul.mubr.msk.bf16.gmra.mrb[4].mxu1 %vm411_vm0, %v12591_v31  ;;  %v8809_v33 = vrot.slane %v8807_v62, 4  ;;  %v8810_v57 = vrot.slane %v12723_v49, 5  ;;  %v4118_v18 = vshrl.u32 %v12722_v10, 16  ;;  %v4129_v43 = vshrl.u32 %v10287_v9, 16  ;;  %v12597_v10 = vld [vmem:[%s12859_s6 + $0x60] sm:$0xff]  }
 0x1f0   : > { %11575 = vmatprep.mubr.msk.bf16.mxu1 %vm411_vm0, %v12594_v3  ;;  %v14986_v60 = vsel %vm12940_vm6, %v10911_v37, %v8793_v19  ;;  %v4111_v24 = vor.u32 %v4110_v25, %v4107_v1  ;;  %v4124_v12 = vshll.u32 %v12724_v22, 16  ;;  %v14992_v38 = vsel %vm12940_vm6, %v8795_v35, %v8796_v63  ;;  %v12730_v22 = vld [vmem:[%s13037_s13 + $0xd4] sm:$0x1]  ;;  %v12600_v47 = vld [vmem:[%s12859_s6 + $0x84] sm:$0xff]  }
 0x1f1   : > { %11878 = vmatmul.mubr.msk.bf16.gmra.mrb[4].mxu0 %vm411_vm0, %v10953_v4  ;;  %v4116_v4 = vrot.slane %v4114_v45, 5  ;;  %v14996_v11 = vsel %vm12940_vm6, %v10912_v32, %v8800_v58  ;;  %v15000_v31 = vsel %vm12940_vm6, %v10913_v27, %v8807_v62  ;;  %v4120_v5 = vrot.slane %v4118_v18, 4  ;;  %v12727_v58 = vld [vmem:[%s13037_s13 + $0x20] sm:$0x1]  ;;  %v10290_v62 = vld [vmem:[%s13037_s13 + $0x24] sm:$0xf] }
 0x1f2   : > { %11881 = vmatprep.mubr.msk.bf16.mxu0 %vm411_vm0, %v10954_v26  ;;  %v15004_v44 = vsel %vm12940_vm6, %v8802_v59, %v8803_v41  ;;  %v4132_v54 = vshll.u32 %v10287_v9, 16  ;;  %v4138_v3 = vshll.u32 %v12725_v28, 16  ;;  %v4142_v26 = vshrl.u32 %v12725_v28, 16  ;;  %v15032_v59 = vld [vmem:[%s13037_s13 + $0xcc] sm:$0xe] }
 0x1f3   : > { %v15010_v19 = vsel %vm12940_vm6, %v8809_v33, %v8810_v57  ;;  %v4121_v14 = vor.u32 %v4120_v5, %v4116_v4  ;;  %v4131_v37 = vrot.slane %v4129_v43, 4  ;;  %v8814_v16 = vrot.slane %v12726_v13, 5  ;;  %v12729_v43 = vld [vmem:[%s13037_s13 + $0xd0] sm:$0xf]  ;;  %v12731_v5 = vld [vmem:[%s13037_s13 + $0x28] sm:$0xf] }
 0x1f4   : > { %v4112_v17 = vrot.slane %v4111_v24, 4  ;;  %v4126_v63 = vrot.slane %v4124_v12, 5  ;;  %v4134_v15 = vrot.slane %v4132_v54, 5  ;;  %v4148_v0 = vshll.u32 %v12727_v58, 16  ;;  %v10293_v24 = vld [vmem:[%s13037_s13 + $0x30] sm:$0xf] }
 0x1f5   : > { %v4122_v21 = vrot.slane %v4121_v14, 4  ;;  %v15017_v20 = vrot.slane %v4138_v3, 5  ;;  %v4144_v9 = vrot.slane %v4142_v26, 4  ;;  %v10914_v35 = vrot.slane %v10898_v7, 9  ;;  %v12732_v13 = vld [vmem:[%s13037_s13 + $0x2c] sm:$0x1] }
 0x1f6   : > { %v10959_v32 = vcombine.low %v14951_v2, %v14967_v55  ;;  %v10960_v40 = vcombine.low %v14955_v30, %v14971_v48  ;;  %v10961_v41 = vcombine.low %v14986_v60, %v14992_v38  ;;  %v10962_v27 = vcombine.low %v14996_v11, %v15004_v44  ;;  %v12740_v30 = vld [vmem:[%s13037_s13 + $0x44] sm:$0x1]  ;;  %v12604_v44 = vld [vmem:[%s12859_s6 + $0xb4] sm:$0xff]  }
 0x1f7   : > { %11576 = vmatmul.mubr.msk.bf16.gmra.mrb[8].mxu1 %vm411_vm0, %v12595_v39  ;;  %v4135_v8 = vor.u32 %v4134_v15, %v4131_v37  ;;  %v8816_v53 = vrot.slane %v8814_v16, 4  ;;  %v4153_v25 = vshrl.u32 %v10290_v62, 16  ;;  %v10963_v45 = vcombine.low %v15000_v31, %v15010_v19 }
 0x1f8   : > { %11579 = vmatprep.mubr.msk.bf16.mxu1 %vm411_vm0, %v12596_v50  ;;  %v4117_v33 = vsel %vm12898_vm4, %v4112_v17, %v4116_v4  ;;  %v4127_v61 = vsel %vm12898_vm4, %v4122_v21, %v4126_v63  ;;  %v15046_v51 = vrot.slane %v4148_v0, 5  ;;  %v4145_v49 = vor.u32 %v4144_v9, %v15017_v20  ;;  %v12733_v0 = vld [vmem:[%s13037_s13 + $0x34] sm:$0xf] }
 0x1f9   : > { %11882 = vmatmul.mubr.msk.bf16.gmra.mrb[8].mxu0 %vm411_vm0, %v10955_v29  ;;  %v12728_v29 = vld [vmem:[%s13037_s13 + $0xc8] sm:$0x1]  ;;  %v15052_v57 = vsel %vm12940_vm6, %v10914_v35, %v8814_v16  ;;  %v10915_v18 = vrot.slane %v15032_v59, 9  ;;  %v8821_v39 = vrot.slane %v12729_v43, 5  ;;  %v8824_v4 = vrot.slane %v12730_v22, 5 }
 0x1fa   : > { %11885 = vmatprep.mubr.msk.bf16.mxu0 %vm411_vm0, %v10956_v6  ;;  %v8817_v1 = vrot.slane %v12728_v29, 5  ;;  %v12598_v6 = vld [vmem:[%s12859_s6 + $0x6c] sm:$0xff]   ;;  %v4155_v12 = vrot.slane %v4153_v25, 4  ;;  %v4156_v50 = vshll.u32 %v10290_v62, 16  ;;  %v4162_v54 = vshll.u32 %v12731_v5, 16 }
 0x1fb   : > { %v15059_v28 = vcombine.low %v4117_v33, %v4127_v61  ;;  %v15061_v3 = vrot.slane %v4135_v8, 4  ;;  %v4166_v7 = vshrl.u32 %v12731_v5, 16  ;;  %v4172_v16 = vshll.u32 %v12732_v13, 16  ;;  %v10916_v8 = vld [vmem:[%s12859_s6 + $0x18] sm:$0xe] }
 0x1fc   : > { %v15065_v26 = vsel %vm12940_vm6, %v8816_v53, %v8817_v1  ;;  %v4158_v14 = vrot.slane %v4156_v50, 5  ;;  %v15068_v37 = vrot.slane %v4162_v54, 5  ;;  %v4177_v17 = vshrl.u32 %v10293_v24, 16  ;;  %v12599_v53 = vld [vmem:[%s12859_s6 + $0x78] sm:$0xff]   ;;  %v10917_v22 = vld [vmem:[%s12859_s6 + $0x24] sm:$0xe] }
 0x1fd   : > { %v15072_v63 = vrot.slane %v4145_v49, 4  ;;  %v4168_v15 = vrot.slane %v4166_v7, 4  ;;  %v4180_v58 = vshll.u32 %v10293_v24, 16  ;;  %v4186_v62 = vshll.u32 %v12733_v0, 16  ;;  %v12735_v61 = vld [vmem:[%s12859_s6 + $0x1c] sm:$0xf] }
 0x1fe   : > { %v10964_v21 = vcombine.low %v15052_v57, %v15065_v26  ;;  %v4159_v9 = vor.u32 %v4158_v14, %v4155_v12  ;;  %v4179_v35 = vrot.slane %v4177_v17, 4  ;;  %v4190_v59 = vshrl.u32 %v12733_v0, 16  ;;  %v10296_v49 = vld [vmem:[%s13037_s13 + $0x3c] sm:$0xf]  ;;  %v12736_v13 = vld [vmem:[%s12859_s6 + $0x20] sm:$0x1] }
 0x1ff   : > { %11580 = vmatmul.mubr.msk.bf16.gmra.mrb[12].mxu1 %vm411_vm0, %v12597_v10  ;;  %v8823_v29 = vrot.slane %v8821_v39, 4  ;;  %v4169_v52 = vor.u32 %v4168_v15, %v15068_v37  ;;  %v4182_v56 = vrot.slane %v4180_v58, 5  ;;  %v15090_v1 = vrot.slane %v4172_v16, 5  ;;  %v12734_v10 = vld [vmem:[%s13037_s13 + $0x38] sm:$0x1] }
 0x200   : > { %11583 = vmatprep.mubr.msk.bf16.mxu1 %vm411_vm0, %v12598_v6  ;;  %v4192_v25 = vrot.slane %v4190_v59, 4  ;;  %v4196_v33 = vshll.u32 %v12734_v10, 16  ;;  %v8892_v6 = vrot.slane %v12735_v61, 5  ;;  %v15096_v36 = vrot.slane %v4159_v9, 4  ;;  %v12737_v17 = vld [vmem:[%s12859_s6 + $0x28] sm:$0xf] }
 0x201   : > { %11886 = vmatmul.mubr.msk.bf16.gmra.mrb[12].mxu0 %vm411_vm0, %v10957_v42  ;;  %v15088_v42 = vrot.slane %v4186_v62, 5  ;;  %v4183_v43 = vor.u32 %v4182_v56, %v4179_v35  ;;  %v10932_v24 = vrot.slane %v10916_v8, 9  ;;  %v4141_v12 = vsel %vm12898_vm4, %v15061_v3, %v15017_v20  ;;  %v12738_v35 = vld [vmem:[%s12859_s6 + $0x2c] sm:$0x1]  ;;  %v10299_v8 = vld [vmem:[%s13037_s13 + $0x48] sm:$0xf] }
 0x202   : > { %11889 = vmatprep.mubr.msk.bf16.mxu0 %vm411_vm0, %v10958_v46  ;;  %v15098_v46 = vrot.slane %v4169_v52, 4  ;;  %v4151_v50 = vsel %vm12898_vm4, %v15072_v63, %v15046_v51  ;;  %v15111_v5 = vsel %vm12940_vm6, %v10915_v18, %v8821_v39  ;;  %v8894_v14 = vrot.slane %v8892_v6, 4  ;;  %v12739_v52 = vld [vmem:[%s13037_s13 + $0x40] sm:$0xf]  ;;  %v12744_v51 = vld [vmem:[%s12859_s6 + $0x38] sm:$0x1] }
 0x203   : > { %v4193_v54 = vor.u32 %v4192_v25, %v15088_v42  ;;  %v15114_v7 = vrot.slane %v4183_v43, 4  ;;  %v8895_v16 = vrot.slane %v12736_v13, 5  ;;  %v8899_v15 = vrot.slane %v12737_v17, 5  ;;  %v12601_v25 = vld [vmem:[%s12859_s6 + $0x90] sm:$0xff]   ;;  %v12603_v63 = vld [vmem:[%s12859_s6 + $0xa8] sm:$0xff]  }
 0x204   : > { %v15121_v58 = vsel %vm12940_vm6, %v8823_v29, %v8824_v4  ;;  %v15123_v18 = vrot.slane %v4196_v33, 5  ;;  %v10933_v39 = vrot.slane %v10917_v22, 9  ;;  %v4201_v0 = vshrl.u32 %v10296_v49, 16  ;;  %v12751_v57 = vld [vmem:[%s12859_s6 + $0x4c] sm:$0xf] }
 0x205   : > { %v4165_v62 = vsel %vm12898_vm4, %v15096_v36, %v15068_v37  ;;  %v4175_v9 = vsel %vm12898_vm4, %v15098_v46, %v15090_v1  ;;  %v15136_v4 = vsel %vm12940_vm6, %v10932_v24, %v8892_v6  ;;  %v8902_v59 = vrot.slane %v12738_v35, 5 }
 0x206   : > { %v4194_v37 = vrot.slane %v4193_v54, 4  ;;  %v4204_v29 = vshll.u32 %v10296_v49, 16  ;;  %v4210_v56 = vshll.u32 %v12739_v52, 16  ;;  %v4189_v1 = vsel %vm12898_vm4, %v15114_v7, %v15088_v42  ;;  %v10918_v54 = vld [vmem:[%s12859_s6 + $0x30] sm:$0xe] }
 0x207   : > { %11584 = vmatmul.mubr.msk.bf16.gmra.mrb[16].mxu1 %vm411_vm0, %v12599_v53  ;;  %v4203_v53 = vrot.slane %v4201_v0, 4  ;;  %v15155_v2 = vsel %vm12940_vm6, %v8894_v14, %v8895_v16  ;;  %v8901_v55 = vrot.slane %v8899_v15, 4  ;;  %v4220_v48 = vshll.u32 %v12740_v30, 16  ;;  %v12743_v0 = vld [vmem:[%s12859_s6 + $0x34] sm:$0xf] }
 0x208   : > { %11587 = vmatprep.mubr.msk.bf16.mxu1 %vm411_vm0, %v12600_v47  ;;  %v4206_v10 = vrot.slane %v4204_v29, 5  ;;  %v15158_v33 = vrot.slane %v4210_v56, 5  ;;  %v4225_v61 = vshrl.u32 %v10299_v8, 16  ;;  %v15164_v6 = vsel %vm12940_vm6, %v10933_v39, %v8899_v15  ;;  %v12741_v47 = vld [vmem:[%s13037_s13 + $0x4c] sm:$0xf] }
 0x209   : > { %11890 = vmatmul.mubr.msk.bf16.gmra.mrb[16].mxu0 %vm411_vm0, %v10959_v32  ;;  %v4214_v32 = vshrl.u32 %v12739_v52, 16  ;;  %v4228_v49 = vshll.u32 %v10299_v8, 16  ;;  %v4234_v36 = vshll.u32 %v12741_v47, 16  ;;  %v4199_v46 = vsel %vm12898_vm4, %v4194_v37, %v15123_v18  ;;  %v12742_v18 = vld [vmem:[%s13037_s13 + $0x50] sm:$0x1] }
 0x20a   : > { %11893 = vmatprep.mubr.msk.bf16.mxu0 %vm411_vm0, %v10960_v40  ;;  %v12602_v40 = vld [vmem:[%s12859_s6 + $0x9c] sm:$0xff]   ;;  %v4207_v43 = vor.u32 %v4206_v10, %v4203_v53  ;;  %v4227_v24 = vrot.slane %v4225_v61, 4  ;;  %v4238_v22 = vshrl.u32 %v12741_v47, 16  ;;  %v15173_v7 = vsel %vm12940_vm6, %v8901_v55, %v8902_v59  ;;  %v10302_v8 = vld [vmem:[%s13037_s13 + $0x54] sm:$0xf] }
 0x20b   : > { %v4216_v42 = vrot.slane %v4214_v32, 4  ;;  %v4230_v13 = vrot.slane %v4228_v49, 5  ;;  %v15176_v16 = vrot.slane %v4234_v36, 5  ;;  %v15179_v17 = vrot.slane %v4220_v48, 5  ;;  %v15190_v52 = vld [vmem:[%s12859_s6 + $0x3c] sm:$0xe] }
 0x20c   : > { %v4240_v15 = vrot.slane %v4238_v22, 4  ;;  %v4244_v39 = vshll.u32 %v12742_v18, 16  ;;  %v8906_v35 = vrot.slane %v12743_v0, 5  ;;  %v15185_v59 = vrot.slane %v4207_v43, 4  ;;  %v10305_v10 = vld [vmem:[%s13037_s13 + $0x60] sm:$0xf] }
 0x20d   : > { %v4217_v14 = vor.u32 %v4216_v42, %v15158_v33  ;;  %v4231_v53 = vor.u32 %v4230_v13, %v4227_v24  ;;  %v10934_v29 = vrot.slane %v10918_v54, 9  ;;  %v15206_v56 = vcombine.low %v4141_v12, %v4151_v50  ;;  %v12745_v30 = vld [vmem:[%s12859_s6 + $0x40] sm:$0xf]  ;;  %v12746_v42 = vld [vmem:[%s13037_s13 + $0x58] sm:$0xf] }
 0x20e   : > { %v10965_v55 = vcombine.low %v15111_v5, %v15121_v58  ;;  %v15210_v32 = vcombine.low %v4165_v62, %v4175_v9  ;;  %v10985_v60 = vcombine.low %v15136_v4, %v15155_v2  ;;  %v15218_v38 = vcombine.low %v4189_v1, %v4199_v46  ;;  %v12747_v36 = vld [vmem:[%s12859_s6 + $0x44] sm:$0x1]  ;;  %v12748_v54 = vld [vmem:[%s13037_s13 + $0x5c] sm:$0x1] }
 0x20f   : > { %11588 = vmatmul.mubr.msk.bf16.gmra.mrb[20].mxu1 %vm411_vm0, %v12601_v25  ;;  %v15187_v37 = vrot.slane %v4217_v14, 4  ;;  %v4241_v20 = vor.u32 %v4240_v15, %v15176_v16  ;;  %v8909_v3 = vrot.slane %v12744_v51, 5  ;;  %v10986_v12 = vcombine.low %v15164_v6, %v15173_v7 }
 0x210   : > { %11591 = vmatprep.mubr.msk.bf16.mxu1 %vm411_vm0, %v12602_v40  ;;  %v4246_v50 = vrot.slane %v4244_v39, 5  ;;  %v10935_v62 = vrot.slane %v15190_v52, 9  ;;  %v4249_v11 = vshrl.u32 %v10302_v8, 16  ;;  %v4232_v1 = vrot.slane %v4231_v53, 4  ;;  %v12749_v39 = vld [vmem:[%s13037_s13 + $0x64] sm:$0xf] }
 0x211   : > { %11894 = vmatmul.mubr.msk.bf16.gmra.mrb[20].mxu0 %vm411_vm0, %v10961_v41  ;;  %v8908_v41 = vrot.slane %v8906_v35, 4  ;;  %v4223_v9 = vsel %vm12898_vm4, %v15187_v37, %v15179_v17  ;;  %v15237_v25 = vsel %vm12940_vm6, %v10934_v29, %v8906_v35  ;;  %v8913_v48 = vrot.slane %v12745_v30, 5  ;;  %v10920_v53 = vld [vmem:[%s12859_s6 + $0x48] sm:$0xe] }
 0x212   : > { %11897 = vmatprep.mubr.msk.bf16.mxu0 %vm411_vm0, %v10962_v27  ;;  %v4213_v27 = vsel %vm12898_vm4, %v15185_v59, %v15158_v33  ;;  %v4251_v61 = vrot.slane %v4249_v11, 4  ;;  %v4252_v40 = vshll.u32 %v10302_v8, 16  ;;  %v4258_v49 = vshll.u32 %v12746_v42, 16  ;;  %v10308_v11 = vld [vmem:[%s13037_s13 + $0x6c] sm:$0xf] }
 0x213   : > { %v4242_v33 = vrot.slane %v4241_v20, 4  ;;  %v15244_v47 = vsel %vm12940_vm6, %v8908_v41, %v8909_v3  ;;  %v8916_v46 = vrot.slane %v12747_v36, 5  ;;  %v4262_v43 = vshrl.u32 %v12746_v42, 16  ;;  %v12750_v41 = vld [vmem:[%s13037_s13 + $0x68] sm:$0x1] }
 0x214   : > { %v4254_v24 = vrot.slane %v4252_v40, 5  ;;  %v15248_v22 = vrot.slane %v4258_v49, 5  ;;  %v4268_v14 = vshll.u32 %v12748_v54, 16  ;;  %v4273_v13 = vshrl.u32 %v10305_v10, 16 }
 0x215   : > { %v4237_v17 = vsel %vm12898_vm4, %v4232_v1, %v15176_v16  ;;  %v4264_v15 = vrot.slane %v4262_v43, 4  ;;  %v4276_v18 = vshll.u32 %v10305_v10, 16  ;;  %v4282_v0 = vshll.u32 %v12749_v39, 16 }
 0x216   : > { %v8915_v35 = vrot.slane %v8913_v48, 4  ;;  %v4255_v8 = vor.u32 %v4254_v24, %v4251_v61  ;;  %v4275_v59 = vrot.slane %v4273_v13, 4  ;;  %v4286_v37 = vshrl.u32 %v12749_v39, 16  ;;  %v10921_v61 = vld [vmem:[%s12859_s6 + $0x54] sm:$0xe] }
 0x217   : > { %11592 = vmatmul.mubr.msk.bf16.gmra.mrb[24].mxu1 %vm411_vm0, %v12603_v63  ;;  %v4247_v16 = vsel %vm12898_vm4, %v4242_v33, %v4246_v50  ;;  %v4265_v29 = vor.u32 %v4264_v15, %v15248_v22  ;;  %v4278_v31 = vrot.slane %v4276_v18, 5  ;;  %v15268_v19 = vrot.slane %v4282_v0, 5  ;;  %v12752_v33 = vld [vmem:[%s12859_s6 + $0x50] sm:$0x1]  ;;  %v10311_v13 = vld [vmem:[%s13037_s13 + $0x78] sm:$0xf] }
 0x218   : > { %11595 = vmatprep.mubr.msk.bf16.mxu1 %vm411_vm0, %v12604_v44  ;;  %v15271_v52 = vrot.slane %v4268_v14, 5  ;;  %v4288_v20 = vrot.slane %v4286_v37, 4  ;;  %v4292_v51 = vshll.u32 %v12750_v41, 16  ;;  %v8920_v26 = vrot.slane %v12751_v57, 5  ;;  %v12755_v18 = vld [vmem:[%s13037_s13 + $0x70] sm:$0xf] }
 0x219   : > { %11898 = vmatmul.mubr.msk.bf16.gmra.mrb[24].mxu0 %vm411_vm0, %v10963_v45  ;;  %v12605_v45 = vld [vmem:[%s12859_s6 + $0xc0] sm:$0xff]   ;;  %v15277_v3 = vrot.slane %v4265_v29, 4  ;;  %v4279_v63 = vor.u32 %v4278_v31, %v4275_v59  ;;  %v10936_v50 = vrot.slane %v10920_v53, 9  ;;  %v15280_v44 = vcombine.low %v4213_v27, %v4223_v9  ;;  %v12756_v53 = vld [vmem:[%s13037_s13 + $0x7c] sm:$0xf] }
 0x21a   : > { %11901 = vmatprep.mubr.msk.bf16.mxu0 %vm411_vm0, %v10964_v21  ;;  %v15275_v21 = vrot.slane %v4255_v8, 4  ;;  %v15282_v1 = vcombine.low %v4237_v17, %v4247_v16  ;;  %v10987_v10 = vcombine.low %v15237_v25, %v15244_v47  ;;  %v15288_v30 = vsel %vm12940_vm6, %v10935_v62, %v8913_v48  ;;  %v12753_v62 = vld [vmem:[%s12859_s6 + $0x58] sm:$0xf]  ;;  %v12757_v31 = vld [vmem:[%s13037_s13 + $0x74] sm:$0x1] }
 0x21b   : > { %v15291_v40 = vrot.slane %v4279_v63, 4  ;;  %v4289_v42 = vor.u32 %v4288_v20, %v15268_v19  ;;  %v8922_v49 = vrot.slane %v8920_v26, 4  ;;  %v8923_v27 = vrot.slane %v12752_v33, 5  ;;  %v10922_v20 = vld [vmem:[%s12859_s6 + $0x60] sm:$0xe] }
 0x21c   : > { %v15298_v9 = vsel %vm12940_vm6, %v8915_v35, %v8916_v46  ;;  %v4294_v36 = vrot.slane %v4292_v51, 5  ;;  %v8927_v48 = vrot.slane %v12753_v62, 5  ;;  %v4297_v43 = vshrl.u32 %v10308_v11, 16  ;;  %v12758_v63 = vld [vmem:[%s13037_s13 + $0x80] sm:$0x1] }
 0x21d   : > { %v4261_v24 = vsel %vm12898_vm4, %v15275_v21, %v15248_v22  ;;  %v4271_v54 = vsel %vm12898_vm4, %v15277_v3, %v15271_v52  ;;  %v15313_v46 = vsel %vm12940_vm6, %v10936_v50, %v8920_v26  ;;  %v10937_v14 = vrot.slane %v10921_v61, 9  ;;  %v10314_v33 = vld [vmem:[%s13037_s13 + $0x84] sm:$0xf] }
 0x21e   : > { %v4299_v15 = vrot.slane %v4297_v43, 4  ;;  %v4300_v22 = vshll.u32 %v10308_v11, 16  ;;  %v4306_v39 = vshll.u32 %v12755_v18, 16  ;;  %v4285_v5 = vsel %vm12898_vm4, %v15291_v40, %v15268_v19  ;;  %v12759_v11 = vld [vmem:[%s12859_s6 + $0x64] sm:$0xf] }
 0x21f   : > { %11596 = vmatmul.mubr.msk.bf16.gmra.mrb[28].mxu1 %vm411_vm0, %v12605_v45  ;;  %v4290_v58 = vrot.slane %v4289_v42, 4  ;;  %v4310_v0 = vshrl.u32 %v12755_v18, 16  ;;  %v8929_v35 = vrot.slane %v8927_v48, 4  ;;  %v4321_v4 = vshrl.u32 %v10311_v13, 16  ;;  %v12762_v18 = vld [vmem:[%s13037_s13 + $0x88] sm:$0xf] }
 0x220   : > { %11601 = vmatprep.mubr.msk.bf16.mxu1 %vm411_vm0, %v15059_v28  ;;  %v12754_v28 = vld [vmem:[%s12859_s6 + $0x5c] sm:$0x1]  ;;  %v4302_v8 = vrot.slane %v4300_v22, 5  ;;  %v15334_v59 = vrot.slane %v4306_v39, 5  ;;  %v15338_v2 = vsel %vm12940_vm6, %v10937_v14, %v8927_v48  ;;  %v4324_v37 = vshll.u32 %v10311_v13, 16 }
 0x221   : > { %11902 = vmatmul.mubr.msk.bf16.gmra.mrb[28].mxu0 %vm411_vm0, %v10965_v55  ;;  %v8930_v17 = vrot.slane %v12754_v28, 5  ;;  %v15332_v55 = vsel %vm12940_vm6, %v8922_v49, %v8923_v27  ;;  %v4330_v16 = vshll.u32 %v12756_v53, 16  ;;  %v4316_v19 = vshll.u32 %v12757_v31, 16  ;;  %v10923_v48 = vld [vmem:[%s12859_s6 + $0x6c] sm:$0xe] }
 0x222   : > { %11907 = vmatprep.mubr.msk.bf16.mxu0 %vm411_vm0, %v10985_v60  ;;  %v4312_v60 = vrot.slane %v4310_v0, 4  ;;  %v4303_v29 = vor.u32 %v4302_v8, %v4299_v15  ;;  %v4323_v45 = vrot.slane %v4321_v4, 4  ;;  %v4334_v52 = vshrl.u32 %v12756_v53, 16  ;;  %v10317_v28 = vld [vmem:[%s13037_s13 + $0x90] sm:$0xf] }
 0x223   : > { %v4295_v41 = vsel %vm12898_vm4, %v4290_v58, %v4294_v36  ;;  %v4326_v57 = vrot.slane %v4324_v37, 5  ;;  %v15346_v26 = vrot.slane %v4330_v16, 5  ;;  %v15352_v21 = vsel %vm12940_vm6, %v8929_v35, %v8930_v17 }
 0x224   : > { %v4313_v51 = vor.u32 %v4312_v60, %v15334_v59  ;;  %v4336_v3 = vrot.slane %v4334_v52, 4  ;;  %v4340_v50 = vshll.u32 %v12758_v63, 16  ;;  %v8934_v61 = vrot.slane %v12759_v11, 5  ;;  %v12766_v11 = vld [vmem:[%s12859_s6 + $0x7c] sm:$0xf] }
 0x225   : > { %v10988_v40 = vcombine.low %v15288_v30, %v15298_v9  ;;  %v15360_v42 = vrot.slane %v4303_v29, 4  ;;  %v10938_v49 = vrot.slane %v10922_v20, 9  ;;  %v15367_v27 = vcombine.low %v4261_v24, %v4271_v54  ;;  %v12761_v54 = vld [vmem:[%s12859_s6 + $0x68] sm:$0x1]  ;;  %v12764_v29 = vld [vmem:[%s13037_s13 + $0x94] sm:$0xf] }
 0x226   : > { %v4314_v36 = vrot.slane %v4313_v51, 4  ;;  %v4318_v62 = vrot.slane %v4316_v19, 5  ;;  %v15376_v30 = vcombine.low %v4285_v5, %v4295_v41  ;;  %v10990_v6 = vcombine.low %v15338_v2, %v15352_v21 }
 0x227   : > { %11602 = vmatmul.mubr.msk.bf16.vlgmr.msra.gmra.mrb[0].mxu1 %vm411_vm0, %v15206_v56  ;;  %v4327_v56 = vor.u32 %v4326_v57, %v4323_v45  ;;  %v4337_v7 = vor.u32 %v4336_v3, %v15346_v26  ;;  %v4342_v43 = vrot.slane %v4340_v50, 5  ;;  %v8936_v24 = vrot.slane %v8934_v61, 4  ;;  %v10924_v57 = vld [vmem:[%s12859_s6 + $0x78] sm:$0xe]  ;;  %v12765_v3 = vld [vmem:[%s13037_s13 + $0x8c] sm:$0x1] }
 0x228   : > { %11605 = vmatprep.mubr.msk.bf16.mxu1 %vm411_vm0, %v15210_v32  ;;  %v10989_v32 = vcombine.low %v15313_v46, %v15332_v55  ;;  %v8937_v46 = vrot.slane %v12761_v54, 5  ;;  %v4345_v14 = vshrl.u32 %v10314_v33, 16  ;;  %v4309_v25 = vsel %vm12898_vm4, %v15360_v42, %v15334_v59  ;;  %v12763_v55 = vld [vmem:[%s12859_s6 + $0x74] sm:$0x1] }
 0x229   : > { %11908 = vmatmul.mubr.msk.bf16.vlgmr.msra.gmra.mrb[0].mxu0 %vm411_vm0, %v10986_v12  ;;  %v12760_v12 = vld [vmem:[%s12859_s6 + $0x70] sm:$0xf]  ;;  %v4328_v47 = vrot.slane %v4327_v56, 4  ;;  %v10939_v13 = vrot.slane %v10923_v48, 9  ;;  %v4319_v17 = vsel %vm12898_vm4, %v4314_v36, %v4318_v62  ;;  %v4348_v22 = vshll.u32 %v10314_v33, 16 }
 0x22a   : > { %11911 = vmatprep.mubr.msk.bf16.mxu0 %vm411_vm0, %v10987_v10  ;;  %v8941_v9 = vrot.slane %v12760_v12, 5  ;;  %v15389_v10 = vsel %vm12940_vm6, %v10938_v49, %v8934_v61  ;;  %v4347_v15 = vrot.slane %v4345_v14, 4  ;;  %v4354_v39 = vshll.u32 %v12762_v18, 16  ;;  %v12767_v49 = vld [vmem:[%s13037_s13 + $0x98] sm:$0x1] }
 0x22b   : > { %v4338_v5 = vrot.slane %v4337_v7, 4  ;;  %v8944_v0 = vrot.slane %v12763_v55, 5  ;;  %v4358_v35 = vshrl.u32 %v12762_v18, 16  ;;  %v8938_v8 = vsel %vm12940_vm6, %v8936_v24, %v8937_v46  ;;  %v10925_v12 = vld [vmem:[%s12859_s6 + $0x84] sm:$0xe] }
 0x22c   : > { %v8943_v58 = vrot.slane %v8941_v9, 4  ;;  %v4350_v59 = vrot.slane %v4348_v22, 5  ;;  %v15400_v4 = vrot.slane %v4354_v39, 5  ;;  %v4369_v60 = vshrl.u32 %v10317_v28, 16  ;;  %v12768_v24 = vld [vmem:[%s12859_s6 + $0x80] sm:$0x1] }
 0x22d   : > { %v4333_v37 = vsel %vm12898_vm4, %v4328_v47, %v15346_v26  ;;  %v4360_v53 = vrot.slane %v4358_v35, 4  ;;  %v4372_v16 = vshll.u32 %v10317_v28, 16  ;;  %v15411_v31 = vsel %vm12940_vm6, %v10939_v13, %v8941_v9  ;;  %v12769_v46 = vld [vmem:[%s12859_s6 + $0x88] sm:$0xf]  ;;  %v12771_v35 = vld [vmem:[%s12859_s6 + $0x8c] sm:$0x1] }
 0x22e   : > { %v4351_v19 = vor.u32 %v4350_v59, %v4347_v15  ;;  %v4371_v45 = vrot.slane %v4369_v60, 4  ;;  %v4343_v52 = vsel %vm12898_vm4, %v4338_v5, %v4342_v43  ;;  %v15418_v20 = vsel %vm12940_vm6, %v8943_v58, %v8944_v0  ;;  %v12770_v5 = vld [vmem:[%s13037_s13 + $0xa0] sm:$0xf] }
 0x22f   : > { %11606 = vmatmul.mubr.msk.bf16.gmra.mrb[4].mxu1 %vm411_vm0, %v15218_v38  ;;  %v4378_v38 = vshll.u32 %v12764_v29, 16  ;;  %v4374_v41 = vrot.slane %v4372_v16, 5  ;;  %v4361_v26 = vor.u32 %v4360_v53, %v15400_v4  ;;  %v4364_v63 = vshll.u32 %v12765_v3, 16 }
 0x230   : > { %11609 = vmatprep.mubr.msk.bf16.mxu1 %vm411_vm0, %v15280_v44  ;;  %v4382_v44 = vshrl.u32 %v12764_v29, 16  ;;  %v8948_v61 = vrot.slane %v12766_v11, 5  ;;  %v4352_v42 = vrot.slane %v4351_v19, 4  ;;  %v4388_v33 = vshll.u32 %v12767_v49, 16  ;;  %v10926_v29 = vld [vmem:[%s12859_s6 + $0x90] sm:$0xe] }
 0x231   : > { %11912 = vmatmul.mubr.msk.bf16.gmra.mrb[4].mxu0 %vm411_vm0, %v10988_v40  ;;  %v15420_v51 = vrot.slane %v4378_v38, 5  ;;  %v15426_v40 = vcombine.low %v4309_v25, %v4319_v17  ;;  %v4375_v56 = vor.u32 %v4374_v41, %v4371_v45  ;;  %v15430_v36 = vcombine.low %v4333_v37, %v4343_v52  ;;  %v12772_v19 = vld [vmem:[%s13037_s13 + $0xac] sm:$0xf] }
 0x232   : > { %11915 = vmatprep.mubr.msk.bf16.mxu0 %vm411_vm0, %v10989_v32  ;;  %v4384_v50 = vrot.slane %v4382_v44, 4  ;;  %v10320_v32 = vld [vmem:[%s13037_s13 + $0x9c] sm:$0xf]  ;;  %v10991_v62 = vcombine.low %v15389_v10, %v8938_v8  ;;  %v10940_v7 = vrot.slane %v10924_v57, 9  ;;  %v10992_v9 = vcombine.low %v15411_v31, %v15418_v20 }
 0x233   : > { %v8950_v43 = vrot.slane %v8948_v61, 4  ;;  %v8951_v54 = vrot.slane %v12768_v24, 5  ;;  %v8955_v14 = vrot.slane %v12769_v46, 5  ;;  %v4362_v25 = vrot.slane %v4361_v26, 4 }
 0x234   : > { %v4385_v48 = vor.u32 %v4384_v50, %v15420_v51  ;;  %v4366_v47 = vrot.slane %v4364_v63, 5  ;;  %v4376_v10 = vrot.slane %v4375_v56, 4  ;;  %v4393_v13 = vshrl.u32 %v10320_v32, 16  ;;  %v12774_v50 = vld [vmem:[%s12859_s6 + $0x94] sm:$0xf] }
 0x235   : > { %v4357_v28 = vsel %vm12898_vm4, %v4352_v42, %v15400_v4  ;;  %v4390_v15 = vrot.slane %v4388_v33, 5  ;;  %v10941_v22 = vrot.slane %v10925_v12, 9  ;;  %v4396_v39 = vshll.u32 %v10320_v32, 16  ;;  %v12775_v33 = vld [vmem:[%s12859_s6 + $0x98] sm:$0x1] }
 0x236   : > { %v4386_v17 = vrot.slane %v4385_v48, 4  ;;  %v4395_v18 = vrot.slane %v4393_v13, 4  ;;  %v4402_v58 = vshll.u32 %v12770_v5, 16  ;;  %v8952_v55 = vsel %vm12940_vm6, %v8950_v43, %v8951_v54  ;;  %v12776_v54 = vld [vmem:[%s12859_s6 + $0xa0] sm:$0xf] }
 0x237   : > { %11610 = vmatmul.mubr.msk.bf16.gmra.mrb[8].mxu1 %vm411_vm0, %v15282_v1  ;;  %v8949_v1 = vsel %vm12940_vm6, %v10940_v7, %v8948_v61  ;;  %v8957_v0 = vrot.slane %v8955_v14, 4  ;;  %v8958_v2 = vrot.slane %v12771_v35, 5  ;;  %v4406_v21 = vshrl.u32 %v12770_v5, 16  ;;  %v10927_v61 = vld [vmem:[%s12859_s6 + $0x9c] sm:$0xe] }
 0x238   : > { %11613 = vmatprep.mubr.msk.bf16.mxu1 %vm411_vm0, %v15367_v27  ;;  %v10323_v27 = vld [vmem:[%s13037_s13 + $0xa8] sm:$0xf]  ;;  %v4381_v8 = vsel %vm12898_vm4, %v4376_v10, %v15420_v51  ;;  %v4398_v59 = vrot.slane %v4396_v39, 5  ;;  %v15463_v4 = vrot.slane %v4402_v58, 5  ;;  %v4391_v60 = vsel %vm12898_vm4, %v4386_v17, %v4390_v15  ;;  %v12773_v51 = vld [vmem:[%s13037_s13 + $0xa4] sm:$0x1] }
 0x239   : > { %11916 = vmatmul.mubr.msk.bf16.gmra.mrb[8].mxu0 %vm411_vm0, %v10990_v6  ;;  %v4367_v6 = vsel %vm12898_vm4, %v4362_v25, %v4366_v47  ;;  %v4408_v37 = vrot.slane %v4406_v21, 4  ;;  %v4417_v53 = vshrl.u32 %v10323_v27, 16  ;;  %v4420_v16 = vshll.u32 %v10323_v27, 16  ;;  %v12778_v15 = vld [vmem:[%s12859_s6 + $0xa4] sm:$0x1] }
 0x23a   : > { %11919 = vmatprep.mubr.msk.bf16.mxu0 %vm411_vm0, %v10991_v62  ;;  %v10993_v38 = vcombine.low %v8949_v1, %v8952_v55  ;;  %v4399_v31 = vor.u32 %v4398_v59, %v4395_v18  ;;  %v4426_v45 = vshll.u32 %v12772_v19, 16  ;;  %v4430_v44 = vshrl.u32 %v12772_v19, 16  ;;  %v10326_v62 = vld [vmem:[%s13037_s13 + $0xb4] sm:$0xf]  ;;  %v10329_v1 = vld [vmem:[%s13037_s13 + $0xc0] sm:$0xf] }
 0x23b   : > { %v15471_v52 = vsel %vm12940_vm6, %v10941_v22, %v8955_v14  ;;  %v15475_v20 = vsel %vm12940_vm6, %v8957_v0, %v8958_v2  ;;  %v4409_v41 = vor.u32 %v4408_v37, %v15463_v4  ;;  %v4412_v57 = vshll.u32 %v12773_v51, 16  ;;  %v12777_v14 = vld [vmem:[%s13037_s13 + $0xb0] sm:$0x1]  ;;  %v12779_v58 = vld [vmem:[%s13037_s13 + $0xb8] sm:$0xf] }
 0x23c   : > { %v10392_v26 = vcombine.low %v4357_v28, %v4367_v6  ;;  %v15481_v3 = vcombine.low %v4381_v8, %v4391_v60  ;;  %v10942_v63 = vrot.slane %v10926_v29, 9  ;;  %v8962_v11 = vrot.slane %v12774_v50, 5  ;;  %v12780_v8 = vld [vmem:[%s13037_s13 + $0xbc] sm:$0x1]  ;;  %v10928_v60 = vld [vmem:[%s12859_s6 + $0xa8] sm:$0xe] }
 0x23d   : > { %v4400_v42 = vrot.slane %v4399_v31, 4  ;;  %v4419_v56 = vrot.slane %v4417_v53, 4  ;;  %v4422_v49 = vrot.slane %v4420_v16, 5  ;;  %v8965_v32 = vrot.slane %v12775_v33, 5  ;;  %v12781_v29 = vld [vmem:[%s13037_s13 + $0xc4] sm:$0xf] }
 0x23e   : > { %v15492_v48 = vrot.slane %v4426_v45, 5  ;;  %v4432_v7 = vrot.slane %v4430_v44, 4  ;;  %v8964_v12 = vrot.slane %v8962_v11, 4  ;;  %v4414_v43 = vrot.slane %v4412_v57, 5 }
 0x23f   : > { %11614 = vmatmul.mubr.msk.bf16.gmra.mrb[12].mxu1 %vm411_vm0, %v15376_v30  ;;  %v10994_v30 = vcombine.low %v15471_v52, %v15475_v20  ;;  %v10943_v24 = vrot.slane %v10927_v61, 9  ;;  %v8969_v46 = vrot.slane %v12776_v54, 5  ;;  %v4436_v25 = vshll.u32 %v12777_v14, 16 }
 0x240   : > { %11617 = vmatprep.mubr.msk.bf16.mxu1 %vm411_vm0, %v15426_v40  ;;  %v4410_v40 = vrot.slane %v4409_v41, 4  ;;  %v8966_v47 = vsel %vm12940_vm6, %v8964_v12, %v8965_v32  ;;  %v4441_v10 = vshrl.u32 %v10326_v62, 16  ;;  %v4405_v13 = vsel %vm12898_vm4, %v4400_v42, %v15463_v4  ;;  %v10930_v32 = vld [vmem:[%s12859_s6 + $0xc0] sm:$0xe] }
 0x241   : > { %11920 = vmatmul.mubr.msk.bf16.gmra.mrb[12].mxu0 %vm411_vm0, %v10992_v9  ;;  %v8963_v9 = vsel %vm12940_vm6, %v10942_v63, %v8962_v11  ;;  %v4423_v28 = vor.u32 %v4422_v49, %v4419_v56  ;;  %v8971_v17 = vrot.slane %v8969_v46, 4  ;;  %v8972_v22 = vrot.slane %v12778_v15, 5  ;;  %v12782_v63 = vld [vmem:[%s12859_s6 + $0xac] sm:$0xf]  ;;  %v10929_v11 = vld [vmem:[%s12859_s6 + $0xb4] sm:$0xe] }
 0x242   : > { %11923 = vmatprep.mubr.msk.bf16.mxu0 %vm411_vm0, %v10993_v38  ;;  %v4433_v18 = vor.u32 %v4432_v7, %v15492_v48  ;;  %v4443_v39 = vrot.slane %v4441_v10, 4  ;;  %v4444_v5 = vshll.u32 %v10326_v62, 16  ;;  %v4450_v27 = vshll.u32 %v12779_v58, 16  ;;  %v12783_v49 = vld [vmem:[%s12859_s6 + $0xb0] sm:$0x1] }
 0x243   : > { %v4415_v55 = vsel %vm12898_vm4, %v4410_v40, %v4414_v43  ;;  %v10995_v0 = vcombine.low %v8963_v9, %v8966_v47  ;;  %v8970_v35 = vsel %vm12940_vm6, %v10943_v24, %v8969_v46  ;;  %v4454_v2 = vshrl.u32 %v12779_v58, 16  ;;  %v12784_v24 = vld [vmem:[%s12859_s6 + $0xb8] sm:$0xf]  ;;  %v12785_v46 = vld [vmem:[%s12859_s6 + $0xbc] sm:$0x1] }
 0x244   : > { %v4446_v21 = vrot.slane %v4444_v5, 5  ;;  %v15514_v6 = vrot.slane %v4450_v27, 5  ;;  %v4460_v59 = vshll.u32 %v12780_v8, 16  ;;  %v4465_v4 = vshrl.u32 %v10329_v1, 16  ;;  %v12786_v9 = vld [vmem:[%s13037_s13 + $0xc8] sm:$0x1] }
 0x245   : > { %v8973_v37 = vsel %vm12940_vm6, %v8971_v17, %v8972_v22  ;;  %v4456_v53 = vrot.slane %v4454_v2, 4  ;;  %v4468_v16 = vshll.u32 %v10329_v1, 16  ;;  %v4474_v38 = vshll.u32 %v12781_v29, 16  ;;  %v12787_v1 = vld [vmem:[%s12859_s6 + $0xc4] sm:$0xf] }
 0x246   : > { %v4438_v31 = vrot.slane %v4436_v25, 5  ;;  %v4447_v19 = vor.u32 %v4446_v21, %v4443_v39  ;;  %v4478_v45 = vshrl.u32 %v12781_v29, 16  ;;  %v10394_v44 = vcombine.low %v4405_v13, %v4415_v55  ;;  %v12788_v39 = vld [vmem:[%s12859_s6 + $0xc8] sm:$0x1]  ;;  %v12789_v55 = vld [vmem:[%s12859_s6 + $0xd0] sm:$0xf] }
 0x247   : > { %11618 = vmatmul.mubr.msk.bf16.gmra.mrb[16].mxu1 %vm411_vm0, %v15430_v36  ;;  %v4424_v36 = vrot.slane %v4423_v28, 4  ;;  %v4434_v52 = vrot.slane %v4433_v18, 4  ;;  %v4457_v20 = vor.u32 %v4456_v53, %v15514_v6  ;;  %v10944_v41 = vrot.slane %v10928_v60, 9 }
 0x248   : > { %11621 = vmatprep.mubr.msk.bf16.mxu1 %vm411_vm0, %v10392_v26  ;;  %v10996_v51 = vcombine.low %v8970_v35, %v8973_v37  ;;  %v4462_v57 = vrot.slane %v4460_v59, 5  ;;  %v4467_v26 = vrot.slane %v4465_v4, 4  ;;  %v8976_v50 = vrot.slane %v12782_v63, 5 }
 0x249   : > { %11924 = vmatmul.mubr.msk.bf16.gmra.mrb[16].mxu0 %vm411_vm0, %v10994_v30  ;;  %v4470_v61 = vrot.slane %v4468_v16, 5  ;;  %v4476_v42 = vrot.slane %v4474_v38, 5  ;;  %v4480_v56 = vrot.slane %v4478_v45, 4  ;;  %v8979_v33 = vrot.slane %v12783_v49, 5 }
 0x24a   : > { %11927 = vmatprep.mubr.msk.bf16.mxu0 %vm411_vm0, %v10995_v0  ;;  %v4448_v62 = vrot.slane %v4447_v19, 4  ;;  %v4458_v30 = vrot.slane %v4457_v20, 4  ;;  %v8977_v7 = vsel %vm12940_vm6, %v10944_v41, %v8976_v50  ;;  %v8978_v12 = vrot.slane %v8976_v50, 4 }
 0x24b   : > { %v4429_v40 = vsel %vm12898_vm4, %v4424_v36, %v15492_v48  ;;  %v10945_v43 = vrot.slane %v10929_v11, 9  ;;  %v8983_v54 = vrot.slane %v12784_v24, 5  ;;  %v8986_v14 = vrot.slane %v12785_v46, 5  ;;  %v12790_v36 = vld [vmem:[%s12859_s6 + $0xd4] sm:$0x1] }
 0x24c   : > { %v4439_v25 = vsel %vm12898_vm4, %v4434_v52, %v4438_v31  ;;  %v4484_v47 = vshll.u32 %v12786_v9, 16  ;;  %v8980_v10 = vsel %vm12940_vm6, %v8978_v12, %v8979_v33  ;;  %v10946_v13 = vrot.slane %v10930_v32, 9 }
 0x24d   : > { %v4471_v48 = vor.u32 %v4470_v61, %v4467_v26  ;;  %v4481_v28 = vor.u32 %v4480_v56, %v4476_v42  ;;  %v10997_v17 = vcombine.low %v8977_v7, %v8980_v10  ;;  %v8985_v15 = vrot.slane %v8983_v54, 4 }
 0x24e   : > { %v4463_v22 = vsel %vm12898_vm4, %v4458_v30, %v4462_v57  ;;  %v8990_v18 = vrot.slane %v12787_v1, 5  ;;  %v8993_v5 = vrot.slane %v12788_v39, 5  ;;  %v8984_v58 = vsel %vm12940_vm6, %v10945_v43, %v8983_v54 }
 0x24f   : > { %11622 = vmatmul.mubr.msk.bf16.gmra.mrb[20].mxu1 %vm411_vm0, %v15481_v3  ;;  %v4453_v3 = vsel %vm12898_vm4, %v4448_v62, %v15514_v6  ;;  %v8987_v27 = vsel %vm12940_vm6, %v8985_v15, %v8986_v14  ;;  %v8997_v0 = vrot.slane %v12789_v55, 5  ;;  %v10395_v35 = vcombine.low %v4429_v40, %v4439_v25  ;;  %v10931_v6 = vld [vmem:[%s12859_s6 + $0xcc] sm:$0xe]  ;;  %s11020_s6 = sshll.u32 %s15739_s19, 8 }
 0x250   : > { %11625 = vmatprep.mubr.msk.bf16.mxu1 %vm411_vm0, %v10394_v44  ;;  %v8991_v2 = vsel %vm12940_vm6, %v10946_v13, %v8990_v18  ;;  %v8992_v21 = vrot.slane %v8990_v18, 4  ;;  %v10396_v8 = vcombine.low %v4453_v3, %v4463_v22  ;;  %v4472_v59 = vrot.slane %v4471_v48, 4  ;;  %s15582_s20 = scalar_lea.vmem %s15723_s4, %s11020_s6 }
 0x251   : > { %11928 = vmatmul.mubr.msk.bf16.gmra.mrb[20].mxu0 %vm411_vm0, %v10996_v51  ;;  %v4482_v4 = vrot.slane %v4481_v28, 4  ;;  %v4486_v60 = vrot.slane %v4484_v47, 5  ;;  %v10998_v37 = vcombine.low %v8984_v58, %v8987_v27  ;;  %v10947_v29 = vrot.slane %v10931_v6, 9 }
 0x252   : > { %11931 = vmatprep.mubr.msk.bf16.mxu0 %vm411_vm0, %v10997_v17  ;;  %v8994_v53 = vsel %vm12940_vm6, %v8992_v21, %v8993_v5  ;;  %v8999_v38 = vrot.slane %v8997_v0, 4  ;;  %v9000_v31 = vrot.slane %v12790_v36, 5  ;;  %v4477_v19 = vsel %vm12898_vm4, %v4472_v59, %v4476_v42 }
 0x253   : > { %v10999_v16 = vcombine.low %v8991_v2, %v8994_v53  ;;  %v4487_v45 = vsel %vm12898_vm4, %v4482_v4, %v4486_v60  ;;  %v8998_v44 = vsel %vm12940_vm6, %v10947_v29, %v8997_v0 }
 0x254   : > { %v9001_v52 = vsel %vm12940_vm6, %v8999_v38, %v9000_v31  ;;  %v10397_v20 = vcombine.low %v4477_v19, %v4487_v45 }
 0x255   : > { %v11000_v41 = vcombine.low %v8998_v44, %v9001_v52 }
 0x257   : > { %11626 = vmatmul.mubr.msk.bf16.gmra.mrb[24].mxu1 %vm411_vm0, %v10395_v35 }
 0x258   : > { %11629 = vmatprep.mubr.msk.bf16.mxu1 %vm411_vm0, %v10396_v8 }
 0x259   : > { %11932 = vmatmul.mubr.msk.bf16.gmra.mrb[24].mxu0 %vm411_vm0, %v10998_v37 }
 0x25a   : > { %11935 = vmatprep.mubr.msk.bf16.mxu0 %vm411_vm0, %v10999_v16 }
 0x25f   : > { %11630 = vmatmul.mubr.msk.bf16.gmra.mrb[28].mxu1 %vm411_vm0, %v10397_v20 }
 0x261   : > { %11936 = vmatmul.mubr.msk.bf16.gmra.mrb[28].mxu0 %vm411_vm0, %v11000_v41 }
 0x2fa   : > { %v11603_v51 = vpop.f32.mrb[0].mxu1 }
 0x2fb   : > { %v5059_v34 = vpop.f32.mrb[1].mxu1 }
 0x2fc   : > { %v11604_v57 = vpop.f32.mrb[2].mxu1  ;;  %v11909_v23 = vpop.f32.mrb[0].mxu0 }
 0x2fd   : > { %v5062_v26 = vpop.f32.mrb[3].mxu1  ;;  %v11939_v63 = vadd.f32 %v11909_v23, %v11603_v51  ;;  %v9439_v50 = vpop.f32.mrb[1].mxu0 }
 0x2fe   : > { %v11940_v11 = vadd.f32 %v9439_v50, %v5059_v34  ;;  %v11910_v61 = vpop.f32.mrb[2].mxu0 }
 0x2ff   : > { %9600 = vst.msk [vmem:[%s15582_s20 + $0x10] sm:$0xff] %vm411_vm0, %v11939_v63  ;;  %v11941_v42 = vadd.f32 %v11910_v61, %v11604_v57  ;;  %v9442_v56 = vpop.f32.mrb[3].mxu0  ;;  %v9701_v62 = vmul.f32 %v11939_v63, %v11939_v63  ;;  %v9633_v54 = vsel %vm411_vm0, %v11939_v63, 0.0 }
 0x300   : > { %9598 = vst.msk [vmem:[%s15582_s20] sm:$0xff] %vm411_vm0, %v11940_v11  ;;  %v9699_v49 = vmul.f32 %v11940_v11, %v11940_v11  ;;  %v11942_v33 = vadd.f32 %v9442_v56, %v5062_v26  ;;  %v9630_v30 = vsel %vm411_vm0, %v11940_v11, 0.0 }
 0x301   : > { %9601 = vst.msk [vmem:[%s15582_s20 + $0x18] sm:$0xff] %vm411_vm0, %v11941_v42  ;;  %v9702_v43 = vmul.f32 %v11941_v42, %v11941_v42  ;;  %v9734_v17 = vsel %vm411_vm0, %v9701_v62, 0.0  ;;  %v9635_v15 = vsel %vm411_vm0, %v11941_v42, 0.0 }
 0x302   : > { %v11607_v32 = vpop.f32.mrb[4].mxu1  ;;  %9599 = vst.msk [vmem:[%s15582_s20 + $0x8] sm:$0xff] %vm411_vm0, %v11942_v33  ;;  %v9631_v7 = vsel %vm411_vm0, %v11942_v33, 0.0  ;;  %v9700_v12 = vmul.f32 %v11942_v33, %v11942_v33  ;;  %v9731_v14 = vsel %vm411_vm0, %v9699_v49, 0.0 }
 0x303   : > { %v5075_v40 = vpop.f32.mrb[5].mxu1  ;;  %v9632_v24 = vadd.f32 %v9631_v7, %v9630_v30  ;;  %v9736_v1 = vsel %vm411_vm0, %v9702_v43, 0.0 }
 0x304   : > { %v11608_v46 = vpop.f32.mrb[6].mxu1  ;;  %v9732_v25 = vsel %vm411_vm0, %v9700_v12, 0.0  ;;  %v11913_v9 = vpop.f32.mrb[4].mxu0 }
 0x305   : > { %v5078_v47 = vpop.f32.mrb[7].mxu1  ;;  %v9634_v10 = vadd.f32 %v9633_v54, %v9632_v24  ;;  %v9733_v13 = vadd.f32 %v9732_v25, %v9731_v14  ;;  %v11943_v48 = vadd.f32 %v11913_v9, %v11607_v32  ;;  %v9455_v28 = vpop.f32.mrb[5].mxu0 }
 0x306   : > { %v11944_v3 = vadd.f32 %v9455_v28, %v5075_v40  ;;  %v11914_v22 = vpop.f32.mrb[6].mxu0 }
 0x307   : > { %v9735_v18 = vadd.f32 %v9734_v17, %v9733_v13  ;;  %9604 = vst.msk [vmem:[%s15582_s20 + $0x30] sm:$0xff] %vm411_vm0, %v11943_v48  ;;  %v9636_v39 = vadd.f32 %v9635_v15, %v9634_v10  ;;  %v9458_v5 = vpop.f32.mrb[7].mxu0  ;;  %v11945_v55 = vadd.f32 %v11914_v22, %v11608_v46  ;;  %v9705_v4 = vmul.f32 %v11943_v48, %v11943_v48 }
 0x308   : > { %9602 = vst.msk [vmem:[%s15582_s20 + $0x20] sm:$0xff] %vm411_vm0, %v11944_v3  ;;  %v9637_v58 = vsel %vm411_vm0, %v11944_v3, 0.0  ;;  %v9703_v27 = vmul.f32 %v11944_v3, %v11944_v3  ;;  %v11946_v0 = vadd.f32 %v9458_v5, %v5078_v47  ;;  %v9641_v16 = vsel %vm411_vm0, %v11943_v48, 0.0 }
 0x309   : > { %v9638_v35 = vadd.f32 %v9637_v58, %v9636_v39  ;;  %v9737_v2 = vadd.f32 %v9736_v1, %v9735_v18  ;;  %9605 = vst.msk [vmem:[%s15582_s20 + $0x38] sm:$0xff] %vm411_vm0, %v11945_v55  ;;  %v9706_v31 = vmul.f32 %v11945_v55, %v11945_v55  ;;  %v9643_v20 = vsel %vm411_vm0, %v11945_v55, 0.0 }
 0x30a   : > { %v11611_v21 = vpop.f32.mrb[8].mxu1  ;;  %v9738_v6 = vsel %vm411_vm0, %v9703_v27, 0.0  ;;  %9603 = vst.msk [vmem:[%s15582_s20 + $0x28] sm:$0xff] %vm411_vm0, %v11946_v0  ;;  %v9639_v8 = vsel %vm411_vm0, %v11946_v0, 0.0  ;;  %v9704_v53 = vmul.f32 %v11946_v0, %v11946_v0  ;;  %v9742_v57 = vsel %vm411_vm0, %v9705_v4, 0.0 }
 0x30b   : > { %v5091_v59 = vpop.f32.mrb[9].mxu1  ;;  %v9739_v60 = vadd.f32 %v9738_v6, %v9737_v2  ;;  %v9640_v37 = vadd.f32 %v9639_v8, %v9638_v35  ;;  %v9744_v56 = vsel %vm411_vm0, %v9706_v31, 0.0 }
 0x30c   : > { %v11612_v29 = vpop.f32.mrb[10].mxu1  ;;  %v11917_v38 = vpop.f32.mrb[8].mxu0  ;;  %v9740_v45 = vsel %vm411_vm0, %v9704_v53, 0.0 }
 0x30d   : > { %v5094_v36 = vpop.f32.mrb[11].mxu1  ;;  %v9642_v19 = vadd.f32 %v9641_v16, %v9640_v37  ;;  %v11947_v44 = vadd.f32 %v11917_v38, %v11611_v21  ;;  %v9471_v52 = vpop.f32.mrb[9].mxu0  ;;  %v9741_v41 = vadd.f32 %v9740_v45, %v9739_v60 }
 0x30e   : > { %v11948_v51 = vadd.f32 %v9471_v52, %v5091_v59  ;;  %v11918_v34 = vpop.f32.mrb[10].mxu0 }
 0x30f   : > { %9608 = vst.msk [vmem:[%s15582_s20 + $0x50] sm:$0xff] %vm411_vm0, %v11947_v44  ;;  %v9644_v23 = vadd.f32 %v9643_v20, %v9642_v19  ;;  %v11949_v26 = vadd.f32 %v11918_v34, %v11612_v29  ;;  %v9474_v63 = vpop.f32.mrb[11].mxu0  ;;  %v9743_v50 = vadd.f32 %v9742_v57, %v9741_v41  ;;  %v9709_v40 = vmul.f32 %v11947_v44, %v11947_v44 }
 0x310   : > { %9606 = vst.msk [vmem:[%s15582_s20 + $0x40] sm:$0xff] %vm411_vm0, %v11948_v51  ;;  %v9645_v11 = vsel %vm411_vm0, %v11948_v51, 0.0  ;;  %v9707_v61 = vmul.f32 %v11948_v51, %v11948_v51  ;;  %v11950_v42 = vadd.f32 %v9474_v63, %v5094_v36  ;;  %v9649_v24 = vsel %vm411_vm0, %v11947_v44, 0.0 }
 0x311   : > { %v9646_v49 = vadd.f32 %v9645_v11, %v9644_v23  ;;  %9609 = vst.msk [vmem:[%s15582_s20 + $0x58] sm:$0xff] %vm411_vm0, %v11949_v26  ;;  %v9745_v32 = vadd.f32 %v9744_v56, %v9743_v50  ;;  %v9710_v47 = vmul.f32 %v11949_v26, %v11949_v26  ;;  %v9651_v28 = vsel %vm411_vm0, %v11949_v26, 0.0 }
 0x312   : > { %v11615_v33 = vpop.f32.mrb[12].mxu1  ;;  %v9746_v62 = vsel %vm411_vm0, %v9707_v61, 0.0  ;;  %9607 = vst.msk [vmem:[%s15582_s20 + $0x48] sm:$0xff] %vm411_vm0, %v11950_v42  ;;  %v9647_v30 = vsel %vm411_vm0, %v11950_v42, 0.0  ;;  %v9708_v7 = vmul.f32 %v11950_v42, %v11950_v42  ;;  %v9750_v22 = vsel %vm411_vm0, %v9709_v40, 0.0 }
 0x313   : > { %v5107_v12 = vpop.f32.mrb[13].mxu1  ;;  %v9648_v43 = vadd.f32 %v9647_v30, %v9646_v49  ;;  %v9747_v46 = vadd.f32 %v9746_v62, %v9745_v32  ;;  %v9752_v0 = vsel %vm411_vm0, %v9710_v47, 0.0 }
 0x314   : > { %v11616_v54 = vpop.f32.mrb[14].mxu1  ;;  %v9748_v14 = vsel %vm411_vm0, %v9708_v7, 0.0  ;;  %v11921_v25 = vpop.f32.mrb[12].mxu0 }
 0x315   : > { %v5110_v9 = vpop.f32.mrb[15].mxu1  ;;  %v9650_v10 = vadd.f32 %v9649_v24, %v9648_v43  ;;  %v11951_v13 = vadd.f32 %v11921_v25, %v11615_v33  ;;  %v9487_v48 = vpop.f32.mrb[13].mxu0  ;;  %v9749_v17 = vadd.f32 %v9748_v14, %v9747_v46 }
 0x316   : > { %v11952_v15 = vadd.f32 %v9487_v48, %v5107_v12  ;;  %v11922_v3 = vpop.f32.mrb[14].mxu0 }
 0x317   : > { %9612 = vst.msk [vmem:[%s15582_s20 + $0x70] sm:$0xff] %vm411_vm0, %v11951_v13  ;;  %v9652_v1 = vadd.f32 %v9651_v28, %v9650_v10  ;;  %v11953_v18 = vadd.f32 %v11922_v3, %v11616_v54  ;;  %v9490_v39 = vpop.f32.mrb[15].mxu0  ;;  %v9751_v5 = vadd.f32 %v9750_v22, %v9749_v17  ;;  %v9713_v60 = vmul.f32 %v11951_v13, %v11951_v13 }
 0x318   : > { %9610 = vst.msk [vmem:[%s15582_s20 + $0x60] sm:$0xff] %vm411_vm0, %v11952_v15  ;;  %v9653_v58 = vsel %vm411_vm0, %v11952_v15, 0.0  ;;  %v9711_v27 = vmul.f32 %v11952_v15, %v11952_v15  ;;  %v11954_v55 = vadd.f32 %v9490_v39, %v5110_v9  ;;  %v9657_v53 = vsel %vm411_vm0, %v11951_v13, 0.0 }
 0x319   : > { %v9654_v35 = vadd.f32 %v9653_v58, %v9652_v1  ;;  %9613 = vst.msk [vmem:[%s15582_s20 + $0x78] sm:$0xff] %vm411_vm0, %v11953_v18  ;;  %v9753_v21 = vadd.f32 %v9752_v0, %v9751_v5  ;;  %v9714_v19 = vmul.f32 %v11953_v18, %v11953_v18  ;;  %v9659_v20 = vsel %vm411_vm0, %v11953_v18, 0.0 }
 0x31a   : > { %v11619_v2 = vpop.f32.mrb[16].mxu1  ;;  %v9754_v6 = vsel %vm411_vm0, %v9711_v27, 0.0  ;;  %9611 = vst.msk [vmem:[%s15582_s20 + $0x68] sm:$0xff] %vm411_vm0, %v11954_v55  ;;  %v9655_v8 = vsel %vm411_vm0, %v11954_v55, 0.0  ;;  %v9712_v59 = vmul.f32 %v11954_v55, %v11954_v55  ;;  %v9758_v57 = vsel %vm411_vm0, %v9713_v60, 0.0 }
 0x31b   : > { %v5123_v4 = vpop.f32.mrb[17].mxu1  ;;  %v9656_v37 = vadd.f32 %v9655_v8, %v9654_v35  ;;  %v9755_v29 = vadd.f32 %v9754_v6, %v9753_v21  ;;  %v9760_v56 = vsel %vm411_vm0, %v9714_v19, 0.0 }
 0x31c   : > { %v11620_v16 = vpop.f32.mrb[18].mxu1  ;;  %v9756_v38 = vsel %vm411_vm0, %v9712_v59, 0.0  ;;  %v11925_v36 = vpop.f32.mrb[16].mxu0 }
 0x31d   : > { %v5126_v31 = vpop.f32.mrb[19].mxu1  ;;  %v9658_v45 = vadd.f32 %v9657_v53, %v9656_v37  ;;  %v11955_v44 = vadd.f32 %v11925_v36, %v11619_v2  ;;  %v9503_v52 = vpop.f32.mrb[17].mxu0  ;;  %v9757_v41 = vadd.f32 %v9756_v38, %v9755_v29 }
 0x31e   : > { %v11956_v51 = vadd.f32 %v9503_v52, %v5123_v4  ;;  %v11926_v34 = vpop.f32.mrb[18].mxu0 }
 0x31f   : > { %9616 = vst.msk [vmem:[%s15582_s20 + $0x90] sm:$0xff] %vm411_vm0, %v11955_v44  ;;  %v9660_v23 = vadd.f32 %v9659_v20, %v9658_v45  ;;  %v11957_v26 = vadd.f32 %v11926_v34, %v11620_v16  ;;  %v9506_v63 = vpop.f32.mrb[19].mxu0  ;;  %v9759_v50 = vadd.f32 %v9758_v57, %v9757_v41  ;;  %v9717_v40 = vmul.f32 %v11955_v44, %v11955_v44 }
 0x320   : > { %9614 = vst.msk [vmem:[%s15582_s20 + $0x80] sm:$0xff] %vm411_vm0, %v11956_v51  ;;  %v9661_v11 = vsel %vm411_vm0, %v11956_v51, 0.0  ;;  %v9715_v61 = vmul.f32 %v11956_v51, %v11956_v51  ;;  %v11958_v42 = vadd.f32 %v9506_v63, %v5126_v31  ;;  %v9665_v24 = vsel %vm411_vm0, %v11955_v44, 0.0 }
 0x321   : > { %v9662_v49 = vadd.f32 %v9661_v11, %v9660_v23  ;;  %9617 = vst.msk [vmem:[%s15582_s20 + $0x98] sm:$0xff] %vm411_vm0, %v11957_v26  ;;  %v9761_v32 = vadd.f32 %v9760_v56, %v9759_v50  ;;  %v9718_v47 = vmul.f32 %v11957_v26, %v11957_v26  ;;  %v9667_v28 = vsel %vm411_vm0, %v11957_v26, 0.0 }
 0x322   : > { %v11623_v33 = vpop.f32.mrb[20].mxu1  ;;  %v9762_v62 = vsel %vm411_vm0, %v9715_v61, 0.0  ;;  %9615 = vst.msk [vmem:[%s15582_s20 + $0x88] sm:$0xff] %vm411_vm0, %v11958_v42  ;;  %v9663_v30 = vsel %vm411_vm0, %v11958_v42, 0.0  ;;  %v9716_v7 = vmul.f32 %v11958_v42, %v11958_v42  ;;  %v9766_v22 = vsel %vm411_vm0, %v9717_v40, 0.0 }
 0x323   : > { %v5139_v12 = vpop.f32.mrb[21].mxu1  ;;  %v9664_v43 = vadd.f32 %v9663_v30, %v9662_v49  ;;  %v9763_v46 = vadd.f32 %v9762_v62, %v9761_v32  ;;  %v9768_v0 = vsel %vm411_vm0, %v9718_v47, 0.0 }
 0x324   : > { %v11624_v54 = vpop.f32.mrb[22].mxu1  ;;  %v9764_v14 = vsel %vm411_vm0, %v9716_v7, 0.0  ;;  %v11929_v25 = vpop.f32.mrb[20].mxu0 }
 0x325   : > { %v5142_v9 = vpop.f32.mrb[23].mxu1  ;;  %v9666_v10 = vadd.f32 %v9665_v24, %v9664_v43  ;;  %v11959_v13 = vadd.f32 %v11929_v25, %v11623_v33  ;;  %v9519_v48 = vpop.f32.mrb[21].mxu0  ;;  %v9765_v17 = vadd.f32 %v9764_v14, %v9763_v46 }
 0x326   : > { %v11960_v15 = vadd.f32 %v9519_v48, %v5139_v12  ;;  %v11930_v3 = vpop.f32.mrb[22].mxu0 }
 0x327   : > { %9620 = vst.msk [vmem:[%s15582_s20 + $0xb0] sm:$0xff] %vm411_vm0, %v11959_v13  ;;  %v9668_v1 = vadd.f32 %v9667_v28, %v9666_v10  ;;  %v11961_v18 = vadd.f32 %v11930_v3, %v11624_v54  ;;  %v9522_v39 = vpop.f32.mrb[23].mxu0  ;;  %v9767_v5 = vadd.f32 %v9766_v22, %v9765_v17  ;;  %v9721_v60 = vmul.f32 %v11959_v13, %v11959_v13 }
 0x328   : > { %9618 = vst.msk [vmem:[%s15582_s20 + $0xa0] sm:$0xff] %vm411_vm0, %v11960_v15  ;;  %v9669_v58 = vsel %vm411_vm0, %v11960_v15, 0.0  ;;  %v9719_v27 = vmul.f32 %v11960_v15, %v11960_v15  ;;  %v11962_v55 = vadd.f32 %v9522_v39, %v5142_v9  ;;  %v9673_v53 = vsel %vm411_vm0, %v11959_v13, 0.0 }
 0x329   : > { %v9670_v35 = vadd.f32 %v9669_v58, %v9668_v1  ;;  %9621 = vst.msk [vmem:[%s15582_s20 + $0xb8] sm:$0xff] %vm411_vm0, %v11961_v18  ;;  %v9769_v21 = vadd.f32 %v9768_v0, %v9767_v5  ;;  %v9722_v19 = vmul.f32 %v11961_v18, %v11961_v18  ;;  %v9675_v20 = vsel %vm411_vm0, %v11961_v18, 0.0 }
 0x32a   : > { %v11627_v2 = vpop.f32.mrb[24].mxu1  ;;  %v9770_v6 = vsel %vm411_vm0, %v9719_v27, 0.0  ;;  %9619 = vst.msk [vmem:[%s15582_s20 + $0xa8] sm:$0xff] %vm411_vm0, %v11962_v55  ;;  %v9671_v8 = vsel %vm411_vm0, %v11962_v55, 0.0  ;;  %v9720_v59 = vmul.f32 %v11962_v55, %v11962_v55  ;;  %v9774_v57 = vsel %vm411_vm0, %v9721_v60, 0.0 }
 0x32b   : > { %v5155_v4 = vpop.f32.mrb[25].mxu1  ;;  %v9672_v37 = vadd.f32 %v9671_v8, %v9670_v35  ;;  %v9771_v29 = vadd.f32 %v9770_v6, %v9769_v21  ;;  %v9776_v56 = vsel %vm411_vm0, %v9722_v19, 0.0 }
 0x32c   : > { %v11628_v16 = vpop.f32.mrb[26].mxu1  ;;  %v9772_v38 = vsel %vm411_vm0, %v9720_v59, 0.0  ;;  %v11933_v36 = vpop.f32.mrb[24].mxu0 }
 0x32d   : > { %v5158_v31 = vpop.f32.mrb[27].mxu1  ;;  %v9674_v45 = vadd.f32 %v9673_v53, %v9672_v37  ;;  %v11963_v44 = vadd.f32 %v11933_v36, %v11627_v2  ;;  %v9535_v52 = vpop.f32.mrb[25].mxu0  ;;  %v9773_v41 = vadd.f32 %v9772_v38, %v9771_v29 }
 0x32e   : > { %v11964_v51 = vadd.f32 %v9535_v52, %v5155_v4  ;;  %v11934_v34 = vpop.f32.mrb[26].mxu0 }
 0x32f   : > { %9624 = vst.msk [vmem:[%s15582_s20 + $0xd0] sm:$0xff] %vm411_vm0, %v11963_v44  ;;  %v9676_v23 = vadd.f32 %v9675_v20, %v9674_v45  ;;  %v11965_v26 = vadd.f32 %v11934_v34, %v11628_v16  ;;  %v9538_v63 = vpop.f32.mrb[27].mxu0  ;;  %v9775_v50 = vadd.f32 %v9774_v57, %v9773_v41  ;;  %v9725_v40 = vmul.f32 %v11963_v44, %v11963_v44 }
 0x330   : > { %9622 = vst.msk [vmem:[%s15582_s20 + $0xc0] sm:$0xff] %vm411_vm0, %v11964_v51  ;;  %v9677_v11 = vsel %vm411_vm0, %v11964_v51, 0.0  ;;  %v9723_v61 = vmul.f32 %v11964_v51, %v11964_v51  ;;  %v11966_v42 = vadd.f32 %v9538_v63, %v5158_v31  ;;  %v9681_v24 = vsel %vm411_vm0, %v11963_v44, 0.0 }
 0x331   : > { %v9678_v49 = vadd.f32 %v9677_v11, %v9676_v23  ;;  %9625 = vst.msk [vmem:[%s15582_s20 + $0xd8] sm:$0xff] %vm411_vm0, %v11965_v26  ;;  %v9777_v32 = vadd.f32 %v9776_v56, %v9775_v50  ;;  %v9726_v47 = vmul.f32 %v11965_v26, %v11965_v26  ;;  %v9683_v28 = vsel %vm411_vm0, %v11965_v26, 0.0 }
 0x332   : > { %v11631_v33 = vpop.f32.mrb[28].mxu1  ;;  %v9778_v62 = vsel %vm411_vm0, %v9723_v61, 0.0  ;;  %9623 = vst.msk [vmem:[%s15582_s20 + $0xc8] sm:$0xff] %vm411_vm0, %v11966_v42  ;;  %v9679_v30 = vsel %vm411_vm0, %v11966_v42, 0.0  ;;  %v9724_v7 = vmul.f32 %v11966_v42, %v11966_v42  ;;  %v9782_v22 = vsel %vm411_vm0, %v9725_v40, 0.0 }
 0x333   : > { %v5171_v12 = vpop.f32.mrb[29].mxu1  ;;  %v9680_v43 = vadd.f32 %v9679_v30, %v9678_v49  ;;  %v9779_v46 = vadd.f32 %v9778_v62, %v9777_v32  ;;  %v9784_v0 = vsel %vm411_vm0, %v9726_v47, 0.0 }
 0x334   : > { %v11632_v54 = vpop.f32.mrb[30].mxu1  ;;  %v9780_v14 = vsel %vm411_vm0, %v9724_v7, 0.0  ;;  %v11937_v25 = vpop.f32.mrb[28].mxu0 }
 0x335   : > { %v5174_v9 = vpop.f32.mrb[31].mxu1  ;;  %v9682_v10 = vadd.f32 %v9681_v24, %v9680_v43  ;;  %v11967_v13 = vadd.f32 %v11937_v25, %v11631_v33  ;;  %v9551_v48 = vpop.f32.mrb[29].mxu0  ;;  %v9781_v17 = vadd.f32 %v9780_v14, %v9779_v46 }
 0x336   : > { %v11968_v15 = vadd.f32 %v9551_v48, %v5171_v12  ;;  %v11938_v3 = vpop.f32.mrb[30].mxu0 }
 0x337   : > { %9628 = vst.msk [vmem:[%s15582_s20 + $0xf0] sm:$0xff] %vm411_vm0, %v11967_v13  ;;  %v9684_v1 = vadd.f32 %v9683_v28, %v9682_v10  ;;  %v11969_v18 = vadd.f32 %v11938_v3, %v11632_v54  ;;  %v9554_v39 = vpop.f32.mrb[31].mxu0  ;;  %v9783_v5 = vadd.f32 %v9782_v22, %v9781_v17  ;;  %v9729_v59 = vmul.f32 %v11967_v13, %v11967_v13 }
 0x338   : > { %9626 = vst.msk [vmem:[%s15582_s20 + $0xe0] sm:$0xff] %vm411_vm0, %v11968_v15  ;;  %v9685_v58 = vsel %vm411_vm0, %v11968_v15, 0.0  ;;  %v9727_v27 = vmul.f32 %v11968_v15, %v11968_v15  ;;  %v11970_v55 = vadd.f32 %v9554_v39, %v5174_v9  ;;  %v9689_v60 = vsel %vm411_vm0, %v11967_v13, 0.0 }
 0x339   : > { %v9686_v35 = vadd.f32 %v9685_v58, %v9684_v1  ;;  %9629 = vst.msk [vmem:[%s15582_s20 + $0xf8] sm:$0xff] %vm411_vm0, %v11969_v18  ;;  %v9785_v2 = vadd.f32 %v9784_v0, %v9783_v5  ;;  %v9730_v16 = vmul.f32 %v11969_v18, %v11969_v18  ;;  %v9691_v38 = vsel %vm411_vm0, %v11969_v18, 0.0 }
 0x33a   : > { %v9786_v21 = vsel %vm411_vm0, %v9727_v27, 0.0  ;;  %9627 = vst.msk [vmem:[%s15582_s20 + $0xe8] sm:$0xff] %vm411_vm0, %v11970_v55  ;;  %v9687_v6 = vsel %vm411_vm0, %v11970_v55, 0.0  ;;  %v9728_v8 = vmul.f32 %v11970_v55, %v11970_v55  ;;  %v9790_v31 = vsel %vm411_vm0, %v9729_v59, 0.0 }
 0x33b   : > { %v9688_v4 = vadd.f32 %v9687_v6, %v9686_v35  ;;  %v9787_v37 = vadd.f32 %v9786_v21, %v9785_v2  ;;  %v9792_v44 = vsel %vm411_vm0, %v9730_v16, 0.0 }
 0x33c   : > { %v9788_v53 = vsel %vm411_vm0, %v9728_v8, 0.0 }
 0x33d   : > { %v9690_v29 = vadd.f32 %v9689_v60, %v9688_v4  ;;  %v9789_v36 = vadd.f32 %v9788_v53, %v9787_v37 }
 0x33f   : > { %v9692_v19 = vadd.f32 %v9691_v38, %v9690_v29  ;;  %v9791_v45 = vadd.f32 %v9790_v31, %v9789_v36 }
 0x341   : > { %v9693_v52 = vrot.slane %v9692_v19, 4  ;;  %v9793_v20 = vadd.f32 %v9792_v44, %v9791_v45 }
 0x343   : > { %v9694_v41 = vadd.f32 %v9693_v52, %v9692_v19  ;;  %v9794_v51 = vrot.slane %v9793_v20, 4 }
 0x345   : > { %v9695_v34 = vrot.slane %v9694_v41, 2  ;;  %v9795_v57 = vadd.f32 %v9794_v51, %v9793_v20 }
 0x347   : > { %v9696_v23 = vadd.f32 %v9695_v34, %v9694_v41  ;;  %v9796_v26 = vrot.slane %v9795_v57, 2 }
 0x349   : > { %v9697_v63 = vrot.slane %v9696_v23, 1  ;;  %v9797_v50 = vadd.f32 %v9796_v26, %v9795_v57 }
 0x34b   : > { %v9798_v11 = vrot.slane %v9797_v50, 1  ;;  %v9698_v61 = vadd.f32 %v9697_v63, %v9696_v23 }
 0x34d   : > { %v9799_v42 = vadd.f32 %v9798_v11, %v9797_v50 }
 0x34f   : > { %v9801_v56 = vsel %vm9800_vm7, %v9698_v61, %v9799_v42 }
 0x350   : > { %9803 = vst.msk [vmem:[%s255_s24] sm:$0x3] %vm9802_vm8, %v9801_v56 }
 0x351 PF: > { %s16_s18 = sadd.s32 1, %s12797_s18  }
 0x352   : > { %p13_p4 = scmp.ge.s32.totalorder %s16_s18, 4  }
 0x354   :  { %15 = sbr.rel (!%p13_p4) target bundleno = 1 (0x1), region = 101 }

</bundles_post_ra>
